<compile_context>
chip_gen: v7x
topology: tpu7x:2x2x1
jax: 0.10.0
libtpu: 0.0.40
codegen_flags: <defaults>
</compile_context>

<pallas_src>
import functools

import jax
import jax.numpy as jnp
import numpy as np
from jax.experimental import pallas as pl
from jax.experimental.pallas import tpu as pltpu

INPUT_SIZE = 225   # nn.LSTM input_size
SEQ_LEN = 100      # sequence length after reshape/permute
HIDDEN = 1         # nn.LSTM hidden_size (num_layers = 1)

# PyTorch LSTM gate order is [i, f, g, o].  Pre-activation scale so a single
# exp() yields every activation:
#   sigmoid(x) = 1 / (1 + exp(-1 * x))   -> scale 1  (i, f, o)
#   tanh(x)    = 2 / (1 + exp(-2 * x)) - 1 -> scale 2  (g)
_GATE_SCALE = np.array([1.0, 1.0, 2.0, 1.0], np.float32)


def _lstm_cls_kernel(x_ref, wih_ref, whh_ref, b_ref, o_ref, gates_ref,
                     *, seq_len, bpad):
    # x_ref:     (T*Bpad, 225)  time-major input rows (row t*Bpad+b = x[b,:,t])
    # wih_ref:   (225, 4)       pre-scaled input->gate weights  (-s_k * W_ih^T)
    # whh_ref:   (1, 4)         pre-scaled recurrent weights    (-s_k * W_hh)
    # b_ref:     (1, 4)         pre-scaled bias                 (-s_k * (b_ih+b_hh))
    # o_ref:     (Bpad, 1)      sigmoid(h_T)
    # gates_ref: (T*Bpad, 4)    VMEM scratch: pre-scaled gate pre-activations

    # Hot matmul: every timestep's input projection in one MXU call.  The
    # per-gate exp scale is already folded into wih/b, so no per-step rescale.
    gates_ref[...] = (
        jnp.dot(x_ref[...], wih_ref[...], preferred_element_type=jnp.float32)
        + b_ref[...]
    )

    # Loop-invariant broadcast hoisted out of the recurrence (JAX does not CSE
    # broadcast_in_dim inside a loop body).
    whh_b = jnp.broadcast_to(whh_ref[...], (bpad, 4))

    h = jnp.zeros((bpad, 1), jnp.float32)
    c = jnp.zeros((bpad, 1), jnp.float32)

    # Fully unrolled recurrence: static offsets -> aligned addressed loads from
    # the scratch; per step the EUP sees one exp (whole tile), one divide and
    # one tanh instead of the previous five transcendental pushes.
    for t in range(seq_len):
        gx = gates_ref[pl.ds(t * bpad, bpad), :]       # (Bpad, 4), aligned
        z = gx + h * whh_b                             # = -s_k * gate_pre_k
        e = jnp.exp(z)                                 # single EUP push
        r = 1.0 / (1.0 + e)                            # [sig(i), sig(f), sig(2g), sig(o)]
        # Split the gate columns once, after the activation.
        i = r[:, 0:1]
        f = r[:, 1:2]
        g = 2.0 * r[:, 2:3] - 1.0                      # tanh(g) = 2*sigmoid(2g) - 1
        o = r[:, 3:4]
        c = f * c + i * g
        h = o * jnp.tanh(c)                            # second (and last) EUP push

    o_ref[...] = jax.nn.sigmoid(h)


def cls_net_forward(x, params):
    """Pallas implementation of ClsNet.forward."""
    wih, whh, bih, bhh = params  # (4,225), (4,1), (4,), (4,)

    xb = jnp.reshape(x, (-1, INPUT_SIZE, SEQ_LEN))      # (B, 225, 100), free
    B = xb.shape[0]
    T, D = SEQ_LEN, INPUT_SIZE
    bpad = max(8, ((B + 7) // 8) * 8)

    # Minimal host glue: one transpose to time-major + batch pad; the reshape
    # below is a bitcast.
    x_tm = jnp.transpose(xb, (2, 0, 1))                 # (T, B, 225)
    x_tm = jnp.pad(x_tm, ((0, 0), (0, bpad - B), (0, 0)))
    x2 = jnp.reshape(x_tm, (T * bpad, D)).astype(jnp.float32)

    # Fold the per-gate exp scales (-1,-1,-2,-1) into the tiny weights on the
    # host.  Scaling by +-1 / +-2 is exact, so this is bit-identical to
    # scaling the pre-activations in-kernel, and removes a per-step multiply.
    neg_scale = -jnp.asarray(_GATE_SCALE)                               # (4,)
    wih_s = jnp.asarray(wih, jnp.float32).T * neg_scale                 # (225, 4)
    whh_s = jnp.asarray(whh, jnp.float32).reshape(1, 4) * neg_scale     # (1, 4)
    bias_s = ((jnp.asarray(bih, jnp.float32)
               + jnp.asarray(bhh, jnp.float32)).reshape(1, 4) * neg_scale)

    kernel = functools.partial(_lstm_cls_kernel, seq_len=T, bpad=bpad)

    cost = pl.CostEstimate(
        flops=2 * T * bpad * D * 4 + 16 * T * bpad,
        transcendentals=3 * T * bpad,
        bytes_accessed=x2.size * 4 + (D * 4 + 4 + 4 + bpad) * 4,
    )

    # NOTE(scaling): at this toy batch (Bpad=8) everything fits in a single
    # block on every TPU generation.  If the batch grows, tile the batch on a
    # leading grid axis (block ~128-256 padded rows) with
    # dimension_semantics=("parallel", "arbitrary") so v7x's second TensorCore
    # is used and the x block stays within the scoped-VMEM default.
    out = pl.pallas_call(
        kernel,
        out_shape=jax.ShapeDtypeStruct((bpad, 1), jnp.float32),
        grid=(1,),
        in_specs=[
            pl.BlockSpec((T * bpad, D), lambda i: (0, 0)),
            pl.BlockSpec((D, 4), lambda i: (0, 0)),
            pl.BlockSpec((1, 4), lambda i: (0, 0)),
            pl.BlockSpec((1, 4), lambda i: (0, 0)),
        ],
        out_specs=pl.BlockSpec((bpad, 1), lambda i: (0, 0)),
        scratch_shapes=[pltpu.VMEM((T * bpad, 4), jnp.float32)],
        compiler_params=pltpu.CompilerParams(
            dimension_semantics=("arbitrary",)),
        cost_estimate=cost,
    )(x2, wih_s, whh_s, bias_s)

    return out[:B]                                      # (B, 1)


def cls_net_reference(x, params):
    """Pure-JAX reference mirroring torch semantics (for verification)."""
    wih, whh, bih, bhh = params
    xb = jnp.reshape(x, (-1, INPUT_SIZE, SEQ_LEN))
    x_seq = jnp.transpose(xb, (0, 2, 1))                # (B, T, 225)
    B = x_seq.shape[0]
    h = jnp.zeros((B, HIDDEN), jnp.float32)
    c = jnp.zeros((B, HIDDEN), jnp.float32)
    for t in range(SEQ_LEN):
        xt = x_seq[:, t, :]
        gates = xt @ wih.T + bih + h @ whh.T + bhh      # (B, 4) order i,f,g,o
        i = jax.nn.sigmoid(gates[:, 0:1])
        f = jax.nn.sigmoid(gates[:, 1:2])
        g = jnp.tanh(gates[:, 2:3])
        o = jax.nn.sigmoid(gates[:, 3:4])
        c = f * c + i * g
        h = o * jnp.tanh(c)
    return jax.nn.sigmoid(h)                            # (B, 1)


if __name__ == "__main__":
    key = jax.random.PRNGKey(0)
    k_wih, k_whh, k_bih, k_bhh, k_x = jax.random.split(key, 5)

    # PyTorch nn.LSTM default init: U(-1/sqrt(H), 1/sqrt(H)); H = 1 -> U(-1, 1)
    wih = jax.random.uniform(k_wih, (4 * HIDDEN, INPUT_SIZE), jnp.float32, -1.0, 1.0)
    whh = jax.random.uniform(k_whh, (4 * HIDDEN, HIDDEN), jnp.float32, -1.0, 1.0)
    bih = jax.random.uniform(k_bih, (4 * HIDDEN,), jnp.float32, -1.0, 1.0)
    bhh = jax.random.uniform(k_bhh, (4 * HIDDEN,), jnp.float32, -1.0, 1.0)
    params = (wih, whh, bih, bhh)

    # input consistent with x.reshape(-1, 225, 100): batch=2
    x = jax.random.normal(k_x, (2, INPUT_SIZE, SEQ_LEN), jnp.float32)

    out = cls_net_forward(x, params)
    out = jax.block_until_ready(out)

    ref = jax.block_until_ready(cls_net_reference(x, params))
    np.testing.assert_allclose(np.asarray(out), np.asarray(ref),
                               rtol=1e-5, atol=1e-5)
    assert out.shape == (2, 1)

    print("KERNEL_OK")
</pallas_src>

<mosaic_0001>
module attributes {stable_mosaic.version = 11 : i64} {
  func.func @_lstm_cls_kernel(%arg0: i32, %arg1: memref<800x225xf32, #tpu.memory_space<vmem>>, %arg2: memref<225x4xf32, #tpu.memory_space<vmem>>, %arg3: memref<1x4xf32, #tpu.memory_space<vmem>>, %arg4: memref<1x4xf32, #tpu.memory_space<vmem>>, %arg5: memref<8x1xf32, #tpu.memory_space<vmem>>, %arg6: memref<800x4xf32, #tpu.memory_space<vmem>>) attributes {dimension_semantics = [#tpu.dimension_semantics<arbitrary>], iteration_bounds = array<i64: 1>, scalar_prefetch = 0 : i64, scratch_operands = 1 : i64, tpu.core_type = #tpu.core_type<tc>, window_params = [{pipeline_mode = #tpu.pipeline_mode<synchronous>, transform_indices = @transform_0, window_bounds = array<i64: 800, 225>}, {pipeline_mode = #tpu.pipeline_mode<synchronous>, transform_indices = @transform_1, window_bounds = array<i64: 225, 4>}, {pipeline_mode = #tpu.pipeline_mode<synchronous>, transform_indices = @transform_2, window_bounds = array<i64: 1, 4>}, {pipeline_mode = #tpu.pipeline_mode<synchronous>, transform_indices = @transform_3, window_bounds = array<i64: 1, 4>}, {pipeline_mode = #tpu.pipeline_mode<synchronous>, transform_indices = @transform_4, window_bounds = array<i64: 8, 1>}]} {
    %c0 = arith.constant 0 : index
    %c0_0 = arith.constant 0 : index
    %0 = vector.load %arg1[%c0, %c0_0] : memref<800x225xf32, #tpu.memory_space<vmem>>, vector<800x225xf32>
    %c0_1 = arith.constant 0 : index
    %c0_2 = arith.constant 0 : index
    %1 = vector.load %arg2[%c0_1, %c0_2] : memref<225x4xf32, #tpu.memory_space<vmem>>, vector<225x4xf32>
    %cst = arith.constant dense<0.000000e+00> : vector<800x4xf32>
    %2 = tpu.matmul %0, %1, %cst {dimension_numbers = #tpu.dot_dimension_numbers<[1], [0], [0], [1], [0, 0, 1, 1], [], []>} : vector<800x225xf32>, vector<225x4xf32>, vector<800x4xf32> -> vector<800x4xf32>
    %c0_3 = arith.constant 0 : index
    %c0_4 = arith.constant 0 : index
    %3 = vector.load %arg4[%c0_3, %c0_4] : memref<1x4xf32, #tpu.memory_space<vmem>>, vector<1x4xf32>
    %4 = vector.broadcast %3 : vector<1x4xf32> to vector<800x4xf32>
    %5 = arith.addf %2, %4 : vector<800x4xf32>
    %c0_5 = arith.constant 0 : index
    %c0_6 = arith.constant 0 : index
    %6 = vector.load %arg6[%c0_5, %c0_6] : memref<800x4xf32, #tpu.memory_space<vmem>>, vector<800x4xf32>
    tpu.vector_store %arg6[%c0_5, %c0_6], %5 {strides = array<i32>} : memref<800x4xf32, #tpu.memory_space<vmem>>, vector<800x4xf32>,
    %c0_7 = arith.constant 0 : index
    %c0_8 = arith.constant 0 : index
    %7 = vector.load %arg3[%c0_7, %c0_8] : memref<1x4xf32, #tpu.memory_space<vmem>>, vector<1x4xf32>
    %8 = vector.shape_cast %7 : vector<1x4xf32> to vector<1x4xf32>
    %9 = vector.broadcast %8 : vector<1x4xf32> to vector<8x4xf32>
    %cst_9 = arith.constant 0.000000e+00 : f32
    %10 = vector.broadcast %cst_9 : f32 to vector<8x1xf32>
    %cst_10 = arith.constant 0.000000e+00 : f32
    %11 = vector.broadcast %cst_10 : f32 to vector<8x1xf32>
    %c0_11 = arith.constant 0 : index
    %c0_12 = arith.constant 0 : index
    %12 = vector.load %arg6[%c0_11, %c0_12] : memref<800x4xf32, #tpu.memory_space<vmem>>, vector<8x4xf32>
    %13 = vector.broadcast %10 : vector<8x1xf32> to vector<8x4xf32>
    %14 = arith.mulf %13, %9 : vector<8x4xf32>
    %15 = arith.addf %12, %14 : vector<8x4xf32>
    %16 = math.exp %15 : vector<8x4xf32>
    %cst_13 = arith.constant 1.000000e+00 : f32
    %17 = vector.broadcast %cst_13 : f32 to vector<8x4xf32>
    %18 = arith.addf %17, %16 : vector<8x4xf32>
    %cst_14 = arith.constant 1.000000e+00 : f32
    %19 = vector.broadcast %cst_14 : f32 to vector<8x4xf32>
    %20 = arith.divf %19, %18 : vector<8x4xf32>
    %21 = vector.extract_strided_slice %20 {offsets = [0, 0], sizes = [8, 1], strides = [1, 1]} : vector<8x4xf32> to vector<8x1xf32>
    %22 = vector.extract_strided_slice %20 {offsets = [0, 1], sizes = [8, 1], strides = [1, 1]} : vector<8x4xf32> to vector<8x1xf32>
    %23 = vector.extract_strided_slice %20 {offsets = [0, 2], sizes = [8, 1], strides = [1, 1]} : vector<8x4xf32> to vector<8x1xf32>
    %cst_15 = arith.constant 2.000000e+00 : f32
    %24 = vector.broadcast %cst_15 : f32 to vector<8x1xf32>
    %25 = arith.mulf %24, %23 : vector<8x1xf32>
    %cst_16 = arith.constant 1.000000e+00 : f32
    %26 = vector.broadcast %cst_16 : f32 to vector<8x1xf32>
    %27 = arith.subf %25, %26 : vector<8x1xf32>
    %28 = vector.extract_strided_slice %20 {offsets = [0, 3], sizes = [8, 1], strides = [1, 1]} : vector<8x4xf32> to vector<8x1xf32>
    %29 = arith.mulf %22, %11 : vector<8x1xf32>
    %30 = arith.mulf %21, %27 : vector<8x1xf32>
    %31 = arith.addf %29, %30 : vector<8x1xf32>
    %32 = math.tanh %31 : vector<8x1xf32>
    %33 = arith.mulf %28, %32 : vector<8x1xf32>
    %c8 = arith.constant 8 : index
    %c0_17 = arith.constant 0 : index
    %34 = vector.load %arg6[%c8, %c0_17] : memref<800x4xf32, #tpu.memory_space<vmem>>, vector<8x4xf32>
    %35 = vector.broadcast %33 : vector<8x1xf32> to vector<8x4xf32>
    %36 = arith.mulf %35, %9 : vector<8x4xf32>
    %37 = arith.addf %34, %36 : vector<8x4xf32>
    %38 = math.exp %37 : vector<8x4xf32>
    %cst_18 = arith.constant 1.000000e+00 : f32
    %39 = vector.broadcast %cst_18 : f32 to vector<8x4xf32>
    %40 = arith.addf %39, %38 : vector<8x4xf32>
    %cst_19 = arith.constant 1.000000e+00 : f32
    %41 = vector.broadcast %cst_19 : f32 to vector<8x4xf32>
    %42 = arith.divf %41, %40 : vector<8x4xf32>
    %43 = vector.extract_strided_slice %42 {offsets = [0, 0], sizes = [8, 1], strides = [1, 1]} : vector<8x4xf32> to vector<8x1xf32>
    %44 = vector.extract_strided_slice %42 {offsets = [0, 1], sizes = [8, 1], strides = [1, 1]} : vector<8x4xf32> to vector<8x1xf32>
    %45 = vector.extract_strided_slice %42 {offsets = [0, 2], sizes = [8, 1], strides = [1, 1]} : vector<8x4xf32> to vector<8x1xf32>
    %cst_20 = arith.constant 2.000000e+00 : f32
    %46 = vector.broadcast %cst_20 : f32 to vector<8x1xf32>
    %47 = arith.mulf %46, %45 : vector<8x1xf32>
    %cst_21 = arith.constant 1.000000e+00 : f32
    %48 = vector.broadcast %cst_21 : f32 to vector<8x1xf32>
    %49 = arith.subf %47, %48 : vector<8x1xf32>
    %50 = vector.extract_strided_slice %42 {offsets = [0, 3], sizes = [8, 1], strides = [1, 1]} : vector<8x4xf32> to vector<8x1xf32>
    %51 = arith.mulf %44, %31 : vector<8x1xf32>
    %52 = arith.mulf %43, %49 : vector<8x1xf32>
    %53 = arith.addf %51, %52 : vector<8x1xf32>
    %54 = math.tanh %53 : vector<8x1xf32>
    %55 = arith.mulf %50, %54 : vector<8x1xf32>
    %c16 = arith.constant 16 : index
    %c0_22 = arith.constant 0 : index
    %56 = vector.load %arg6[%c16, %c0_22] : memref<800x4xf32, #tpu.memory_space<vmem>>, vector<8x4xf32>
    %57 = vector.broadcast %55 : vector<8x1xf32> to vector<8x4xf32>
    %58 = arith.mulf %57, %9 : vector<8x4xf32>
    %59 = arith.addf %56, %58 : vector<8x4xf32>
    %60 = math.exp %59 : vector<8x4xf32>
    %cst_23 = arith.constant 1.000000e+00 : f32
    %61 = vector.broadcast %cst_23 : f32 to vector<8x4xf32>
    %62 = arith.addf %61, %60 : vector<8x4xf32>
    %cst_24 = arith.constant 1.000000e+00 : f32
    %63 = vector.broadcast %cst_24 : f32 to vector<8x4xf32>
    %64 = arith.divf %63, %62 : vector<8x4xf32>
    %65 = vector.extract_strided_slice %64 {offsets = [0, 0], sizes = [8, 1], strides = [1, 1]} : vector<8x4xf32> to vector<8x1xf32>
    %66 = vector.extract_strided_slice %64 {offsets = [0, 1], sizes = [8, 1], strides = [1, 1]} : vector<8x4xf32> to vector<8x1xf32>
    %67 = vector.extract_strided_slice %64 {offsets = [0, 2], sizes = [8, 1], strides = [1, 1]} : vector<8x4xf32> to vector<8x1xf32>
    %cst_25 = arith.constant 2.000000e+00 : f32
    %68 = vector.broadcast %cst_25 : f32 to vector<8x1xf32>
    %69 = arith.mulf %68, %67 : vector<8x1xf32>
    %cst_26 = arith.constant 1.000000e+00 : f32
    %70 = vector.broadcast %cst_26 : f32 to vector<8x1xf32>
    %71 = arith.subf %69, %70 : vector<8x1xf32>
    %72 = vector.extract_strided_slice %64 {offsets = [0, 3], sizes = [8, 1], strides = [1, 1]} : vector<8x4xf32> to vector<8x1xf32>
    %73 = arith.mulf %66, %53 : vector<8x1xf32>
    %74 = arith.mulf %65, %71 : vector<8x1xf32>
    %75 = arith.addf %73, %74 : vector<8x1xf32>
    %76 = math.tanh %75 : vector<8x1xf32>
    %77 = arith.mulf %72, %76 : vector<8x1xf32>
    %c24 = arith.constant 24 : index
    %c0_27 = arith.constant 0 : index
    %78 = vector.load %arg6[%c24, %c0_27] : memref<800x4xf32, #tpu.memory_space<vmem>>, vector<8x4xf32>
    %79 = vector.broadcast %77 : vector<8x1xf32> to vector<8x4xf32>
    %80 = arith.mulf %79, %9 : vector<8x4xf32>
    %81 = arith.addf %78, %80 : vector<8x4xf32>
    %82 = math.exp %81 : vector<8x4xf32>
    %cst_28 = arith.constant 1.000000e+00 : f32
    %83 = vector.broadcast %cst_28 : f32 to vector<8x4xf32>
    %84 = arith.addf %83, %82 : vector<8x4xf32>
    %cst_29 = arith.constant 1.000000e+00 : f32
    %85 = vector.broadcast %cst_29 : f32 to vector<8x4xf32>
    %86 = arith.divf %85, %84 : vector<8x4xf32>
    %87 = vector.extract_strided_slice %86 {offsets = [0, 0], sizes = [8, 1], strides = [1, 1]} : vector<8x4xf32> to vector<8x1xf32>
    %88 = vector.extract_strided_slice %86 {offsets = [0, 1], sizes = [8, 1], strides = [1, 1]} : vector<8x4xf32> to vector<8x1xf32>
    %89 = vector.extract_strided_slice %86 {offsets = [0, 2], sizes = [8, 1], strides = [1, 1]} : vector<8x4xf32> to vector<8x1xf32>
    %cst_30 = arith.constant 2.000000e+00 : f32
    %90 = vector.broadcast %cst_30 : f32 to vector<8x1xf32>
    %91 = arith.mulf %90, %89 : vector<8x1xf32>
    %cst_31 = arith.constant 1.000000e+00 : f32
    %92 = vector.broadcast %cst_31 : f32 to vector<8x1xf32>
    %93 = arith.subf %91, %92 : vector<8x1xf32>
    %94 = vector.extract_strided_slice %86 {offsets = [0, 3], sizes = [8, 1], strides = [1, 1]} : vector<8x4xf32> to vector<8x1xf32>
    %95 = arith.mulf %88, %75 : vector<8x1xf32>
    %96 = arith.mulf %87, %93 : vector<8x1xf32>
    %97 = arith.addf %95, %96 : vector<8x1xf32>
    %98 = math.tanh %97 : vector<8x1xf32>
    %99 = arith.mulf %94, %98 : vector<8x1xf32>
    %c32 = arith.constant 32 : index
    %c0_32 = arith.constant 0 : index
    %100 = vector.load %arg6[%c32, %c0_32] : memref<800x4xf32, #tpu.memory_space<vmem>>, vector<8x4xf32>
    %101 = vector.broadcast %99 : vector<8x1xf32> to vector<8x4xf32>
    %102 = arith.mulf %101, %9 : vector<8x4xf32>
    %103 = arith.addf %100, %102 : vector<8x4xf32>
    %104 = math.exp %103 : vector<8x4xf32>
    %cst_33 = arith.constant 1.000000e+00 : f32
    %105 = vector.broadcast %cst_33 : f32 to vector<8x4xf32>
    %106 = arith.addf %105, %104 : vector<8x4xf32>
    %cst_34 = arith.constant 1.000000e+00 : f32
    %107 = vector.broadcast %cst_34 : f32 to vector<8x4xf32>
    %108 = arith.divf %107, %106 : vector<8x4xf32>
    %109 = vector.extract_strided_slice %108 {offsets = [0, 0], sizes = [8, 1], strides = [1, 1]} : vector<8x4xf32> to vector<8x1xf32>
    %110 = vector.extract_strided_slice %108 {offsets = [0, 1], sizes = [8, 1], strides = [1, 1]} : vector<8x4xf32> to vector<8x1xf32>
    %111 = vector.extract_strided_slice %108 {offsets = [0, 2], sizes = [8, 1], strides = [1, 1]} : vector<8x4xf32> to vector<8x1xf32>
    %cst_35 = arith.constant 2.000000e+00 : f32
    %112 = vector.broadcast %cst_35 : f32 to vector<8x1xf32>
    %113 = arith.mulf %112, %111 : vector<8x1xf32>
    %cst_36 = arith.constant 1.000000e+00 : f32
    %114 = vector.broadcast %cst_36 : f32 to vector<8x1xf32>
    %115 = arith.subf %113, %114 : vector<8x1xf32>
    %116 = vector.extract_strided_slice %108 {offsets = [0, 3], sizes = [8, 1], strides = [1, 1]} : vector<8x4xf32> to vector<8x1xf32>
    %117 = arith.mulf %110, %97 : vector<8x1xf32>
    %118 = arith.mulf %109, %115 : vector<8x1xf32>
    %119 = arith.addf %117, %118 : vector<8x1xf32>
    %120 = math.tanh %119 : vector<8x1xf32>
    %121 = arith.mulf %116, %120 : vector<8x1xf32>
    %c40 = arith.constant 40 : index
    %c0_37 = arith.constant 0 : index
    %122 = vector.load %arg6[%c40, %c0_37] : memref<800x4xf32, #tpu.memory_space<vmem>>, vector<8x4xf32>
    %123 = vector.broadcast %121 : vector<8x1xf32> to vector<8x4xf32>
    %124 = arith.mulf %123, %9 : vector<8x4xf32>
    %125 = arith.addf %122, %124 : vector<8x4xf32>
    %126 = math.exp %125 : vector<8x4xf32>
    %cst_38 = arith.constant 1.000000e+00 : f32
    %127 = vector.broadcast %cst_38 : f32 to vector<8x4xf32>
    %128 = arith.addf %127, %126 : vector<8x4xf32>
    %cst_39 = arith.constant 1.000000e+00 : f32
    %129 = vector.broadcast %cst_39 : f32 to vector<8x4xf32>
    %130 = arith.divf %129, %128 : vector<8x4xf32>
    %131 = vector.extract_strided_slice %130 {offsets = [0, 0], sizes = [8, 1], strides = [1, 1]} : vector<8x4xf32> to vector<8x1xf32>
    %132 = vector.extract_strided_slice %130 {offsets = [0, 1], sizes = [8, 1], strides = [1, 1]} : vector<8x4xf32> to vector<8x1xf32>
    %133 = vector.extract_strided_slice %130 {offsets = [0, 2], sizes = [8, 1], strides = [1, 1]} : vector<8x4xf32> to vector<8x1xf32>
    %cst_40 = arith.constant 2.000000e+00 : f32
    %134 = vector.broadcast %cst_40 : f32 to vector<8x1xf32>
    %135 = arith.mulf %134, %133 : vector<8x1xf32>
    %cst_41 = arith.constant 1.000000e+00 : f32
    %136 = vector.broadcast %cst_41 : f32 to vector<8x1xf32>
    %137 = arith.subf %135, %136 : vector<8x1xf32>
    %138 = vector.extract_strided_slice %130 {offsets = [0, 3], sizes = [8, 1], strides = [1, 1]} : vector<8x4xf32> to vector<8x1xf32>
    %139 = arith.mulf %132, %119 : vector<8x1xf32>
    %140 = arith.mulf %131, %137 : vector<8x1xf32>
    %141 = arith.addf %139, %140 : vector<8x1xf32>
    %142 = math.tanh %141 : vector<8x1xf32>
    %143 = arith.mulf %138, %142 : vector<8x1xf32>
    %c48 = arith.constant 48 : index
    %c0_42 = arith.constant 0 : index
    %144 = vector.load %arg6[%c48, %c0_42] : memref<800x4xf32, #tpu.memory_space<vmem>>, vector<8x4xf32>
    %145 = vector.broadcast %143 : vector<8x1xf32> to vector<8x4xf32>
    %146 = arith.mulf %145, %9 : vector<8x4xf32>
    %147 = arith.addf %144, %146 : vector<8x4xf32>
    %148 = math.exp %147 : vector<8x4xf32>
    %cst_43 = arith.constant 1.000000e+00 : f32
    %149 = vector.broadcast %cst_43 : f32 to vector<8x4xf32>
    %150 = arith.addf %149, %148 : vector<8x4xf32>
    %cst_44 = arith.constant 1.000000e+00 : f32
    %151 = vector.broadcast %cst_44 : f32 to vector<8x4xf32>
    %152 = arith.divf %151, %150 : vector<8x4xf32>
    %153 = vector.extract_strided_slice %152 {offsets = [0, 0], sizes = [8, 1], strides = [1, 1]} : vector<8x4xf32> to vector<8x1xf32>
    %154 = vector.extract_strided_slice %152 {offsets = [0, 1], sizes = [8, 1], strides = [1, 1]} : vector<8x4xf32> to vector<8x1xf32>
    %155 = vector.extract_strided_slice %152 {offsets = [0, 2], sizes = [8, 1], strides = [1, 1]} : vector<8x4xf32> to vector<8x1xf32>
    %cst_45 = arith.constant 2.000000e+00 : f32
    %156 = vector.broadcast %cst_45 : f32 to vector<8x1xf32>
    %157 = arith.mulf %156, %155 : vector<8x1xf32>
    %cst_46 = arith.constant 1.000000e+00 : f32
    %158 = vector.broadcast %cst_46 : f32 to vector<8x1xf32>
    %159 = arith.subf %157, %158 : vector<8x1xf32>
    %160 = vector.extract_strided_slice %152 {offsets = [0, 3], sizes = [8, 1], strides = [1, 1]} : vector<8x4xf32> to vector<8x1xf32>
    %161 = arith.mulf %154, %141 : vector<8x1xf32>
    %162 = arith.mulf %153, %159 : vector<8x1xf32>
    %163 = arith.addf %161, %162 : vector<8x1xf32>
    %164 = math.tanh %163 : vector<8x1xf32>
    %165 = arith.mulf %160, %164 : vector<8x1xf32>
    %c56 = arith.constant 56 : index
    %c0_47 = arith.constant 0 : index
    %166 = vector.load %arg6[%c56, %c0_47] : memref<800x4xf32, #tpu.memory_space<vmem>>, vector<8x4xf32>
    %167 = vector.broadcast %165 : vector<8x1xf32> to vector<8x4xf32>
    %168 = arith.mulf %167, %9 : vector<8x4xf32>
    %169 = arith.addf %166, %168 : vector<8x4xf32>
    %170 = math.exp %169 : vector<8x4xf32>
    %cst_48 = arith.constant 1.000000e+00 : f32
    %171 = vector.broadcast %cst_48 : f32 to vector<8x4xf32>
    %172 = arith.addf %171, %170 : vector<8x4xf32>
    %cst_49 = arith.constant 1.000000e+00 : f32
    %173 = vector.broadcast %cst_49 : f32 to vector<8x4xf32>
    %174 = arith.divf %173, %172 : vector<8x4xf32>
    %175 = vector.extract_strided_slice %174 {offsets = [0, 0], sizes = [8, 1], strides = [1, 1]} : vector<8x4xf32> to vector<8x1xf32>
    %176 = vector.extract_strided_slice %174 {offsets = [0, 1], sizes = [8, 1], strides = [1, 1]} : vector<8x4xf32> to vector<8x1xf32>
    %177 = vector.extract_strided_slice %174 {offsets = [0, 2], sizes = [8, 1], strides = [1, 1]} : vector<8x4xf32> to vector<8x1xf32>
    %cst_50 = arith.constant 2.000000e+00 : f32
    %178 = vector.broadcast %cst_50 : f32 to vector<8x1xf32>
    %179 = arith.mulf %178, %177 : vector<8x1xf32>
    %cst_51 = arith.constant 1.000000e+00 : f32
    %180 = vector.broadcast %cst_51 : f32 to vector<8x1xf32>
    %181 = arith.subf %179, %180 : vector<8x1xf32>
    %182 = vector.extract_strided_slice %174 {offsets = [0, 3], sizes = [8, 1], strides = [1, 1]} : vector<8x4xf32> to vector<8x1xf32>
    %183 = arith.mulf %176, %163 : vector<8x1xf32>
    %184 = arith.mulf %175, %181 : vector<8x1xf32>
    %185 = arith.addf %183, %184 : vector<8x1xf32>
    %186 = math.tanh %185 : vector<8x1xf32>
    %187 = arith.mulf %182, %186 : vector<8x1xf32>
    %c64 = arith.constant 64 : index
    %c0_52 = arith.constant 0 : index
    %188 = vector.load %arg6[%c64, %c0_52] : memref<800x4xf32, #tpu.memory_space<vmem>>, vector<8x4xf32>
    %189 = vector.broadcast %187 : vector<8x1xf32> to vector<8x4xf32>
    %190 = arith.mulf %189, %9 : vector<8x4xf32>
    %191 = arith.addf %188, %190 : vector<8x4xf32>
    %192 = math.exp %191 : vector<8x4xf32>
    %cst_53 = arith.constant 1.000000e+00 : f32
    %193 = vector.broadcast %cst_53 : f32 to vector<8x4xf32>
    %194 = arith.addf %193, %192 : vector<8x4xf32>
    %cst_54 = arith.constant 1.000000e+00 : f32
    %195 = vector.broadcast %cst_54 : f32 to vector<8x4xf32>
    %196 = arith.divf %195, %194 : vector<8x4xf32>
    %197 = vector.extract_strided_slice %196 {offsets = [0, 0], sizes = [8, 1], strides = [1, 1]} : vector<8x4xf32> to vector<8x1xf32>
    %198 = vector.extract_strided_slice %196 {offsets = [0, 1], sizes = [8, 1], strides = [1, 1]} : vector<8x4xf32> to vector<8x1xf32>
    %199 = vector.extract_strided_slice %196 {offsets = [0, 2], sizes = [8, 1], strides = [1, 1]} : vector<8x4xf32> to vector<8x1xf32>
    %cst_55 = arith.constant 2.000000e+00 : f32
    %200 = vector.broadcast %cst_55 : f32 to vector<8x1xf32>
    %201 = arith.mulf %200, %199 : vector<8x1xf32>
    %cst_56 = arith.constant 1.000000e+00 : f32
    %202 = vector.broadcast %cst_56 : f32 to vector<8x1xf32>
    %203 = arith.subf %201, %202 : vector<8x1xf32>
    %204 = vector.extract_strided_slice %196 {offsets = [0, 3], sizes = [8, 1], strides = [1, 1]} : vector<8x4xf32> to vector<8x1xf32>
    %205 = arith.mulf %198, %185 : vector<8x1xf32>
    %206 = arith.mulf %197, %203 : vector<8x1xf32>
    %207 = arith.addf %205, %206 : vector<8x1xf32>
    %208 = math.tanh %207 : vector<8x1xf32>
    %209 = arith.mulf %204, %208 : vector<8x1xf32>
    %c72 = arith.constant 72 : index
    %c0_57 = arith.constant 0 : index
    %210 = vector.load %arg6[%c72, %c0_57] : memref<800x4xf32, #tpu.memory_space<vmem>>, vector<8x4xf32>
    %211 = vector.broadcast %209 : vector<8x1xf32> to vector<8x4xf32>
    %212 = arith.mulf %211, %9 : vector<8x4xf32>
    %213 = arith.addf %210, %212 : vector<8x4xf32>
    %214 = math.exp %213 : vector<8x4xf32>
    %cst_58 = arith.constant 1.000000e+00 : f32
    %215 = vector.broadcast %cst_58 : f32 to vector<8x4xf32>
    %216 = arith.addf %215, %214 : vector<8x4xf32>
    %cst_59 = arith.constant 1.000000e+00 : f32
    %217 = vector.broadcast %cst_59 : f32 to vector<8x4xf32>
    %218 = arith.divf %217, %216 : vector<8x4xf32>
    %219 = vector.extract_strided_slice %218 {offsets = [0, 0], sizes = [8, 1], strides = [1, 1]} : vector<8x4xf32> to vector<8x1xf32>
    %220 = vector.extract_strided_slice %218 {offsets = [0, 1], sizes = [8, 1], strides = [1, 1]} : vector<8x4xf32> to vector<8x1xf32>
    %221 = vector.extract_strided_slice %218 {offsets = [0, 2], sizes = [8, 1], strides = [1, 1]} : vector<8x4xf32> to vector<8x1xf32>
    %cst_60 = arith.constant 2.000000e+00 : f32
    %222 = vector.broadcast %cst_60 : f32 to vector<8x1xf32>
    %223 = arith.mulf %222, %221 : vector<8x1xf32>
    %cst_61 = arith.constant 1.000000e+00 : f32
    %224 = vector.broadcast %cst_61 : f32 to vector<8x1xf32>
    %225 = arith.subf %223, %224 : vector<8x1xf32>
    %226 = vector.extract_strided_slice %218 {offsets = [0, 3], sizes = [8, 1], strides = [1, 1]} : vector<8x4xf32> to vector<8x1xf32>
    %227 = arith.mulf %220, %207 : vector<8x1xf32>
    %228 = arith.mulf %219, %225 : vector<8x1xf32>
    %229 = arith.addf %227, %228 : vector<8x1xf32>
    %230 = math.tanh %229 : vector<8x1xf32>
    %231 = arith.mulf %226, %230 : vector<8x1xf32>
    %c80 = arith.constant 80 : index
    %c0_62 = arith.constant 0 : index
    %232 = vector.load %arg6[%c80, %c0_62] : memref<800x4xf32, #tpu.memory_space<vmem>>, vector<8x4xf32>
    %233 = vector.broadcast %231 : vector<8x1xf32> to vector<8x4xf32>
    %234 = arith.mulf %233, %9 : vector<8x4xf32>
    %235 = arith.addf %232, %234 : vector<8x4xf32>
    %236 = math.exp %235 : vector<8x4xf32>
    %cst_63 = arith.constant 1.000000e+00 : f32
    %237 = vector.broadcast %cst_63 : f32 to vector<8x4xf32>
    %238 = arith.addf %237, %236 : vector<8x4xf32>
    %cst_64 = arith.constant 1.000000e+00 : f32
    %239 = vector.broadcast %cst_64 : f32 to vector<8x4xf32>
    %240 = arith.divf %239, %238 : vector<8x4xf32>
    %241 = vector.extract_strided_slice %240 {offsets = [0, 0], sizes = [8, 1], strides = [1, 1]} : vector<8x4xf32> to vector<8x1xf32>
    %242 = vector.extract_strided_slice %240 {offsets = [0, 1], sizes = [8, 1], strides = [1, 1]} : vector<8x4xf32> to vector<8x1xf32>
    %243 = vector.extract_strided_slice %240 {offsets = [0, 2], sizes = [8, 1], strides = [1, 1]} : vector<8x4xf32> to vector<8x1xf32>
    %cst_65 = arith.constant 2.000000e+00 : f32
    %244 = vector.broadcast %cst_65 : f32 to vector<8x1xf32>
    %245 = arith.mulf %244, %243 : vector<8x1xf32>
    %cst_66 = arith.constant 1.000000e+00 : f32
    %246 = vector.broadcast %cst_66 : f32 to vector<8x1xf32>
    %247 = arith.subf %245, %246 : vector<8x1xf32>
    %248 = vector.extract_strided_slice %240 {offsets = [0, 3], sizes = [8, 1], strides = [1, 1]} : vector<8x4xf32> to vector<8x1xf32>
    %249 = arith.mulf %242, %229 : vector<8x1xf32>
    %250 = arith.mulf %241, %247 : vector<8x1xf32>
    %251 = arith.addf %249, %250 : vector<8x1xf32>
    %252 = math.tanh %251 : vector<8x1xf32>
    %253 = arith.mulf %248, %252 : vector<8x1xf32>
    %c88 = arith.constant 88 : index
    %c0_67 = arith.constant 0 : index
    %254 = vector.load %arg6[%c88, %c0_67] : memref<800x4xf32, #tpu.memory_space<vmem>>, vector<8x4xf32>
    %255 = vector.broadcast %253 : vector<8x1xf32> to vector<8x4xf32>
    %256 = arith.mulf %255, %9 : vector<8x4xf32>
    %257 = arith.addf %254, %256 : vector<8x4xf32>
    %258 = math.exp %257 : vector<8x4xf32>
    %cst_68 = arith.constant 1.000000e+00 : f32
    %259 = vector.broadcast %cst_68 : f32 to vector<8x4xf32>
    %260 = arith.addf %259, %258 : vector<8x4xf32>
    %cst_69 = arith.constant 1.000000e+00 : f32
    %261 = vector.broadcast %cst_69 : f32 to vector<8x4xf32>
    %262 = arith.divf %261, %260 : vector<8x4xf32>
    %263 = vector.extract_strided_slice %262 {offsets = [0, 0], sizes = [8, 1], strides = [1, 1]} : vector<8x4xf32> to vector<8x1xf32>
    %264 = vector.extract_strided_slice %262 {offsets = [0, 1], sizes = [8, 1], strides = [1, 1]} : vector<8x4xf32> to vector<8x1xf32>
    %265 = vector.extract_strided_slice %262 {offsets = [0, 2], sizes = [8, 1], strides = [1, 1]} : vector<8x4xf32> to vector<8x1xf32>
    %cst_70 = arith.constant 2.000000e+00 : f32
    %266 = vector.broadcast %cst_70 : f32 to vector<8x1xf32>
    %267 = arith.mulf %266, %265 : vector<8x1xf32>
    %cst_71 = arith.constant 1.000000e+00 : f32
    %268 = vector.broadcast %cst_71 : f32 to vector<8x1xf32>
    %269 = arith.subf %267, %268 : vector<8x1xf32>
    %270 = vector.extract_strided_slice %262 {offsets = [0, 3], sizes = [8, 1], strides = [1, 1]} : vector<8x4xf32> to vector<8x1xf32>
    %271 = arith.mulf %264, %251 : vector<8x1xf32>
    %272 = arith.mulf %263, %269 : vector<8x1xf32>
    %273 = arith.addf %271, %272 : vector<8x1xf32>
    %274 = math.tanh %273 : vector<8x1xf32>
    %275 = arith.mulf %270, %274 : vector<8x1xf32>
    %c96 = arith.constant 96 : index
    %c0_72 = arith.constant 0 : index
    %276 = vector.load %arg6[%c96, %c0_72] : memref<800x4xf32, #tpu.memory_space<vmem>>, vector<8x4xf32>
    %277 = vector.broadcast %275 : vector<8x1xf32> to vector<8x4xf32>
    %278 = arith.mulf %277, %9 : vector<8x4xf32>
    %279 = arith.addf %276, %278 : vector<8x4xf32>
    %280 = math.exp %279 : vector<8x4xf32>
    %cst_73 = arith.constant 1.000000e+00 : f32
    %281 = vector.broadcast %cst_73 : f32 to vector<8x4xf32>
    %282 = arith.addf %281, %280 : vector<8x4xf32>
    %cst_74 = arith.constant 1.000000e+00 : f32
    %283 = vector.broadcast %cst_74 : f32 to vector<8x4xf32>
    %284 = arith.divf %283, %282 : vector<8x4xf32>
    %285 = vector.extract_strided_slice %284 {offsets = [0, 0], sizes = [8, 1], strides = [1, 1]} : vector<8x4xf32> to vector<8x1xf32>
    %286 = vector.extract_strided_slice %284 {offsets = [0, 1], sizes = [8, 1], strides = [1, 1]} : vector<8x4xf32> to vector<8x1xf32>
    %287 = vector.extract_strided_slice %284 {offsets = [0, 2], sizes = [8, 1], strides = [1, 1]} : vector<8x4xf32> to vector<8x1xf32>
    %cst_75 = arith.constant 2.000000e+00 : f32
    %288 = vector.broadcast %cst_75 : f32 to vector<8x1xf32>
    %289 = arith.mulf %288, %287 : vector<8x1xf32>
    %cst_76 = arith.constant 1.000000e+00 : f32
    %290 = vector.broadcast %cst_76 : f32 to vector<8x1xf32>
    %291 = arith.subf %289, %290 : vector<8x1xf32>
    %292 = vector.extract_strided_slice %284 {offsets = [0, 3], sizes = [8, 1], strides = [1, 1]} : vector<8x4xf32> to vector<8x1xf32>
    %293 = arith.mulf %286, %273 : vector<8x1xf32>
    %294 = arith.mulf %285, %291 : vector<8x1xf32>
    %295 = arith.addf %293, %294 : vector<8x1xf32>
    %296 = math.tanh %295 : vector<8x1xf32>
    %297 = arith.mulf %292, %296 : vector<8x1xf32>
    %c104 = arith.constant 104 : index
    %c0_77 = arith.constant 0 : index
    %298 = vector.load %arg6[%c104, %c0_77] : memref<800x4xf32, #tpu.memory_space<vmem>>, vector<8x4xf32>
    %299 = vector.broadcast %297 : vector<8x1xf32> to vector<8x4xf32>
    %300 = arith.mulf %299, %9 : vector<8x4xf32>
    %301 = arith.addf %298, %300 : vector<8x4xf32>
    %302 = math.exp %301 : vector<8x4xf32>
    %cst_78 = arith.constant 1.000000e+00 : f32
    %303 = vector.broadcast %cst_78 : f32 to vector<8x4xf32>
    %304 = arith.addf %303, %302 : vector<8x4xf32>
    %cst_79 = arith.constant 1.000000e+00 : f32
    %305 = vector.broadcast %cst_79 : f32 to vector<8x4xf32>
    %306 = arith.divf %305, %304 : vector<8x4xf32>
    %307 = vector.extract_strided_slice %306 {offsets = [0, 0], sizes = [8, 1], strides = [1, 1]} : vector<8x4xf32> to vector<8x1xf32>
    %308 = vector.extract_strided_slice %306 {offsets = [0, 1], sizes = [8, 1], strides = [1, 1]} : vector<8x4xf32> to vector<8x1xf32>
    %309 = vector.extract_strided_slice %306 {offsets = [0, 2], sizes = [8, 1], strides = [1, 1]} : vector<8x4xf32> to vector<8x1xf32>
    %cst_80 = arith.constant 2.000000e+00 : f32
    %310 = vector.broadcast %cst_80 : f32 to vector<8x1xf32>
    %311 = arith.mulf %310, %309 : vector<8x1xf32>
    %cst_81 = arith.constant 1.000000e+00 : f32
    %312 = vector.broadcast %cst_81 : f32 to vector<8x1xf32>
    %313 = arith.subf %311, %312 : vector<8x1xf32>
    %314 = vector.extract_strided_slice %306 {offsets = [0, 3], sizes = [8, 1], strides = [1, 1]} : vector<8x4xf32> to vector<8x1xf32>
    %315 = arith.mulf %308, %295 : vector<8x1xf32>
    %316 = arith.mulf %307, %313 : vector<8x1xf32>
    %317 = arith.addf %315, %316 : vector<8x1xf32>
    %318 = math.tanh %317 : vector<8x1xf32>
    %319 = arith.mulf %314, %318 : vector<8x1xf32>
    %c112 = arith.constant 112 : index
    %c0_82 = arith.constant 0 : index
    %320 = vector.load %arg6[%c112, %c0_82] : memref<800x4xf32, #tpu.memory_space<vmem>>, vector<8x4xf32>
    %321 = vector.broadcast %319 : vector<8x1xf32> to vector<8x4xf32>
    %322 = arith.mulf %321, %9 : vector<8x4xf32>
    %323 = arith.addf %320, %322 : vector<8x4xf32>
    %324 = math.exp %323 : vector<8x4xf32>
    %cst_83 = arith.constant 1.000000e+00 : f32
    %325 = vector.broadcast %cst_83 : f32 to vector<8x4xf32>
    %326 = arith.addf %325, %324 : vector<8x4xf32>
    %cst_84 = arith.constant 1.000000e+00 : f32
    %327 = vector.broadcast %cst_84 : f32 to vector<8x4xf32>
    %328 = arith.divf %327, %326 : vector<8x4xf32>
    %329 = vector.extract_strided_slice %328 {offsets = [0, 0], sizes = [8, 1], strides = [1, 1]} : vector<8x4xf32> to vector<8x1xf32>
    %330 = vector.extract_strided_slice %328 {offsets = [0, 1], sizes = [8, 1], strides = [1, 1]} : vector<8x4xf32> to vector<8x1xf32>
    %331 = vector.extract_strided_slice %328 {offsets = [0, 2], sizes = [8, 1], strides = [1, 1]} : vector<8x4xf32> to vector<8x1xf32>
    %cst_85 = arith.constant 2.000000e+00 : f32
    %332 = vector.broadcast %cst_85 : f32 to vector<8x1xf32>
    %333 = arith.mulf %332, %331 : vector<8x1xf32>
    %cst_86 = arith.constant 1.000000e+00 : f32
    %334 = vector.broadcast %cst_86 : f32 to vector<8x1xf32>
    %335 = arith.subf %333, %334 : vector<8x1xf32>
    %336 = vector.extract_strided_slice %328 {offsets = [0, 3], sizes = [8, 1], strides = [1, 1]} : vector<8x4xf32> to vector<8x1xf32>
    %337 = arith.mulf %330, %317 : vector<8x1xf32>
    %338 = arith.mulf %329, %335 : vector<8x1xf32>
    %339 = arith.addf %337, %338 : vector<8x1xf32>
    %340 = math.tanh %339 : vector<8x1xf32>
    %341 = arith.mulf %336, %340 : vector<8x1xf32>
    %c120 = arith.constant 120 : index
    %c0_87 = arith.constant 0 : index
    %342 = vector.load %arg6[%c120, %c0_87] : memref<800x4xf32, #tpu.memory_space<vmem>>, vector<8x4xf32>
    %343 = vector.broadcast %341 : vector<8x1xf32> to vector<8x4xf32>
    %344 = arith.mulf %343, %9 : vector<8x4xf32>
    %345 = arith.addf %342, %344 : vector<8x4xf32>
    %346 = math.exp %345 : vector<8x4xf32>
    %cst_88 = arith.constant 1.000000e+00 : f32
    %347 = vector.broadcast %cst_88 : f32 to vector<8x4xf32>
    %348 = arith.addf %347, %346 : vector<8x4xf32>
    %cst_89 = arith.constant 1.000000e+00 : f32
    %349 = vector.broadcast %cst_89 : f32 to vector<8x4xf32>
    %350 = arith.divf %349, %348 : vector<8x4xf32>
    %351 = vector.extract_strided_slice %350 {offsets = [0, 0], sizes = [8, 1], strides = [1, 1]} : vector<8x4xf32> to vector<8x1xf32>
    %352 = vector.extract_strided_slice %350 {offsets = [0, 1], sizes = [8, 1], strides = [1, 1]} : vector<8x4xf32> to vector<8x1xf32>
    %353 = vector.extract_strided_slice %350 {offsets = [0, 2], sizes = [8, 1], strides = [1, 1]} : vector<8x4xf32> to vector<8x1xf32>
    %cst_90 = arith.constant 2.000000e+00 : f32
    %354 = vector.broadcast %cst_90 : f32 to vector<8x1xf32>
    %355 = arith.mulf %354, %353 : vector<8x1xf32>
    %cst_91 = arith.constant 1.000000e+00 : f32
    %356 = vector.broadcast %cst_91 : f32 to vector<8x1xf32>
    %357 = arith.subf %355, %356 : vector<8x1xf32>
    %358 = vector.extract_strided_slice %350 {offsets = [0, 3], sizes = [8, 1], strides = [1, 1]} : vector<8x4xf32> to vector<8x1xf32>
    %359 = arith.mulf %352, %339 : vector<8x1xf32>
    %360 = arith.mulf %351, %357 : vector<8x1xf32>
    %361 = arith.addf %359, %360 : vector<8x1xf32>
    %362 = math.tanh %361 : vector<8x1xf32>
    %363 = arith.mulf %358, %362 : vector<8x1xf32>
    %c128 = arith.constant 128 : index
    %c0_92 = arith.constant 0 : index
    %364 = vector.load %arg6[%c128, %c0_92] : memref<800x4xf32, #tpu.memory_space<vmem>>, vector<8x4xf32>
    %365 = vector.broadcast %363 : vector<8x1xf32> to vector<8x4xf32>
    %366 = arith.mulf %365, %9 : vector<8x4xf32>
    %367 = arith.addf %364, %366 : vector<8x4xf32>
    %368 = math.exp %367 : vector<8x4xf32>
    %cst_93 = arith.constant 1.000000e+00 : f32
    %369 = vector.broadcast %cst_93 : f32 to vector<8x4xf32>
    %370 = arith.addf %369, %368 : vector<8x4xf32>
    %cst_94 = arith.constant 1.000000e+00 : f32
    %371 = vector.broadcast %cst_94 : f32 to vector<8x4xf32>
    %372 = arith.divf %371, %370 : vector<8x4xf32>
    %373 = vector.extract_strided_slice %372 {offsets = [0, 0], sizes = [8, 1], strides = [1, 1]} : vector<8x4xf32> to vector<8x1xf32>
    %374 = vector.extract_strided_slice %372 {offsets = [0, 1], sizes = [8, 1], strides = [1, 1]} : vector<8x4xf32> to vector<8x1xf32>
    %375 = vector.extract_strided_slice %372 {offsets = [0, 2], sizes = [8, 1], strides = [1, 1]} : vector<8x4xf32> to vector<8x1xf32>
    %cst_95 = arith.constant 2.000000e+00 : f32
    %376 = vector.broadcast %cst_95 : f32 to vector<8x1xf32>
    %377 = arith.mulf %376, %375 : vector<8x1xf32>
    %cst_96 = arith.constant 1.000000e+00 : f32
    %378 = vector.broadcast %cst_96 : f32 to vector<8x1xf32>
    %379 = arith.subf %377, %378 : vector<8x1xf32>
    %380 = vector.extract_strided_slice %372 {offsets = [0, 3], sizes = [8, 1], strides = [1, 1]} : vector<8x4xf32> to vector<8x1xf32>
    %381 = arith.mulf %374, %361 : vector<8x1xf32>
    %382 = arith.mulf %373, %379 : vector<8x1xf32>
    %383 = arith.addf %381, %382 : vector<8x1xf32>
    %384 = math.tanh %383 : vector<8x1xf32>
    %385 = arith.mulf %380, %384 : vector<8x1xf32>
    %c136 = arith.constant 136 : index
    %c0_97 = arith.constant 0 : index
    %386 = vector.load %arg6[%c136, %c0_97] : memref<800x4xf32, #tpu.memory_space<vmem>>, vector<8x4xf32>
    %387 = vector.broadcast %385 : vector<8x1xf32> to vector<8x4xf32>
    %388 = arith.mulf %387, %9 : vector<8x4xf32>
    %389 = arith.addf %386, %388 : vector<8x4xf32>
    %390 = math.exp %389 : vector<8x4xf32>
    %cst_98 = arith.constant 1.000000e+00 : f32
    %391 = vector.broadcast %cst_98 : f32 to vector<8x4xf32>
    %392 = arith.addf %391, %390 : vector<8x4xf32>
    %cst_99 = arith.constant 1.000000e+00 : f32
    %393 = vector.broadcast %cst_99 : f32 to vector<8x4xf32>
    %394 = arith.divf %393, %392 : vector<8x4xf32>
    %395 = vector.extract_strided_slice %394 {offsets = [0, 0], sizes = [8, 1], strides = [1, 1]} : vector<8x4xf32> to vector<8x1xf32>
    %396 = vector.extract_strided_slice %394 {offsets = [0, 1], sizes = [8, 1], strides = [1, 1]} : vector<8x4xf32> to vector<8x1xf32>
    %397 = vector.extract_strided_slice %394 {offsets = [0, 2], sizes = [8, 1], strides = [1, 1]} : vector<8x4xf32> to vector<8x1xf32>
    %cst_100 = arith.constant 2.000000e+00 : f32
    %398 = vector.broadcast %cst_100 : f32 to vector<8x1xf32>
    %399 = arith.mulf %398, %397 : vector<8x1xf32>
    %cst_101 = arith.constant 1.000000e+00 : f32
    %400 = vector.broadcast %cst_101 : f32 to vector<8x1xf32>
    %401 = arith.subf %399, %400 : vector<8x1xf32>
    %402 = vector.extract_strided_slice %394 {offsets = [0, 3], sizes = [8, 1], strides = [1, 1]} : vector<8x4xf32> to vector<8x1xf32>
    %403 = arith.mulf %396, %383 : vector<8x1xf32>
    %404 = arith.mulf %395, %401 : vector<8x1xf32>
    %405 = arith.addf %403, %404 : vector<8x1xf32>
    %406 = math.tanh %405 : vector<8x1xf32>
    %407 = arith.mulf %402, %406 : vector<8x1xf32>
    %c144 = arith.constant 144 : index
    %c0_102 = arith.constant 0 : index
    %408 = vector.load %arg6[%c144, %c0_102] : memref<800x4xf32, #tpu.memory_space<vmem>>, vector<8x4xf32>
    %409 = vector.broadcast %407 : vector<8x1xf32> to vector<8x4xf32>
    %410 = arith.mulf %409, %9 : vector<8x4xf32>
    %411 = arith.addf %408, %410 : vector<8x4xf32>
    %412 = math.exp %411 : vector<8x4xf32>
    %cst_103 = arith.constant 1.000000e+00 : f32
    %413 = vector.broadcast %cst_103 : f32 to vector<8x4xf32>
    %414 = arith.addf %413, %412 : vector<8x4xf32>
    %cst_104 = arith.constant 1.000000e+00 : f32
    %415 = vector.broadcast %cst_104 : f32 to vector<8x4xf32>
    %416 = arith.divf %415, %414 : vector<8x4xf32>
    %417 = vector.extract_strided_slice %416 {offsets = [0, 0], sizes = [8, 1], strides = [1, 1]} : vector<8x4xf32> to vector<8x1xf32>
    %418 = vector.extract_strided_slice %416 {offsets = [0, 1], sizes = [8, 1], strides = [1, 1]} : vector<8x4xf32> to vector<8x1xf32>
    %419 = vector.extract_strided_slice %416 {offsets = [0, 2], sizes = [8, 1], strides = [1, 1]} : vector<8x4xf32> to vector<8x1xf32>
    %cst_105 = arith.constant 2.000000e+00 : f32
    %420 = vector.broadcast %cst_105 : f32 to vector<8x1xf32>
    %421 = arith.mulf %420, %419 : vector<8x1xf32>
    %cst_106 = arith.constant 1.000000e+00 : f32
    %422 = vector.broadcast %cst_106 : f32 to vector<8x1xf32>
    %423 = arith.subf %421, %422 : vector<8x1xf32>
    %424 = vector.extract_strided_slice %416 {offsets = [0, 3], sizes = [8, 1], strides = [1, 1]} : vector<8x4xf32> to vector<8x1xf32>
    %425 = arith.mulf %418, %405 : vector<8x1xf32>
    %426 = arith.mulf %417, %423 : vector<8x1xf32>
    %427 = arith.addf %425, %426 : vector<8x1xf32>
    %428 = math.tanh %427 : vector<8x1xf32>
    %429 = arith.mulf %424, %428 : vector<8x1xf32>
    %c152 = arith.constant 152 : index
    %c0_107 = arith.constant 0 : index
    %430 = vector.load %arg6[%c152, %c0_107] : memref<800x4xf32, #tpu.memory_space<vmem>>, vector<8x4xf32>
    %431 = vector.broadcast %429 : vector<8x1xf32> to vector<8x4xf32>
    %432 = arith.mulf %431, %9 : vector<8x4xf32>
    %433 = arith.addf %430, %432 : vector<8x4xf32>
    %434 = math.exp %433 : vector<8x4xf32>
    %cst_108 = arith.constant 1.000000e+00 : f32
    %435 = vector.broadcast %cst_108 : f32 to vector<8x4xf32>
    %436 = arith.addf %435, %434 : vector<8x4xf32>
    %cst_109 = arith.constant 1.000000e+00 : f32
    %437 = vector.broadcast %cst_109 : f32 to vector<8x4xf32>
    %438 = arith.divf %437, %436 : vector<8x4xf32>
    %439 = vector.extract_strided_slice %438 {offsets = [0, 0], sizes = [8, 1], strides = [1, 1]} : vector<8x4xf32> to vector<8x1xf32>
    %440 = vector.extract_strided_slice %438 {offsets = [0, 1], sizes = [8, 1], strides = [1, 1]} : vector<8x4xf32> to vector<8x1xf32>
    %441 = vector.extract_strided_slice %438 {offsets = [0, 2], sizes = [8, 1], strides = [1, 1]} : vector<8x4xf32> to vector<8x1xf32>
    %cst_110 = arith.constant 2.000000e+00 : f32
    %442 = vector.broadcast %cst_110 : f32 to vector<8x1xf32>
    %443 = arith.mulf %442, %441 : vector<8x1xf32>
    %cst_111 = arith.constant 1.000000e+00 : f32
    %444 = vector.broadcast %cst_111 : f32 to vector<8x1xf32>
    %445 = arith.subf %443, %444 : vector<8x1xf32>
    %446 = vector.extract_strided_slice %438 {offsets = [0, 3], sizes = [8, 1], strides = [1, 1]} : vector<8x4xf32> to vector<8x1xf32>
    %447 = arith.mulf %440, %427 : vector<8x1xf32>
    %448 = arith.mulf %439, %445 : vector<8x1xf32>
    %449 = arith.addf %447, %448 : vector<8x1xf32>
    %450 = math.tanh %449 : vector<8x1xf32>
    %451 = arith.mulf %446, %450 : vector<8x1xf32>
    %c160 = arith.constant 160 : index
    %c0_112 = arith.constant 0 : index
    %452 = vector.load %arg6[%c160, %c0_112] : memref<800x4xf32, #tpu.memory_space<vmem>>, vector<8x4xf32>
    %453 = vector.broadcast %451 : vector<8x1xf32> to vector<8x4xf32>
    %454 = arith.mulf %453, %9 : vector<8x4xf32>
    %455 = arith.addf %452, %454 : vector<8x4xf32>
    %456 = math.exp %455 : vector<8x4xf32>
    %cst_113 = arith.constant 1.000000e+00 : f32
    %457 = vector.broadcast %cst_113 : f32 to vector<8x4xf32>
    %458 = arith.addf %457, %456 : vector<8x4xf32>
    %cst_114 = arith.constant 1.000000e+00 : f32
    %459 = vector.broadcast %cst_114 : f32 to vector<8x4xf32>
    %460 = arith.divf %459, %458 : vector<8x4xf32>
    %461 = vector.extract_strided_slice %460 {offsets = [0, 0], sizes = [8, 1], strides = [1, 1]} : vector<8x4xf32> to vector<8x1xf32>
    %462 = vector.extract_strided_slice %460 {offsets = [0, 1], sizes = [8, 1], strides = [1, 1]} : vector<8x4xf32> to vector<8x1xf32>
    %463 = vector.extract_strided_slice %460 {offsets = [0, 2], sizes = [8, 1], strides = [1, 1]} : vector<8x4xf32> to vector<8x1xf32>
    %cst_115 = arith.constant 2.000000e+00 : f32
    %464 = vector.broadcast %cst_115 : f32 to vector<8x1xf32>
    %465 = arith.mulf %464, %463 : vector<8x1xf32>
    %cst_116 = arith.constant 1.000000e+00 : f32
    %466 = vector.broadcast %cst_116 : f32 to vector<8x1xf32>
    %467 = arith.subf %465, %466 : vector<8x1xf32>
    %468 = vector.extract_strided_slice %460 {offsets = [0, 3], sizes = [8, 1], strides = [1, 1]} : vector<8x4xf32> to vector<8x1xf32>
    %469 = arith.mulf %462, %449 : vector<8x1xf32>
    %470 = arith.mulf %461, %467 : vector<8x1xf32>
    %471 = arith.addf %469, %470 : vector<8x1xf32>
    %472 = math.tanh %471 : vector<8x1xf32>
    %473 = arith.mulf %468, %472 : vector<8x1xf32>
    %c168 = arith.constant 168 : index
    %c0_117 = arith.constant 0 : index
    %474 = vector.load %arg6[%c168, %c0_117] : memref<800x4xf32, #tpu.memory_space<vmem>>, vector<8x4xf32>
    %475 = vector.broadcast %473 : vector<8x1xf32> to vector<8x4xf32>
    %476 = arith.mulf %475, %9 : vector<8x4xf32>
    %477 = arith.addf %474, %476 : vector<8x4xf32>
    %478 = math.exp %477 : vector<8x4xf32>
    %cst_118 = arith.constant 1.000000e+00 : f32
    %479 = vector.broadcast %cst_118 : f32 to vector<8x4xf32>
    %480 = arith.addf %479, %478 : vector<8x4xf32>
    %cst_119 = arith.constant 1.000000e+00 : f32
    %481 = vector.broadcast %cst_119 : f32 to vector<8x4xf32>
    %482 = arith.divf %481, %480 : vector<8x4xf32>
    %483 = vector.extract_strided_slice %482 {offsets = [0, 0], sizes = [8, 1], strides = [1, 1]} : vector<8x4xf32> to vector<8x1xf32>
    %484 = vector.extract_strided_slice %482 {offsets = [0, 1], sizes = [8, 1], strides = [1, 1]} : vector<8x4xf32> to vector<8x1xf32>
    %485 = vector.extract_strided_slice %482 {offsets = [0, 2], sizes = [8, 1], strides = [1, 1]} : vector<8x4xf32> to vector<8x1xf32>
    %cst_120 = arith.constant 2.000000e+00 : f32
    %486 = vector.broadcast %cst_120 : f32 to vector<8x1xf32>
    %487 = arith.mulf %486, %485 : vector<8x1xf32>
    %cst_121 = arith.constant 1.000000e+00 : f32
    %488 = vector.broadcast %cst_121 : f32 to vector<8x1xf32>
    %489 = arith.subf %487, %488 : vector<8x1xf32>
    %490 = vector.extract_strided_slice %482 {offsets = [0, 3], sizes = [8, 1], strides = [1, 1]} : vector<8x4xf32> to vector<8x1xf32>
    %491 = arith.mulf %484, %471 : vector<8x1xf32>
    %492 = arith.mulf %483, %489 : vector<8x1xf32>
    %493 = arith.addf %491, %492 : vector<8x1xf32>
    %494 = math.tanh %493 : vector<8x1xf32>
    %495 = arith.mulf %490, %494 : vector<8x1xf32>
    %c176 = arith.constant 176 : index
    %c0_122 = arith.constant 0 : index
    %496 = vector.load %arg6[%c176, %c0_122] : memref<800x4xf32, #tpu.memory_space<vmem>>, vector<8x4xf32>
    %497 = vector.broadcast %495 : vector<8x1xf32> to vector<8x4xf32>
    %498 = arith.mulf %497, %9 : vector<8x4xf32>
    %499 = arith.addf %496, %498 : vector<8x4xf32>
    %500 = math.exp %499 : vector<8x4xf32>
    %cst_123 = arith.constant 1.000000e+00 : f32
    %501 = vector.broadcast %cst_123 : f32 to vector<8x4xf32>
    %502 = arith.addf %501, %500 : vector<8x4xf32>
    %cst_124 = arith.constant 1.000000e+00 : f32
    %503 = vector.broadcast %cst_124 : f32 to vector<8x4xf32>
    %504 = arith.divf %503, %502 : vector<8x4xf32>
    %505 = vector.extract_strided_slice %504 {offsets = [0, 0], sizes = [8, 1], strides = [1, 1]} : vector<8x4xf32> to vector<8x1xf32>
    %506 = vector.extract_strided_slice %504 {offsets = [0, 1], sizes = [8, 1], strides = [1, 1]} : vector<8x4xf32> to vector<8x1xf32>
    %507 = vector.extract_strided_slice %504 {offsets = [0, 2], sizes = [8, 1], strides = [1, 1]} : vector<8x4xf32> to vector<8x1xf32>
    %cst_125 = arith.constant 2.000000e+00 : f32
    %508 = vector.broadcast %cst_125 : f32 to vector<8x1xf32>
    %509 = arith.mulf %508, %507 : vector<8x1xf32>
    %cst_126 = arith.constant 1.000000e+00 : f32
    %510 = vector.broadcast %cst_126 : f32 to vector<8x1xf32>
    %511 = arith.subf %509, %510 : vector<8x1xf32>
    %512 = vector.extract_strided_slice %504 {offsets = [0, 3], sizes = [8, 1], strides = [1, 1]} : vector<8x4xf32> to vector<8x1xf32>
    %513 = arith.mulf %506, %493 : vector<8x1xf32>
    %514 = arith.mulf %505, %511 : vector<8x1xf32>
    %515 = arith.addf %513, %514 : vector<8x1xf32>
    %516 = math.tanh %515 : vector<8x1xf32>
    %517 = arith.mulf %512, %516 : vector<8x1xf32>
    %c184 = arith.constant 184 : index
    %c0_127 = arith.constant 0 : index
    %518 = vector.load %arg6[%c184, %c0_127] : memref<800x4xf32, #tpu.memory_space<vmem>>, vector<8x4xf32>
    %519 = vector.broadcast %517 : vector<8x1xf32> to vector<8x4xf32>
    %520 = arith.mulf %519, %9 : vector<8x4xf32>
    %521 = arith.addf %518, %520 : vector<8x4xf32>
    %522 = math.exp %521 : vector<8x4xf32>
    %cst_128 = arith.constant 1.000000e+00 : f32
    %523 = vector.broadcast %cst_128 : f32 to vector<8x4xf32>
    %524 = arith.addf %523, %522 : vector<8x4xf32>
    %cst_129 = arith.constant 1.000000e+00 : f32
    %525 = vector.broadcast %cst_129 : f32 to vector<8x4xf32>
    %526 = arith.divf %525, %524 : vector<8x4xf32>
    %527 = vector.extract_strided_slice %526 {offsets = [0, 0], sizes = [8, 1], strides = [1, 1]} : vector<8x4xf32> to vector<8x1xf32>
    %528 = vector.extract_strided_slice %526 {offsets = [0, 1], sizes = [8, 1], strides = [1, 1]} : vector<8x4xf32> to vector<8x1xf32>
    %529 = vector.extract_strided_slice %526 {offsets = [0, 2], sizes = [8, 1], strides = [1, 1]} : vector<8x4xf32> to vector<8x1xf32>
    %cst_130 = arith.constant 2.000000e+00 : f32
    %530 = vector.broadcast %cst_130 : f32 to vector<8x1xf32>
    %531 = arith.mulf %530, %529 : vector<8x1xf32>
    %cst_131 = arith.constant 1.000000e+00 : f32
    %532 = vector.broadcast %cst_131 : f32 to vector<8x1xf32>
    %533 = arith.subf %531, %532 : vector<8x1xf32>
    %534 = vector.extract_strided_slice %526 {offsets = [0, 3], sizes = [8, 1], strides = [1, 1]} : vector<8x4xf32> to vector<8x1xf32>
    %535 = arith.mulf %528, %515 : vector<8x1xf32>
    %536 = arith.mulf %527, %533 : vector<8x1xf32>
    %537 = arith.addf %535, %536 : vector<8x1xf32>
    %538 = math.tanh %537 : vector<8x1xf32>
    %539 = arith.mulf %534, %538 : vector<8x1xf32>
    %c192 = arith.constant 192 : index
    %c0_132 = arith.constant 0 : index
    %540 = vector.load %arg6[%c192, %c0_132] : memref<800x4xf32, #tpu.memory_space<vmem>>, vector<8x4xf32>
    %541 = vector.broadcast %539 : vector<8x1xf32> to vector<8x4xf32>
    %542 = arith.mulf %541, %9 : vector<8x4xf32>
    %543 = arith.addf %540, %542 : vector<8x4xf32>
    %544 = math.exp %543 : vector<8x4xf32>
    %cst_133 = arith.constant 1.000000e+00 : f32
    %545 = vector.broadcast %cst_133 : f32 to vector<8x4xf32>
    %546 = arith.addf %545, %544 : vector<8x4xf32>
    %cst_134 = arith.constant 1.000000e+00 : f32
    %547 = vector.broadcast %cst_134 : f32 to vector<8x4xf32>
    %548 = arith.divf %547, %546 : vector<8x4xf32>
    %549 = vector.extract_strided_slice %548 {offsets = [0, 0], sizes = [8, 1], strides = [1, 1]} : vector<8x4xf32> to vector<8x1xf32>
    %550 = vector.extract_strided_slice %548 {offsets = [0, 1], sizes = [8, 1], strides = [1, 1]} : vector<8x4xf32> to vector<8x1xf32>
    %551 = vector.extract_strided_slice %548 {offsets = [0, 2], sizes = [8, 1], strides = [1, 1]} : vector<8x4xf32> to vector<8x1xf32>
    %cst_135 = arith.constant 2.000000e+00 : f32
    %552 = vector.broadcast %cst_135 : f32 to vector<8x1xf32>
    %553 = arith.mulf %552, %551 : vector<8x1xf32>
    %cst_136 = arith.constant 1.000000e+00 : f32
    %554 = vector.broadcast %cst_136 : f32 to vector<8x1xf32>
    %555 = arith.subf %553, %554 : vector<8x1xf32>
    %556 = vector.extract_strided_slice %548 {offsets = [0, 3], sizes = [8, 1], strides = [1, 1]} : vector<8x4xf32> to vector<8x1xf32>
    %557 = arith.mulf %550, %537 : vector<8x1xf32>
    %558 = arith.mulf %549, %555 : vector<8x1xf32>
    %559 = arith.addf %557, %558 : vector<8x1xf32>
    %560 = math.tanh %559 : vector<8x1xf32>
    %561 = arith.mulf %556, %560 : vector<8x1xf32>
    %c200 = arith.constant 200 : index
    %c0_137 = arith.constant 0 : index
    %562 = vector.load %arg6[%c200, %c0_137] : memref<800x4xf32, #tpu.memory_space<vmem>>, vector<8x4xf32>
    %563 = vector.broadcast %561 : vector<8x1xf32> to vector<8x4xf32>
    %564 = arith.mulf %563, %9 : vector<8x4xf32>
    %565 = arith.addf %562, %564 : vector<8x4xf32>
    %566 = math.exp %565 : vector<8x4xf32>
    %cst_138 = arith.constant 1.000000e+00 : f32
    %567 = vector.broadcast %cst_138 : f32 to vector<8x4xf32>
    %568 = arith.addf %567, %566 : vector<8x4xf32>
    %cst_139 = arith.constant 1.000000e+00 : f32
    %569 = vector.broadcast %cst_139 : f32 to vector<8x4xf32>
    %570 = arith.divf %569, %568 : vector<8x4xf32>
    %571 = vector.extract_strided_slice %570 {offsets = [0, 0], sizes = [8, 1], strides = [1, 1]} : vector<8x4xf32> to vector<8x1xf32>
    %572 = vector.extract_strided_slice %570 {offsets = [0, 1], sizes = [8, 1], strides = [1, 1]} : vector<8x4xf32> to vector<8x1xf32>
    %573 = vector.extract_strided_slice %570 {offsets = [0, 2], sizes = [8, 1], strides = [1, 1]} : vector<8x4xf32> to vector<8x1xf32>
    %cst_140 = arith.constant 2.000000e+00 : f32
    %574 = vector.broadcast %cst_140 : f32 to vector<8x1xf32>
    %575 = arith.mulf %574, %573 : vector<8x1xf32>
    %cst_141 = arith.constant 1.000000e+00 : f32
    %576 = vector.broadcast %cst_141 : f32 to vector<8x1xf32>
    %577 = arith.subf %575, %576 : vector<8x1xf32>
    %578 = vector.extract_strided_slice %570 {offsets = [0, 3], sizes = [8, 1], strides = [1, 1]} : vector<8x4xf32> to vector<8x1xf32>
    %579 = arith.mulf %572, %559 : vector<8x1xf32>
    %580 = arith.mulf %571, %577 : vector<8x1xf32>
    %581 = arith.addf %579, %580 : vector<8x1xf32>
    %582 = math.tanh %581 : vector<8x1xf32>
    %583 = arith.mulf %578, %582 : vector<8x1xf32>
    %c208 = arith.constant 208 : index
    %c0_142 = arith.constant 0 : index
    %584 = vector.load %arg6[%c208, %c0_142] : memref<800x4xf32, #tpu.memory_space<vmem>>, vector<8x4xf32>
    %585 = vector.broadcast %583 : vector<8x1xf32> to vector<8x4xf32>
    %586 = arith.mulf %585, %9 : vector<8x4xf32>
    %587 = arith.addf %584, %586 : vector<8x4xf32>
    %588 = math.exp %587 : vector<8x4xf32>
    %cst_143 = arith.constant 1.000000e+00 : f32
    %589 = vector.broadcast %cst_143 : f32 to vector<8x4xf32>
    %590 = arith.addf %589, %588 : vector<8x4xf32>
    %cst_144 = arith.constant 1.000000e+00 : f32
    %591 = vector.broadcast %cst_144 : f32 to vector<8x4xf32>
    %592 = arith.divf %591, %590 : vector<8x4xf32>
    %593 = vector.extract_strided_slice %592 {offsets = [0, 0], sizes = [8, 1], strides = [1, 1]} : vector<8x4xf32> to vector<8x1xf32>
    %594 = vector.extract_strided_slice %592 {offsets = [0, 1], sizes = [8, 1], strides = [1, 1]} : vector<8x4xf32> to vector<8x1xf32>
    %595 = vector.extract_strided_slice %592 {offsets = [0, 2], sizes = [8, 1], strides = [1, 1]} : vector<8x4xf32> to vector<8x1xf32>
    %cst_145 = arith.constant 2.000000e+00 : f32
    %596 = vector.broadcast %cst_145 : f32 to vector<8x1xf32>
    %597 = arith.mulf %596, %595 : vector<8x1xf32>
    %cst_146 = arith.constant 1.000000e+00 : f32
    %598 = vector.broadcast %cst_146 : f32 to vector<8x1xf32>
    %599 = arith.subf %597, %598 : vector<8x1xf32>
    %600 = vector.extract_strided_slice %592 {offsets = [0, 3], sizes = [8, 1], strides = [1, 1]} : vector<8x4xf32> to vector<8x1xf32>
    %601 = arith.mulf %594, %581 : vector<8x1xf32>
    %602 = arith.mulf %593, %599 : vector<8x1xf32>
    %603 = arith.addf %601, %602 : vector<8x1xf32>
    %604 = math.tanh %603 : vector<8x1xf32>
    %605 = arith.mulf %600, %604 : vector<8x1xf32>
    %c216 = arith.constant 216 : index
    %c0_147 = arith.constant 0 : index
    %606 = vector.load %arg6[%c216, %c0_147] : memref<800x4xf32, #tpu.memory_space<vmem>>, vector<8x4xf32>
    %607 = vector.broadcast %605 : vector<8x1xf32> to vector<8x4xf32>
    %608 = arith.mulf %607, %9 : vector<8x4xf32>
    %609 = arith.addf %606, %608 : vector<8x4xf32>
    %610 = math.exp %609 : vector<8x4xf32>
    %cst_148 = arith.constant 1.000000e+00 : f32
    %611 = vector.broadcast %cst_148 : f32 to vector<8x4xf32>
    %612 = arith.addf %611, %610 : vector<8x4xf32>
    %cst_149 = arith.constant 1.000000e+00 : f32
    %613 = vector.broadcast %cst_149 : f32 to vector<8x4xf32>
    %614 = arith.divf %613, %612 : vector<8x4xf32>
    %615 = vector.extract_strided_slice %614 {offsets = [0, 0], sizes = [8, 1], strides = [1, 1]} : vector<8x4xf32> to vector<8x1xf32>
    %616 = vector.extract_strided_slice %614 {offsets = [0, 1], sizes = [8, 1], strides = [1, 1]} : vector<8x4xf32> to vector<8x1xf32>
    %617 = vector.extract_strided_slice %614 {offsets = [0, 2], sizes = [8, 1], strides = [1, 1]} : vector<8x4xf32> to vector<8x1xf32>
    %cst_150 = arith.constant 2.000000e+00 : f32
    %618 = vector.broadcast %cst_150 : f32 to vector<8x1xf32>
    %619 = arith.mulf %618, %617 : vector<8x1xf32>
    %cst_151 = arith.constant 1.000000e+00 : f32
    %620 = vector.broadcast %cst_151 : f32 to vector<8x1xf32>
    %621 = arith.subf %619, %620 : vector<8x1xf32>
    %622 = vector.extract_strided_slice %614 {offsets = [0, 3], sizes = [8, 1], strides = [1, 1]} : vector<8x4xf32> to vector<8x1xf32>
    %623 = arith.mulf %616, %603 : vector<8x1xf32>
    %624 = arith.mulf %615, %621 : vector<8x1xf32>
    %625 = arith.addf %623, %624 : vector<8x1xf32>
    %626 = math.tanh %625 : vector<8x1xf32>
    %627 = arith.mulf %622, %626 : vector<8x1xf32>
    %c224 = arith.constant 224 : index
    %c0_152 = arith.constant 0 : index
    %628 = vector.load %arg6[%c224, %c0_152] : memref<800x4xf32, #tpu.memory_space<vmem>>, vector<8x4xf32>
    %629 = vector.broadcast %627 : vector<8x1xf32> to vector<8x4xf32>
    %630 = arith.mulf %629, %9 : vector<8x4xf32>
    %631 = arith.addf %628, %630 : vector<8x4xf32>
    %632 = math.exp %631 : vector<8x4xf32>
    %cst_153 = arith.constant 1.000000e+00 : f32
    %633 = vector.broadcast %cst_153 : f32 to vector<8x4xf32>
    %634 = arith.addf %633, %632 : vector<8x4xf32>
    %cst_154 = arith.constant 1.000000e+00 : f32
    %635 = vector.broadcast %cst_154 : f32 to vector<8x4xf32>
    %636 = arith.divf %635, %634 : vector<8x4xf32>
    %637 = vector.extract_strided_slice %636 {offsets = [0, 0], sizes = [8, 1], strides = [1, 1]} : vector<8x4xf32> to vector<8x1xf32>
    %638 = vector.extract_strided_slice %636 {offsets = [0, 1], sizes = [8, 1], strides = [1, 1]} : vector<8x4xf32> to vector<8x1xf32>
    %639 = vector.extract_strided_slice %636 {offsets = [0, 2], sizes = [8, 1], strides = [1, 1]} : vector<8x4xf32> to vector<8x1xf32>
    %cst_155 = arith.constant 2.000000e+00 : f32
    %640 = vector.broadcast %cst_155 : f32 to vector<8x1xf32>
    %641 = arith.mulf %640, %639 : vector<8x1xf32>
    %cst_156 = arith.constant 1.000000e+00 : f32
    %642 = vector.broadcast %cst_156 : f32 to vector<8x1xf32>
    %643 = arith.subf %641, %642 : vector<8x1xf32>
    %644 = vector.extract_strided_slice %636 {offsets = [0, 3], sizes = [8, 1], strides = [1, 1]} : vector<8x4xf32> to vector<8x1xf32>
    %645 = arith.mulf %638, %625 : vector<8x1xf32>
    %646 = arith.mulf %637, %643 : vector<8x1xf32>
    %647 = arith.addf %645, %646 : vector<8x1xf32>
    %648 = math.tanh %647 : vector<8x1xf32>
    %649 = arith.mulf %644, %648 : vector<8x1xf32>
    %c232 = arith.constant 232 : index
    %c0_157 = arith.constant 0 : index
    %650 = vector.load %arg6[%c232, %c0_157] : memref<800x4xf32, #tpu.memory_space<vmem>>, vector<8x4xf32>
    %651 = vector.broadcast %649 : vector<8x1xf32> to vector<8x4xf32>
    %652 = arith.mulf %651, %9 : vector<8x4xf32>
    %653 = arith.addf %650, %652 : vector<8x4xf32>
    %654 = math.exp %653 : vector<8x4xf32>
    %cst_158 = arith.constant 1.000000e+00 : f32
    %655 = vector.broadcast %cst_158 : f32 to vector<8x4xf32>
    %656 = arith.addf %655, %654 : vector<8x4xf32>
    %cst_159 = arith.constant 1.000000e+00 : f32
    %657 = vector.broadcast %cst_159 : f32 to vector<8x4xf32>
    %658 = arith.divf %657, %656 : vector<8x4xf32>
    %659 = vector.extract_strided_slice %658 {offsets = [0, 0], sizes = [8, 1], strides = [1, 1]} : vector<8x4xf32> to vector<8x1xf32>
    %660 = vector.extract_strided_slice %658 {offsets = [0, 1], sizes = [8, 1], strides = [1, 1]} : vector<8x4xf32> to vector<8x1xf32>
    %661 = vector.extract_strided_slice %658 {offsets = [0, 2], sizes = [8, 1], strides = [1, 1]} : vector<8x4xf32> to vector<8x1xf32>
    %cst_160 = arith.constant 2.000000e+00 : f32
    %662 = vector.broadcast %cst_160 : f32 to vector<8x1xf32>
    %663 = arith.mulf %662, %661 : vector<8x1xf32>
    %cst_161 = arith.constant 1.000000e+00 : f32
    %664 = vector.broadcast %cst_161 : f32 to vector<8x1xf32>
    %665 = arith.subf %663, %664 : vector<8x1xf32>
    %666 = vector.extract_strided_slice %658 {offsets = [0, 3], sizes = [8, 1], strides = [1, 1]} : vector<8x4xf32> to vector<8x1xf32>
    %667 = arith.mulf %660, %647 : vector<8x1xf32>
    %668 = arith.mulf %659, %665 : vector<8x1xf32>
    %669 = arith.addf %667, %668 : vector<8x1xf32>
    %670 = math.tanh %669 : vector<8x1xf32>
    %671 = arith.mulf %666, %670 : vector<8x1xf32>
    %c240 = arith.constant 240 : index
    %c0_162 = arith.constant 0 : index
    %672 = vector.load %arg6[%c240, %c0_162] : memref<800x4xf32, #tpu.memory_space<vmem>>, vector<8x4xf32>
    %673 = vector.broadcast %671 : vector<8x1xf32> to vector<8x4xf32>
    %674 = arith.mulf %673, %9 : vector<8x4xf32>
    %675 = arith.addf %672, %674 : vector<8x4xf32>
    %676 = math.exp %675 : vector<8x4xf32>
    %cst_163 = arith.constant 1.000000e+00 : f32
    %677 = vector.broadcast %cst_163 : f32 to vector<8x4xf32>
    %678 = arith.addf %677, %676 : vector<8x4xf32>
    %cst_164 = arith.constant 1.000000e+00 : f32
    %679 = vector.broadcast %cst_164 : f32 to vector<8x4xf32>
    %680 = arith.divf %679, %678 : vector<8x4xf32>
    %681 = vector.extract_strided_slice %680 {offsets = [0, 0], sizes = [8, 1], strides = [1, 1]} : vector<8x4xf32> to vector<8x1xf32>
    %682 = vector.extract_strided_slice %680 {offsets = [0, 1], sizes = [8, 1], strides = [1, 1]} : vector<8x4xf32> to vector<8x1xf32>
    %683 = vector.extract_strided_slice %680 {offsets = [0, 2], sizes = [8, 1], strides = [1, 1]} : vector<8x4xf32> to vector<8x1xf32>
    %cst_165 = arith.constant 2.000000e+00 : f32
    %684 = vector.broadcast %cst_165 : f32 to vector<8x1xf32>
    %685 = arith.mulf %684, %683 : vector<8x1xf32>
    %cst_166 = arith.constant 1.000000e+00 : f32
    %686 = vector.broadcast %cst_166 : f32 to vector<8x1xf32>
    %687 = arith.subf %685, %686 : vector<8x1xf32>
    %688 = vector.extract_strided_slice %680 {offsets = [0, 3], sizes = [8, 1], strides = [1, 1]} : vector<8x4xf32> to vector<8x1xf32>
    %689 = arith.mulf %682, %669 : vector<8x1xf32>
    %690 = arith.mulf %681, %687 : vector<8x1xf32>
    %691 = arith.addf %689, %690 : vector<8x1xf32>
    %692 = math.tanh %691 : vector<8x1xf32>
    %693 = arith.mulf %688, %692 : vector<8x1xf32>
    %c248 = arith.constant 248 : index
    %c0_167 = arith.constant 0 : index
    %694 = vector.load %arg6[%c248, %c0_167] : memref<800x4xf32, #tpu.memory_space<vmem>>, vector<8x4xf32>
    %695 = vector.broadcast %693 : vector<8x1xf32> to vector<8x4xf32>
    %696 = arith.mulf %695, %9 : vector<8x4xf32>
    %697 = arith.addf %694, %696 : vector<8x4xf32>
    %698 = math.exp %697 : vector<8x4xf32>
    %cst_168 = arith.constant 1.000000e+00 : f32
    %699 = vector.broadcast %cst_168 : f32 to vector<8x4xf32>
    %700 = arith.addf %699, %698 : vector<8x4xf32>
    %cst_169 = arith.constant 1.000000e+00 : f32
    %701 = vector.broadcast %cst_169 : f32 to vector<8x4xf32>
    %702 = arith.divf %701, %700 : vector<8x4xf32>
    %703 = vector.extract_strided_slice %702 {offsets = [0, 0], sizes = [8, 1], strides = [1, 1]} : vector<8x4xf32> to vector<8x1xf32>
    %704 = vector.extract_strided_slice %702 {offsets = [0, 1], sizes = [8, 1], strides = [1, 1]} : vector<8x4xf32> to vector<8x1xf32>
    %705 = vector.extract_strided_slice %702 {offsets = [0, 2], sizes = [8, 1], strides = [1, 1]} : vector<8x4xf32> to vector<8x1xf32>
    %cst_170 = arith.constant 2.000000e+00 : f32
    %706 = vector.broadcast %cst_170 : f32 to vector<8x1xf32>
    %707 = arith.mulf %706, %705 : vector<8x1xf32>
    %cst_171 = arith.constant 1.000000e+00 : f32
    %708 = vector.broadcast %cst_171 : f32 to vector<8x1xf32>
    %709 = arith.subf %707, %708 : vector<8x1xf32>
    %710 = vector.extract_strided_slice %702 {offsets = [0, 3], sizes = [8, 1], strides = [1, 1]} : vector<8x4xf32> to vector<8x1xf32>
    %711 = arith.mulf %704, %691 : vector<8x1xf32>
    %712 = arith.mulf %703, %709 : vector<8x1xf32>
    %713 = arith.addf %711, %712 : vector<8x1xf32>
    %714 = math.tanh %713 : vector<8x1xf32>
    %715 = arith.mulf %710, %714 : vector<8x1xf32>
    %c256 = arith.constant 256 : index
    %c0_172 = arith.constant 0 : index
    %716 = vector.load %arg6[%c256, %c0_172] : memref<800x4xf32, #tpu.memory_space<vmem>>, vector<8x4xf32>
    %717 = vector.broadcast %715 : vector<8x1xf32> to vector<8x4xf32>
    %718 = arith.mulf %717, %9 : vector<8x4xf32>
    %719 = arith.addf %716, %718 : vector<8x4xf32>
    %720 = math.exp %719 : vector<8x4xf32>
    %cst_173 = arith.constant 1.000000e+00 : f32
    %721 = vector.broadcast %cst_173 : f32 to vector<8x4xf32>
    %722 = arith.addf %721, %720 : vector<8x4xf32>
    %cst_174 = arith.constant 1.000000e+00 : f32
    %723 = vector.broadcast %cst_174 : f32 to vector<8x4xf32>
    %724 = arith.divf %723, %722 : vector<8x4xf32>
    %725 = vector.extract_strided_slice %724 {offsets = [0, 0], sizes = [8, 1], strides = [1, 1]} : vector<8x4xf32> to vector<8x1xf32>
    %726 = vector.extract_strided_slice %724 {offsets = [0, 1], sizes = [8, 1], strides = [1, 1]} : vector<8x4xf32> to vector<8x1xf32>
    %727 = vector.extract_strided_slice %724 {offsets = [0, 2], sizes = [8, 1], strides = [1, 1]} : vector<8x4xf32> to vector<8x1xf32>
    %cst_175 = arith.constant 2.000000e+00 : f32
    %728 = vector.broadcast %cst_175 : f32 to vector<8x1xf32>
    %729 = arith.mulf %728, %727 : vector<8x1xf32>
    %cst_176 = arith.constant 1.000000e+00 : f32
    %730 = vector.broadcast %cst_176 : f32 to vector<8x1xf32>
    %731 = arith.subf %729, %730 : vector<8x1xf32>
    %732 = vector.extract_strided_slice %724 {offsets = [0, 3], sizes = [8, 1], strides = [1, 1]} : vector<8x4xf32> to vector<8x1xf32>
    %733 = arith.mulf %726, %713 : vector<8x1xf32>
    %734 = arith.mulf %725, %731 : vector<8x1xf32>
    %735 = arith.addf %733, %734 : vector<8x1xf32>
    %736 = math.tanh %735 : vector<8x1xf32>
    %737 = arith.mulf %732, %736 : vector<8x1xf32>
    %c264 = arith.constant 264 : index
    %c0_177 = arith.constant 0 : index
    %738 = vector.load %arg6[%c264, %c0_177] : memref<800x4xf32, #tpu.memory_space<vmem>>, vector<8x4xf32>
    %739 = vector.broadcast %737 : vector<8x1xf32> to vector<8x4xf32>
    %740 = arith.mulf %739, %9 : vector<8x4xf32>
    %741 = arith.addf %738, %740 : vector<8x4xf32>
    %742 = math.exp %741 : vector<8x4xf32>
    %cst_178 = arith.constant 1.000000e+00 : f32
    %743 = vector.broadcast %cst_178 : f32 to vector<8x4xf32>
    %744 = arith.addf %743, %742 : vector<8x4xf32>
    %cst_179 = arith.constant 1.000000e+00 : f32
    %745 = vector.broadcast %cst_179 : f32 to vector<8x4xf32>
    %746 = arith.divf %745, %744 : vector<8x4xf32>
    %747 = vector.extract_strided_slice %746 {offsets = [0, 0], sizes = [8, 1], strides = [1, 1]} : vector<8x4xf32> to vector<8x1xf32>
    %748 = vector.extract_strided_slice %746 {offsets = [0, 1], sizes = [8, 1], strides = [1, 1]} : vector<8x4xf32> to vector<8x1xf32>
    %749 = vector.extract_strided_slice %746 {offsets = [0, 2], sizes = [8, 1], strides = [1, 1]} : vector<8x4xf32> to vector<8x1xf32>
    %cst_180 = arith.constant 2.000000e+00 : f32
    %750 = vector.broadcast %cst_180 : f32 to vector<8x1xf32>
    %751 = arith.mulf %750, %749 : vector<8x1xf32>
    %cst_181 = arith.constant 1.000000e+00 : f32
    %752 = vector.broadcast %cst_181 : f32 to vector<8x1xf32>
    %753 = arith.subf %751, %752 : vector<8x1xf32>
    %754 = vector.extract_strided_slice %746 {offsets = [0, 3], sizes = [8, 1], strides = [1, 1]} : vector<8x4xf32> to vector<8x1xf32>
    %755 = arith.mulf %748, %735 : vector<8x1xf32>
    %756 = arith.mulf %747, %753 : vector<8x1xf32>
    %757 = arith.addf %755, %756 : vector<8x1xf32>
    %758 = math.tanh %757 : vector<8x1xf32>
    %759 = arith.mulf %754, %758 : vector<8x1xf32>
    %c272 = arith.constant 272 : index
    %c0_182 = arith.constant 0 : index
    %760 = vector.load %arg6[%c272, %c0_182] : memref<800x4xf32, #tpu.memory_space<vmem>>, vector<8x4xf32>
    %761 = vector.broadcast %759 : vector<8x1xf32> to vector<8x4xf32>
    %762 = arith.mulf %761, %9 : vector<8x4xf32>
    %763 = arith.addf %760, %762 : vector<8x4xf32>
    %764 = math.exp %763 : vector<8x4xf32>
    %cst_183 = arith.constant 1.000000e+00 : f32
    %765 = vector.broadcast %cst_183 : f32 to vector<8x4xf32>
    %766 = arith.addf %765, %764 : vector<8x4xf32>
    %cst_184 = arith.constant 1.000000e+00 : f32
    %767 = vector.broadcast %cst_184 : f32 to vector<8x4xf32>
    %768 = arith.divf %767, %766 : vector<8x4xf32>
    %769 = vector.extract_strided_slice %768 {offsets = [0, 0], sizes = [8, 1], strides = [1, 1]} : vector<8x4xf32> to vector<8x1xf32>
    %770 = vector.extract_strided_slice %768 {offsets = [0, 1], sizes = [8, 1], strides = [1, 1]} : vector<8x4xf32> to vector<8x1xf32>
    %771 = vector.extract_strided_slice %768 {offsets = [0, 2], sizes = [8, 1], strides = [1, 1]} : vector<8x4xf32> to vector<8x1xf32>
    %cst_185 = arith.constant 2.000000e+00 : f32
    %772 = vector.broadcast %cst_185 : f32 to vector<8x1xf32>
    %773 = arith.mulf %772, %771 : vector<8x1xf32>
    %cst_186 = arith.constant 1.000000e+00 : f32
    %774 = vector.broadcast %cst_186 : f32 to vector<8x1xf32>
    %775 = arith.subf %773, %774 : vector<8x1xf32>
    %776 = vector.extract_strided_slice %768 {offsets = [0, 3], sizes = [8, 1], strides = [1, 1]} : vector<8x4xf32> to vector<8x1xf32>
    %777 = arith.mulf %770, %757 : vector<8x1xf32>
    %778 = arith.mulf %769, %775 : vector<8x1xf32>
    %779 = arith.addf %777, %778 : vector<8x1xf32>
    %780 = math.tanh %779 : vector<8x1xf32>
    %781 = arith.mulf %776, %780 : vector<8x1xf32>
    %c280 = arith.constant 280 : index
    %c0_187 = arith.constant 0 : index
    %782 = vector.load %arg6[%c280, %c0_187] : memref<800x4xf32, #tpu.memory_space<vmem>>, vector<8x4xf32>
    %783 = vector.broadcast %781 : vector<8x1xf32> to vector<8x4xf32>
    %784 = arith.mulf %783, %9 : vector<8x4xf32>
    %785 = arith.addf %782, %784 : vector<8x4xf32>
    %786 = math.exp %785 : vector<8x4xf32>
    %cst_188 = arith.constant 1.000000e+00 : f32
    %787 = vector.broadcast %cst_188 : f32 to vector<8x4xf32>
    %788 = arith.addf %787, %786 : vector<8x4xf32>
    %cst_189 = arith.constant 1.000000e+00 : f32
    %789 = vector.broadcast %cst_189 : f32 to vector<8x4xf32>
    %790 = arith.divf %789, %788 : vector<8x4xf32>
    %791 = vector.extract_strided_slice %790 {offsets = [0, 0], sizes = [8, 1], strides = [1, 1]} : vector<8x4xf32> to vector<8x1xf32>
    %792 = vector.extract_strided_slice %790 {offsets = [0, 1], sizes = [8, 1], strides = [1, 1]} : vector<8x4xf32> to vector<8x1xf32>
    %793 = vector.extract_strided_slice %790 {offsets = [0, 2], sizes = [8, 1], strides = [1, 1]} : vector<8x4xf32> to vector<8x1xf32>
    %cst_190 = arith.constant 2.000000e+00 : f32
    %794 = vector.broadcast %cst_190 : f32 to vector<8x1xf32>
    %795 = arith.mulf %794, %793 : vector<8x1xf32>
    %cst_191 = arith.constant 1.000000e+00 : f32
    %796 = vector.broadcast %cst_191 : f32 to vector<8x1xf32>
    %797 = arith.subf %795, %796 : vector<8x1xf32>
    %798 = vector.extract_strided_slice %790 {offsets = [0, 3], sizes = [8, 1], strides = [1, 1]} : vector<8x4xf32> to vector<8x1xf32>
    %799 = arith.mulf %792, %779 : vector<8x1xf32>
    %800 = arith.mulf %791, %797 : vector<8x1xf32>
    %801 = arith.addf %799, %800 : vector<8x1xf32>
    %802 = math.tanh %801 : vector<8x1xf32>
    %803 = arith.mulf %798, %802 : vector<8x1xf32>
    %c288 = arith.constant 288 : index
    %c0_192 = arith.constant 0 : index
    %804 = vector.load %arg6[%c288, %c0_192] : memref<800x4xf32, #tpu.memory_space<vmem>>, vector<8x4xf32>
    %805 = vector.broadcast %803 : vector<8x1xf32> to vector<8x4xf32>
    %806 = arith.mulf %805, %9 : vector<8x4xf32>
    %807 = arith.addf %804, %806 : vector<8x4xf32>
    %808 = math.exp %807 : vector<8x4xf32>
    %cst_193 = arith.constant 1.000000e+00 : f32
    %809 = vector.broadcast %cst_193 : f32 to vector<8x4xf32>
    %810 = arith.addf %809, %808 : vector<8x4xf32>
    %cst_194 = arith.constant 1.000000e+00 : f32
    %811 = vector.broadcast %cst_194 : f32 to vector<8x4xf32>
    %812 = arith.divf %811, %810 : vector<8x4xf32>
    %813 = vector.extract_strided_slice %812 {offsets = [0, 0], sizes = [8, 1], strides = [1, 1]} : vector<8x4xf32> to vector<8x1xf32>
    %814 = vector.extract_strided_slice %812 {offsets = [0, 1], sizes = [8, 1], strides = [1, 1]} : vector<8x4xf32> to vector<8x1xf32>
    %815 = vector.extract_strided_slice %812 {offsets = [0, 2], sizes = [8, 1], strides = [1, 1]} : vector<8x4xf32> to vector<8x1xf32>
    %cst_195 = arith.constant 2.000000e+00 : f32
    %816 = vector.broadcast %cst_195 : f32 to vector<8x1xf32>
    %817 = arith.mulf %816, %815 : vector<8x1xf32>
    %cst_196 = arith.constant 1.000000e+00 : f32
    %818 = vector.broadcast %cst_196 : f32 to vector<8x1xf32>
    %819 = arith.subf %817, %818 : vector<8x1xf32>
    %820 = vector.extract_strided_slice %812 {offsets = [0, 3], sizes = [8, 1], strides = [1, 1]} : vector<8x4xf32> to vector<8x1xf32>
    %821 = arith.mulf %814, %801 : vector<8x1xf32>
    %822 = arith.mulf %813, %819 : vector<8x1xf32>
    %823 = arith.addf %821, %822 : vector<8x1xf32>
    %824 = math.tanh %823 : vector<8x1xf32>
    %825 = arith.mulf %820, %824 : vector<8x1xf32>
    %c296 = arith.constant 296 : index
    %c0_197 = arith.constant 0 : index
    %826 = vector.load %arg6[%c296, %c0_197] : memref<800x4xf32, #tpu.memory_space<vmem>>, vector<8x4xf32>
    %827 = vector.broadcast %825 : vector<8x1xf32> to vector<8x4xf32>
    %828 = arith.mulf %827, %9 : vector<8x4xf32>
    %829 = arith.addf %826, %828 : vector<8x4xf32>
    %830 = math.exp %829 : vector<8x4xf32>
    %cst_198 = arith.constant 1.000000e+00 : f32
    %831 = vector.broadcast %cst_198 : f32 to vector<8x4xf32>
    %832 = arith.addf %831, %830 : vector<8x4xf32>
    %cst_199 = arith.constant 1.000000e+00 : f32
    %833 = vector.broadcast %cst_199 : f32 to vector<8x4xf32>
    %834 = arith.divf %833, %832 : vector<8x4xf32>
    %835 = vector.extract_strided_slice %834 {offsets = [0, 0], sizes = [8, 1], strides = [1, 1]} : vector<8x4xf32> to vector<8x1xf32>
    %836 = vector.extract_strided_slice %834 {offsets = [0, 1], sizes = [8, 1], strides = [1, 1]} : vector<8x4xf32> to vector<8x1xf32>
    %837 = vector.extract_strided_slice %834 {offsets = [0, 2], sizes = [8, 1], strides = [1, 1]} : vector<8x4xf32> to vector<8x1xf32>
    %cst_200 = arith.constant 2.000000e+00 : f32
    %838 = vector.broadcast %cst_200 : f32 to vector<8x1xf32>
    %839 = arith.mulf %838, %837 : vector<8x1xf32>
    %cst_201 = arith.constant 1.000000e+00 : f32
    %840 = vector.broadcast %cst_201 : f32 to vector<8x1xf32>
    %841 = arith.subf %839, %840 : vector<8x1xf32>
    %842 = vector.extract_strided_slice %834 {offsets = [0, 3], sizes = [8, 1], strides = [1, 1]} : vector<8x4xf32> to vector<8x1xf32>
    %843 = arith.mulf %836, %823 : vector<8x1xf32>
    %844 = arith.mulf %835, %841 : vector<8x1xf32>
    %845 = arith.addf %843, %844 : vector<8x1xf32>
    %846 = math.tanh %845 : vector<8x1xf32>
    %847 = arith.mulf %842, %846 : vector<8x1xf32>
    %c304 = arith.constant 304 : index
    %c0_202 = arith.constant 0 : index
    %848 = vector.load %arg6[%c304, %c0_202] : memref<800x4xf32, #tpu.memory_space<vmem>>, vector<8x4xf32>
    %849 = vector.broadcast %847 : vector<8x1xf32> to vector<8x4xf32>
    %850 = arith.mulf %849, %9 : vector<8x4xf32>
    %851 = arith.addf %848, %850 : vector<8x4xf32>
    %852 = math.exp %851 : vector<8x4xf32>
    %cst_203 = arith.constant 1.000000e+00 : f32
    %853 = vector.broadcast %cst_203 : f32 to vector<8x4xf32>
    %854 = arith.addf %853, %852 : vector<8x4xf32>
    %cst_204 = arith.constant 1.000000e+00 : f32
    %855 = vector.broadcast %cst_204 : f32 to vector<8x4xf32>
    %856 = arith.divf %855, %854 : vector<8x4xf32>
    %857 = vector.extract_strided_slice %856 {offsets = [0, 0], sizes = [8, 1], strides = [1, 1]} : vector<8x4xf32> to vector<8x1xf32>
    %858 = vector.extract_strided_slice %856 {offsets = [0, 1], sizes = [8, 1], strides = [1, 1]} : vector<8x4xf32> to vector<8x1xf32>
    %859 = vector.extract_strided_slice %856 {offsets = [0, 2], sizes = [8, 1], strides = [1, 1]} : vector<8x4xf32> to vector<8x1xf32>
    %cst_205 = arith.constant 2.000000e+00 : f32
    %860 = vector.broadcast %cst_205 : f32 to vector<8x1xf32>
    %861 = arith.mulf %860, %859 : vector<8x1xf32>
    %cst_206 = arith.constant 1.000000e+00 : f32
    %862 = vector.broadcast %cst_206 : f32 to vector<8x1xf32>
    %863 = arith.subf %861, %862 : vector<8x1xf32>
    %864 = vector.extract_strided_slice %856 {offsets = [0, 3], sizes = [8, 1], strides = [1, 1]} : vector<8x4xf32> to vector<8x1xf32>
    %865 = arith.mulf %858, %845 : vector<8x1xf32>
    %866 = arith.mulf %857, %863 : vector<8x1xf32>
    %867 = arith.addf %865, %866 : vector<8x1xf32>
    %868 = math.tanh %867 : vector<8x1xf32>
    %869 = arith.mulf %864, %868 : vector<8x1xf32>
    %c312 = arith.constant 312 : index
    %c0_207 = arith.constant 0 : index
    %870 = vector.load %arg6[%c312, %c0_207] : memref<800x4xf32, #tpu.memory_space<vmem>>, vector<8x4xf32>
    %871 = vector.broadcast %869 : vector<8x1xf32> to vector<8x4xf32>
    %872 = arith.mulf %871, %9 : vector<8x4xf32>
    %873 = arith.addf %870, %872 : vector<8x4xf32>
    %874 = math.exp %873 : vector<8x4xf32>
    %cst_208 = arith.constant 1.000000e+00 : f32
    %875 = vector.broadcast %cst_208 : f32 to vector<8x4xf32>
    %876 = arith.addf %875, %874 : vector<8x4xf32>
    %cst_209 = arith.constant 1.000000e+00 : f32
    %877 = vector.broadcast %cst_209 : f32 to vector<8x4xf32>
    %878 = arith.divf %877, %876 : vector<8x4xf32>
    %879 = vector.extract_strided_slice %878 {offsets = [0, 0], sizes = [8, 1], strides = [1, 1]} : vector<8x4xf32> to vector<8x1xf32>
    %880 = vector.extract_strided_slice %878 {offsets = [0, 1], sizes = [8, 1], strides = [1, 1]} : vector<8x4xf32> to vector<8x1xf32>
    %881 = vector.extract_strided_slice %878 {offsets = [0, 2], sizes = [8, 1], strides = [1, 1]} : vector<8x4xf32> to vector<8x1xf32>
    %cst_210 = arith.constant 2.000000e+00 : f32
    %882 = vector.broadcast %cst_210 : f32 to vector<8x1xf32>
    %883 = arith.mulf %882, %881 : vector<8x1xf32>
    %cst_211 = arith.constant 1.000000e+00 : f32
    %884 = vector.broadcast %cst_211 : f32 to vector<8x1xf32>
    %885 = arith.subf %883, %884 : vector<8x1xf32>
    %886 = vector.extract_strided_slice %878 {offsets = [0, 3], sizes = [8, 1], strides = [1, 1]} : vector<8x4xf32> to vector<8x1xf32>
    %887 = arith.mulf %880, %867 : vector<8x1xf32>
    %888 = arith.mulf %879, %885 : vector<8x1xf32>
    %889 = arith.addf %887, %888 : vector<8x1xf32>
    %890 = math.tanh %889 : vector<8x1xf32>
    %891 = arith.mulf %886, %890 : vector<8x1xf32>
    %c320 = arith.constant 320 : index
    %c0_212 = arith.constant 0 : index
    %892 = vector.load %arg6[%c320, %c0_212] : memref<800x4xf32, #tpu.memory_space<vmem>>, vector<8x4xf32>
    %893 = vector.broadcast %891 : vector<8x1xf32> to vector<8x4xf32>
    %894 = arith.mulf %893, %9 : vector<8x4xf32>
    %895 = arith.addf %892, %894 : vector<8x4xf32>
    %896 = math.exp %895 : vector<8x4xf32>
    %cst_213 = arith.constant 1.000000e+00 : f32
    %897 = vector.broadcast %cst_213 : f32 to vector<8x4xf32>
    %898 = arith.addf %897, %896 : vector<8x4xf32>
    %cst_214 = arith.constant 1.000000e+00 : f32
    %899 = vector.broadcast %cst_214 : f32 to vector<8x4xf32>
    %900 = arith.divf %899, %898 : vector<8x4xf32>
    %901 = vector.extract_strided_slice %900 {offsets = [0, 0], sizes = [8, 1], strides = [1, 1]} : vector<8x4xf32> to vector<8x1xf32>
    %902 = vector.extract_strided_slice %900 {offsets = [0, 1], sizes = [8, 1], strides = [1, 1]} : vector<8x4xf32> to vector<8x1xf32>
    %903 = vector.extract_strided_slice %900 {offsets = [0, 2], sizes = [8, 1], strides = [1, 1]} : vector<8x4xf32> to vector<8x1xf32>
    %cst_215 = arith.constant 2.000000e+00 : f32
    %904 = vector.broadcast %cst_215 : f32 to vector<8x1xf32>
    %905 = arith.mulf %904, %903 : vector<8x1xf32>
    %cst_216 = arith.constant 1.000000e+00 : f32
    %906 = vector.broadcast %cst_216 : f32 to vector<8x1xf32>
    %907 = arith.subf %905, %906 : vector<8x1xf32>
    %908 = vector.extract_strided_slice %900 {offsets = [0, 3], sizes = [8, 1], strides = [1, 1]} : vector<8x4xf32> to vector<8x1xf32>
    %909 = arith.mulf %902, %889 : vector<8x1xf32>
    %910 = arith.mulf %901, %907 : vector<8x1xf32>
    %911 = arith.addf %909, %910 : vector<8x1xf32>
    %912 = math.tanh %911 : vector<8x1xf32>
    %913 = arith.mulf %908, %912 : vector<8x1xf32>
    %c328 = arith.constant 328 : index
    %c0_217 = arith.constant 0 : index
    %914 = vector.load %arg6[%c328, %c0_217] : memref<800x4xf32, #tpu.memory_space<vmem>>, vector<8x4xf32>
    %915 = vector.broadcast %913 : vector<8x1xf32> to vector<8x4xf32>
    %916 = arith.mulf %915, %9 : vector<8x4xf32>
    %917 = arith.addf %914, %916 : vector<8x4xf32>
    %918 = math.exp %917 : vector<8x4xf32>
    %cst_218 = arith.constant 1.000000e+00 : f32
    %919 = vector.broadcast %cst_218 : f32 to vector<8x4xf32>
    %920 = arith.addf %919, %918 : vector<8x4xf32>
    %cst_219 = arith.constant 1.000000e+00 : f32
    %921 = vector.broadcast %cst_219 : f32 to vector<8x4xf32>
    %922 = arith.divf %921, %920 : vector<8x4xf32>
    %923 = vector.extract_strided_slice %922 {offsets = [0, 0], sizes = [8, 1], strides = [1, 1]} : vector<8x4xf32> to vector<8x1xf32>
    %924 = vector.extract_strided_slice %922 {offsets = [0, 1], sizes = [8, 1], strides = [1, 1]} : vector<8x4xf32> to vector<8x1xf32>
    %925 = vector.extract_strided_slice %922 {offsets = [0, 2], sizes = [8, 1], strides = [1, 1]} : vector<8x4xf32> to vector<8x1xf32>
    %cst_220 = arith.constant 2.000000e+00 : f32
    %926 = vector.broadcast %cst_220 : f32 to vector<8x1xf32>
    %927 = arith.mulf %926, %925 : vector<8x1xf32>
    %cst_221 = arith.constant 1.000000e+00 : f32
    %928 = vector.broadcast %cst_221 : f32 to vector<8x1xf32>
    %929 = arith.subf %927, %928 : vector<8x1xf32>
    %930 = vector.extract_strided_slice %922 {offsets = [0, 3], sizes = [8, 1], strides = [1, 1]} : vector<8x4xf32> to vector<8x1xf32>
    %931 = arith.mulf %924, %911 : vector<8x1xf32>
    %932 = arith.mulf %923, %929 : vector<8x1xf32>
    %933 = arith.addf %931, %932 : vector<8x1xf32>
    %934 = math.tanh %933 : vector<8x1xf32>
    %935 = arith.mulf %930, %934 : vector<8x1xf32>
    %c336 = arith.constant 336 : index
    %c0_222 = arith.constant 0 : index
    %936 = vector.load %arg6[%c336, %c0_222] : memref<800x4xf32, #tpu.memory_space<vmem>>, vector<8x4xf32>
    %937 = vector.broadcast %935 : vector<8x1xf32> to vector<8x4xf32>
    %938 = arith.mulf %937, %9 : vector<8x4xf32>
    %939 = arith.addf %936, %938 : vector<8x4xf32>
    %940 = math.exp %939 : vector<8x4xf32>
    %cst_223 = arith.constant 1.000000e+00 : f32
    %941 = vector.broadcast %cst_223 : f32 to vector<8x4xf32>
    %942 = arith.addf %941, %940 : vector<8x4xf32>
    %cst_224 = arith.constant 1.000000e+00 : f32
    %943 = vector.broadcast %cst_224 : f32 to vector<8x4xf32>
    %944 = arith.divf %943, %942 : vector<8x4xf32>
    %945 = vector.extract_strided_slice %944 {offsets = [0, 0], sizes = [8, 1], strides = [1, 1]} : vector<8x4xf32> to vector<8x1xf32>
    %946 = vector.extract_strided_slice %944 {offsets = [0, 1], sizes = [8, 1], strides = [1, 1]} : vector<8x4xf32> to vector<8x1xf32>
    %947 = vector.extract_strided_slice %944 {offsets = [0, 2], sizes = [8, 1], strides = [1, 1]} : vector<8x4xf32> to vector<8x1xf32>
    %cst_225 = arith.constant 2.000000e+00 : f32
    %948 = vector.broadcast %cst_225 : f32 to vector<8x1xf32>
    %949 = arith.mulf %948, %947 : vector<8x1xf32>
    %cst_226 = arith.constant 1.000000e+00 : f32
    %950 = vector.broadcast %cst_226 : f32 to vector<8x1xf32>
    %951 = arith.subf %949, %950 : vector<8x1xf32>
    %952 = vector.extract_strided_slice %944 {offsets = [0, 3], sizes = [8, 1], strides = [1, 1]} : vector<8x4xf32> to vector<8x1xf32>
    %953 = arith.mulf %946, %933 : vector<8x1xf32>
    %954 = arith.mulf %945, %951 : vector<8x1xf32>
    %955 = arith.addf %953, %954 : vector<8x1xf32>
    %956 = math.tanh %955 : vector<8x1xf32>
    %957 = arith.mulf %952, %956 : vector<8x1xf32>
    %c344 = arith.constant 344 : index
    %c0_227 = arith.constant 0 : index
    %958 = vector.load %arg6[%c344, %c0_227] : memref<800x4xf32, #tpu.memory_space<vmem>>, vector<8x4xf32>
    %959 = vector.broadcast %957 : vector<8x1xf32> to vector<8x4xf32>
    %960 = arith.mulf %959, %9 : vector<8x4xf32>
    %961 = arith.addf %958, %960 : vector<8x4xf32>
    %962 = math.exp %961 : vector<8x4xf32>
    %cst_228 = arith.constant 1.000000e+00 : f32
    %963 = vector.broadcast %cst_228 : f32 to vector<8x4xf32>
    %964 = arith.addf %963, %962 : vector<8x4xf32>
    %cst_229 = arith.constant 1.000000e+00 : f32
    %965 = vector.broadcast %cst_229 : f32 to vector<8x4xf32>
    %966 = arith.divf %965, %964 : vector<8x4xf32>
    %967 = vector.extract_strided_slice %966 {offsets = [0, 0], sizes = [8, 1], strides = [1, 1]} : vector<8x4xf32> to vector<8x1xf32>
    %968 = vector.extract_strided_slice %966 {offsets = [0, 1], sizes = [8, 1], strides = [1, 1]} : vector<8x4xf32> to vector<8x1xf32>
    %969 = vector.extract_strided_slice %966 {offsets = [0, 2], sizes = [8, 1], strides = [1, 1]} : vector<8x4xf32> to vector<8x1xf32>
    %cst_230 = arith.constant 2.000000e+00 : f32
    %970 = vector.broadcast %cst_230 : f32 to vector<8x1xf32>
    %971 = arith.mulf %970, %969 : vector<8x1xf32>
    %cst_231 = arith.constant 1.000000e+00 : f32
    %972 = vector.broadcast %cst_231 : f32 to vector<8x1xf32>
    %973 = arith.subf %971, %972 : vector<8x1xf32>
    %974 = vector.extract_strided_slice %966 {offsets = [0, 3], sizes = [8, 1], strides = [1, 1]} : vector<8x4xf32> to vector<8x1xf32>
    %975 = arith.mulf %968, %955 : vector<8x1xf32>
    %976 = arith.mulf %967, %973 : vector<8x1xf32>
    %977 = arith.addf %975, %976 : vector<8x1xf32>
    %978 = math.tanh %977 : vector<8x1xf32>
    %979 = arith.mulf %974, %978 : vector<8x1xf32>
    %c352 = arith.constant 352 : index
    %c0_232 = arith.constant 0 : index
    %980 = vector.load %arg6[%c352, %c0_232] : memref<800x4xf32, #tpu.memory_space<vmem>>, vector<8x4xf32>
    %981 = vector.broadcast %979 : vector<8x1xf32> to vector<8x4xf32>
    %982 = arith.mulf %981, %9 : vector<8x4xf32>
    %983 = arith.addf %980, %982 : vector<8x4xf32>
    %984 = math.exp %983 : vector<8x4xf32>
    %cst_233 = arith.constant 1.000000e+00 : f32
    %985 = vector.broadcast %cst_233 : f32 to vector<8x4xf32>
    %986 = arith.addf %985, %984 : vector<8x4xf32>
    %cst_234 = arith.constant 1.000000e+00 : f32
    %987 = vector.broadcast %cst_234 : f32 to vector<8x4xf32>
    %988 = arith.divf %987, %986 : vector<8x4xf32>
    %989 = vector.extract_strided_slice %988 {offsets = [0, 0], sizes = [8, 1], strides = [1, 1]} : vector<8x4xf32> to vector<8x1xf32>
    %990 = vector.extract_strided_slice %988 {offsets = [0, 1], sizes = [8, 1], strides = [1, 1]} : vector<8x4xf32> to vector<8x1xf32>
    %991 = vector.extract_strided_slice %988 {offsets = [0, 2], sizes = [8, 1], strides = [1, 1]} : vector<8x4xf32> to vector<8x1xf32>
    %cst_235 = arith.constant 2.000000e+00 : f32
    %992 = vector.broadcast %cst_235 : f32 to vector<8x1xf32>
    %993 = arith.mulf %992, %991 : vector<8x1xf32>
    %cst_236 = arith.constant 1.000000e+00 : f32
    %994 = vector.broadcast %cst_236 : f32 to vector<8x1xf32>
    %995 = arith.subf %993, %994 : vector<8x1xf32>
    %996 = vector.extract_strided_slice %988 {offsets = [0, 3], sizes = [8, 1], strides = [1, 1]} : vector<8x4xf32> to vector<8x1xf32>
    %997 = arith.mulf %990, %977 : vector<8x1xf32>
    %998 = arith.mulf %989, %995 : vector<8x1xf32>
    %999 = arith.addf %997, %998 : vector<8x1xf32>
    %1000 = math.tanh %999 : vector<8x1xf32>
    %1001 = arith.mulf %996, %1000 : vector<8x1xf32>
    %c360 = arith.constant 360 : index
    %c0_237 = arith.constant 0 : index
    %1002 = vector.load %arg6[%c360, %c0_237] : memref<800x4xf32, #tpu.memory_space<vmem>>, vector<8x4xf32>
    %1003 = vector.broadcast %1001 : vector<8x1xf32> to vector<8x4xf32>
    %1004 = arith.mulf %1003, %9 : vector<8x4xf32>
    %1005 = arith.addf %1002, %1004 : vector<8x4xf32>
    %1006 = math.exp %1005 : vector<8x4xf32>
    %cst_238 = arith.constant 1.000000e+00 : f32
    %1007 = vector.broadcast %cst_238 : f32 to vector<8x4xf32>
    %1008 = arith.addf %1007, %1006 : vector<8x4xf32>
    %cst_239 = arith.constant 1.000000e+00 : f32
    %1009 = vector.broadcast %cst_239 : f32 to vector<8x4xf32>
    %1010 = arith.divf %1009, %1008 : vector<8x4xf32>
    %1011 = vector.extract_strided_slice %1010 {offsets = [0, 0], sizes = [8, 1], strides = [1, 1]} : vector<8x4xf32> to vector<8x1xf32>
    %1012 = vector.extract_strided_slice %1010 {offsets = [0, 1], sizes = [8, 1], strides = [1, 1]} : vector<8x4xf32> to vector<8x1xf32>
    %1013 = vector.extract_strided_slice %1010 {offsets = [0, 2], sizes = [8, 1], strides = [1, 1]} : vector<8x4xf32> to vector<8x1xf32>
    %cst_240 = arith.constant 2.000000e+00 : f32
    %1014 = vector.broadcast %cst_240 : f32 to vector<8x1xf32>
    %1015 = arith.mulf %1014, %1013 : vector<8x1xf32>
    %cst_241 = arith.constant 1.000000e+00 : f32
    %1016 = vector.broadcast %cst_241 : f32 to vector<8x1xf32>
    %1017 = arith.subf %1015, %1016 : vector<8x1xf32>
    %1018 = vector.extract_strided_slice %1010 {offsets = [0, 3], sizes = [8, 1], strides = [1, 1]} : vector<8x4xf32> to vector<8x1xf32>
    %1019 = arith.mulf %1012, %999 : vector<8x1xf32>
    %1020 = arith.mulf %1011, %1017 : vector<8x1xf32>
    %1021 = arith.addf %1019, %1020 : vector<8x1xf32>
    %1022 = math.tanh %1021 : vector<8x1xf32>
    %1023 = arith.mulf %1018, %1022 : vector<8x1xf32>
    %c368 = arith.constant 368 : index
    %c0_242 = arith.constant 0 : index
    %1024 = vector.load %arg6[%c368, %c0_242] : memref<800x4xf32, #tpu.memory_space<vmem>>, vector<8x4xf32>
    %1025 = vector.broadcast %1023 : vector<8x1xf32> to vector<8x4xf32>
    %1026 = arith.mulf %1025, %9 : vector<8x4xf32>
    %1027 = arith.addf %1024, %1026 : vector<8x4xf32>
    %1028 = math.exp %1027 : vector<8x4xf32>
    %cst_243 = arith.constant 1.000000e+00 : f32
    %1029 = vector.broadcast %cst_243 : f32 to vector<8x4xf32>
    %1030 = arith.addf %1029, %1028 : vector<8x4xf32>
    %cst_244 = arith.constant 1.000000e+00 : f32
    %1031 = vector.broadcast %cst_244 : f32 to vector<8x4xf32>
    %1032 = arith.divf %1031, %1030 : vector<8x4xf32>
    %1033 = vector.extract_strided_slice %1032 {offsets = [0, 0], sizes = [8, 1], strides = [1, 1]} : vector<8x4xf32> to vector<8x1xf32>
    %1034 = vector.extract_strided_slice %1032 {offsets = [0, 1], sizes = [8, 1], strides = [1, 1]} : vector<8x4xf32> to vector<8x1xf32>
    %1035 = vector.extract_strided_slice %1032 {offsets = [0, 2], sizes = [8, 1], strides = [1, 1]} : vector<8x4xf32> to vector<8x1xf32>
    %cst_245 = arith.constant 2.000000e+00 : f32
    %1036 = vector.broadcast %cst_245 : f32 to vector<8x1xf32>
    %1037 = arith.mulf %1036, %1035 : vector<8x1xf32>
    %cst_246 = arith.constant 1.000000e+00 : f32
    %1038 = vector.broadcast %cst_246 : f32 to vector<8x1xf32>
    %1039 = arith.subf %1037, %1038 : vector<8x1xf32>
    %1040 = vector.extract_strided_slice %1032 {offsets = [0, 3], sizes = [8, 1], strides = [1, 1]} : vector<8x4xf32> to vector<8x1xf32>
    %1041 = arith.mulf %1034, %1021 : vector<8x1xf32>
    %1042 = arith.mulf %1033, %1039 : vector<8x1xf32>
    %1043 = arith.addf %1041, %1042 : vector<8x1xf32>
    %1044 = math.tanh %1043 : vector<8x1xf32>
    %1045 = arith.mulf %1040, %1044 : vector<8x1xf32>
    %c376 = arith.constant 376 : index
    %c0_247 = arith.constant 0 : index
    %1046 = vector.load %arg6[%c376, %c0_247] : memref<800x4xf32, #tpu.memory_space<vmem>>, vector<8x4xf32>
    %1047 = vector.broadcast %1045 : vector<8x1xf32> to vector<8x4xf32>
    %1048 = arith.mulf %1047, %9 : vector<8x4xf32>
    %1049 = arith.addf %1046, %1048 : vector<8x4xf32>
    %1050 = math.exp %1049 : vector<8x4xf32>
    %cst_248 = arith.constant 1.000000e+00 : f32
    %1051 = vector.broadcast %cst_248 : f32 to vector<8x4xf32>
    %1052 = arith.addf %1051, %1050 : vector<8x4xf32>
    %cst_249 = arith.constant 1.000000e+00 : f32
    %1053 = vector.broadcast %cst_249 : f32 to vector<8x4xf32>
    %1054 = arith.divf %1053, %1052 : vector<8x4xf32>
    %1055 = vector.extract_strided_slice %1054 {offsets = [0, 0], sizes = [8, 1], strides = [1, 1]} : vector<8x4xf32> to vector<8x1xf32>
    %1056 = vector.extract_strided_slice %1054 {offsets = [0, 1], sizes = [8, 1], strides = [1, 1]} : vector<8x4xf32> to vector<8x1xf32>
    %1057 = vector.extract_strided_slice %1054 {offsets = [0, 2], sizes = [8, 1], strides = [1, 1]} : vector<8x4xf32> to vector<8x1xf32>
    %cst_250 = arith.constant 2.000000e+00 : f32
    %1058 = vector.broadcast %cst_250 : f32 to vector<8x1xf32>
    %1059 = arith.mulf %1058, %1057 : vector<8x1xf32>
    %cst_251 = arith.constant 1.000000e+00 : f32
    %1060 = vector.broadcast %cst_251 : f32 to vector<8x1xf32>
    %1061 = arith.subf %1059, %1060 : vector<8x1xf32>
    %1062 = vector.extract_strided_slice %1054 {offsets = [0, 3], sizes = [8, 1], strides = [1, 1]} : vector<8x4xf32> to vector<8x1xf32>
    %1063 = arith.mulf %1056, %1043 : vector<8x1xf32>
    %1064 = arith.mulf %1055, %1061 : vector<8x1xf32>
    %1065 = arith.addf %1063, %1064 : vector<8x1xf32>
    %1066 = math.tanh %1065 : vector<8x1xf32>
    %1067 = arith.mulf %1062, %1066 : vector<8x1xf32>
    %c384 = arith.constant 384 : index
    %c0_252 = arith.constant 0 : index
    %1068 = vector.load %arg6[%c384, %c0_252] : memref<800x4xf32, #tpu.memory_space<vmem>>, vector<8x4xf32>
    %1069 = vector.broadcast %1067 : vector<8x1xf32> to vector<8x4xf32>
    %1070 = arith.mulf %1069, %9 : vector<8x4xf32>
    %1071 = arith.addf %1068, %1070 : vector<8x4xf32>
    %1072 = math.exp %1071 : vector<8x4xf32>
    %cst_253 = arith.constant 1.000000e+00 : f32
    %1073 = vector.broadcast %cst_253 : f32 to vector<8x4xf32>
    %1074 = arith.addf %1073, %1072 : vector<8x4xf32>
    %cst_254 = arith.constant 1.000000e+00 : f32
    %1075 = vector.broadcast %cst_254 : f32 to vector<8x4xf32>
    %1076 = arith.divf %1075, %1074 : vector<8x4xf32>
    %1077 = vector.extract_strided_slice %1076 {offsets = [0, 0], sizes = [8, 1], strides = [1, 1]} : vector<8x4xf32> to vector<8x1xf32>
    %1078 = vector.extract_strided_slice %1076 {offsets = [0, 1], sizes = [8, 1], strides = [1, 1]} : vector<8x4xf32> to vector<8x1xf32>
    %1079 = vector.extract_strided_slice %1076 {offsets = [0, 2], sizes = [8, 1], strides = [1, 1]} : vector<8x4xf32> to vector<8x1xf32>
    %cst_255 = arith.constant 2.000000e+00 : f32
    %1080 = vector.broadcast %cst_255 : f32 to vector<8x1xf32>
    %1081 = arith.mulf %1080, %1079 : vector<8x1xf32>
    %cst_256 = arith.constant 1.000000e+00 : f32
    %1082 = vector.broadcast %cst_256 : f32 to vector<8x1xf32>
    %1083 = arith.subf %1081, %1082 : vector<8x1xf32>
    %1084 = vector.extract_strided_slice %1076 {offsets = [0, 3], sizes = [8, 1], strides = [1, 1]} : vector<8x4xf32> to vector<8x1xf32>
    %1085 = arith.mulf %1078, %1065 : vector<8x1xf32>
    %1086 = arith.mulf %1077, %1083 : vector<8x1xf32>
    %1087 = arith.addf %1085, %1086 : vector<8x1xf32>
    %1088 = math.tanh %1087 : vector<8x1xf32>
    %1089 = arith.mulf %1084, %1088 : vector<8x1xf32>
    %c392 = arith.constant 392 : index
    %c0_257 = arith.constant 0 : index
    %1090 = vector.load %arg6[%c392, %c0_257] : memref<800x4xf32, #tpu.memory_space<vmem>>, vector<8x4xf32>
    %1091 = vector.broadcast %1089 : vector<8x1xf32> to vector<8x4xf32>
    %1092 = arith.mulf %1091, %9 : vector<8x4xf32>
    %1093 = arith.addf %1090, %1092 : vector<8x4xf32>
    %1094 = math.exp %1093 : vector<8x4xf32>
    %cst_258 = arith.constant 1.000000e+00 : f32
    %1095 = vector.broadcast %cst_258 : f32 to vector<8x4xf32>
    %1096 = arith.addf %1095, %1094 : vector<8x4xf32>
    %cst_259 = arith.constant 1.000000e+00 : f32
    %1097 = vector.broadcast %cst_259 : f32 to vector<8x4xf32>
    %1098 = arith.divf %1097, %1096 : vector<8x4xf32>
    %1099 = vector.extract_strided_slice %1098 {offsets = [0, 0], sizes = [8, 1], strides = [1, 1]} : vector<8x4xf32> to vector<8x1xf32>
    %1100 = vector.extract_strided_slice %1098 {offsets = [0, 1], sizes = [8, 1], strides = [1, 1]} : vector<8x4xf32> to vector<8x1xf32>
    %1101 = vector.extract_strided_slice %1098 {offsets = [0, 2], sizes = [8, 1], strides = [1, 1]} : vector<8x4xf32> to vector<8x1xf32>
    %cst_260 = arith.constant 2.000000e+00 : f32
    %1102 = vector.broadcast %cst_260 : f32 to vector<8x1xf32>
    %1103 = arith.mulf %1102, %1101 : vector<8x1xf32>
    %cst_261 = arith.constant 1.000000e+00 : f32
    %1104 = vector.broadcast %cst_261 : f32 to vector<8x1xf32>
    %1105 = arith.subf %1103, %1104 : vector<8x1xf32>
    %1106 = vector.extract_strided_slice %1098 {offsets = [0, 3], sizes = [8, 1], strides = [1, 1]} : vector<8x4xf32> to vector<8x1xf32>
    %1107 = arith.mulf %1100, %1087 : vector<8x1xf32>
    %1108 = arith.mulf %1099, %1105 : vector<8x1xf32>
    %1109 = arith.addf %1107, %1108 : vector<8x1xf32>
    %1110 = math.tanh %1109 : vector<8x1xf32>
    %1111 = arith.mulf %1106, %1110 : vector<8x1xf32>
    %c400 = arith.constant 400 : index
    %c0_262 = arith.constant 0 : index
    %1112 = vector.load %arg6[%c400, %c0_262] : memref<800x4xf32, #tpu.memory_space<vmem>>, vector<8x4xf32>
    %1113 = vector.broadcast %1111 : vector<8x1xf32> to vector<8x4xf32>
    %1114 = arith.mulf %1113, %9 : vector<8x4xf32>
    %1115 = arith.addf %1112, %1114 : vector<8x4xf32>
    %1116 = math.exp %1115 : vector<8x4xf32>
    %cst_263 = arith.constant 1.000000e+00 : f32
    %1117 = vector.broadcast %cst_263 : f32 to vector<8x4xf32>
    %1118 = arith.addf %1117, %1116 : vector<8x4xf32>
    %cst_264 = arith.constant 1.000000e+00 : f32
    %1119 = vector.broadcast %cst_264 : f32 to vector<8x4xf32>
    %1120 = arith.divf %1119, %1118 : vector<8x4xf32>
    %1121 = vector.extract_strided_slice %1120 {offsets = [0, 0], sizes = [8, 1], strides = [1, 1]} : vector<8x4xf32> to vector<8x1xf32>
    %1122 = vector.extract_strided_slice %1120 {offsets = [0, 1], sizes = [8, 1], strides = [1, 1]} : vector<8x4xf32> to vector<8x1xf32>
    %1123 = vector.extract_strided_slice %1120 {offsets = [0, 2], sizes = [8, 1], strides = [1, 1]} : vector<8x4xf32> to vector<8x1xf32>
    %cst_265 = arith.constant 2.000000e+00 : f32
    %1124 = vector.broadcast %cst_265 : f32 to vector<8x1xf32>
    %1125 = arith.mulf %1124, %1123 : vector<8x1xf32>
    %cst_266 = arith.constant 1.000000e+00 : f32
    %1126 = vector.broadcast %cst_266 : f32 to vector<8x1xf32>
    %1127 = arith.subf %1125, %1126 : vector<8x1xf32>
    %1128 = vector.extract_strided_slice %1120 {offsets = [0, 3], sizes = [8, 1], strides = [1, 1]} : vector<8x4xf32> to vector<8x1xf32>
    %1129 = arith.mulf %1122, %1109 : vector<8x1xf32>
    %1130 = arith.mulf %1121, %1127 : vector<8x1xf32>
    %1131 = arith.addf %1129, %1130 : vector<8x1xf32>
    %1132 = math.tanh %1131 : vector<8x1xf32>
    %1133 = arith.mulf %1128, %1132 : vector<8x1xf32>
    %c408 = arith.constant 408 : index
    %c0_267 = arith.constant 0 : index
    %1134 = vector.load %arg6[%c408, %c0_267] : memref<800x4xf32, #tpu.memory_space<vmem>>, vector<8x4xf32>
    %1135 = vector.broadcast %1133 : vector<8x1xf32> to vector<8x4xf32>
    %1136 = arith.mulf %1135, %9 : vector<8x4xf32>
    %1137 = arith.addf %1134, %1136 : vector<8x4xf32>
    %1138 = math.exp %1137 : vector<8x4xf32>
    %cst_268 = arith.constant 1.000000e+00 : f32
    %1139 = vector.broadcast %cst_268 : f32 to vector<8x4xf32>
    %1140 = arith.addf %1139, %1138 : vector<8x4xf32>
    %cst_269 = arith.constant 1.000000e+00 : f32
    %1141 = vector.broadcast %cst_269 : f32 to vector<8x4xf32>
    %1142 = arith.divf %1141, %1140 : vector<8x4xf32>
    %1143 = vector.extract_strided_slice %1142 {offsets = [0, 0], sizes = [8, 1], strides = [1, 1]} : vector<8x4xf32> to vector<8x1xf32>
    %1144 = vector.extract_strided_slice %1142 {offsets = [0, 1], sizes = [8, 1], strides = [1, 1]} : vector<8x4xf32> to vector<8x1xf32>
    %1145 = vector.extract_strided_slice %1142 {offsets = [0, 2], sizes = [8, 1], strides = [1, 1]} : vector<8x4xf32> to vector<8x1xf32>
    %cst_270 = arith.constant 2.000000e+00 : f32
    %1146 = vector.broadcast %cst_270 : f32 to vector<8x1xf32>
    %1147 = arith.mulf %1146, %1145 : vector<8x1xf32>
    %cst_271 = arith.constant 1.000000e+00 : f32
    %1148 = vector.broadcast %cst_271 : f32 to vector<8x1xf32>
    %1149 = arith.subf %1147, %1148 : vector<8x1xf32>
    %1150 = vector.extract_strided_slice %1142 {offsets = [0, 3], sizes = [8, 1], strides = [1, 1]} : vector<8x4xf32> to vector<8x1xf32>
    %1151 = arith.mulf %1144, %1131 : vector<8x1xf32>
    %1152 = arith.mulf %1143, %1149 : vector<8x1xf32>
    %1153 = arith.addf %1151, %1152 : vector<8x1xf32>
    %1154 = math.tanh %1153 : vector<8x1xf32>
    %1155 = arith.mulf %1150, %1154 : vector<8x1xf32>
    %c416 = arith.constant 416 : index
    %c0_272 = arith.constant 0 : index
    %1156 = vector.load %arg6[%c416, %c0_272] : memref<800x4xf32, #tpu.memory_space<vmem>>, vector<8x4xf32>
    %1157 = vector.broadcast %1155 : vector<8x1xf32> to vector<8x4xf32>
    %1158 = arith.mulf %1157, %9 : vector<8x4xf32>
    %1159 = arith.addf %1156, %1158 : vector<8x4xf32>
    %1160 = math.exp %1159 : vector<8x4xf32>
    %cst_273 = arith.constant 1.000000e+00 : f32
    %1161 = vector.broadcast %cst_273 : f32 to vector<8x4xf32>
    %1162 = arith.addf %1161, %1160 : vector<8x4xf32>
    %cst_274 = arith.constant 1.000000e+00 : f32
    %1163 = vector.broadcast %cst_274 : f32 to vector<8x4xf32>
    %1164 = arith.divf %1163, %1162 : vector<8x4xf32>
    %1165 = vector.extract_strided_slice %1164 {offsets = [0, 0], sizes = [8, 1], strides = [1, 1]} : vector<8x4xf32> to vector<8x1xf32>
    %1166 = vector.extract_strided_slice %1164 {offsets = [0, 1], sizes = [8, 1], strides = [1, 1]} : vector<8x4xf32> to vector<8x1xf32>
    %1167 = vector.extract_strided_slice %1164 {offsets = [0, 2], sizes = [8, 1], strides = [1, 1]} : vector<8x4xf32> to vector<8x1xf32>
    %cst_275 = arith.constant 2.000000e+00 : f32
    %1168 = vector.broadcast %cst_275 : f32 to vector<8x1xf32>
    %1169 = arith.mulf %1168, %1167 : vector<8x1xf32>
    %cst_276 = arith.constant 1.000000e+00 : f32
    %1170 = vector.broadcast %cst_276 : f32 to vector<8x1xf32>
    %1171 = arith.subf %1169, %1170 : vector<8x1xf32>
    %1172 = vector.extract_strided_slice %1164 {offsets = [0, 3], sizes = [8, 1], strides = [1, 1]} : vector<8x4xf32> to vector<8x1xf32>
    %1173 = arith.mulf %1166, %1153 : vector<8x1xf32>
    %1174 = arith.mulf %1165, %1171 : vector<8x1xf32>
    %1175 = arith.addf %1173, %1174 : vector<8x1xf32>
    %1176 = math.tanh %1175 : vector<8x1xf32>
    %1177 = arith.mulf %1172, %1176 : vector<8x1xf32>
    %c424 = arith.constant 424 : index
    %c0_277 = arith.constant 0 : index
    %1178 = vector.load %arg6[%c424, %c0_277] : memref<800x4xf32, #tpu.memory_space<vmem>>, vector<8x4xf32>
    %1179 = vector.broadcast %1177 : vector<8x1xf32> to vector<8x4xf32>
    %1180 = arith.mulf %1179, %9 : vector<8x4xf32>
    %1181 = arith.addf %1178, %1180 : vector<8x4xf32>
    %1182 = math.exp %1181 : vector<8x4xf32>
    %cst_278 = arith.constant 1.000000e+00 : f32
    %1183 = vector.broadcast %cst_278 : f32 to vector<8x4xf32>
    %1184 = arith.addf %1183, %1182 : vector<8x4xf32>
    %cst_279 = arith.constant 1.000000e+00 : f32
    %1185 = vector.broadcast %cst_279 : f32 to vector<8x4xf32>
    %1186 = arith.divf %1185, %1184 : vector<8x4xf32>
    %1187 = vector.extract_strided_slice %1186 {offsets = [0, 0], sizes = [8, 1], strides = [1, 1]} : vector<8x4xf32> to vector<8x1xf32>
    %1188 = vector.extract_strided_slice %1186 {offsets = [0, 1], sizes = [8, 1], strides = [1, 1]} : vector<8x4xf32> to vector<8x1xf32>
    %1189 = vector.extract_strided_slice %1186 {offsets = [0, 2], sizes = [8, 1], strides = [1, 1]} : vector<8x4xf32> to vector<8x1xf32>
    %cst_280 = arith.constant 2.000000e+00 : f32
    %1190 = vector.broadcast %cst_280 : f32 to vector<8x1xf32>
    %1191 = arith.mulf %1190, %1189 : vector<8x1xf32>
    %cst_281 = arith.constant 1.000000e+00 : f32
    %1192 = vector.broadcast %cst_281 : f32 to vector<8x1xf32>
    %1193 = arith.subf %1191, %1192 : vector<8x1xf32>
    %1194 = vector.extract_strided_slice %1186 {offsets = [0, 3], sizes = [8, 1], strides = [1, 1]} : vector<8x4xf32> to vector<8x1xf32>
    %1195 = arith.mulf %1188, %1175 : vector<8x1xf32>
    %1196 = arith.mulf %1187, %1193 : vector<8x1xf32>
    %1197 = arith.addf %1195, %1196 : vector<8x1xf32>
    %1198 = math.tanh %1197 : vector<8x1xf32>
    %1199 = arith.mulf %1194, %1198 : vector<8x1xf32>
    %c432 = arith.constant 432 : index
    %c0_282 = arith.constant 0 : index
    %1200 = vector.load %arg6[%c432, %c0_282] : memref<800x4xf32, #tpu.memory_space<vmem>>, vector<8x4xf32>
    %1201 = vector.broadcast %1199 : vector<8x1xf32> to vector<8x4xf32>
    %1202 = arith.mulf %1201, %9 : vector<8x4xf32>
    %1203 = arith.addf %1200, %1202 : vector<8x4xf32>
    %1204 = math.exp %1203 : vector<8x4xf32>
    %cst_283 = arith.constant 1.000000e+00 : f32
    %1205 = vector.broadcast %cst_283 : f32 to vector<8x4xf32>
    %1206 = arith.addf %1205, %1204 : vector<8x4xf32>
    %cst_284 = arith.constant 1.000000e+00 : f32
    %1207 = vector.broadcast %cst_284 : f32 to vector<8x4xf32>
    %1208 = arith.divf %1207, %1206 : vector<8x4xf32>
    %1209 = vector.extract_strided_slice %1208 {offsets = [0, 0], sizes = [8, 1], strides = [1, 1]} : vector<8x4xf32> to vector<8x1xf32>
    %1210 = vector.extract_strided_slice %1208 {offsets = [0, 1], sizes = [8, 1], strides = [1, 1]} : vector<8x4xf32> to vector<8x1xf32>
    %1211 = vector.extract_strided_slice %1208 {offsets = [0, 2], sizes = [8, 1], strides = [1, 1]} : vector<8x4xf32> to vector<8x1xf32>
    %cst_285 = arith.constant 2.000000e+00 : f32
    %1212 = vector.broadcast %cst_285 : f32 to vector<8x1xf32>
    %1213 = arith.mulf %1212, %1211 : vector<8x1xf32>
    %cst_286 = arith.constant 1.000000e+00 : f32
    %1214 = vector.broadcast %cst_286 : f32 to vector<8x1xf32>
    %1215 = arith.subf %1213, %1214 : vector<8x1xf32>
    %1216 = vector.extract_strided_slice %1208 {offsets = [0, 3], sizes = [8, 1], strides = [1, 1]} : vector<8x4xf32> to vector<8x1xf32>
    %1217 = arith.mulf %1210, %1197 : vector<8x1xf32>
    %1218 = arith.mulf %1209, %1215 : vector<8x1xf32>
    %1219 = arith.addf %1217, %1218 : vector<8x1xf32>
    %1220 = math.tanh %1219 : vector<8x1xf32>
    %1221 = arith.mulf %1216, %1220 : vector<8x1xf32>
    %c440 = arith.constant 440 : index
    %c0_287 = arith.constant 0 : index
    %1222 = vector.load %arg6[%c440, %c0_287] : memref<800x4xf32, #tpu.memory_space<vmem>>, vector<8x4xf32>
    %1223 = vector.broadcast %1221 : vector<8x1xf32> to vector<8x4xf32>
    %1224 = arith.mulf %1223, %9 : vector<8x4xf32>
    %1225 = arith.addf %1222, %1224 : vector<8x4xf32>
    %1226 = math.exp %1225 : vector<8x4xf32>
    %cst_288 = arith.constant 1.000000e+00 : f32
    %1227 = vector.broadcast %cst_288 : f32 to vector<8x4xf32>
    %1228 = arith.addf %1227, %1226 : vector<8x4xf32>
    %cst_289 = arith.constant 1.000000e+00 : f32
    %1229 = vector.broadcast %cst_289 : f32 to vector<8x4xf32>
    %1230 = arith.divf %1229, %1228 : vector<8x4xf32>
    %1231 = vector.extract_strided_slice %1230 {offsets = [0, 0], sizes = [8, 1], strides = [1, 1]} : vector<8x4xf32> to vector<8x1xf32>
    %1232 = vector.extract_strided_slice %1230 {offsets = [0, 1], sizes = [8, 1], strides = [1, 1]} : vector<8x4xf32> to vector<8x1xf32>
    %1233 = vector.extract_strided_slice %1230 {offsets = [0, 2], sizes = [8, 1], strides = [1, 1]} : vector<8x4xf32> to vector<8x1xf32>
    %cst_290 = arith.constant 2.000000e+00 : f32
    %1234 = vector.broadcast %cst_290 : f32 to vector<8x1xf32>
    %1235 = arith.mulf %1234, %1233 : vector<8x1xf32>
    %cst_291 = arith.constant 1.000000e+00 : f32
    %1236 = vector.broadcast %cst_291 : f32 to vector<8x1xf32>
    %1237 = arith.subf %1235, %1236 : vector<8x1xf32>
    %1238 = vector.extract_strided_slice %1230 {offsets = [0, 3], sizes = [8, 1], strides = [1, 1]} : vector<8x4xf32> to vector<8x1xf32>
    %1239 = arith.mulf %1232, %1219 : vector<8x1xf32>
    %1240 = arith.mulf %1231, %1237 : vector<8x1xf32>
    %1241 = arith.addf %1239, %1240 : vector<8x1xf32>
    %1242 = math.tanh %1241 : vector<8x1xf32>
    %1243 = arith.mulf %1238, %1242 : vector<8x1xf32>
    %c448 = arith.constant 448 : index
    %c0_292 = arith.constant 0 : index
    %1244 = vector.load %arg6[%c448, %c0_292] : memref<800x4xf32, #tpu.memory_space<vmem>>, vector<8x4xf32>
    %1245 = vector.broadcast %1243 : vector<8x1xf32> to vector<8x4xf32>
    %1246 = arith.mulf %1245, %9 : vector<8x4xf32>
    %1247 = arith.addf %1244, %1246 : vector<8x4xf32>
    %1248 = math.exp %1247 : vector<8x4xf32>
    %cst_293 = arith.constant 1.000000e+00 : f32
    %1249 = vector.broadcast %cst_293 : f32 to vector<8x4xf32>
    %1250 = arith.addf %1249, %1248 : vector<8x4xf32>
    %cst_294 = arith.constant 1.000000e+00 : f32
    %1251 = vector.broadcast %cst_294 : f32 to vector<8x4xf32>
    %1252 = arith.divf %1251, %1250 : vector<8x4xf32>
    %1253 = vector.extract_strided_slice %1252 {offsets = [0, 0], sizes = [8, 1], strides = [1, 1]} : vector<8x4xf32> to vector<8x1xf32>
    %1254 = vector.extract_strided_slice %1252 {offsets = [0, 1], sizes = [8, 1], strides = [1, 1]} : vector<8x4xf32> to vector<8x1xf32>
    %1255 = vector.extract_strided_slice %1252 {offsets = [0, 2], sizes = [8, 1], strides = [1, 1]} : vector<8x4xf32> to vector<8x1xf32>
    %cst_295 = arith.constant 2.000000e+00 : f32
    %1256 = vector.broadcast %cst_295 : f32 to vector<8x1xf32>
    %1257 = arith.mulf %1256, %1255 : vector<8x1xf32>
    %cst_296 = arith.constant 1.000000e+00 : f32
    %1258 = vector.broadcast %cst_296 : f32 to vector<8x1xf32>
    %1259 = arith.subf %1257, %1258 : vector<8x1xf32>
    %1260 = vector.extract_strided_slice %1252 {offsets = [0, 3], sizes = [8, 1], strides = [1, 1]} : vector<8x4xf32> to vector<8x1xf32>
    %1261 = arith.mulf %1254, %1241 : vector<8x1xf32>
    %1262 = arith.mulf %1253, %1259 : vector<8x1xf32>
    %1263 = arith.addf %1261, %1262 : vector<8x1xf32>
    %1264 = math.tanh %1263 : vector<8x1xf32>
    %1265 = arith.mulf %1260, %1264 : vector<8x1xf32>
    %c456 = arith.constant 456 : index
    %c0_297 = arith.constant 0 : index
    %1266 = vector.load %arg6[%c456, %c0_297] : memref<800x4xf32, #tpu.memory_space<vmem>>, vector<8x4xf32>
    %1267 = vector.broadcast %1265 : vector<8x1xf32> to vector<8x4xf32>
    %1268 = arith.mulf %1267, %9 : vector<8x4xf32>
    %1269 = arith.addf %1266, %1268 : vector<8x4xf32>
    %1270 = math.exp %1269 : vector<8x4xf32>
    %cst_298 = arith.constant 1.000000e+00 : f32
    %1271 = vector.broadcast %cst_298 : f32 to vector<8x4xf32>
    %1272 = arith.addf %1271, %1270 : vector<8x4xf32>
    %cst_299 = arith.constant 1.000000e+00 : f32
    %1273 = vector.broadcast %cst_299 : f32 to vector<8x4xf32>
    %1274 = arith.divf %1273, %1272 : vector<8x4xf32>
    %1275 = vector.extract_strided_slice %1274 {offsets = [0, 0], sizes = [8, 1], strides = [1, 1]} : vector<8x4xf32> to vector<8x1xf32>
    %1276 = vector.extract_strided_slice %1274 {offsets = [0, 1], sizes = [8, 1], strides = [1, 1]} : vector<8x4xf32> to vector<8x1xf32>
    %1277 = vector.extract_strided_slice %1274 {offsets = [0, 2], sizes = [8, 1], strides = [1, 1]} : vector<8x4xf32> to vector<8x1xf32>
    %cst_300 = arith.constant 2.000000e+00 : f32
    %1278 = vector.broadcast %cst_300 : f32 to vector<8x1xf32>
    %1279 = arith.mulf %1278, %1277 : vector<8x1xf32>
    %cst_301 = arith.constant 1.000000e+00 : f32
    %1280 = vector.broadcast %cst_301 : f32 to vector<8x1xf32>
    %1281 = arith.subf %1279, %1280 : vector<8x1xf32>
    %1282 = vector.extract_strided_slice %1274 {offsets = [0, 3], sizes = [8, 1], strides = [1, 1]} : vector<8x4xf32> to vector<8x1xf32>
    %1283 = arith.mulf %1276, %1263 : vector<8x1xf32>
    %1284 = arith.mulf %1275, %1281 : vector<8x1xf32>
    %1285 = arith.addf %1283, %1284 : vector<8x1xf32>
    %1286 = math.tanh %1285 : vector<8x1xf32>
    %1287 = arith.mulf %1282, %1286 : vector<8x1xf32>
    %c464 = arith.constant 464 : index
    %c0_302 = arith.constant 0 : index
    %1288 = vector.load %arg6[%c464, %c0_302] : memref<800x4xf32, #tpu.memory_space<vmem>>, vector<8x4xf32>
    %1289 = vector.broadcast %1287 : vector<8x1xf32> to vector<8x4xf32>
    %1290 = arith.mulf %1289, %9 : vector<8x4xf32>
    %1291 = arith.addf %1288, %1290 : vector<8x4xf32>
    %1292 = math.exp %1291 : vector<8x4xf32>
    %cst_303 = arith.constant 1.000000e+00 : f32
    %1293 = vector.broadcast %cst_303 : f32 to vector<8x4xf32>
    %1294 = arith.addf %1293, %1292 : vector<8x4xf32>
    %cst_304 = arith.constant 1.000000e+00 : f32
    %1295 = vector.broadcast %cst_304 : f32 to vector<8x4xf32>
    %1296 = arith.divf %1295, %1294 : vector<8x4xf32>
    %1297 = vector.extract_strided_slice %1296 {offsets = [0, 0], sizes = [8, 1], strides = [1, 1]} : vector<8x4xf32> to vector<8x1xf32>
    %1298 = vector.extract_strided_slice %1296 {offsets = [0, 1], sizes = [8, 1], strides = [1, 1]} : vector<8x4xf32> to vector<8x1xf32>
    %1299 = vector.extract_strided_slice %1296 {offsets = [0, 2], sizes = [8, 1], strides = [1, 1]} : vector<8x4xf32> to vector<8x1xf32>
    %cst_305 = arith.constant 2.000000e+00 : f32
    %1300 = vector.broadcast %cst_305 : f32 to vector<8x1xf32>
    %1301 = arith.mulf %1300, %1299 : vector<8x1xf32>
    %cst_306 = arith.constant 1.000000e+00 : f32
    %1302 = vector.broadcast %cst_306 : f32 to vector<8x1xf32>
    %1303 = arith.subf %1301, %1302 : vector<8x1xf32>
    %1304 = vector.extract_strided_slice %1296 {offsets = [0, 3], sizes = [8, 1], strides = [1, 1]} : vector<8x4xf32> to vector<8x1xf32>
    %1305 = arith.mulf %1298, %1285 : vector<8x1xf32>
    %1306 = arith.mulf %1297, %1303 : vector<8x1xf32>
    %1307 = arith.addf %1305, %1306 : vector<8x1xf32>
    %1308 = math.tanh %1307 : vector<8x1xf32>
    %1309 = arith.mulf %1304, %1308 : vector<8x1xf32>
    %c472 = arith.constant 472 : index
    %c0_307 = arith.constant 0 : index
    %1310 = vector.load %arg6[%c472, %c0_307] : memref<800x4xf32, #tpu.memory_space<vmem>>, vector<8x4xf32>
    %1311 = vector.broadcast %1309 : vector<8x1xf32> to vector<8x4xf32>
    %1312 = arith.mulf %1311, %9 : vector<8x4xf32>
    %1313 = arith.addf %1310, %1312 : vector<8x4xf32>
    %1314 = math.exp %1313 : vector<8x4xf32>
    %cst_308 = arith.constant 1.000000e+00 : f32
    %1315 = vector.broadcast %cst_308 : f32 to vector<8x4xf32>
    %1316 = arith.addf %1315, %1314 : vector<8x4xf32>
    %cst_309 = arith.constant 1.000000e+00 : f32
    %1317 = vector.broadcast %cst_309 : f32 to vector<8x4xf32>
    %1318 = arith.divf %1317, %1316 : vector<8x4xf32>
    %1319 = vector.extract_strided_slice %1318 {offsets = [0, 0], sizes = [8, 1], strides = [1, 1]} : vector<8x4xf32> to vector<8x1xf32>
    %1320 = vector.extract_strided_slice %1318 {offsets = [0, 1], sizes = [8, 1], strides = [1, 1]} : vector<8x4xf32> to vector<8x1xf32>
    %1321 = vector.extract_strided_slice %1318 {offsets = [0, 2], sizes = [8, 1], strides = [1, 1]} : vector<8x4xf32> to vector<8x1xf32>
    %cst_310 = arith.constant 2.000000e+00 : f32
    %1322 = vector.broadcast %cst_310 : f32 to vector<8x1xf32>
    %1323 = arith.mulf %1322, %1321 : vector<8x1xf32>
    %cst_311 = arith.constant 1.000000e+00 : f32
    %1324 = vector.broadcast %cst_311 : f32 to vector<8x1xf32>
    %1325 = arith.subf %1323, %1324 : vector<8x1xf32>
    %1326 = vector.extract_strided_slice %1318 {offsets = [0, 3], sizes = [8, 1], strides = [1, 1]} : vector<8x4xf32> to vector<8x1xf32>
    %1327 = arith.mulf %1320, %1307 : vector<8x1xf32>
    %1328 = arith.mulf %1319, %1325 : vector<8x1xf32>
    %1329 = arith.addf %1327, %1328 : vector<8x1xf32>
    %1330 = math.tanh %1329 : vector<8x1xf32>
    %1331 = arith.mulf %1326, %1330 : vector<8x1xf32>
    %c480 = arith.constant 480 : index
    %c0_312 = arith.constant 0 : index
    %1332 = vector.load %arg6[%c480, %c0_312] : memref<800x4xf32, #tpu.memory_space<vmem>>, vector<8x4xf32>
    %1333 = vector.broadcast %1331 : vector<8x1xf32> to vector<8x4xf32>
    %1334 = arith.mulf %1333, %9 : vector<8x4xf32>
    %1335 = arith.addf %1332, %1334 : vector<8x4xf32>
    %1336 = math.exp %1335 : vector<8x4xf32>
    %cst_313 = arith.constant 1.000000e+00 : f32
    %1337 = vector.broadcast %cst_313 : f32 to vector<8x4xf32>
    %1338 = arith.addf %1337, %1336 : vector<8x4xf32>
    %cst_314 = arith.constant 1.000000e+00 : f32
    %1339 = vector.broadcast %cst_314 : f32 to vector<8x4xf32>
    %1340 = arith.divf %1339, %1338 : vector<8x4xf32>
    %1341 = vector.extract_strided_slice %1340 {offsets = [0, 0], sizes = [8, 1], strides = [1, 1]} : vector<8x4xf32> to vector<8x1xf32>
    %1342 = vector.extract_strided_slice %1340 {offsets = [0, 1], sizes = [8, 1], strides = [1, 1]} : vector<8x4xf32> to vector<8x1xf32>
    %1343 = vector.extract_strided_slice %1340 {offsets = [0, 2], sizes = [8, 1], strides = [1, 1]} : vector<8x4xf32> to vector<8x1xf32>
    %cst_315 = arith.constant 2.000000e+00 : f32
    %1344 = vector.broadcast %cst_315 : f32 to vector<8x1xf32>
    %1345 = arith.mulf %1344, %1343 : vector<8x1xf32>
    %cst_316 = arith.constant 1.000000e+00 : f32
    %1346 = vector.broadcast %cst_316 : f32 to vector<8x1xf32>
    %1347 = arith.subf %1345, %1346 : vector<8x1xf32>
    %1348 = vector.extract_strided_slice %1340 {offsets = [0, 3], sizes = [8, 1], strides = [1, 1]} : vector<8x4xf32> to vector<8x1xf32>
    %1349 = arith.mulf %1342, %1329 : vector<8x1xf32>
    %1350 = arith.mulf %1341, %1347 : vector<8x1xf32>
    %1351 = arith.addf %1349, %1350 : vector<8x1xf32>
    %1352 = math.tanh %1351 : vector<8x1xf32>
    %1353 = arith.mulf %1348, %1352 : vector<8x1xf32>
    %c488 = arith.constant 488 : index
    %c0_317 = arith.constant 0 : index
    %1354 = vector.load %arg6[%c488, %c0_317] : memref<800x4xf32, #tpu.memory_space<vmem>>, vector<8x4xf32>
    %1355 = vector.broadcast %1353 : vector<8x1xf32> to vector<8x4xf32>
    %1356 = arith.mulf %1355, %9 : vector<8x4xf32>
    %1357 = arith.addf %1354, %1356 : vector<8x4xf32>
    %1358 = math.exp %1357 : vector<8x4xf32>
    %cst_318 = arith.constant 1.000000e+00 : f32
    %1359 = vector.broadcast %cst_318 : f32 to vector<8x4xf32>
    %1360 = arith.addf %1359, %1358 : vector<8x4xf32>
    %cst_319 = arith.constant 1.000000e+00 : f32
    %1361 = vector.broadcast %cst_319 : f32 to vector<8x4xf32>
    %1362 = arith.divf %1361, %1360 : vector<8x4xf32>
    %1363 = vector.extract_strided_slice %1362 {offsets = [0, 0], sizes = [8, 1], strides = [1, 1]} : vector<8x4xf32> to vector<8x1xf32>
    %1364 = vector.extract_strided_slice %1362 {offsets = [0, 1], sizes = [8, 1], strides = [1, 1]} : vector<8x4xf32> to vector<8x1xf32>
    %1365 = vector.extract_strided_slice %1362 {offsets = [0, 2], sizes = [8, 1], strides = [1, 1]} : vector<8x4xf32> to vector<8x1xf32>
    %cst_320 = arith.constant 2.000000e+00 : f32
    %1366 = vector.broadcast %cst_320 : f32 to vector<8x1xf32>
    %1367 = arith.mulf %1366, %1365 : vector<8x1xf32>
    %cst_321 = arith.constant 1.000000e+00 : f32
    %1368 = vector.broadcast %cst_321 : f32 to vector<8x1xf32>
    %1369 = arith.subf %1367, %1368 : vector<8x1xf32>
    %1370 = vector.extract_strided_slice %1362 {offsets = [0, 3], sizes = [8, 1], strides = [1, 1]} : vector<8x4xf32> to vector<8x1xf32>
    %1371 = arith.mulf %1364, %1351 : vector<8x1xf32>
    %1372 = arith.mulf %1363, %1369 : vector<8x1xf32>
    %1373 = arith.addf %1371, %1372 : vector<8x1xf32>
    %1374 = math.tanh %1373 : vector<8x1xf32>
    %1375 = arith.mulf %1370, %1374 : vector<8x1xf32>
    %c496 = arith.constant 496 : index
    %c0_322 = arith.constant 0 : index
    %1376 = vector.load %arg6[%c496, %c0_322] : memref<800x4xf32, #tpu.memory_space<vmem>>, vector<8x4xf32>
    %1377 = vector.broadcast %1375 : vector<8x1xf32> to vector<8x4xf32>
    %1378 = arith.mulf %1377, %9 : vector<8x4xf32>
    %1379 = arith.addf %1376, %1378 : vector<8x4xf32>
    %1380 = math.exp %1379 : vector<8x4xf32>
    %cst_323 = arith.constant 1.000000e+00 : f32
    %1381 = vector.broadcast %cst_323 : f32 to vector<8x4xf32>
    %1382 = arith.addf %1381, %1380 : vector<8x4xf32>
    %cst_324 = arith.constant 1.000000e+00 : f32
    %1383 = vector.broadcast %cst_324 : f32 to vector<8x4xf32>
    %1384 = arith.divf %1383, %1382 : vector<8x4xf32>
    %1385 = vector.extract_strided_slice %1384 {offsets = [0, 0], sizes = [8, 1], strides = [1, 1]} : vector<8x4xf32> to vector<8x1xf32>
    %1386 = vector.extract_strided_slice %1384 {offsets = [0, 1], sizes = [8, 1], strides = [1, 1]} : vector<8x4xf32> to vector<8x1xf32>
    %1387 = vector.extract_strided_slice %1384 {offsets = [0, 2], sizes = [8, 1], strides = [1, 1]} : vector<8x4xf32> to vector<8x1xf32>
    %cst_325 = arith.constant 2.000000e+00 : f32
    %1388 = vector.broadcast %cst_325 : f32 to vector<8x1xf32>
    %1389 = arith.mulf %1388, %1387 : vector<8x1xf32>
    %cst_326 = arith.constant 1.000000e+00 : f32
    %1390 = vector.broadcast %cst_326 : f32 to vector<8x1xf32>
    %1391 = arith.subf %1389, %1390 : vector<8x1xf32>
    %1392 = vector.extract_strided_slice %1384 {offsets = [0, 3], sizes = [8, 1], strides = [1, 1]} : vector<8x4xf32> to vector<8x1xf32>
    %1393 = arith.mulf %1386, %1373 : vector<8x1xf32>
    %1394 = arith.mulf %1385, %1391 : vector<8x1xf32>
    %1395 = arith.addf %1393, %1394 : vector<8x1xf32>
    %1396 = math.tanh %1395 : vector<8x1xf32>
    %1397 = arith.mulf %1392, %1396 : vector<8x1xf32>
    %c504 = arith.constant 504 : index
    %c0_327 = arith.constant 0 : index
    %1398 = vector.load %arg6[%c504, %c0_327] : memref<800x4xf32, #tpu.memory_space<vmem>>, vector<8x4xf32>
    %1399 = vector.broadcast %1397 : vector<8x1xf32> to vector<8x4xf32>
    %1400 = arith.mulf %1399, %9 : vector<8x4xf32>
    %1401 = arith.addf %1398, %1400 : vector<8x4xf32>
    %1402 = math.exp %1401 : vector<8x4xf32>
    %cst_328 = arith.constant 1.000000e+00 : f32
    %1403 = vector.broadcast %cst_328 : f32 to vector<8x4xf32>
    %1404 = arith.addf %1403, %1402 : vector<8x4xf32>
    %cst_329 = arith.constant 1.000000e+00 : f32
    %1405 = vector.broadcast %cst_329 : f32 to vector<8x4xf32>
    %1406 = arith.divf %1405, %1404 : vector<8x4xf32>
    %1407 = vector.extract_strided_slice %1406 {offsets = [0, 0], sizes = [8, 1], strides = [1, 1]} : vector<8x4xf32> to vector<8x1xf32>
    %1408 = vector.extract_strided_slice %1406 {offsets = [0, 1], sizes = [8, 1], strides = [1, 1]} : vector<8x4xf32> to vector<8x1xf32>
    %1409 = vector.extract_strided_slice %1406 {offsets = [0, 2], sizes = [8, 1], strides = [1, 1]} : vector<8x4xf32> to vector<8x1xf32>
    %cst_330 = arith.constant 2.000000e+00 : f32
    %1410 = vector.broadcast %cst_330 : f32 to vector<8x1xf32>
    %1411 = arith.mulf %1410, %1409 : vector<8x1xf32>
    %cst_331 = arith.constant 1.000000e+00 : f32
    %1412 = vector.broadcast %cst_331 : f32 to vector<8x1xf32>
    %1413 = arith.subf %1411, %1412 : vector<8x1xf32>
    %1414 = vector.extract_strided_slice %1406 {offsets = [0, 3], sizes = [8, 1], strides = [1, 1]} : vector<8x4xf32> to vector<8x1xf32>
    %1415 = arith.mulf %1408, %1395 : vector<8x1xf32>
    %1416 = arith.mulf %1407, %1413 : vector<8x1xf32>
    %1417 = arith.addf %1415, %1416 : vector<8x1xf32>
    %1418 = math.tanh %1417 : vector<8x1xf32>
    %1419 = arith.mulf %1414, %1418 : vector<8x1xf32>
    %c512 = arith.constant 512 : index
    %c0_332 = arith.constant 0 : index
    %1420 = vector.load %arg6[%c512, %c0_332] : memref<800x4xf32, #tpu.memory_space<vmem>>, vector<8x4xf32>
    %1421 = vector.broadcast %1419 : vector<8x1xf32> to vector<8x4xf32>
    %1422 = arith.mulf %1421, %9 : vector<8x4xf32>
    %1423 = arith.addf %1420, %1422 : vector<8x4xf32>
    %1424 = math.exp %1423 : vector<8x4xf32>
    %cst_333 = arith.constant 1.000000e+00 : f32
    %1425 = vector.broadcast %cst_333 : f32 to vector<8x4xf32>
    %1426 = arith.addf %1425, %1424 : vector<8x4xf32>
    %cst_334 = arith.constant 1.000000e+00 : f32
    %1427 = vector.broadcast %cst_334 : f32 to vector<8x4xf32>
    %1428 = arith.divf %1427, %1426 : vector<8x4xf32>
    %1429 = vector.extract_strided_slice %1428 {offsets = [0, 0], sizes = [8, 1], strides = [1, 1]} : vector<8x4xf32> to vector<8x1xf32>
    %1430 = vector.extract_strided_slice %1428 {offsets = [0, 1], sizes = [8, 1], strides = [1, 1]} : vector<8x4xf32> to vector<8x1xf32>
    %1431 = vector.extract_strided_slice %1428 {offsets = [0, 2], sizes = [8, 1], strides = [1, 1]} : vector<8x4xf32> to vector<8x1xf32>
    %cst_335 = arith.constant 2.000000e+00 : f32
    %1432 = vector.broadcast %cst_335 : f32 to vector<8x1xf32>
    %1433 = arith.mulf %1432, %1431 : vector<8x1xf32>
    %cst_336 = arith.constant 1.000000e+00 : f32
    %1434 = vector.broadcast %cst_336 : f32 to vector<8x1xf32>
    %1435 = arith.subf %1433, %1434 : vector<8x1xf32>
    %1436 = vector.extract_strided_slice %1428 {offsets = [0, 3], sizes = [8, 1], strides = [1, 1]} : vector<8x4xf32> to vector<8x1xf32>
    %1437 = arith.mulf %1430, %1417 : vector<8x1xf32>
    %1438 = arith.mulf %1429, %1435 : vector<8x1xf32>
    %1439 = arith.addf %1437, %1438 : vector<8x1xf32>
    %1440 = math.tanh %1439 : vector<8x1xf32>
    %1441 = arith.mulf %1436, %1440 : vector<8x1xf32>
    %c520 = arith.constant 520 : index
    %c0_337 = arith.constant 0 : index
    %1442 = vector.load %arg6[%c520, %c0_337] : memref<800x4xf32, #tpu.memory_space<vmem>>, vector<8x4xf32>
    %1443 = vector.broadcast %1441 : vector<8x1xf32> to vector<8x4xf32>
    %1444 = arith.mulf %1443, %9 : vector<8x4xf32>
    %1445 = arith.addf %1442, %1444 : vector<8x4xf32>
    %1446 = math.exp %1445 : vector<8x4xf32>
    %cst_338 = arith.constant 1.000000e+00 : f32
    %1447 = vector.broadcast %cst_338 : f32 to vector<8x4xf32>
    %1448 = arith.addf %1447, %1446 : vector<8x4xf32>
    %cst_339 = arith.constant 1.000000e+00 : f32
    %1449 = vector.broadcast %cst_339 : f32 to vector<8x4xf32>
    %1450 = arith.divf %1449, %1448 : vector<8x4xf32>
    %1451 = vector.extract_strided_slice %1450 {offsets = [0, 0], sizes = [8, 1], strides = [1, 1]} : vector<8x4xf32> to vector<8x1xf32>
    %1452 = vector.extract_strided_slice %1450 {offsets = [0, 1], sizes = [8, 1], strides = [1, 1]} : vector<8x4xf32> to vector<8x1xf32>
    %1453 = vector.extract_strided_slice %1450 {offsets = [0, 2], sizes = [8, 1], strides = [1, 1]} : vector<8x4xf32> to vector<8x1xf32>
    %cst_340 = arith.constant 2.000000e+00 : f32
    %1454 = vector.broadcast %cst_340 : f32 to vector<8x1xf32>
    %1455 = arith.mulf %1454, %1453 : vector<8x1xf32>
    %cst_341 = arith.constant 1.000000e+00 : f32
    %1456 = vector.broadcast %cst_341 : f32 to vector<8x1xf32>
    %1457 = arith.subf %1455, %1456 : vector<8x1xf32>
    %1458 = vector.extract_strided_slice %1450 {offsets = [0, 3], sizes = [8, 1], strides = [1, 1]} : vector<8x4xf32> to vector<8x1xf32>
    %1459 = arith.mulf %1452, %1439 : vector<8x1xf32>
    %1460 = arith.mulf %1451, %1457 : vector<8x1xf32>
    %1461 = arith.addf %1459, %1460 : vector<8x1xf32>
    %1462 = math.tanh %1461 : vector<8x1xf32>
    %1463 = arith.mulf %1458, %1462 : vector<8x1xf32>
    %c528 = arith.constant 528 : index
    %c0_342 = arith.constant 0 : index
    %1464 = vector.load %arg6[%c528, %c0_342] : memref<800x4xf32, #tpu.memory_space<vmem>>, vector<8x4xf32>
    %1465 = vector.broadcast %1463 : vector<8x1xf32> to vector<8x4xf32>
    %1466 = arith.mulf %1465, %9 : vector<8x4xf32>
    %1467 = arith.addf %1464, %1466 : vector<8x4xf32>
    %1468 = math.exp %1467 : vector<8x4xf32>
    %cst_343 = arith.constant 1.000000e+00 : f32
    %1469 = vector.broadcast %cst_343 : f32 to vector<8x4xf32>
    %1470 = arith.addf %1469, %1468 : vector<8x4xf32>
    %cst_344 = arith.constant 1.000000e+00 : f32
    %1471 = vector.broadcast %cst_344 : f32 to vector<8x4xf32>
    %1472 = arith.divf %1471, %1470 : vector<8x4xf32>
    %1473 = vector.extract_strided_slice %1472 {offsets = [0, 0], sizes = [8, 1], strides = [1, 1]} : vector<8x4xf32> to vector<8x1xf32>
    %1474 = vector.extract_strided_slice %1472 {offsets = [0, 1], sizes = [8, 1], strides = [1, 1]} : vector<8x4xf32> to vector<8x1xf32>
    %1475 = vector.extract_strided_slice %1472 {offsets = [0, 2], sizes = [8, 1], strides = [1, 1]} : vector<8x4xf32> to vector<8x1xf32>
    %cst_345 = arith.constant 2.000000e+00 : f32
    %1476 = vector.broadcast %cst_345 : f32 to vector<8x1xf32>
    %1477 = arith.mulf %1476, %1475 : vector<8x1xf32>
    %cst_346 = arith.constant 1.000000e+00 : f32
    %1478 = vector.broadcast %cst_346 : f32 to vector<8x1xf32>
    %1479 = arith.subf %1477, %1478 : vector<8x1xf32>
    %1480 = vector.extract_strided_slice %1472 {offsets = [0, 3], sizes = [8, 1], strides = [1, 1]} : vector<8x4xf32> to vector<8x1xf32>
    %1481 = arith.mulf %1474, %1461 : vector<8x1xf32>
    %1482 = arith.mulf %1473, %1479 : vector<8x1xf32>
    %1483 = arith.addf %1481, %1482 : vector<8x1xf32>
    %1484 = math.tanh %1483 : vector<8x1xf32>
    %1485 = arith.mulf %1480, %1484 : vector<8x1xf32>
    %c536 = arith.constant 536 : index
    %c0_347 = arith.constant 0 : index
    %1486 = vector.load %arg6[%c536, %c0_347] : memref<800x4xf32, #tpu.memory_space<vmem>>, vector<8x4xf32>
    %1487 = vector.broadcast %1485 : vector<8x1xf32> to vector<8x4xf32>
    %1488 = arith.mulf %1487, %9 : vector<8x4xf32>
    %1489 = arith.addf %1486, %1488 : vector<8x4xf32>
    %1490 = math.exp %1489 : vector<8x4xf32>
    %cst_348 = arith.constant 1.000000e+00 : f32
    %1491 = vector.broadcast %cst_348 : f32 to vector<8x4xf32>
    %1492 = arith.addf %1491, %1490 : vector<8x4xf32>
    %cst_349 = arith.constant 1.000000e+00 : f32
    %1493 = vector.broadcast %cst_349 : f32 to vector<8x4xf32>
    %1494 = arith.divf %1493, %1492 : vector<8x4xf32>
    %1495 = vector.extract_strided_slice %1494 {offsets = [0, 0], sizes = [8, 1], strides = [1, 1]} : vector<8x4xf32> to vector<8x1xf32>
    %1496 = vector.extract_strided_slice %1494 {offsets = [0, 1], sizes = [8, 1], strides = [1, 1]} : vector<8x4xf32> to vector<8x1xf32>
    %1497 = vector.extract_strided_slice %1494 {offsets = [0, 2], sizes = [8, 1], strides = [1, 1]} : vector<8x4xf32> to vector<8x1xf32>
    %cst_350 = arith.constant 2.000000e+00 : f32
    %1498 = vector.broadcast %cst_350 : f32 to vector<8x1xf32>
    %1499 = arith.mulf %1498, %1497 : vector<8x1xf32>
    %cst_351 = arith.constant 1.000000e+00 : f32
    %1500 = vector.broadcast %cst_351 : f32 to vector<8x1xf32>
    %1501 = arith.subf %1499, %1500 : vector<8x1xf32>
    %1502 = vector.extract_strided_slice %1494 {offsets = [0, 3], sizes = [8, 1], strides = [1, 1]} : vector<8x4xf32> to vector<8x1xf32>
    %1503 = arith.mulf %1496, %1483 : vector<8x1xf32>
    %1504 = arith.mulf %1495, %1501 : vector<8x1xf32>
    %1505 = arith.addf %1503, %1504 : vector<8x1xf32>
    %1506 = math.tanh %1505 : vector<8x1xf32>
    %1507 = arith.mulf %1502, %1506 : vector<8x1xf32>
    %c544 = arith.constant 544 : index
    %c0_352 = arith.constant 0 : index
    %1508 = vector.load %arg6[%c544, %c0_352] : memref<800x4xf32, #tpu.memory_space<vmem>>, vector<8x4xf32>
    %1509 = vector.broadcast %1507 : vector<8x1xf32> to vector<8x4xf32>
    %1510 = arith.mulf %1509, %9 : vector<8x4xf32>
    %1511 = arith.addf %1508, %1510 : vector<8x4xf32>
    %1512 = math.exp %1511 : vector<8x4xf32>
    %cst_353 = arith.constant 1.000000e+00 : f32
    %1513 = vector.broadcast %cst_353 : f32 to vector<8x4xf32>
    %1514 = arith.addf %1513, %1512 : vector<8x4xf32>
    %cst_354 = arith.constant 1.000000e+00 : f32
    %1515 = vector.broadcast %cst_354 : f32 to vector<8x4xf32>
    %1516 = arith.divf %1515, %1514 : vector<8x4xf32>
    %1517 = vector.extract_strided_slice %1516 {offsets = [0, 0], sizes = [8, 1], strides = [1, 1]} : vector<8x4xf32> to vector<8x1xf32>
    %1518 = vector.extract_strided_slice %1516 {offsets = [0, 1], sizes = [8, 1], strides = [1, 1]} : vector<8x4xf32> to vector<8x1xf32>
    %1519 = vector.extract_strided_slice %1516 {offsets = [0, 2], sizes = [8, 1], strides = [1, 1]} : vector<8x4xf32> to vector<8x1xf32>
    %cst_355 = arith.constant 2.000000e+00 : f32
    %1520 = vector.broadcast %cst_355 : f32 to vector<8x1xf32>
    %1521 = arith.mulf %1520, %1519 : vector<8x1xf32>
    %cst_356 = arith.constant 1.000000e+00 : f32
    %1522 = vector.broadcast %cst_356 : f32 to vector<8x1xf32>
    %1523 = arith.subf %1521, %1522 : vector<8x1xf32>
    %1524 = vector.extract_strided_slice %1516 {offsets = [0, 3], sizes = [8, 1], strides = [1, 1]} : vector<8x4xf32> to vector<8x1xf32>
    %1525 = arith.mulf %1518, %1505 : vector<8x1xf32>
    %1526 = arith.mulf %1517, %1523 : vector<8x1xf32>
    %1527 = arith.addf %1525, %1526 : vector<8x1xf32>
    %1528 = math.tanh %1527 : vector<8x1xf32>
    %1529 = arith.mulf %1524, %1528 : vector<8x1xf32>
    %c552 = arith.constant 552 : index
    %c0_357 = arith.constant 0 : index
    %1530 = vector.load %arg6[%c552, %c0_357] : memref<800x4xf32, #tpu.memory_space<vmem>>, vector<8x4xf32>
    %1531 = vector.broadcast %1529 : vector<8x1xf32> to vector<8x4xf32>
    %1532 = arith.mulf %1531, %9 : vector<8x4xf32>
    %1533 = arith.addf %1530, %1532 : vector<8x4xf32>
    %1534 = math.exp %1533 : vector<8x4xf32>
    %cst_358 = arith.constant 1.000000e+00 : f32
    %1535 = vector.broadcast %cst_358 : f32 to vector<8x4xf32>
    %1536 = arith.addf %1535, %1534 : vector<8x4xf32>
    %cst_359 = arith.constant 1.000000e+00 : f32
    %1537 = vector.broadcast %cst_359 : f32 to vector<8x4xf32>
    %1538 = arith.divf %1537, %1536 : vector<8x4xf32>
    %1539 = vector.extract_strided_slice %1538 {offsets = [0, 0], sizes = [8, 1], strides = [1, 1]} : vector<8x4xf32> to vector<8x1xf32>
    %1540 = vector.extract_strided_slice %1538 {offsets = [0, 1], sizes = [8, 1], strides = [1, 1]} : vector<8x4xf32> to vector<8x1xf32>
    %1541 = vector.extract_strided_slice %1538 {offsets = [0, 2], sizes = [8, 1], strides = [1, 1]} : vector<8x4xf32> to vector<8x1xf32>
    %cst_360 = arith.constant 2.000000e+00 : f32
    %1542 = vector.broadcast %cst_360 : f32 to vector<8x1xf32>
    %1543 = arith.mulf %1542, %1541 : vector<8x1xf32>
    %cst_361 = arith.constant 1.000000e+00 : f32
    %1544 = vector.broadcast %cst_361 : f32 to vector<8x1xf32>
    %1545 = arith.subf %1543, %1544 : vector<8x1xf32>
    %1546 = vector.extract_strided_slice %1538 {offsets = [0, 3], sizes = [8, 1], strides = [1, 1]} : vector<8x4xf32> to vector<8x1xf32>
    %1547 = arith.mulf %1540, %1527 : vector<8x1xf32>
    %1548 = arith.mulf %1539, %1545 : vector<8x1xf32>
    %1549 = arith.addf %1547, %1548 : vector<8x1xf32>
    %1550 = math.tanh %1549 : vector<8x1xf32>
    %1551 = arith.mulf %1546, %1550 : vector<8x1xf32>
    %c560 = arith.constant 560 : index
    %c0_362 = arith.constant 0 : index
    %1552 = vector.load %arg6[%c560, %c0_362] : memref<800x4xf32, #tpu.memory_space<vmem>>, vector<8x4xf32>
    %1553 = vector.broadcast %1551 : vector<8x1xf32> to vector<8x4xf32>
    %1554 = arith.mulf %1553, %9 : vector<8x4xf32>
    %1555 = arith.addf %1552, %1554 : vector<8x4xf32>
    %1556 = math.exp %1555 : vector<8x4xf32>
    %cst_363 = arith.constant 1.000000e+00 : f32
    %1557 = vector.broadcast %cst_363 : f32 to vector<8x4xf32>
    %1558 = arith.addf %1557, %1556 : vector<8x4xf32>
    %cst_364 = arith.constant 1.000000e+00 : f32
    %1559 = vector.broadcast %cst_364 : f32 to vector<8x4xf32>
    %1560 = arith.divf %1559, %1558 : vector<8x4xf32>
    %1561 = vector.extract_strided_slice %1560 {offsets = [0, 0], sizes = [8, 1], strides = [1, 1]} : vector<8x4xf32> to vector<8x1xf32>
    %1562 = vector.extract_strided_slice %1560 {offsets = [0, 1], sizes = [8, 1], strides = [1, 1]} : vector<8x4xf32> to vector<8x1xf32>
    %1563 = vector.extract_strided_slice %1560 {offsets = [0, 2], sizes = [8, 1], strides = [1, 1]} : vector<8x4xf32> to vector<8x1xf32>
    %cst_365 = arith.constant 2.000000e+00 : f32
    %1564 = vector.broadcast %cst_365 : f32 to vector<8x1xf32>
    %1565 = arith.mulf %1564, %1563 : vector<8x1xf32>
    %cst_366 = arith.constant 1.000000e+00 : f32
    %1566 = vector.broadcast %cst_366 : f32 to vector<8x1xf32>
    %1567 = arith.subf %1565, %1566 : vector<8x1xf32>
    %1568 = vector.extract_strided_slice %1560 {offsets = [0, 3], sizes = [8, 1], strides = [1, 1]} : vector<8x4xf32> to vector<8x1xf32>
    %1569 = arith.mulf %1562, %1549 : vector<8x1xf32>
    %1570 = arith.mulf %1561, %1567 : vector<8x1xf32>
    %1571 = arith.addf %1569, %1570 : vector<8x1xf32>
    %1572 = math.tanh %1571 : vector<8x1xf32>
    %1573 = arith.mulf %1568, %1572 : vector<8x1xf32>
    %c568 = arith.constant 568 : index
    %c0_367 = arith.constant 0 : index
    %1574 = vector.load %arg6[%c568, %c0_367] : memref<800x4xf32, #tpu.memory_space<vmem>>, vector<8x4xf32>
    %1575 = vector.broadcast %1573 : vector<8x1xf32> to vector<8x4xf32>
    %1576 = arith.mulf %1575, %9 : vector<8x4xf32>
    %1577 = arith.addf %1574, %1576 : vector<8x4xf32>
    %1578 = math.exp %1577 : vector<8x4xf32>
    %cst_368 = arith.constant 1.000000e+00 : f32
    %1579 = vector.broadcast %cst_368 : f32 to vector<8x4xf32>
    %1580 = arith.addf %1579, %1578 : vector<8x4xf32>
    %cst_369 = arith.constant 1.000000e+00 : f32
    %1581 = vector.broadcast %cst_369 : f32 to vector<8x4xf32>
    %1582 = arith.divf %1581, %1580 : vector<8x4xf32>
    %1583 = vector.extract_strided_slice %1582 {offsets = [0, 0], sizes = [8, 1], strides = [1, 1]} : vector<8x4xf32> to vector<8x1xf32>
    %1584 = vector.extract_strided_slice %1582 {offsets = [0, 1], sizes = [8, 1], strides = [1, 1]} : vector<8x4xf32> to vector<8x1xf32>
    %1585 = vector.extract_strided_slice %1582 {offsets = [0, 2], sizes = [8, 1], strides = [1, 1]} : vector<8x4xf32> to vector<8x1xf32>
    %cst_370 = arith.constant 2.000000e+00 : f32
    %1586 = vector.broadcast %cst_370 : f32 to vector<8x1xf32>
    %1587 = arith.mulf %1586, %1585 : vector<8x1xf32>
    %cst_371 = arith.constant 1.000000e+00 : f32
    %1588 = vector.broadcast %cst_371 : f32 to vector<8x1xf32>
    %1589 = arith.subf %1587, %1588 : vector<8x1xf32>
    %1590 = vector.extract_strided_slice %1582 {offsets = [0, 3], sizes = [8, 1], strides = [1, 1]} : vector<8x4xf32> to vector<8x1xf32>
    %1591 = arith.mulf %1584, %1571 : vector<8x1xf32>
    %1592 = arith.mulf %1583, %1589 : vector<8x1xf32>
    %1593 = arith.addf %1591, %1592 : vector<8x1xf32>
    %1594 = math.tanh %1593 : vector<8x1xf32>
    %1595 = arith.mulf %1590, %1594 : vector<8x1xf32>
    %c576 = arith.constant 576 : index
    %c0_372 = arith.constant 0 : index
    %1596 = vector.load %arg6[%c576, %c0_372] : memref<800x4xf32, #tpu.memory_space<vmem>>, vector<8x4xf32>
    %1597 = vector.broadcast %1595 : vector<8x1xf32> to vector<8x4xf32>
    %1598 = arith.mulf %1597, %9 : vector<8x4xf32>
    %1599 = arith.addf %1596, %1598 : vector<8x4xf32>
    %1600 = math.exp %1599 : vector<8x4xf32>
    %cst_373 = arith.constant 1.000000e+00 : f32
    %1601 = vector.broadcast %cst_373 : f32 to vector<8x4xf32>
    %1602 = arith.addf %1601, %1600 : vector<8x4xf32>
    %cst_374 = arith.constant 1.000000e+00 : f32
    %1603 = vector.broadcast %cst_374 : f32 to vector<8x4xf32>
    %1604 = arith.divf %1603, %1602 : vector<8x4xf32>
    %1605 = vector.extract_strided_slice %1604 {offsets = [0, 0], sizes = [8, 1], strides = [1, 1]} : vector<8x4xf32> to vector<8x1xf32>
    %1606 = vector.extract_strided_slice %1604 {offsets = [0, 1], sizes = [8, 1], strides = [1, 1]} : vector<8x4xf32> to vector<8x1xf32>
    %1607 = vector.extract_strided_slice %1604 {offsets = [0, 2], sizes = [8, 1], strides = [1, 1]} : vector<8x4xf32> to vector<8x1xf32>
    %cst_375 = arith.constant 2.000000e+00 : f32
    %1608 = vector.broadcast %cst_375 : f32 to vector<8x1xf32>
    %1609 = arith.mulf %1608, %1607 : vector<8x1xf32>
    %cst_376 = arith.constant 1.000000e+00 : f32
    %1610 = vector.broadcast %cst_376 : f32 to vector<8x1xf32>
    %1611 = arith.subf %1609, %1610 : vector<8x1xf32>
    %1612 = vector.extract_strided_slice %1604 {offsets = [0, 3], sizes = [8, 1], strides = [1, 1]} : vector<8x4xf32> to vector<8x1xf32>
    %1613 = arith.mulf %1606, %1593 : vector<8x1xf32>
    %1614 = arith.mulf %1605, %1611 : vector<8x1xf32>
    %1615 = arith.addf %1613, %1614 : vector<8x1xf32>
    %1616 = math.tanh %1615 : vector<8x1xf32>
    %1617 = arith.mulf %1612, %1616 : vector<8x1xf32>
    %c584 = arith.constant 584 : index
    %c0_377 = arith.constant 0 : index
    %1618 = vector.load %arg6[%c584, %c0_377] : memref<800x4xf32, #tpu.memory_space<vmem>>, vector<8x4xf32>
    %1619 = vector.broadcast %1617 : vector<8x1xf32> to vector<8x4xf32>
    %1620 = arith.mulf %1619, %9 : vector<8x4xf32>
    %1621 = arith.addf %1618, %1620 : vector<8x4xf32>
    %1622 = math.exp %1621 : vector<8x4xf32>
    %cst_378 = arith.constant 1.000000e+00 : f32
    %1623 = vector.broadcast %cst_378 : f32 to vector<8x4xf32>
    %1624 = arith.addf %1623, %1622 : vector<8x4xf32>
    %cst_379 = arith.constant 1.000000e+00 : f32
    %1625 = vector.broadcast %cst_379 : f32 to vector<8x4xf32>
    %1626 = arith.divf %1625, %1624 : vector<8x4xf32>
    %1627 = vector.extract_strided_slice %1626 {offsets = [0, 0], sizes = [8, 1], strides = [1, 1]} : vector<8x4xf32> to vector<8x1xf32>
    %1628 = vector.extract_strided_slice %1626 {offsets = [0, 1], sizes = [8, 1], strides = [1, 1]} : vector<8x4xf32> to vector<8x1xf32>
    %1629 = vector.extract_strided_slice %1626 {offsets = [0, 2], sizes = [8, 1], strides = [1, 1]} : vector<8x4xf32> to vector<8x1xf32>
    %cst_380 = arith.constant 2.000000e+00 : f32
    %1630 = vector.broadcast %cst_380 : f32 to vector<8x1xf32>
    %1631 = arith.mulf %1630, %1629 : vector<8x1xf32>
    %cst_381 = arith.constant 1.000000e+00 : f32
    %1632 = vector.broadcast %cst_381 : f32 to vector<8x1xf32>
    %1633 = arith.subf %1631, %1632 : vector<8x1xf32>
    %1634 = vector.extract_strided_slice %1626 {offsets = [0, 3], sizes = [8, 1], strides = [1, 1]} : vector<8x4xf32> to vector<8x1xf32>
    %1635 = arith.mulf %1628, %1615 : vector<8x1xf32>
    %1636 = arith.mulf %1627, %1633 : vector<8x1xf32>
    %1637 = arith.addf %1635, %1636 : vector<8x1xf32>
    %1638 = math.tanh %1637 : vector<8x1xf32>
    %1639 = arith.mulf %1634, %1638 : vector<8x1xf32>
    %c592 = arith.constant 592 : index
    %c0_382 = arith.constant 0 : index
    %1640 = vector.load %arg6[%c592, %c0_382] : memref<800x4xf32, #tpu.memory_space<vmem>>, vector<8x4xf32>
    %1641 = vector.broadcast %1639 : vector<8x1xf32> to vector<8x4xf32>
    %1642 = arith.mulf %1641, %9 : vector<8x4xf32>
    %1643 = arith.addf %1640, %1642 : vector<8x4xf32>
    %1644 = math.exp %1643 : vector<8x4xf32>
    %cst_383 = arith.constant 1.000000e+00 : f32
    %1645 = vector.broadcast %cst_383 : f32 to vector<8x4xf32>
    %1646 = arith.addf %1645, %1644 : vector<8x4xf32>
    %cst_384 = arith.constant 1.000000e+00 : f32
    %1647 = vector.broadcast %cst_384 : f32 to vector<8x4xf32>
    %1648 = arith.divf %1647, %1646 : vector<8x4xf32>
    %1649 = vector.extract_strided_slice %1648 {offsets = [0, 0], sizes = [8, 1], strides = [1, 1]} : vector<8x4xf32> to vector<8x1xf32>
    %1650 = vector.extract_strided_slice %1648 {offsets = [0, 1], sizes = [8, 1], strides = [1, 1]} : vector<8x4xf32> to vector<8x1xf32>
    %1651 = vector.extract_strided_slice %1648 {offsets = [0, 2], sizes = [8, 1], strides = [1, 1]} : vector<8x4xf32> to vector<8x1xf32>
    %cst_385 = arith.constant 2.000000e+00 : f32
    %1652 = vector.broadcast %cst_385 : f32 to vector<8x1xf32>
    %1653 = arith.mulf %1652, %1651 : vector<8x1xf32>
    %cst_386 = arith.constant 1.000000e+00 : f32
    %1654 = vector.broadcast %cst_386 : f32 to vector<8x1xf32>
    %1655 = arith.subf %1653, %1654 : vector<8x1xf32>
    %1656 = vector.extract_strided_slice %1648 {offsets = [0, 3], sizes = [8, 1], strides = [1, 1]} : vector<8x4xf32> to vector<8x1xf32>
    %1657 = arith.mulf %1650, %1637 : vector<8x1xf32>
    %1658 = arith.mulf %1649, %1655 : vector<8x1xf32>
    %1659 = arith.addf %1657, %1658 : vector<8x1xf32>
    %1660 = math.tanh %1659 : vector<8x1xf32>
    %1661 = arith.mulf %1656, %1660 : vector<8x1xf32>
    %c600 = arith.constant 600 : index
    %c0_387 = arith.constant 0 : index
    %1662 = vector.load %arg6[%c600, %c0_387] : memref<800x4xf32, #tpu.memory_space<vmem>>, vector<8x4xf32>
    %1663 = vector.broadcast %1661 : vector<8x1xf32> to vector<8x4xf32>
    %1664 = arith.mulf %1663, %9 : vector<8x4xf32>
    %1665 = arith.addf %1662, %1664 : vector<8x4xf32>
    %1666 = math.exp %1665 : vector<8x4xf32>
    %cst_388 = arith.constant 1.000000e+00 : f32
    %1667 = vector.broadcast %cst_388 : f32 to vector<8x4xf32>
    %1668 = arith.addf %1667, %1666 : vector<8x4xf32>
    %cst_389 = arith.constant 1.000000e+00 : f32
    %1669 = vector.broadcast %cst_389 : f32 to vector<8x4xf32>
    %1670 = arith.divf %1669, %1668 : vector<8x4xf32>
    %1671 = vector.extract_strided_slice %1670 {offsets = [0, 0], sizes = [8, 1], strides = [1, 1]} : vector<8x4xf32> to vector<8x1xf32>
    %1672 = vector.extract_strided_slice %1670 {offsets = [0, 1], sizes = [8, 1], strides = [1, 1]} : vector<8x4xf32> to vector<8x1xf32>
    %1673 = vector.extract_strided_slice %1670 {offsets = [0, 2], sizes = [8, 1], strides = [1, 1]} : vector<8x4xf32> to vector<8x1xf32>
    %cst_390 = arith.constant 2.000000e+00 : f32
    %1674 = vector.broadcast %cst_390 : f32 to vector<8x1xf32>
    %1675 = arith.mulf %1674, %1673 : vector<8x1xf32>
    %cst_391 = arith.constant 1.000000e+00 : f32
    %1676 = vector.broadcast %cst_391 : f32 to vector<8x1xf32>
    %1677 = arith.subf %1675, %1676 : vector<8x1xf32>
    %1678 = vector.extract_strided_slice %1670 {offsets = [0, 3], sizes = [8, 1], strides = [1, 1]} : vector<8x4xf32> to vector<8x1xf32>
    %1679 = arith.mulf %1672, %1659 : vector<8x1xf32>
    %1680 = arith.mulf %1671, %1677 : vector<8x1xf32>
    %1681 = arith.addf %1679, %1680 : vector<8x1xf32>
    %1682 = math.tanh %1681 : vector<8x1xf32>
    %1683 = arith.mulf %1678, %1682 : vector<8x1xf32>
    %c608 = arith.constant 608 : index
    %c0_392 = arith.constant 0 : index
    %1684 = vector.load %arg6[%c608, %c0_392] : memref<800x4xf32, #tpu.memory_space<vmem>>, vector<8x4xf32>
    %1685 = vector.broadcast %1683 : vector<8x1xf32> to vector<8x4xf32>
    %1686 = arith.mulf %1685, %9 : vector<8x4xf32>
    %1687 = arith.addf %1684, %1686 : vector<8x4xf32>
    %1688 = math.exp %1687 : vector<8x4xf32>
    %cst_393 = arith.constant 1.000000e+00 : f32
    %1689 = vector.broadcast %cst_393 : f32 to vector<8x4xf32>
    %1690 = arith.addf %1689, %1688 : vector<8x4xf32>
    %cst_394 = arith.constant 1.000000e+00 : f32
    %1691 = vector.broadcast %cst_394 : f32 to vector<8x4xf32>
    %1692 = arith.divf %1691, %1690 : vector<8x4xf32>
    %1693 = vector.extract_strided_slice %1692 {offsets = [0, 0], sizes = [8, 1], strides = [1, 1]} : vector<8x4xf32> to vector<8x1xf32>
    %1694 = vector.extract_strided_slice %1692 {offsets = [0, 1], sizes = [8, 1], strides = [1, 1]} : vector<8x4xf32> to vector<8x1xf32>
    %1695 = vector.extract_strided_slice %1692 {offsets = [0, 2], sizes = [8, 1], strides = [1, 1]} : vector<8x4xf32> to vector<8x1xf32>
    %cst_395 = arith.constant 2.000000e+00 : f32
    %1696 = vector.broadcast %cst_395 : f32 to vector<8x1xf32>
    %1697 = arith.mulf %1696, %1695 : vector<8x1xf32>
    %cst_396 = arith.constant 1.000000e+00 : f32
    %1698 = vector.broadcast %cst_396 : f32 to vector<8x1xf32>
    %1699 = arith.subf %1697, %1698 : vector<8x1xf32>
    %1700 = vector.extract_strided_slice %1692 {offsets = [0, 3], sizes = [8, 1], strides = [1, 1]} : vector<8x4xf32> to vector<8x1xf32>
    %1701 = arith.mulf %1694, %1681 : vector<8x1xf32>
    %1702 = arith.mulf %1693, %1699 : vector<8x1xf32>
    %1703 = arith.addf %1701, %1702 : vector<8x1xf32>
    %1704 = math.tanh %1703 : vector<8x1xf32>
    %1705 = arith.mulf %1700, %1704 : vector<8x1xf32>
    %c616 = arith.constant 616 : index
    %c0_397 = arith.constant 0 : index
    %1706 = vector.load %arg6[%c616, %c0_397] : memref<800x4xf32, #tpu.memory_space<vmem>>, vector<8x4xf32>
    %1707 = vector.broadcast %1705 : vector<8x1xf32> to vector<8x4xf32>
    %1708 = arith.mulf %1707, %9 : vector<8x4xf32>
    %1709 = arith.addf %1706, %1708 : vector<8x4xf32>
    %1710 = math.exp %1709 : vector<8x4xf32>
    %cst_398 = arith.constant 1.000000e+00 : f32
    %1711 = vector.broadcast %cst_398 : f32 to vector<8x4xf32>
    %1712 = arith.addf %1711, %1710 : vector<8x4xf32>
    %cst_399 = arith.constant 1.000000e+00 : f32
    %1713 = vector.broadcast %cst_399 : f32 to vector<8x4xf32>
    %1714 = arith.divf %1713, %1712 : vector<8x4xf32>
    %1715 = vector.extract_strided_slice %1714 {offsets = [0, 0], sizes = [8, 1], strides = [1, 1]} : vector<8x4xf32> to vector<8x1xf32>
    %1716 = vector.extract_strided_slice %1714 {offsets = [0, 1], sizes = [8, 1], strides = [1, 1]} : vector<8x4xf32> to vector<8x1xf32>
    %1717 = vector.extract_strided_slice %1714 {offsets = [0, 2], sizes = [8, 1], strides = [1, 1]} : vector<8x4xf32> to vector<8x1xf32>
    %cst_400 = arith.constant 2.000000e+00 : f32
    %1718 = vector.broadcast %cst_400 : f32 to vector<8x1xf32>
    %1719 = arith.mulf %1718, %1717 : vector<8x1xf32>
    %cst_401 = arith.constant 1.000000e+00 : f32
    %1720 = vector.broadcast %cst_401 : f32 to vector<8x1xf32>
    %1721 = arith.subf %1719, %1720 : vector<8x1xf32>
    %1722 = vector.extract_strided_slice %1714 {offsets = [0, 3], sizes = [8, 1], strides = [1, 1]} : vector<8x4xf32> to vector<8x1xf32>
    %1723 = arith.mulf %1716, %1703 : vector<8x1xf32>
    %1724 = arith.mulf %1715, %1721 : vector<8x1xf32>
    %1725 = arith.addf %1723, %1724 : vector<8x1xf32>
    %1726 = math.tanh %1725 : vector<8x1xf32>
    %1727 = arith.mulf %1722, %1726 : vector<8x1xf32>
    %c624 = arith.constant 624 : index
    %c0_402 = arith.constant 0 : index
    %1728 = vector.load %arg6[%c624, %c0_402] : memref<800x4xf32, #tpu.memory_space<vmem>>, vector<8x4xf32>
    %1729 = vector.broadcast %1727 : vector<8x1xf32> to vector<8x4xf32>
    %1730 = arith.mulf %1729, %9 : vector<8x4xf32>
    %1731 = arith.addf %1728, %1730 : vector<8x4xf32>
    %1732 = math.exp %1731 : vector<8x4xf32>
    %cst_403 = arith.constant 1.000000e+00 : f32
    %1733 = vector.broadcast %cst_403 : f32 to vector<8x4xf32>
    %1734 = arith.addf %1733, %1732 : vector<8x4xf32>
    %cst_404 = arith.constant 1.000000e+00 : f32
    %1735 = vector.broadcast %cst_404 : f32 to vector<8x4xf32>
    %1736 = arith.divf %1735, %1734 : vector<8x4xf32>
    %1737 = vector.extract_strided_slice %1736 {offsets = [0, 0], sizes = [8, 1], strides = [1, 1]} : vector<8x4xf32> to vector<8x1xf32>
    %1738 = vector.extract_strided_slice %1736 {offsets = [0, 1], sizes = [8, 1], strides = [1, 1]} : vector<8x4xf32> to vector<8x1xf32>
    %1739 = vector.extract_strided_slice %1736 {offsets = [0, 2], sizes = [8, 1], strides = [1, 1]} : vector<8x4xf32> to vector<8x1xf32>
    %cst_405 = arith.constant 2.000000e+00 : f32
    %1740 = vector.broadcast %cst_405 : f32 to vector<8x1xf32>
    %1741 = arith.mulf %1740, %1739 : vector<8x1xf32>
    %cst_406 = arith.constant 1.000000e+00 : f32
    %1742 = vector.broadcast %cst_406 : f32 to vector<8x1xf32>
    %1743 = arith.subf %1741, %1742 : vector<8x1xf32>
    %1744 = vector.extract_strided_slice %1736 {offsets = [0, 3], sizes = [8, 1], strides = [1, 1]} : vector<8x4xf32> to vector<8x1xf32>
    %1745 = arith.mulf %1738, %1725 : vector<8x1xf32>
    %1746 = arith.mulf %1737, %1743 : vector<8x1xf32>
    %1747 = arith.addf %1745, %1746 : vector<8x1xf32>
    %1748 = math.tanh %1747 : vector<8x1xf32>
    %1749 = arith.mulf %1744, %1748 : vector<8x1xf32>
    %c632 = arith.constant 632 : index
    %c0_407 = arith.constant 0 : index
    %1750 = vector.load %arg6[%c632, %c0_407] : memref<800x4xf32, #tpu.memory_space<vmem>>, vector<8x4xf32>
    %1751 = vector.broadcast %1749 : vector<8x1xf32> to vector<8x4xf32>
    %1752 = arith.mulf %1751, %9 : vector<8x4xf32>
    %1753 = arith.addf %1750, %1752 : vector<8x4xf32>
    %1754 = math.exp %1753 : vector<8x4xf32>
    %cst_408 = arith.constant 1.000000e+00 : f32
    %1755 = vector.broadcast %cst_408 : f32 to vector<8x4xf32>
    %1756 = arith.addf %1755, %1754 : vector<8x4xf32>
    %cst_409 = arith.constant 1.000000e+00 : f32
    %1757 = vector.broadcast %cst_409 : f32 to vector<8x4xf32>
    %1758 = arith.divf %1757, %1756 : vector<8x4xf32>
    %1759 = vector.extract_strided_slice %1758 {offsets = [0, 0], sizes = [8, 1], strides = [1, 1]} : vector<8x4xf32> to vector<8x1xf32>
    %1760 = vector.extract_strided_slice %1758 {offsets = [0, 1], sizes = [8, 1], strides = [1, 1]} : vector<8x4xf32> to vector<8x1xf32>
    %1761 = vector.extract_strided_slice %1758 {offsets = [0, 2], sizes = [8, 1], strides = [1, 1]} : vector<8x4xf32> to vector<8x1xf32>
    %cst_410 = arith.constant 2.000000e+00 : f32
    %1762 = vector.broadcast %cst_410 : f32 to vector<8x1xf32>
    %1763 = arith.mulf %1762, %1761 : vector<8x1xf32>
    %cst_411 = arith.constant 1.000000e+00 : f32
    %1764 = vector.broadcast %cst_411 : f32 to vector<8x1xf32>
    %1765 = arith.subf %1763, %1764 : vector<8x1xf32>
    %1766 = vector.extract_strided_slice %1758 {offsets = [0, 3], sizes = [8, 1], strides = [1, 1]} : vector<8x4xf32> to vector<8x1xf32>
    %1767 = arith.mulf %1760, %1747 : vector<8x1xf32>
    %1768 = arith.mulf %1759, %1765 : vector<8x1xf32>
    %1769 = arith.addf %1767, %1768 : vector<8x1xf32>
    %1770 = math.tanh %1769 : vector<8x1xf32>
    %1771 = arith.mulf %1766, %1770 : vector<8x1xf32>
    %c640 = arith.constant 640 : index
    %c0_412 = arith.constant 0 : index
    %1772 = vector.load %arg6[%c640, %c0_412] : memref<800x4xf32, #tpu.memory_space<vmem>>, vector<8x4xf32>
    %1773 = vector.broadcast %1771 : vector<8x1xf32> to vector<8x4xf32>
    %1774 = arith.mulf %1773, %9 : vector<8x4xf32>
    %1775 = arith.addf %1772, %1774 : vector<8x4xf32>
    %1776 = math.exp %1775 : vector<8x4xf32>
    %cst_413 = arith.constant 1.000000e+00 : f32
    %1777 = vector.broadcast %cst_413 : f32 to vector<8x4xf32>
    %1778 = arith.addf %1777, %1776 : vector<8x4xf32>
    %cst_414 = arith.constant 1.000000e+00 : f32
    %1779 = vector.broadcast %cst_414 : f32 to vector<8x4xf32>
    %1780 = arith.divf %1779, %1778 : vector<8x4xf32>
    %1781 = vector.extract_strided_slice %1780 {offsets = [0, 0], sizes = [8, 1], strides = [1, 1]} : vector<8x4xf32> to vector<8x1xf32>
    %1782 = vector.extract_strided_slice %1780 {offsets = [0, 1], sizes = [8, 1], strides = [1, 1]} : vector<8x4xf32> to vector<8x1xf32>
    %1783 = vector.extract_strided_slice %1780 {offsets = [0, 2], sizes = [8, 1], strides = [1, 1]} : vector<8x4xf32> to vector<8x1xf32>
    %cst_415 = arith.constant 2.000000e+00 : f32
    %1784 = vector.broadcast %cst_415 : f32 to vector<8x1xf32>
    %1785 = arith.mulf %1784, %1783 : vector<8x1xf32>
    %cst_416 = arith.constant 1.000000e+00 : f32
    %1786 = vector.broadcast %cst_416 : f32 to vector<8x1xf32>
    %1787 = arith.subf %1785, %1786 : vector<8x1xf32>
    %1788 = vector.extract_strided_slice %1780 {offsets = [0, 3], sizes = [8, 1], strides = [1, 1]} : vector<8x4xf32> to vector<8x1xf32>
    %1789 = arith.mulf %1782, %1769 : vector<8x1xf32>
    %1790 = arith.mulf %1781, %1787 : vector<8x1xf32>
    %1791 = arith.addf %1789, %1790 : vector<8x1xf32>
    %1792 = math.tanh %1791 : vector<8x1xf32>
    %1793 = arith.mulf %1788, %1792 : vector<8x1xf32>
    %c648 = arith.constant 648 : index
    %c0_417 = arith.constant 0 : index
    %1794 = vector.load %arg6[%c648, %c0_417] : memref<800x4xf32, #tpu.memory_space<vmem>>, vector<8x4xf32>
    %1795 = vector.broadcast %1793 : vector<8x1xf32> to vector<8x4xf32>
    %1796 = arith.mulf %1795, %9 : vector<8x4xf32>
    %1797 = arith.addf %1794, %1796 : vector<8x4xf32>
    %1798 = math.exp %1797 : vector<8x4xf32>
    %cst_418 = arith.constant 1.000000e+00 : f32
    %1799 = vector.broadcast %cst_418 : f32 to vector<8x4xf32>
    %1800 = arith.addf %1799, %1798 : vector<8x4xf32>
    %cst_419 = arith.constant 1.000000e+00 : f32
    %1801 = vector.broadcast %cst_419 : f32 to vector<8x4xf32>
    %1802 = arith.divf %1801, %1800 : vector<8x4xf32>
    %1803 = vector.extract_strided_slice %1802 {offsets = [0, 0], sizes = [8, 1], strides = [1, 1]} : vector<8x4xf32> to vector<8x1xf32>
    %1804 = vector.extract_strided_slice %1802 {offsets = [0, 1], sizes = [8, 1], strides = [1, 1]} : vector<8x4xf32> to vector<8x1xf32>
    %1805 = vector.extract_strided_slice %1802 {offsets = [0, 2], sizes = [8, 1], strides = [1, 1]} : vector<8x4xf32> to vector<8x1xf32>
    %cst_420 = arith.constant 2.000000e+00 : f32
    %1806 = vector.broadcast %cst_420 : f32 to vector<8x1xf32>
    %1807 = arith.mulf %1806, %1805 : vector<8x1xf32>
    %cst_421 = arith.constant 1.000000e+00 : f32
    %1808 = vector.broadcast %cst_421 : f32 to vector<8x1xf32>
    %1809 = arith.subf %1807, %1808 : vector<8x1xf32>
    %1810 = vector.extract_strided_slice %1802 {offsets = [0, 3], sizes = [8, 1], strides = [1, 1]} : vector<8x4xf32> to vector<8x1xf32>
    %1811 = arith.mulf %1804, %1791 : vector<8x1xf32>
    %1812 = arith.mulf %1803, %1809 : vector<8x1xf32>
    %1813 = arith.addf %1811, %1812 : vector<8x1xf32>
    %1814 = math.tanh %1813 : vector<8x1xf32>
    %1815 = arith.mulf %1810, %1814 : vector<8x1xf32>
    %c656 = arith.constant 656 : index
    %c0_422 = arith.constant 0 : index
    %1816 = vector.load %arg6[%c656, %c0_422] : memref<800x4xf32, #tpu.memory_space<vmem>>, vector<8x4xf32>
    %1817 = vector.broadcast %1815 : vector<8x1xf32> to vector<8x4xf32>
    %1818 = arith.mulf %1817, %9 : vector<8x4xf32>
    %1819 = arith.addf %1816, %1818 : vector<8x4xf32>
    %1820 = math.exp %1819 : vector<8x4xf32>
    %cst_423 = arith.constant 1.000000e+00 : f32
    %1821 = vector.broadcast %cst_423 : f32 to vector<8x4xf32>
    %1822 = arith.addf %1821, %1820 : vector<8x4xf32>
    %cst_424 = arith.constant 1.000000e+00 : f32
    %1823 = vector.broadcast %cst_424 : f32 to vector<8x4xf32>
    %1824 = arith.divf %1823, %1822 : vector<8x4xf32>
    %1825 = vector.extract_strided_slice %1824 {offsets = [0, 0], sizes = [8, 1], strides = [1, 1]} : vector<8x4xf32> to vector<8x1xf32>
    %1826 = vector.extract_strided_slice %1824 {offsets = [0, 1], sizes = [8, 1], strides = [1, 1]} : vector<8x4xf32> to vector<8x1xf32>
    %1827 = vector.extract_strided_slice %1824 {offsets = [0, 2], sizes = [8, 1], strides = [1, 1]} : vector<8x4xf32> to vector<8x1xf32>
    %cst_425 = arith.constant 2.000000e+00 : f32
    %1828 = vector.broadcast %cst_425 : f32 to vector<8x1xf32>
    %1829 = arith.mulf %1828, %1827 : vector<8x1xf32>
    %cst_426 = arith.constant 1.000000e+00 : f32
    %1830 = vector.broadcast %cst_426 : f32 to vector<8x1xf32>
    %1831 = arith.subf %1829, %1830 : vector<8x1xf32>
    %1832 = vector.extract_strided_slice %1824 {offsets = [0, 3], sizes = [8, 1], strides = [1, 1]} : vector<8x4xf32> to vector<8x1xf32>
    %1833 = arith.mulf %1826, %1813 : vector<8x1xf32>
    %1834 = arith.mulf %1825, %1831 : vector<8x1xf32>
    %1835 = arith.addf %1833, %1834 : vector<8x1xf32>
    %1836 = math.tanh %1835 : vector<8x1xf32>
    %1837 = arith.mulf %1832, %1836 : vector<8x1xf32>
    %c664 = arith.constant 664 : index
    %c0_427 = arith.constant 0 : index
    %1838 = vector.load %arg6[%c664, %c0_427] : memref<800x4xf32, #tpu.memory_space<vmem>>, vector<8x4xf32>
    %1839 = vector.broadcast %1837 : vector<8x1xf32> to vector<8x4xf32>
    %1840 = arith.mulf %1839, %9 : vector<8x4xf32>
    %1841 = arith.addf %1838, %1840 : vector<8x4xf32>
    %1842 = math.exp %1841 : vector<8x4xf32>
    %cst_428 = arith.constant 1.000000e+00 : f32
    %1843 = vector.broadcast %cst_428 : f32 to vector<8x4xf32>
    %1844 = arith.addf %1843, %1842 : vector<8x4xf32>
    %cst_429 = arith.constant 1.000000e+00 : f32
    %1845 = vector.broadcast %cst_429 : f32 to vector<8x4xf32>
    %1846 = arith.divf %1845, %1844 : vector<8x4xf32>
    %1847 = vector.extract_strided_slice %1846 {offsets = [0, 0], sizes = [8, 1], strides = [1, 1]} : vector<8x4xf32> to vector<8x1xf32>
    %1848 = vector.extract_strided_slice %1846 {offsets = [0, 1], sizes = [8, 1], strides = [1, 1]} : vector<8x4xf32> to vector<8x1xf32>
    %1849 = vector.extract_strided_slice %1846 {offsets = [0, 2], sizes = [8, 1], strides = [1, 1]} : vector<8x4xf32> to vector<8x1xf32>
    %cst_430 = arith.constant 2.000000e+00 : f32
    %1850 = vector.broadcast %cst_430 : f32 to vector<8x1xf32>
    %1851 = arith.mulf %1850, %1849 : vector<8x1xf32>
    %cst_431 = arith.constant 1.000000e+00 : f32
    %1852 = vector.broadcast %cst_431 : f32 to vector<8x1xf32>
    %1853 = arith.subf %1851, %1852 : vector<8x1xf32>
    %1854 = vector.extract_strided_slice %1846 {offsets = [0, 3], sizes = [8, 1], strides = [1, 1]} : vector<8x4xf32> to vector<8x1xf32>
    %1855 = arith.mulf %1848, %1835 : vector<8x1xf32>
    %1856 = arith.mulf %1847, %1853 : vector<8x1xf32>
    %1857 = arith.addf %1855, %1856 : vector<8x1xf32>
    %1858 = math.tanh %1857 : vector<8x1xf32>
    %1859 = arith.mulf %1854, %1858 : vector<8x1xf32>
    %c672 = arith.constant 672 : index
    %c0_432 = arith.constant 0 : index
    %1860 = vector.load %arg6[%c672, %c0_432] : memref<800x4xf32, #tpu.memory_space<vmem>>, vector<8x4xf32>
    %1861 = vector.broadcast %1859 : vector<8x1xf32> to vector<8x4xf32>
    %1862 = arith.mulf %1861, %9 : vector<8x4xf32>
    %1863 = arith.addf %1860, %1862 : vector<8x4xf32>
    %1864 = math.exp %1863 : vector<8x4xf32>
    %cst_433 = arith.constant 1.000000e+00 : f32
    %1865 = vector.broadcast %cst_433 : f32 to vector<8x4xf32>
    %1866 = arith.addf %1865, %1864 : vector<8x4xf32>
    %cst_434 = arith.constant 1.000000e+00 : f32
    %1867 = vector.broadcast %cst_434 : f32 to vector<8x4xf32>
    %1868 = arith.divf %1867, %1866 : vector<8x4xf32>
    %1869 = vector.extract_strided_slice %1868 {offsets = [0, 0], sizes = [8, 1], strides = [1, 1]} : vector<8x4xf32> to vector<8x1xf32>
    %1870 = vector.extract_strided_slice %1868 {offsets = [0, 1], sizes = [8, 1], strides = [1, 1]} : vector<8x4xf32> to vector<8x1xf32>
    %1871 = vector.extract_strided_slice %1868 {offsets = [0, 2], sizes = [8, 1], strides = [1, 1]} : vector<8x4xf32> to vector<8x1xf32>
    %cst_435 = arith.constant 2.000000e+00 : f32
    %1872 = vector.broadcast %cst_435 : f32 to vector<8x1xf32>
    %1873 = arith.mulf %1872, %1871 : vector<8x1xf32>
    %cst_436 = arith.constant 1.000000e+00 : f32
    %1874 = vector.broadcast %cst_436 : f32 to vector<8x1xf32>
    %1875 = arith.subf %1873, %1874 : vector<8x1xf32>
    %1876 = vector.extract_strided_slice %1868 {offsets = [0, 3], sizes = [8, 1], strides = [1, 1]} : vector<8x4xf32> to vector<8x1xf32>
    %1877 = arith.mulf %1870, %1857 : vector<8x1xf32>
    %1878 = arith.mulf %1869, %1875 : vector<8x1xf32>
    %1879 = arith.addf %1877, %1878 : vector<8x1xf32>
    %1880 = math.tanh %1879 : vector<8x1xf32>
    %1881 = arith.mulf %1876, %1880 : vector<8x1xf32>
    %c680 = arith.constant 680 : index
    %c0_437 = arith.constant 0 : index
    %1882 = vector.load %arg6[%c680, %c0_437] : memref<800x4xf32, #tpu.memory_space<vmem>>, vector<8x4xf32>
    %1883 = vector.broadcast %1881 : vector<8x1xf32> to vector<8x4xf32>
    %1884 = arith.mulf %1883, %9 : vector<8x4xf32>
    %1885 = arith.addf %1882, %1884 : vector<8x4xf32>
    %1886 = math.exp %1885 : vector<8x4xf32>
    %cst_438 = arith.constant 1.000000e+00 : f32
    %1887 = vector.broadcast %cst_438 : f32 to vector<8x4xf32>
    %1888 = arith.addf %1887, %1886 : vector<8x4xf32>
    %cst_439 = arith.constant 1.000000e+00 : f32
    %1889 = vector.broadcast %cst_439 : f32 to vector<8x4xf32>
    %1890 = arith.divf %1889, %1888 : vector<8x4xf32>
    %1891 = vector.extract_strided_slice %1890 {offsets = [0, 0], sizes = [8, 1], strides = [1, 1]} : vector<8x4xf32> to vector<8x1xf32>
    %1892 = vector.extract_strided_slice %1890 {offsets = [0, 1], sizes = [8, 1], strides = [1, 1]} : vector<8x4xf32> to vector<8x1xf32>
    %1893 = vector.extract_strided_slice %1890 {offsets = [0, 2], sizes = [8, 1], strides = [1, 1]} : vector<8x4xf32> to vector<8x1xf32>
    %cst_440 = arith.constant 2.000000e+00 : f32
    %1894 = vector.broadcast %cst_440 : f32 to vector<8x1xf32>
    %1895 = arith.mulf %1894, %1893 : vector<8x1xf32>
    %cst_441 = arith.constant 1.000000e+00 : f32
    %1896 = vector.broadcast %cst_441 : f32 to vector<8x1xf32>
    %1897 = arith.subf %1895, %1896 : vector<8x1xf32>
    %1898 = vector.extract_strided_slice %1890 {offsets = [0, 3], sizes = [8, 1], strides = [1, 1]} : vector<8x4xf32> to vector<8x1xf32>
    %1899 = arith.mulf %1892, %1879 : vector<8x1xf32>
    %1900 = arith.mulf %1891, %1897 : vector<8x1xf32>
    %1901 = arith.addf %1899, %1900 : vector<8x1xf32>
    %1902 = math.tanh %1901 : vector<8x1xf32>
    %1903 = arith.mulf %1898, %1902 : vector<8x1xf32>
    %c688 = arith.constant 688 : index
    %c0_442 = arith.constant 0 : index
    %1904 = vector.load %arg6[%c688, %c0_442] : memref<800x4xf32, #tpu.memory_space<vmem>>, vector<8x4xf32>
    %1905 = vector.broadcast %1903 : vector<8x1xf32> to vector<8x4xf32>
    %1906 = arith.mulf %1905, %9 : vector<8x4xf32>
    %1907 = arith.addf %1904, %1906 : vector<8x4xf32>
    %1908 = math.exp %1907 : vector<8x4xf32>
    %cst_443 = arith.constant 1.000000e+00 : f32
    %1909 = vector.broadcast %cst_443 : f32 to vector<8x4xf32>
    %1910 = arith.addf %1909, %1908 : vector<8x4xf32>
    %cst_444 = arith.constant 1.000000e+00 : f32
    %1911 = vector.broadcast %cst_444 : f32 to vector<8x4xf32>
    %1912 = arith.divf %1911, %1910 : vector<8x4xf32>
    %1913 = vector.extract_strided_slice %1912 {offsets = [0, 0], sizes = [8, 1], strides = [1, 1]} : vector<8x4xf32> to vector<8x1xf32>
    %1914 = vector.extract_strided_slice %1912 {offsets = [0, 1], sizes = [8, 1], strides = [1, 1]} : vector<8x4xf32> to vector<8x1xf32>
    %1915 = vector.extract_strided_slice %1912 {offsets = [0, 2], sizes = [8, 1], strides = [1, 1]} : vector<8x4xf32> to vector<8x1xf32>
    %cst_445 = arith.constant 2.000000e+00 : f32
    %1916 = vector.broadcast %cst_445 : f32 to vector<8x1xf32>
    %1917 = arith.mulf %1916, %1915 : vector<8x1xf32>
    %cst_446 = arith.constant 1.000000e+00 : f32
    %1918 = vector.broadcast %cst_446 : f32 to vector<8x1xf32>
    %1919 = arith.subf %1917, %1918 : vector<8x1xf32>
    %1920 = vector.extract_strided_slice %1912 {offsets = [0, 3], sizes = [8, 1], strides = [1, 1]} : vector<8x4xf32> to vector<8x1xf32>
    %1921 = arith.mulf %1914, %1901 : vector<8x1xf32>
    %1922 = arith.mulf %1913, %1919 : vector<8x1xf32>
    %1923 = arith.addf %1921, %1922 : vector<8x1xf32>
    %1924 = math.tanh %1923 : vector<8x1xf32>
    %1925 = arith.mulf %1920, %1924 : vector<8x1xf32>
    %c696 = arith.constant 696 : index
    %c0_447 = arith.constant 0 : index
    %1926 = vector.load %arg6[%c696, %c0_447] : memref<800x4xf32, #tpu.memory_space<vmem>>, vector<8x4xf32>
    %1927 = vector.broadcast %1925 : vector<8x1xf32> to vector<8x4xf32>
    %1928 = arith.mulf %1927, %9 : vector<8x4xf32>
    %1929 = arith.addf %1926, %1928 : vector<8x4xf32>
    %1930 = math.exp %1929 : vector<8x4xf32>
    %cst_448 = arith.constant 1.000000e+00 : f32
    %1931 = vector.broadcast %cst_448 : f32 to vector<8x4xf32>
    %1932 = arith.addf %1931, %1930 : vector<8x4xf32>
    %cst_449 = arith.constant 1.000000e+00 : f32
    %1933 = vector.broadcast %cst_449 : f32 to vector<8x4xf32>
    %1934 = arith.divf %1933, %1932 : vector<8x4xf32>
    %1935 = vector.extract_strided_slice %1934 {offsets = [0, 0], sizes = [8, 1], strides = [1, 1]} : vector<8x4xf32> to vector<8x1xf32>
    %1936 = vector.extract_strided_slice %1934 {offsets = [0, 1], sizes = [8, 1], strides = [1, 1]} : vector<8x4xf32> to vector<8x1xf32>
    %1937 = vector.extract_strided_slice %1934 {offsets = [0, 2], sizes = [8, 1], strides = [1, 1]} : vector<8x4xf32> to vector<8x1xf32>
    %cst_450 = arith.constant 2.000000e+00 : f32
    %1938 = vector.broadcast %cst_450 : f32 to vector<8x1xf32>
    %1939 = arith.mulf %1938, %1937 : vector<8x1xf32>
    %cst_451 = arith.constant 1.000000e+00 : f32
    %1940 = vector.broadcast %cst_451 : f32 to vector<8x1xf32>
    %1941 = arith.subf %1939, %1940 : vector<8x1xf32>
    %1942 = vector.extract_strided_slice %1934 {offsets = [0, 3], sizes = [8, 1], strides = [1, 1]} : vector<8x4xf32> to vector<8x1xf32>
    %1943 = arith.mulf %1936, %1923 : vector<8x1xf32>
    %1944 = arith.mulf %1935, %1941 : vector<8x1xf32>
    %1945 = arith.addf %1943, %1944 : vector<8x1xf32>
    %1946 = math.tanh %1945 : vector<8x1xf32>
    %1947 = arith.mulf %1942, %1946 : vector<8x1xf32>
    %c704 = arith.constant 704 : index
    %c0_452 = arith.constant 0 : index
    %1948 = vector.load %arg6[%c704, %c0_452] : memref<800x4xf32, #tpu.memory_space<vmem>>, vector<8x4xf32>
    %1949 = vector.broadcast %1947 : vector<8x1xf32> to vector<8x4xf32>
    %1950 = arith.mulf %1949, %9 : vector<8x4xf32>
    %1951 = arith.addf %1948, %1950 : vector<8x4xf32>
    %1952 = math.exp %1951 : vector<8x4xf32>
    %cst_453 = arith.constant 1.000000e+00 : f32
    %1953 = vector.broadcast %cst_453 : f32 to vector<8x4xf32>
    %1954 = arith.addf %1953, %1952 : vector<8x4xf32>
    %cst_454 = arith.constant 1.000000e+00 : f32
    %1955 = vector.broadcast %cst_454 : f32 to vector<8x4xf32>
    %1956 = arith.divf %1955, %1954 : vector<8x4xf32>
    %1957 = vector.extract_strided_slice %1956 {offsets = [0, 0], sizes = [8, 1], strides = [1, 1]} : vector<8x4xf32> to vector<8x1xf32>
    %1958 = vector.extract_strided_slice %1956 {offsets = [0, 1], sizes = [8, 1], strides = [1, 1]} : vector<8x4xf32> to vector<8x1xf32>
    %1959 = vector.extract_strided_slice %1956 {offsets = [0, 2], sizes = [8, 1], strides = [1, 1]} : vector<8x4xf32> to vector<8x1xf32>
    %cst_455 = arith.constant 2.000000e+00 : f32
    %1960 = vector.broadcast %cst_455 : f32 to vector<8x1xf32>
    %1961 = arith.mulf %1960, %1959 : vector<8x1xf32>
    %cst_456 = arith.constant 1.000000e+00 : f32
    %1962 = vector.broadcast %cst_456 : f32 to vector<8x1xf32>
    %1963 = arith.subf %1961, %1962 : vector<8x1xf32>
    %1964 = vector.extract_strided_slice %1956 {offsets = [0, 3], sizes = [8, 1], strides = [1, 1]} : vector<8x4xf32> to vector<8x1xf32>
    %1965 = arith.mulf %1958, %1945 : vector<8x1xf32>
    %1966 = arith.mulf %1957, %1963 : vector<8x1xf32>
    %1967 = arith.addf %1965, %1966 : vector<8x1xf32>
    %1968 = math.tanh %1967 : vector<8x1xf32>
    %1969 = arith.mulf %1964, %1968 : vector<8x1xf32>
    %c712 = arith.constant 712 : index
    %c0_457 = arith.constant 0 : index
    %1970 = vector.load %arg6[%c712, %c0_457] : memref<800x4xf32, #tpu.memory_space<vmem>>, vector<8x4xf32>
    %1971 = vector.broadcast %1969 : vector<8x1xf32> to vector<8x4xf32>
    %1972 = arith.mulf %1971, %9 : vector<8x4xf32>
    %1973 = arith.addf %1970, %1972 : vector<8x4xf32>
    %1974 = math.exp %1973 : vector<8x4xf32>
    %cst_458 = arith.constant 1.000000e+00 : f32
    %1975 = vector.broadcast %cst_458 : f32 to vector<8x4xf32>
    %1976 = arith.addf %1975, %1974 : vector<8x4xf32>
    %cst_459 = arith.constant 1.000000e+00 : f32
    %1977 = vector.broadcast %cst_459 : f32 to vector<8x4xf32>
    %1978 = arith.divf %1977, %1976 : vector<8x4xf32>
    %1979 = vector.extract_strided_slice %1978 {offsets = [0, 0], sizes = [8, 1], strides = [1, 1]} : vector<8x4xf32> to vector<8x1xf32>
    %1980 = vector.extract_strided_slice %1978 {offsets = [0, 1], sizes = [8, 1], strides = [1, 1]} : vector<8x4xf32> to vector<8x1xf32>
    %1981 = vector.extract_strided_slice %1978 {offsets = [0, 2], sizes = [8, 1], strides = [1, 1]} : vector<8x4xf32> to vector<8x1xf32>
    %cst_460 = arith.constant 2.000000e+00 : f32
    %1982 = vector.broadcast %cst_460 : f32 to vector<8x1xf32>
    %1983 = arith.mulf %1982, %1981 : vector<8x1xf32>
    %cst_461 = arith.constant 1.000000e+00 : f32
    %1984 = vector.broadcast %cst_461 : f32 to vector<8x1xf32>
    %1985 = arith.subf %1983, %1984 : vector<8x1xf32>
    %1986 = vector.extract_strided_slice %1978 {offsets = [0, 3], sizes = [8, 1], strides = [1, 1]} : vector<8x4xf32> to vector<8x1xf32>
    %1987 = arith.mulf %1980, %1967 : vector<8x1xf32>
    %1988 = arith.mulf %1979, %1985 : vector<8x1xf32>
    %1989 = arith.addf %1987, %1988 : vector<8x1xf32>
    %1990 = math.tanh %1989 : vector<8x1xf32>
    %1991 = arith.mulf %1986, %1990 : vector<8x1xf32>
    %c720 = arith.constant 720 : index
    %c0_462 = arith.constant 0 : index
    %1992 = vector.load %arg6[%c720, %c0_462] : memref<800x4xf32, #tpu.memory_space<vmem>>, vector<8x4xf32>
    %1993 = vector.broadcast %1991 : vector<8x1xf32> to vector<8x4xf32>
    %1994 = arith.mulf %1993, %9 : vector<8x4xf32>
    %1995 = arith.addf %1992, %1994 : vector<8x4xf32>
    %1996 = math.exp %1995 : vector<8x4xf32>
    %cst_463 = arith.constant 1.000000e+00 : f32
    %1997 = vector.broadcast %cst_463 : f32 to vector<8x4xf32>
    %1998 = arith.addf %1997, %1996 : vector<8x4xf32>
    %cst_464 = arith.constant 1.000000e+00 : f32
    %1999 = vector.broadcast %cst_464 : f32 to vector<8x4xf32>
    %2000 = arith.divf %1999, %1998 : vector<8x4xf32>
    %2001 = vector.extract_strided_slice %2000 {offsets = [0, 0], sizes = [8, 1], strides = [1, 1]} : vector<8x4xf32> to vector<8x1xf32>
    %2002 = vector.extract_strided_slice %2000 {offsets = [0, 1], sizes = [8, 1], strides = [1, 1]} : vector<8x4xf32> to vector<8x1xf32>
    %2003 = vector.extract_strided_slice %2000 {offsets = [0, 2], sizes = [8, 1], strides = [1, 1]} : vector<8x4xf32> to vector<8x1xf32>
    %cst_465 = arith.constant 2.000000e+00 : f32
    %2004 = vector.broadcast %cst_465 : f32 to vector<8x1xf32>
    %2005 = arith.mulf %2004, %2003 : vector<8x1xf32>
    %cst_466 = arith.constant 1.000000e+00 : f32
    %2006 = vector.broadcast %cst_466 : f32 to vector<8x1xf32>
    %2007 = arith.subf %2005, %2006 : vector<8x1xf32>
    %2008 = vector.extract_strided_slice %2000 {offsets = [0, 3], sizes = [8, 1], strides = [1, 1]} : vector<8x4xf32> to vector<8x1xf32>
    %2009 = arith.mulf %2002, %1989 : vector<8x1xf32>
    %2010 = arith.mulf %2001, %2007 : vector<8x1xf32>
    %2011 = arith.addf %2009, %2010 : vector<8x1xf32>
    %2012 = math.tanh %2011 : vector<8x1xf32>
    %2013 = arith.mulf %2008, %2012 : vector<8x1xf32>
    %c728 = arith.constant 728 : index
    %c0_467 = arith.constant 0 : index
    %2014 = vector.load %arg6[%c728, %c0_467] : memref<800x4xf32, #tpu.memory_space<vmem>>, vector<8x4xf32>
    %2015 = vector.broadcast %2013 : vector<8x1xf32> to vector<8x4xf32>
    %2016 = arith.mulf %2015, %9 : vector<8x4xf32>
    %2017 = arith.addf %2014, %2016 : vector<8x4xf32>
    %2018 = math.exp %2017 : vector<8x4xf32>
    %cst_468 = arith.constant 1.000000e+00 : f32
    %2019 = vector.broadcast %cst_468 : f32 to vector<8x4xf32>
    %2020 = arith.addf %2019, %2018 : vector<8x4xf32>
    %cst_469 = arith.constant 1.000000e+00 : f32
    %2021 = vector.broadcast %cst_469 : f32 to vector<8x4xf32>
    %2022 = arith.divf %2021, %2020 : vector<8x4xf32>
    %2023 = vector.extract_strided_slice %2022 {offsets = [0, 0], sizes = [8, 1], strides = [1, 1]} : vector<8x4xf32> to vector<8x1xf32>
    %2024 = vector.extract_strided_slice %2022 {offsets = [0, 1], sizes = [8, 1], strides = [1, 1]} : vector<8x4xf32> to vector<8x1xf32>
    %2025 = vector.extract_strided_slice %2022 {offsets = [0, 2], sizes = [8, 1], strides = [1, 1]} : vector<8x4xf32> to vector<8x1xf32>
    %cst_470 = arith.constant 2.000000e+00 : f32
    %2026 = vector.broadcast %cst_470 : f32 to vector<8x1xf32>
    %2027 = arith.mulf %2026, %2025 : vector<8x1xf32>
    %cst_471 = arith.constant 1.000000e+00 : f32
    %2028 = vector.broadcast %cst_471 : f32 to vector<8x1xf32>
    %2029 = arith.subf %2027, %2028 : vector<8x1xf32>
    %2030 = vector.extract_strided_slice %2022 {offsets = [0, 3], sizes = [8, 1], strides = [1, 1]} : vector<8x4xf32> to vector<8x1xf32>
    %2031 = arith.mulf %2024, %2011 : vector<8x1xf32>
    %2032 = arith.mulf %2023, %2029 : vector<8x1xf32>
    %2033 = arith.addf %2031, %2032 : vector<8x1xf32>
    %2034 = math.tanh %2033 : vector<8x1xf32>
    %2035 = arith.mulf %2030, %2034 : vector<8x1xf32>
    %c736 = arith.constant 736 : index
    %c0_472 = arith.constant 0 : index
    %2036 = vector.load %arg6[%c736, %c0_472] : memref<800x4xf32, #tpu.memory_space<vmem>>, vector<8x4xf32>
    %2037 = vector.broadcast %2035 : vector<8x1xf32> to vector<8x4xf32>
    %2038 = arith.mulf %2037, %9 : vector<8x4xf32>
    %2039 = arith.addf %2036, %2038 : vector<8x4xf32>
    %2040 = math.exp %2039 : vector<8x4xf32>
    %cst_473 = arith.constant 1.000000e+00 : f32
    %2041 = vector.broadcast %cst_473 : f32 to vector<8x4xf32>
    %2042 = arith.addf %2041, %2040 : vector<8x4xf32>
    %cst_474 = arith.constant 1.000000e+00 : f32
    %2043 = vector.broadcast %cst_474 : f32 to vector<8x4xf32>
    %2044 = arith.divf %2043, %2042 : vector<8x4xf32>
    %2045 = vector.extract_strided_slice %2044 {offsets = [0, 0], sizes = [8, 1], strides = [1, 1]} : vector<8x4xf32> to vector<8x1xf32>
    %2046 = vector.extract_strided_slice %2044 {offsets = [0, 1], sizes = [8, 1], strides = [1, 1]} : vector<8x4xf32> to vector<8x1xf32>
    %2047 = vector.extract_strided_slice %2044 {offsets = [0, 2], sizes = [8, 1], strides = [1, 1]} : vector<8x4xf32> to vector<8x1xf32>
    %cst_475 = arith.constant 2.000000e+00 : f32
    %2048 = vector.broadcast %cst_475 : f32 to vector<8x1xf32>
    %2049 = arith.mulf %2048, %2047 : vector<8x1xf32>
    %cst_476 = arith.constant 1.000000e+00 : f32
    %2050 = vector.broadcast %cst_476 : f32 to vector<8x1xf32>
    %2051 = arith.subf %2049, %2050 : vector<8x1xf32>
    %2052 = vector.extract_strided_slice %2044 {offsets = [0, 3], sizes = [8, 1], strides = [1, 1]} : vector<8x4xf32> to vector<8x1xf32>
    %2053 = arith.mulf %2046, %2033 : vector<8x1xf32>
    %2054 = arith.mulf %2045, %2051 : vector<8x1xf32>
    %2055 = arith.addf %2053, %2054 : vector<8x1xf32>
    %2056 = math.tanh %2055 : vector<8x1xf32>
    %2057 = arith.mulf %2052, %2056 : vector<8x1xf32>
    %c744 = arith.constant 744 : index
    %c0_477 = arith.constant 0 : index
    %2058 = vector.load %arg6[%c744, %c0_477] : memref<800x4xf32, #tpu.memory_space<vmem>>, vector<8x4xf32>
    %2059 = vector.broadcast %2057 : vector<8x1xf32> to vector<8x4xf32>
    %2060 = arith.mulf %2059, %9 : vector<8x4xf32>
    %2061 = arith.addf %2058, %2060 : vector<8x4xf32>
    %2062 = math.exp %2061 : vector<8x4xf32>
    %cst_478 = arith.constant 1.000000e+00 : f32
    %2063 = vector.broadcast %cst_478 : f32 to vector<8x4xf32>
    %2064 = arith.addf %2063, %2062 : vector<8x4xf32>
    %cst_479 = arith.constant 1.000000e+00 : f32
    %2065 = vector.broadcast %cst_479 : f32 to vector<8x4xf32>
    %2066 = arith.divf %2065, %2064 : vector<8x4xf32>
    %2067 = vector.extract_strided_slice %2066 {offsets = [0, 0], sizes = [8, 1], strides = [1, 1]} : vector<8x4xf32> to vector<8x1xf32>
    %2068 = vector.extract_strided_slice %2066 {offsets = [0, 1], sizes = [8, 1], strides = [1, 1]} : vector<8x4xf32> to vector<8x1xf32>
    %2069 = vector.extract_strided_slice %2066 {offsets = [0, 2], sizes = [8, 1], strides = [1, 1]} : vector<8x4xf32> to vector<8x1xf32>
    %cst_480 = arith.constant 2.000000e+00 : f32
    %2070 = vector.broadcast %cst_480 : f32 to vector<8x1xf32>
    %2071 = arith.mulf %2070, %2069 : vector<8x1xf32>
    %cst_481 = arith.constant 1.000000e+00 : f32
    %2072 = vector.broadcast %cst_481 : f32 to vector<8x1xf32>
    %2073 = arith.subf %2071, %2072 : vector<8x1xf32>
    %2074 = vector.extract_strided_slice %2066 {offsets = [0, 3], sizes = [8, 1], strides = [1, 1]} : vector<8x4xf32> to vector<8x1xf32>
    %2075 = arith.mulf %2068, %2055 : vector<8x1xf32>
    %2076 = arith.mulf %2067, %2073 : vector<8x1xf32>
    %2077 = arith.addf %2075, %2076 : vector<8x1xf32>
    %2078 = math.tanh %2077 : vector<8x1xf32>
    %2079 = arith.mulf %2074, %2078 : vector<8x1xf32>
    %c752 = arith.constant 752 : index
    %c0_482 = arith.constant 0 : index
    %2080 = vector.load %arg6[%c752, %c0_482] : memref<800x4xf32, #tpu.memory_space<vmem>>, vector<8x4xf32>
    %2081 = vector.broadcast %2079 : vector<8x1xf32> to vector<8x4xf32>
    %2082 = arith.mulf %2081, %9 : vector<8x4xf32>
    %2083 = arith.addf %2080, %2082 : vector<8x4xf32>
    %2084 = math.exp %2083 : vector<8x4xf32>
    %cst_483 = arith.constant 1.000000e+00 : f32
    %2085 = vector.broadcast %cst_483 : f32 to vector<8x4xf32>
    %2086 = arith.addf %2085, %2084 : vector<8x4xf32>
    %cst_484 = arith.constant 1.000000e+00 : f32
    %2087 = vector.broadcast %cst_484 : f32 to vector<8x4xf32>
    %2088 = arith.divf %2087, %2086 : vector<8x4xf32>
    %2089 = vector.extract_strided_slice %2088 {offsets = [0, 0], sizes = [8, 1], strides = [1, 1]} : vector<8x4xf32> to vector<8x1xf32>
    %2090 = vector.extract_strided_slice %2088 {offsets = [0, 1], sizes = [8, 1], strides = [1, 1]} : vector<8x4xf32> to vector<8x1xf32>
    %2091 = vector.extract_strided_slice %2088 {offsets = [0, 2], sizes = [8, 1], strides = [1, 1]} : vector<8x4xf32> to vector<8x1xf32>
    %cst_485 = arith.constant 2.000000e+00 : f32
    %2092 = vector.broadcast %cst_485 : f32 to vector<8x1xf32>
    %2093 = arith.mulf %2092, %2091 : vector<8x1xf32>
    %cst_486 = arith.constant 1.000000e+00 : f32
    %2094 = vector.broadcast %cst_486 : f32 to vector<8x1xf32>
    %2095 = arith.subf %2093, %2094 : vector<8x1xf32>
    %2096 = vector.extract_strided_slice %2088 {offsets = [0, 3], sizes = [8, 1], strides = [1, 1]} : vector<8x4xf32> to vector<8x1xf32>
    %2097 = arith.mulf %2090, %2077 : vector<8x1xf32>
    %2098 = arith.mulf %2089, %2095 : vector<8x1xf32>
    %2099 = arith.addf %2097, %2098 : vector<8x1xf32>
    %2100 = math.tanh %2099 : vector<8x1xf32>
    %2101 = arith.mulf %2096, %2100 : vector<8x1xf32>
    %c760 = arith.constant 760 : index
    %c0_487 = arith.constant 0 : index
    %2102 = vector.load %arg6[%c760, %c0_487] : memref<800x4xf32, #tpu.memory_space<vmem>>, vector<8x4xf32>
    %2103 = vector.broadcast %2101 : vector<8x1xf32> to vector<8x4xf32>
    %2104 = arith.mulf %2103, %9 : vector<8x4xf32>
    %2105 = arith.addf %2102, %2104 : vector<8x4xf32>
    %2106 = math.exp %2105 : vector<8x4xf32>
    %cst_488 = arith.constant 1.000000e+00 : f32
    %2107 = vector.broadcast %cst_488 : f32 to vector<8x4xf32>
    %2108 = arith.addf %2107, %2106 : vector<8x4xf32>
    %cst_489 = arith.constant 1.000000e+00 : f32
    %2109 = vector.broadcast %cst_489 : f32 to vector<8x4xf32>
    %2110 = arith.divf %2109, %2108 : vector<8x4xf32>
    %2111 = vector.extract_strided_slice %2110 {offsets = [0, 0], sizes = [8, 1], strides = [1, 1]} : vector<8x4xf32> to vector<8x1xf32>
    %2112 = vector.extract_strided_slice %2110 {offsets = [0, 1], sizes = [8, 1], strides = [1, 1]} : vector<8x4xf32> to vector<8x1xf32>
    %2113 = vector.extract_strided_slice %2110 {offsets = [0, 2], sizes = [8, 1], strides = [1, 1]} : vector<8x4xf32> to vector<8x1xf32>
    %cst_490 = arith.constant 2.000000e+00 : f32
    %2114 = vector.broadcast %cst_490 : f32 to vector<8x1xf32>
    %2115 = arith.mulf %2114, %2113 : vector<8x1xf32>
    %cst_491 = arith.constant 1.000000e+00 : f32
    %2116 = vector.broadcast %cst_491 : f32 to vector<8x1xf32>
    %2117 = arith.subf %2115, %2116 : vector<8x1xf32>
    %2118 = vector.extract_strided_slice %2110 {offsets = [0, 3], sizes = [8, 1], strides = [1, 1]} : vector<8x4xf32> to vector<8x1xf32>
    %2119 = arith.mulf %2112, %2099 : vector<8x1xf32>
    %2120 = arith.mulf %2111, %2117 : vector<8x1xf32>
    %2121 = arith.addf %2119, %2120 : vector<8x1xf32>
    %2122 = math.tanh %2121 : vector<8x1xf32>
    %2123 = arith.mulf %2118, %2122 : vector<8x1xf32>
    %c768 = arith.constant 768 : index
    %c0_492 = arith.constant 0 : index
    %2124 = vector.load %arg6[%c768, %c0_492] : memref<800x4xf32, #tpu.memory_space<vmem>>, vector<8x4xf32>
    %2125 = vector.broadcast %2123 : vector<8x1xf32> to vector<8x4xf32>
    %2126 = arith.mulf %2125, %9 : vector<8x4xf32>
    %2127 = arith.addf %2124, %2126 : vector<8x4xf32>
    %2128 = math.exp %2127 : vector<8x4xf32>
    %cst_493 = arith.constant 1.000000e+00 : f32
    %2129 = vector.broadcast %cst_493 : f32 to vector<8x4xf32>
    %2130 = arith.addf %2129, %2128 : vector<8x4xf32>
    %cst_494 = arith.constant 1.000000e+00 : f32
    %2131 = vector.broadcast %cst_494 : f32 to vector<8x4xf32>
    %2132 = arith.divf %2131, %2130 : vector<8x4xf32>
    %2133 = vector.extract_strided_slice %2132 {offsets = [0, 0], sizes = [8, 1], strides = [1, 1]} : vector<8x4xf32> to vector<8x1xf32>
    %2134 = vector.extract_strided_slice %2132 {offsets = [0, 1], sizes = [8, 1], strides = [1, 1]} : vector<8x4xf32> to vector<8x1xf32>
    %2135 = vector.extract_strided_slice %2132 {offsets = [0, 2], sizes = [8, 1], strides = [1, 1]} : vector<8x4xf32> to vector<8x1xf32>
    %cst_495 = arith.constant 2.000000e+00 : f32
    %2136 = vector.broadcast %cst_495 : f32 to vector<8x1xf32>
    %2137 = arith.mulf %2136, %2135 : vector<8x1xf32>
    %cst_496 = arith.constant 1.000000e+00 : f32
    %2138 = vector.broadcast %cst_496 : f32 to vector<8x1xf32>
    %2139 = arith.subf %2137, %2138 : vector<8x1xf32>
    %2140 = vector.extract_strided_slice %2132 {offsets = [0, 3], sizes = [8, 1], strides = [1, 1]} : vector<8x4xf32> to vector<8x1xf32>
    %2141 = arith.mulf %2134, %2121 : vector<8x1xf32>
    %2142 = arith.mulf %2133, %2139 : vector<8x1xf32>
    %2143 = arith.addf %2141, %2142 : vector<8x1xf32>
    %2144 = math.tanh %2143 : vector<8x1xf32>
    %2145 = arith.mulf %2140, %2144 : vector<8x1xf32>
    %c776 = arith.constant 776 : index
    %c0_497 = arith.constant 0 : index
    %2146 = vector.load %arg6[%c776, %c0_497] : memref<800x4xf32, #tpu.memory_space<vmem>>, vector<8x4xf32>
    %2147 = vector.broadcast %2145 : vector<8x1xf32> to vector<8x4xf32>
    %2148 = arith.mulf %2147, %9 : vector<8x4xf32>
    %2149 = arith.addf %2146, %2148 : vector<8x4xf32>
    %2150 = math.exp %2149 : vector<8x4xf32>
    %cst_498 = arith.constant 1.000000e+00 : f32
    %2151 = vector.broadcast %cst_498 : f32 to vector<8x4xf32>
    %2152 = arith.addf %2151, %2150 : vector<8x4xf32>
    %cst_499 = arith.constant 1.000000e+00 : f32
    %2153 = vector.broadcast %cst_499 : f32 to vector<8x4xf32>
    %2154 = arith.divf %2153, %2152 : vector<8x4xf32>
    %2155 = vector.extract_strided_slice %2154 {offsets = [0, 0], sizes = [8, 1], strides = [1, 1]} : vector<8x4xf32> to vector<8x1xf32>
    %2156 = vector.extract_strided_slice %2154 {offsets = [0, 1], sizes = [8, 1], strides = [1, 1]} : vector<8x4xf32> to vector<8x1xf32>
    %2157 = vector.extract_strided_slice %2154 {offsets = [0, 2], sizes = [8, 1], strides = [1, 1]} : vector<8x4xf32> to vector<8x1xf32>
    %cst_500 = arith.constant 2.000000e+00 : f32
    %2158 = vector.broadcast %cst_500 : f32 to vector<8x1xf32>
    %2159 = arith.mulf %2158, %2157 : vector<8x1xf32>
    %cst_501 = arith.constant 1.000000e+00 : f32
    %2160 = vector.broadcast %cst_501 : f32 to vector<8x1xf32>
    %2161 = arith.subf %2159, %2160 : vector<8x1xf32>
    %2162 = vector.extract_strided_slice %2154 {offsets = [0, 3], sizes = [8, 1], strides = [1, 1]} : vector<8x4xf32> to vector<8x1xf32>
    %2163 = arith.mulf %2156, %2143 : vector<8x1xf32>
    %2164 = arith.mulf %2155, %2161 : vector<8x1xf32>
    %2165 = arith.addf %2163, %2164 : vector<8x1xf32>
    %2166 = math.tanh %2165 : vector<8x1xf32>
    %2167 = arith.mulf %2162, %2166 : vector<8x1xf32>
    %c784 = arith.constant 784 : index
    %c0_502 = arith.constant 0 : index
    %2168 = vector.load %arg6[%c784, %c0_502] : memref<800x4xf32, #tpu.memory_space<vmem>>, vector<8x4xf32>
    %2169 = vector.broadcast %2167 : vector<8x1xf32> to vector<8x4xf32>
    %2170 = arith.mulf %2169, %9 : vector<8x4xf32>
    %2171 = arith.addf %2168, %2170 : vector<8x4xf32>
    %2172 = math.exp %2171 : vector<8x4xf32>
    %cst_503 = arith.constant 1.000000e+00 : f32
    %2173 = vector.broadcast %cst_503 : f32 to vector<8x4xf32>
    %2174 = arith.addf %2173, %2172 : vector<8x4xf32>
    %cst_504 = arith.constant 1.000000e+00 : f32
    %2175 = vector.broadcast %cst_504 : f32 to vector<8x4xf32>
    %2176 = arith.divf %2175, %2174 : vector<8x4xf32>
    %2177 = vector.extract_strided_slice %2176 {offsets = [0, 0], sizes = [8, 1], strides = [1, 1]} : vector<8x4xf32> to vector<8x1xf32>
    %2178 = vector.extract_strided_slice %2176 {offsets = [0, 1], sizes = [8, 1], strides = [1, 1]} : vector<8x4xf32> to vector<8x1xf32>
    %2179 = vector.extract_strided_slice %2176 {offsets = [0, 2], sizes = [8, 1], strides = [1, 1]} : vector<8x4xf32> to vector<8x1xf32>
    %cst_505 = arith.constant 2.000000e+00 : f32
    %2180 = vector.broadcast %cst_505 : f32 to vector<8x1xf32>
    %2181 = arith.mulf %2180, %2179 : vector<8x1xf32>
    %cst_506 = arith.constant 1.000000e+00 : f32
    %2182 = vector.broadcast %cst_506 : f32 to vector<8x1xf32>
    %2183 = arith.subf %2181, %2182 : vector<8x1xf32>
    %2184 = vector.extract_strided_slice %2176 {offsets = [0, 3], sizes = [8, 1], strides = [1, 1]} : vector<8x4xf32> to vector<8x1xf32>
    %2185 = arith.mulf %2178, %2165 : vector<8x1xf32>
    %2186 = arith.mulf %2177, %2183 : vector<8x1xf32>
    %2187 = arith.addf %2185, %2186 : vector<8x1xf32>
    %2188 = math.tanh %2187 : vector<8x1xf32>
    %2189 = arith.mulf %2184, %2188 : vector<8x1xf32>
    %c792 = arith.constant 792 : index
    %c0_507 = arith.constant 0 : index
    %2190 = vector.load %arg6[%c792, %c0_507] : memref<800x4xf32, #tpu.memory_space<vmem>>, vector<8x4xf32>
    %2191 = vector.broadcast %2189 : vector<8x1xf32> to vector<8x4xf32>
    %2192 = arith.mulf %2191, %9 : vector<8x4xf32>
    %2193 = arith.addf %2190, %2192 : vector<8x4xf32>
    %2194 = math.exp %2193 : vector<8x4xf32>
    %cst_508 = arith.constant 1.000000e+00 : f32
    %2195 = vector.broadcast %cst_508 : f32 to vector<8x4xf32>
    %2196 = arith.addf %2195, %2194 : vector<8x4xf32>
    %cst_509 = arith.constant 1.000000e+00 : f32
    %2197 = vector.broadcast %cst_509 : f32 to vector<8x4xf32>
    %2198 = arith.divf %2197, %2196 : vector<8x4xf32>
    %2199 = vector.extract_strided_slice %2198 {offsets = [0, 0], sizes = [8, 1], strides = [1, 1]} : vector<8x4xf32> to vector<8x1xf32>
    %2200 = vector.extract_strided_slice %2198 {offsets = [0, 1], sizes = [8, 1], strides = [1, 1]} : vector<8x4xf32> to vector<8x1xf32>
    %2201 = vector.extract_strided_slice %2198 {offsets = [0, 2], sizes = [8, 1], strides = [1, 1]} : vector<8x4xf32> to vector<8x1xf32>
    %cst_510 = arith.constant 2.000000e+00 : f32
    %2202 = vector.broadcast %cst_510 : f32 to vector<8x1xf32>
    %2203 = arith.mulf %2202, %2201 : vector<8x1xf32>
    %cst_511 = arith.constant 1.000000e+00 : f32
    %2204 = vector.broadcast %cst_511 : f32 to vector<8x1xf32>
    %2205 = arith.subf %2203, %2204 : vector<8x1xf32>
    %2206 = vector.extract_strided_slice %2198 {offsets = [0, 3], sizes = [8, 1], strides = [1, 1]} : vector<8x4xf32> to vector<8x1xf32>
    %2207 = arith.mulf %2200, %2187 : vector<8x1xf32>
    %2208 = arith.mulf %2199, %2205 : vector<8x1xf32>
    %2209 = arith.addf %2207, %2208 : vector<8x1xf32>
    %2210 = math.tanh %2209 : vector<8x1xf32>
    %2211 = arith.mulf %2206, %2210 : vector<8x1xf32>
    %2212 = arith.negf %2211 : vector<8x1xf32>
    %2213 = math.exp %2212 : vector<8x1xf32>
    %cst_512 = arith.constant 1.000000e+00 : f32
    %2214 = vector.broadcast %cst_512 : f32 to vector<8x1xf32>
    %2215 = arith.addf %2214, %2213 : vector<8x1xf32>
    %2216 = arith.divf %2214, %2215 : vector<8x1xf32>
    %c0_513 = arith.constant 0 : index
    %c0_514 = arith.constant 0 : index
    %2217 = vector.load %arg5[%c0_513, %c0_514] : memref<8x1xf32, #tpu.memory_space<vmem>>, vector<8x1xf32>
    tpu.vector_store %arg5[%c0_513, %c0_514], %2216 {strides = array<i32>} : memref<8x1xf32, #tpu.memory_space<vmem>>, vector<8x1xf32>,
    return
  }
  func.func @transform_0(%arg0: i32) -> (i32, i32) {
    %c0_i32 = arith.constant 0 : i32
    %c0_i32_0 = arith.constant 0 : i32
    %c0_i32_1 = arith.constant 0 : i32
    return %c0_i32, %c0_i32_0 : i32, i32
  }
  func.func @transform_1(%arg0: i32) -> (i32, i32) {
    %c0_i32 = arith.constant 0 : i32
    %c0_i32_0 = arith.constant 0 : i32
    %c0_i32_1 = arith.constant 0 : i32
    return %c0_i32, %c0_i32_0 : i32, i32
  }
  func.func @transform_2(%arg0: i32) -> (i32, i32) {
    %c0_i32 = arith.constant 0 : i32
    %c0_i32_0 = arith.constant 0 : i32
    %c0_i32_1 = arith.constant 0 : i32
    return %c0_i32, %c0_i32_0 : i32, i32
  }
  func.func @transform_3(%arg0: i32) -> (i32, i32) {
    %c0_i32 = arith.constant 0 : i32
    %c0_i32_0 = arith.constant 0 : i32
    %c0_i32_1 = arith.constant 0 : i32
    return %c0_i32, %c0_i32_0 : i32, i32
  }
  func.func @transform_4(%arg0: i32) -> (i32, i32) {
    %c0_i32 = arith.constant 0 : i32
    %c0_i32_0 = arith.constant 0 : i32
    %c0_i32_1 = arith.constant 0 : i32
    return %c0_i32, %c0_i32_0 : i32, i32
  }
}

</mosaic_0001>

<bundles_post_ra>
// kernel: tpu_custom_call.1
= control target key start
LH: loop header
LB: loop body
LE: loop exit
PB: predicated region body
PF: predicated region fallthrough
CT: control target
= control target key end

     0   :  { %9 = vsyncpa [#allocation4], 0  ;;  %s5385_s15 = smov [#allocation3]   ;;  %s6320_s0 = inlined_call_operand.hbm [shape: f32[800,225], index: 0, kind: input, shape index: {}]   ;;  %s6321_s1 = inlined_call_operand.vmem [shape: f32[225,4], index: 1, kind: input, shape index: {}]   ;;  %s6322_s2 = inlined_call_operand.vmem [shape: f32[1,4], index: 2, kind: input, shape index: {}]   ;;  %s6323_s3 = inlined_call_operand.vmem [shape: f32[1,4], index: 3, kind: input, shape index: {}]   ;;  %s6324_s4 = inlined_call_operand.vmem [shape: f32[8,1], index: 4, kind: output, shape index: {}]  }
   0x1   :  { %s15_s16 = sshll.u32 %s5385_s15, 4  ;;  %s5361_s19 = scalar_lea.hbm %s6320_s0, 25600  ;;  %s16_s16 = int_to_ptr.vmem [resolvable:$true] %s15_s16 }
   0x2   :  { %p5362_p0 = scmp.ne.s32.totalorder %s6320_s0, %s5361_s19  ;;  %p5365_p1 = scmp.lt.u32.totalorder %s5361_s19, %s6320_s0 }
   0x4   :  { %p5367_p2 = pnand %p5365_p1, %p5362_p0 }
   0x6   :  { %5370 = shalt.err (!%p5367_p2)
}
   0x7   :  { %s5371_s24 = scalar_lea.vmem %s16_s16, 25600  ;;  %p5376_p4 = scmp.lt.s32.totalorder %s16_s16, %s16_s16 }
   0x8   :  { %p5372_p3 = scmp.ne.s32.totalorder %s16_s16, %s5371_s24  ;;  %p5377_p5 = scmp.lt.s32.totalorder %s5371_s24, %s5371_s24 }
   0xa   :  { %p5378_p6 = por %p5377_p5, %p5376_p4 }
   0xc   :  { %p5379_p7 = pnand %p5378_p6, %p5372_p3 }
   0xe   :  { %5382 = shalt.err (!%p5379_p7)
}
   0xf   :  { %s5386_s25 = smov 256   ;;  %s5387_s26 = smov 16  }
  0x10   :  { %21 = dma.hbm_to_vmem [thread:$0]  %s6320_s0, 25600, %s16_s16, [#allocation4], %s5386_s25, %s5386_s25, %s5387_s26  }
  0x11   :  { %5383 = dma.done.wait [#allocation4], 25600  }
  0x12   :  { %5384 = vsyncadd [#allocation4], 4294941696  ;;  %v5388_v0 = vmov 0.0|0.0   ;;  %v231_v1 = vld [vmem:[%s6321_s1] sm:$0xff]  ;;  %v232_v2 = vld [vmem:[%s6321_s1 + $0x8] sm:$0xff]  ;;  %vm267_vm0 = vcmask 793600  }
  0x13   :  { %4661 = vmatprep.subr.bf16.mxu0 %v5388_v0  ;;  %4703 = vmatprep.subr.bf16.mxu1 %v5388_v0  ;;  %v233_v3 = vld [vmem:[%s6321_s1 + $0x10] sm:$0xff]  ;;  %v4662_v4 = vpack.c.bf16 %v232_v2, %v231_v1  ;;  %v234_v5 = vld [vmem:[%s6321_s1 + $0x18] sm:$0xff]  ;;  %v235_v7 = vld [vmem:[%s6321_s1 + $0x20] sm:$0xff]  ;;  %v5389_v44 = vmov 0.0   ;;  %vm568_vm1 = vcmask 1040384   ;;  %vm1137_vm2 = vcmask 31744  }
  0x14   :  { %v4665_v6 = vpack.c.bf16 %v234_v5, %v233_v3  ;;  %v236_v8 = vld [vmem:[%s6321_s1 + $0x28] sm:$0xff]  ;;  %v237_v10 = vld [vmem:[%s6321_s1 + $0x30] sm:$0xff]  ;;  %v238_v11 = vld [vmem:[%s6321_s1 + $0x38] sm:$0xff]  ;;  %s5390_s9 = smov 126   ;;  %s5391_s10 = smov 1   ;;  %vm4450_vm3 = vcmask 7168  }
  0x15   :  { %4663 = vmatpush1.bf16.msra.mxu0 %v4662_v4  ;;  %4718 = vmatpush1.bf16.msra.mxu1 %v4662_v4  ;;  %v4668_v9 = vpack.c.bf16 %v236_v8, %v235_v7  ;;  %v32_v12 = vld [vmem:[#allocation3 + $0x8] sm:$0xff]  ;;  %v4671_v13 = vpack.c.bf16 %v238_v11, %v237_v10  ;;  %v239_v14 = vld [vmem:[%s6321_s1 + $0x40] sm:$0xff]  ;;  %v241_v17 = vld [vmem:[%s6321_s1 + $0x50] sm:$0xff]  ;;  %v5392_v4 = vmov 3   ;;  %s5393_s11 = smov 2  }
  0x16   :  { %4664 = vmatprep.subr.bf16.mxu0 %v5388_v0  ;;  %4704 = vmatprep.subr.bf16.mxu1 %v5388_v0  ;;  %v240_v15 = vld [vmem:[%s6321_s1 + $0x48] sm:$0xff]  ;;  %v242_v18 = vld [vmem:[%s6321_s1 + $0x58] sm:$0xff]  ;;  %v243_v20 = vld [vmem:[%s6321_s1 + $0x60] sm:$0xff] }
  0x17   :  { %4459 = vmatprep.mubr.msk.f32.mxu0 %vm267_vm0, %v32_v12  ;;  %v4674_v16 = vpack.c.bf16 %v240_v15, %v239_v14  ;;  %v4677_v19 = vpack.c.bf16 %v242_v18, %v241_v17  ;;  %v244_v21 = vld [vmem:[%s6321_s1 + $0x68] sm:$0xff]  ;;  %v245_v23 = vld [vmem:[%s6321_s1 + $0x70] sm:$0xff]  ;;  %v246_v24 = vld [vmem:[%s6321_s1 + $0x78] sm:$0xff]  ;;  %4743 = vset.pattern.permute.xlu1 %v5392_v4 }
  0x18   :  { %v4680_v22 = vpack.c.bf16 %v244_v21, %v243_v20  ;;  %v4683_v25 = vpack.c.bf16 %v246_v24, %v245_v23  ;;  %v247_v26 = vld [vmem:[%s6321_s1 + $0x80] sm:$0xff]  ;;  %v248_v27 = vld [vmem:[%s6321_s1 + $0x88] sm:$0xff]  ;;  %v249_v29 = vld [vmem:[%s6321_s1 + $0x90] sm:$0xff]  ;;  %4744 = vset.pattern.permute.xlu0 %v5392_v4 }
  0x19   :  { %4666 = vmatpush1.bf16.msra.mxu0 %v4665_v6  ;;  %4719 = vmatpush1.bf16.msra.mxu1 %v4665_v6  ;;  %v4686_v28 = vpack.c.bf16 %v248_v27, %v247_v26  ;;  %v250_v30 = vld [vmem:[%s6321_s1 + $0x98] sm:$0xff]  ;;  %v251_v32 = vld [vmem:[%s6321_s1 + $0xa0] sm:$0xff]  ;;  %v252_v33 = vld [vmem:[%s6321_s1 + $0xa8] sm:$0xff] }
  0x1a   :  { %4667 = vmatprep.subr.bf16.mxu0 %v5388_v0  ;;  %4705 = vmatprep.subr.bf16.mxu1 %v5388_v0  ;;  %v4689_v31 = vpack.c.bf16 %v250_v30, %v249_v29  ;;  %v4692_v34 = vpack.c.bf16 %v252_v33, %v251_v32  ;;  %v253_v35 = vld [vmem:[%s6321_s1 + $0xb0] sm:$0xff]  ;;  %v254_v36 = vld [vmem:[%s6321_s1 + $0xb8] sm:$0xff]  ;;  %v255_v38 = vld [vmem:[%s6321_s1 + $0xc0] sm:$0xff] }
  0x1b   :  { %v4695_v37 = vpack.c.bf16 %v254_v36, %v253_v35  ;;  %v256_v39 = vld [vmem:[%s6321_s1 + $0xc8] sm:$0xff]  ;;  %v257_v41 = vld [vmem:[%s6321_s1 + $0xd0] sm:$0xff]  ;;  %v258_v42 = vld [vmem:[%s6321_s1 + $0xd8] sm:$0xff] }
  0x1c   :  { %v4698_v40 = vpack.c.bf16 %v256_v39, %v255_v38  ;;  %v4701_v43 = vpack.c.bf16 %v258_v42, %v257_v41  ;;  %v259_v45 = vld [vmem:[%s6321_s1 + $0xe0] sm:$0x1]  ;;  %v34_v63 = vld [vmem:[#allocation3 + $0x18] sm:$0xff]  ;;  %v36_v23 = vld [vmem:[#allocation3 + $0x28] sm:$0xff] }
  0x1d   :  { %4669 = vmatpush1.bf16.msra.mxu0 %v4668_v9  ;;  %4720 = vmatpush1.bf16.msra.mxu1 %v4668_v9  ;;  %v31_v46 = vld [vmem:[#allocation3] sm:$0xff] }
  0x1e   :  { %4670 = vmatprep.subr.bf16.mxu0 %v5388_v0  ;;  %4706 = vmatprep.subr.bf16.mxu1 %v5388_v0  ;;  %v5551_v47 = vld [vmem:[%s6323_s3] ss:$0 sm:$0xff] }
  0x1f   :  { %v5558_v51 = vld [vmem:[%s6322_s2] ss:$0 sm:$0xff] }
  0x20   :  { %v1246_v52 = vmul.f32 0.0, %v5558_v51  ;;  %v35_v24 = vld [vmem:[#allocation3 + $0x20] sm:$0xff] }
  0x21   :  { %4672 = vmatpush1.bf16.msra.mxu0 %v4671_v13  ;;  %4721 = vmatpush1.bf16.msra.mxu1 %v4671_v13 }
  0x22   :  { %4673 = vmatprep.subr.bf16.mxu0 %v5388_v0  ;;  %4707 = vmatprep.subr.bf16.mxu1 %v5388_v0 }
  0x25   :  { %4675 = vmatpush1.bf16.msra.mxu0 %v4674_v16  ;;  %4722 = vmatpush1.bf16.msra.mxu1 %v4674_v16 }
  0x26   :  { %4676 = vmatprep.subr.bf16.mxu0 %v5388_v0  ;;  %4708 = vmatprep.subr.bf16.mxu1 %v5388_v0 }
  0x29   :  { %4678 = vmatpush1.bf16.msra.mxu0 %v4677_v19  ;;  %4723 = vmatpush1.bf16.msra.mxu1 %v4677_v19 }
  0x2a   :  { %4679 = vmatprep.subr.bf16.mxu0 %v5388_v0  ;;  %4709 = vmatprep.subr.bf16.mxu1 %v5388_v0 }
  0x2d   :  { %4681 = vmatpush1.bf16.msra.mxu0 %v4680_v22  ;;  %4724 = vmatpush1.bf16.msra.mxu1 %v4680_v22 }
  0x2e   :  { %4682 = vmatprep.subr.bf16.mxu0 %v5388_v0  ;;  %4710 = vmatprep.subr.bf16.mxu1 %v5388_v0 }
  0x31   :  { %4684 = vmatpush1.bf16.msra.mxu0 %v4683_v25  ;;  %4725 = vmatpush1.bf16.msra.mxu1 %v4683_v25 }
  0x32   :  { %4685 = vmatprep.subr.bf16.mxu0 %v5388_v0  ;;  %4711 = vmatprep.subr.bf16.mxu1 %v5388_v0 }
  0x35   :  { %4687 = vmatpush1.bf16.msra.mxu0 %v4686_v28  ;;  %4726 = vmatpush1.bf16.msra.mxu1 %v4686_v28 }
  0x36   :  { %4688 = vmatprep.subr.bf16.mxu0 %v5388_v0  ;;  %4712 = vmatprep.subr.bf16.mxu1 %v5388_v0 }
  0x39   :  { %4690 = vmatpush1.bf16.msra.mxu0 %v4689_v31  ;;  %4727 = vmatpush1.bf16.msra.mxu1 %v4689_v31 }
  0x3a   :  { %4691 = vmatprep.subr.bf16.mxu0 %v5388_v0  ;;  %4713 = vmatprep.subr.bf16.mxu1 %v5388_v0 }
  0x3d   :  { %4693 = vmatpush1.bf16.msra.mxu0 %v4692_v34  ;;  %4728 = vmatpush1.bf16.msra.mxu1 %v4692_v34 }
  0x3e   :  { %4694 = vmatprep.subr.bf16.mxu0 %v5388_v0  ;;  %4714 = vmatprep.subr.bf16.mxu1 %v5388_v0 }
  0x41   :  { %4696 = vmatpush1.bf16.msra.mxu0 %v4695_v37  ;;  %4729 = vmatpush1.bf16.msra.mxu1 %v4695_v37 }
  0x42   :  { %4697 = vmatprep.subr.bf16.mxu0 %v5388_v0  ;;  %4715 = vmatprep.subr.bf16.mxu1 %v5388_v0 }
  0x45   :  { %4699 = vmatpush1.bf16.msra.mxu0 %v4698_v40  ;;  %4730 = vmatpush1.bf16.msra.mxu1 %v4698_v40 }
  0x46   :  { %4700 = vmatprep.subr.bf16.mxu0 %v5388_v0  ;;  %4716 = vmatprep.subr.bf16.mxu1 %v5388_v0  ;;  %v33_v0 = vld [vmem:[#allocation3 + $0x10] sm:$0xff] }
  0x49   :  { %4702 = vmatpush1.bf16.msra.mxu0 %v4701_v43  ;;  %4731 = vmatpush1.bf16.msra.mxu1 %v4701_v43 }
  0x4a   :  { %628 = vmatprep.subr.mxu0 %v5389_v44  ;;  %4717 = vmatprep.subr.mxu1 %v5389_v44 }
  0x4d   :  { %4458 = vmatpush1.msk.msra.mxu0 %vm568_vm1, %v259_v45  ;;  %4732 = vmatpush1.msk.msra.mxu1 %vm568_vm1, %v259_v45 }
  0x4e   :  { %637 = vmatmul.mubr.f32.vlgmr.msra.gmra.mrb[0].mxu0 %v31_v46  ;;  %v38_v46 = vld [vmem:[#allocation3 + $0x38] sm:$0xff] }
  0x4f   :  { %4460 = vmatprep.mubr.msk.f32.mxu0 %vm267_vm0, %v34_v63 }
  0x52   :  { %642 = vmatmul.mubr.f32.gmra.mrb[2].mxu0 %v33_v0 }
  0x53   :  { %4461 = vmatprep.mubr.msk.f32.mxu0 %vm267_vm0, %v36_v23 }
  0x56   :  { %647 = vmatmul.mubr.f32.gmra.mrb[4].mxu0 %v35_v24 }
  0x57   :  { %4462 = vmatprep.mubr.msk.f32.mxu0 %vm267_vm0, %v38_v46 }
 0x121   :  { %v638_v48 = vpop.f32.mrb[0].mxu0 }
 0x122   :  { %v639_v49 = vadd.f32 %v5551_v47, %v638_v48  ;;  %v640_v50 = vpop.f32.mrb[1].mxu0  ;;  %v37_v48 = vld [vmem:[#allocation3 + $0x30] sm:$0xff] }
 0x123   :  { %652 = vmatmul.mubr.f32.gmra.mrb[6].mxu0 %v37_v48 }
 0x124   :  { %1138 = vst.msk [vmem:[#allocation2] sm:$0xff] %vm1137_vm2, %v639_v49 }
 0x125   :  { %v643_v6 = vpop.f32.mrb[2].mxu0 }
 0x126   :  { %v644_v7 = vadd.f32 %v5551_v47, %v643_v6  ;;  %v645_v8 = vpop.f32.mrb[3].mxu0 }
 0x127   :  { %v39_v8 = vld [vmem:[#allocation3 + $0x40] sm:$0xff] }
 0x128   :  { %1139 = vst.msk [vmem:[#allocation2 + $0x8] sm:$0xff] %vm1137_vm2, %v644_v7  ;;  %v40_v7 = vld [vmem:[#allocation3 + $0x48] sm:$0xff] }
 0x129   :  { %v648_v29 = vpop.f32.mrb[4].mxu0  ;;  %4463 = vmatprep.mubr.msk.f32.mxu0 %vm267_vm0, %v40_v7 }
 0x12a   :  { %v649_v30 = vadd.f32 %v5551_v47, %v648_v29  ;;  %v650_v31 = vpop.f32.mrb[5].mxu0  ;;  %657 = vmatmul.mubr.f32.gmra.mrb[8].mxu0 %v39_v8 }
 0x12b   :  { %v1245_v53 = vld [vmem:[#allocation2] sm:$0xff]  ;;  %v41_v31 = vld [vmem:[#allocation3 + $0x50] sm:$0xff] }
 0x12c   :  { %v1247_v54 = vadd.f32 %v1246_v52, %v1245_v53  ;;  %1140 = vst.msk [vmem:[#allocation2 + $0x10] sm:$0xff] %vm1137_vm2, %v649_v30  ;;  %v42_v30 = vld [vmem:[#allocation3 + $0x58] sm:$0xff] }
 0x12d   :  { %4464 = vmatprep.mubr.msk.f32.mxu0 %vm267_vm0, %v42_v30 }
 0x12e   :  { %v1248_v55 = vmul.f32 1.442695, %v1247_v54  ;;  %662 = vmatmul.mubr.f32.gmra.mrb[10].mxu0 %v41_v31 }
 0x12f   :  { %v1272_v11 = vld [vmem:[#allocation2 + $0x8] sm:$0xff] }
 0x130   :  { %4745 = vpow2.f32 %v1248_v55 }
 0x133   :  { %v1304_v34 = vld [vmem:[#allocation2 + $0x10] sm:$0xff] }
 0x13a   :  { %v4746_v56 = vpop.eup %4745 }
 0x13b   :  { %v1250_v57 = vadd.f32 1.0, %v4746_v56 }
 0x13d   :  { %4747 = vrcp.f32 %v1250_v57 }
 0x147   :  { %v4748_v58 = vpop.eup %4747 }
 0x148   :  { %v1253_v59 = vmul.f32 2.0, %v4748_v58  ;;  %v1255_v1 = vmul.f32 0.0, %v4748_v58 }
 0x14a   :  { %v4560_v60 = vadd.f32 -1.0, %v1253_v59 }
 0x14c   :  { %1257 = vrot.lane.b32.xlu0 %v4560_v60, %s5390_s9 }
 0x1be   :  { %v1258_v61 = vpop.permute.xlu0 %1257 }
 0x1bf   :  { %v1260_v62 = vmul.f32 %v4748_v58, %v1258_v61 }
 0x1c1   :  { %1262 = vrot.lane.b32.xlu0 %v1260_v62, %s5391_s10 }
 0x1f6   :  { %v653_v54 = vpop.f32.mrb[6].mxu0 }
 0x1f7   :  { %v654_v55 = vadd.f32 %v5551_v47, %v653_v54  ;;  %v655_v56 = vpop.f32.mrb[7].mxu0 }
 0x1f8   :  { %v43_v56 = vld [vmem:[#allocation3 + $0x60] sm:$0xff] }
 0x1f9   :  { %1141 = vst.msk [vmem:[#allocation2 + $0x18] sm:$0xff] %vm1137_vm2, %v654_v55  ;;  %v44_v55 = vld [vmem:[#allocation3 + $0x68] sm:$0xff] }
 0x1fa   :  { %4465 = vmatprep.mubr.msk.f32.mxu0 %vm267_vm0, %v44_v55 }
 0x1fb   :  { %667 = vmatmul.mubr.f32.gmra.mrb[12].mxu0 %v43_v56 }
 0x200   :  { %v1336_v59 = vld [vmem:[#allocation2 + $0x18] sm:$0xff] }
 0x233   :  { %v1263_v2 = vpop.permute.xlu0 %1262 }
 0x234   :  { %v1265_v3 = vadd.f32 %v1263_v2, %v1255_v1 }
 0x236   :  { %4749 = vtanh.f32 %v1265_v3 }
 0x240   :  { %v4750_v5 = vpop.eup %4749 }
 0x241   :  { %1268 = vrot.lane.b32.xlu1 %v4750_v5, %s5393_s11 }
 0x2b3   :  { %v1269_v9 = vpop.permute.xlu1 %1268 }
 0x2b4   :  { %v1271_v10 = vmul.f32 %v4748_v58, %v1269_v9 }
 0x2b6   :  { %1275 = vperm.xlu1 %4743, %v1271_v10  }
 0x335   :  { %v1276_v12 = vpop.permute.xlu1 %1275 }
 0x336   :  { %v1278_v13 = vmul.f32 %v5558_v51, %v1276_v12 }
 0x338   :  { %v1279_v14 = vadd.f32 %v1278_v13, %v1272_v11  ;;  %v658_v13 = vpop.f32.mrb[8].mxu0 }
 0x33a   :  { %v1280_v15 = vmul.f32 1.442695, %v1279_v14  ;;  %v659_v14 = vadd.f32 %v5551_v47, %v658_v13 }
 0x33c   :  { %4751 = vpow2.f32 %v1280_v15  ;;  %v660_v15 = vpop.f32.mrb[9].mxu0  ;;  %1142 = vst.msk [vmem:[#allocation2 + $0x20] sm:$0xff] %vm1137_vm2, %v659_v14  ;;  %v46_v14 = vld [vmem:[#allocation3 + $0x78] sm:$0xff] }
 0x33d   :  { %v45_v15 = vld [vmem:[#allocation3 + $0x70] sm:$0xff]  ;;  %4466 = vmatprep.mubr.msk.f32.mxu0 %vm267_vm0, %v46_v14 }
 0x33e   :  { %672 = vmatmul.mubr.f32.gmra.mrb[14].mxu0 %v45_v15 }
 0x346   :  { %v4752_v16 = vpop.eup %4751 }
 0x347   :  { %v1282_v17 = vadd.f32 1.0, %v4752_v16 }
 0x349   :  { %4753 = vrcp.f32 %v1282_v17 }
 0x353   :  { %v4754_v18 = vpop.eup %4753 }
 0x354   :  { %v1285_v19 = vmul.f32 2.0, %v4754_v18  ;;  %v1287_v25 = vmul.f32 %v4754_v18, %v1265_v3 }
 0x356   :  { %v4561_v20 = vadd.f32 -1.0, %v1285_v19 }
 0x358   :  { %1289 = vrot.lane.b32.xlu0 %v4561_v20, %s5390_s9 }
 0x3ca   :  { %v1290_v21 = vpop.permute.xlu0 %1289 }
 0x3cb   :  { %v1292_v22 = vmul.f32 %v4754_v18, %v1290_v21 }
 0x3cd   :  { %1294 = vrot.lane.b32.xlu1 %v1292_v22, %s5391_s10 }
 0x43f   :  { %v1295_v26 = vpop.permute.xlu1 %1294 }
 0x440   :  { %v1297_v27 = vadd.f32 %v1295_v26, %v1287_v25 }
 0x442   :  { %4755 = vtanh.f32 %v1297_v27 }
 0x44c   :  { %v4756_v28 = vpop.eup %4755 }
 0x44d   :  { %1300 = vrot.lane.b32.xlu0 %v4756_v28, %s5393_s11 }
 0x4bf   :  { %v1301_v32 = vpop.permute.xlu0 %1300 }
 0x4c0   :  { %v1303_v33 = vmul.f32 %v4754_v18, %v1301_v32  ;;  %v1368_v18 = vld [vmem:[#allocation2 + $0x20] sm:$0xff] }
 0x4c2   :  { %1307 = vperm.xlu1 %4743, %v1303_v33  }
 0x541   :  { %v1308_v35 = vpop.permute.xlu1 %1307 }
 0x542   :  { %v1310_v36 = vmul.f32 %v5558_v51, %v1308_v35 }
 0x544   :  { %v1311_v37 = vadd.f32 %v1310_v36, %v1304_v34  ;;  %v663_v36 = vpop.f32.mrb[10].mxu0 }
 0x546   :  { %v1312_v38 = vmul.f32 1.442695, %v1311_v37  ;;  %v664_v37 = vadd.f32 %v5551_v47, %v663_v36 }
 0x548   :  { %4757 = vpow2.f32 %v1312_v38  ;;  %v665_v38 = vpop.f32.mrb[11].mxu0  ;;  %1143 = vst.msk [vmem:[#allocation2 + $0x28] sm:$0xff] %vm1137_vm2, %v664_v37  ;;  %v48_v37 = vld [vmem:[#allocation3 + $0x88] sm:$0xff] }
 0x549   :  { %v47_v38 = vld [vmem:[#allocation3 + $0x80] sm:$0xff]  ;;  %4467 = vmatprep.mubr.msk.f32.mxu0 %vm267_vm0, %v48_v37 }
 0x54a   :  { %677 = vmatmul.mubr.f32.gmra.mrb[16].mxu0 %v47_v38 }
 0x552   :  { %v4758_v39 = vpop.eup %4757 }
 0x553   :  { %v1314_v40 = vadd.f32 1.0, %v4758_v39 }
 0x555   :  { %4759 = vrcp.f32 %v1314_v40 }
 0x55f   :  { %v4760_v41 = vpop.eup %4759 }
 0x560   :  { %v1317_v42 = vmul.f32 2.0, %v4760_v41  ;;  %v1319_v49 = vmul.f32 %v4760_v41, %v1297_v27 }
 0x562   :  { %v4562_v43 = vadd.f32 -1.0, %v1317_v42 }
 0x564   :  { %1321 = vrot.lane.b32.xlu0 %v4562_v43, %s5390_s9 }
 0x5d6   :  { %v1322_v44 = vpop.permute.xlu0 %1321 }
 0x5d7   :  { %v1324_v45 = vmul.f32 %v4760_v41, %v1322_v44 }
 0x5d9   :  { %1326 = vrot.lane.b32.xlu1 %v1324_v45, %s5391_s10 }
 0x64b   :  { %v1327_v50 = vpop.permute.xlu1 %1326 }
 0x64c   :  { %v1329_v52 = vadd.f32 %v1327_v50, %v1319_v49 }
 0x64e   :  { %4761 = vtanh.f32 %v1329_v52 }
 0x658   :  { %v4762_v53 = vpop.eup %4761 }
 0x659   :  { %1332 = vrot.lane.b32.xlu0 %v4762_v53, %s5393_s11 }
 0x6cb   :  { %v1333_v57 = vpop.permute.xlu0 %1332 }
 0x6cc   :  { %v1335_v58 = vmul.f32 %v4760_v41, %v1333_v57  ;;  %v1400_v41 = vld [vmem:[#allocation2 + $0x28] sm:$0xff] }
 0x6ce   :  { %1339 = vperm.xlu1 %4743, %v1335_v58  }
 0x74d   :  { %v1340_v60 = vpop.permute.xlu1 %1339 }
 0x74e   :  { %v1342_v61 = vmul.f32 %v5558_v51, %v1340_v60 }
 0x750   :  { %v1343_v62 = vadd.f32 %v1342_v61, %v1336_v59  ;;  %v668_v61 = vpop.f32.mrb[12].mxu0 }
 0x752   :  { %v1344_v63 = vmul.f32 1.442695, %v1343_v62  ;;  %v669_v62 = vadd.f32 %v5551_v47, %v668_v61 }
 0x754   :  { %4763 = vpow2.f32 %v1344_v63  ;;  %v670_v63 = vpop.f32.mrb[13].mxu0  ;;  %1144 = vst.msk [vmem:[#allocation2 + $0x30] sm:$0xff] %vm1137_vm2, %v669_v62  ;;  %v50_v62 = vld [vmem:[#allocation3 + $0x98] sm:$0xff] }
 0x755   :  { %v49_v63 = vld [vmem:[#allocation3 + $0x90] sm:$0xff]  ;;  %4468 = vmatprep.mubr.msk.f32.mxu0 %vm267_vm0, %v50_v62 }
 0x756   :  { %682 = vmatmul.mubr.f32.gmra.mrb[18].mxu0 %v49_v63 }
 0x75e   :  { %v4764_v0 = vpop.eup %4763 }
 0x75f   :  { %v1346_v1 = vadd.f32 1.0, %v4764_v0 }
 0x761   :  { %4765 = vrcp.f32 %v1346_v1 }
 0x76b   :  { %v4766_v2 = vpop.eup %4765 }
 0x76c   :  { %v1349_v3 = vmul.f32 2.0, %v4766_v2  ;;  %v1351_v9 = vmul.f32 %v4766_v2, %v1329_v52 }
 0x76e   :  { %v4563_v4 = vadd.f32 -1.0, %v1349_v3 }
 0x770   :  { %1353 = vrot.lane.b32.xlu0 %v4563_v4, %s5390_s9 }
 0x7e2   :  { %v1354_v5 = vpop.permute.xlu0 %1353 }
 0x7e3   :  { %v1356_v6 = vmul.f32 %v4766_v2, %v1354_v5 }
 0x7e5   :  { %1358 = vrot.lane.b32.xlu1 %v1356_v6, %s5391_s10 }
 0x857   :  { %v1359_v10 = vpop.permute.xlu1 %1358 }
 0x858   :  { %v1361_v11 = vadd.f32 %v1359_v10, %v1351_v9 }
 0x85a   :  { %4767 = vtanh.f32 %v1361_v11 }
 0x864   :  { %v4768_v12 = vpop.eup %4767 }
 0x865   :  { %1364 = vrot.lane.b32.xlu0 %v4768_v12, %s5393_s11 }
 0x8d7   :  { %v1365_v16 = vpop.permute.xlu0 %1364 }
 0x8d8   :  { %v1367_v17 = vmul.f32 %v4766_v2, %v1365_v16  ;;  %v1432_v2 = vld [vmem:[#allocation2 + $0x30] sm:$0xff] }
 0x8da   :  { %1371 = vperm.xlu1 %4743, %v1367_v17  }
 0x959   :  { %v1372_v19 = vpop.permute.xlu1 %1371 }
 0x95a   :  { %v1374_v20 = vmul.f32 %v5558_v51, %v1372_v19 }
 0x95c   :  { %v1375_v21 = vadd.f32 %v1374_v20, %v1368_v18  ;;  %v673_v20 = vpop.f32.mrb[14].mxu0 }
 0x95e   :  { %v1376_v22 = vmul.f32 1.442695, %v1375_v21  ;;  %v674_v21 = vadd.f32 %v5551_v47, %v673_v20 }
 0x960   :  { %4769 = vpow2.f32 %v1376_v22  ;;  %v675_v22 = vpop.f32.mrb[15].mxu0  ;;  %1145 = vst.msk [vmem:[#allocation2 + $0x38] sm:$0xff] %vm1137_vm2, %v674_v21  ;;  %v52_v21 = vld [vmem:[#allocation3 + $0xa8] sm:$0xff] }
 0x961   :  { %v51_v22 = vld [vmem:[#allocation3 + $0xa0] sm:$0xff]  ;;  %4469 = vmatprep.mubr.msk.f32.mxu0 %vm267_vm0, %v52_v21 }
 0x962   :  { %687 = vmatmul.mubr.f32.gmra.mrb[20].mxu0 %v51_v22 }
 0x96a   :  { %v4770_v23 = vpop.eup %4769 }
 0x96b   :  { %v1378_v24 = vadd.f32 1.0, %v4770_v23 }
 0x96d   :  { %4771 = vrcp.f32 %v1378_v24 }
 0x977   :  { %v4772_v25 = vpop.eup %4771 }
 0x978   :  { %v1381_v26 = vmul.f32 2.0, %v4772_v25  ;;  %v1383_v32 = vmul.f32 %v4772_v25, %v1361_v11 }
 0x97a   :  { %v4564_v27 = vadd.f32 -1.0, %v1381_v26 }
 0x97c   :  { %1385 = vrot.lane.b32.xlu0 %v4564_v27, %s5390_s9 }
 0x9ee   :  { %v1386_v28 = vpop.permute.xlu0 %1385 }
 0x9ef   :  { %v1388_v29 = vmul.f32 %v4772_v25, %v1386_v28 }
 0x9f1   :  { %1390 = vrot.lane.b32.xlu1 %v1388_v29, %s5391_s10 }
 0xa63   :  { %v1391_v33 = vpop.permute.xlu1 %1390 }
 0xa64   :  { %v1393_v34 = vadd.f32 %v1391_v33, %v1383_v32 }
 0xa66   :  { %4773 = vtanh.f32 %v1393_v34 }
 0xa70   :  { %v4774_v35 = vpop.eup %4773 }
 0xa71   :  { %1396 = vrot.lane.b32.xlu0 %v4774_v35, %s5393_s11 }
 0xae3   :  { %v1397_v39 = vpop.permute.xlu0 %1396 }
 0xae4   :  { %v1399_v40 = vmul.f32 %v4772_v25, %v1397_v39  ;;  %v1464_v25 = vld [vmem:[#allocation2 + $0x38] sm:$0xff] }
 0xae6   :  { %1403 = vperm.xlu1 %4743, %v1399_v40  }
 0xb65   :  { %v1404_v42 = vpop.permute.xlu1 %1403 }
 0xb66   :  { %v1406_v43 = vmul.f32 %v5558_v51, %v1404_v42 }
 0xb68   :  { %v1407_v44 = vadd.f32 %v1406_v43, %v1400_v41  ;;  %v678_v43 = vpop.f32.mrb[16].mxu0 }
 0xb6a   :  { %v1408_v45 = vmul.f32 1.442695, %v1407_v44  ;;  %v679_v44 = vadd.f32 %v5551_v47, %v678_v43 }
 0xb6c   :  { %4775 = vpow2.f32 %v1408_v45  ;;  %v680_v45 = vpop.f32.mrb[17].mxu0  ;;  %1146 = vst.msk [vmem:[#allocation2 + $0x40] sm:$0xff] %vm1137_vm2, %v679_v44  ;;  %v54_v44 = vld [vmem:[#allocation3 + $0xb8] sm:$0xff] }
 0xb6d   :  { %v53_v45 = vld [vmem:[#allocation3 + $0xb0] sm:$0xff]  ;;  %4470 = vmatprep.mubr.msk.f32.mxu0 %vm267_vm0, %v54_v44 }
 0xb6e   :  { %692 = vmatmul.mubr.f32.gmra.mrb[22].mxu0 %v53_v45 }
 0xb76   :  { %v4776_v46 = vpop.eup %4775 }
 0xb77   :  { %v1410_v48 = vadd.f32 1.0, %v4776_v46 }
 0xb79   :  { %4777 = vrcp.f32 %v1410_v48 }
 0xb83   :  { %v4778_v49 = vpop.eup %4777 }
 0xb84   :  { %v1413_v50 = vmul.f32 2.0, %v4778_v49  ;;  %v1415_v57 = vmul.f32 %v4778_v49, %v1393_v34 }
 0xb86   :  { %v4565_v52 = vadd.f32 -1.0, %v1413_v50 }
 0xb88   :  { %1417 = vrot.lane.b32.xlu0 %v4565_v52, %s5390_s9 }
 0xbfa   :  { %v1418_v53 = vpop.permute.xlu0 %1417 }
 0xbfb   :  { %v1420_v54 = vmul.f32 %v4778_v49, %v1418_v53 }
 0xbfd   :  { %1422 = vrot.lane.b32.xlu1 %v1420_v54, %s5391_s10 }
 0xc6f   :  { %v1423_v58 = vpop.permute.xlu1 %1422 }
 0xc70   :  { %v1425_v59 = vadd.f32 %v1423_v58, %v1415_v57 }
 0xc72   :  { %4779 = vtanh.f32 %v1425_v59 }
 0xc7c   :  { %v4780_v60 = vpop.eup %4779 }
 0xc7d   :  { %1428 = vrot.lane.b32.xlu0 %v4780_v60, %s5393_s11 }
 0xcef   :  { %v1429_v0 = vpop.permute.xlu0 %1428 }
 0xcf0   :  { %v1431_v1 = vmul.f32 %v4778_v49, %v1429_v0  ;;  %v1496_v49 = vld [vmem:[#allocation2 + $0x40] sm:$0xff] }
 0xcf2   :  { %1435 = vperm.xlu1 %4743, %v1431_v1  }
 0xd71   :  { %v1436_v3 = vpop.permute.xlu1 %1435 }
 0xd72   :  { %v1438_v4 = vmul.f32 %v5558_v51, %v1436_v3 }
 0xd74   :  { %v1439_v5 = vadd.f32 %v1438_v4, %v1432_v2  ;;  %v683_v4 = vpop.f32.mrb[18].mxu0 }
 0xd76   :  { %v1440_v6 = vmul.f32 1.442695, %v1439_v5  ;;  %v684_v5 = vadd.f32 %v5551_v47, %v683_v4 }
 0xd78   :  { %4781 = vpow2.f32 %v1440_v6  ;;  %v685_v6 = vpop.f32.mrb[19].mxu0  ;;  %1147 = vst.msk [vmem:[#allocation2 + $0x48] sm:$0xff] %vm1137_vm2, %v684_v5  ;;  %v56_v5 = vld [vmem:[#allocation3 + $0xc8] sm:$0xff] }
 0xd79   :  { %v55_v6 = vld [vmem:[#allocation3 + $0xc0] sm:$0xff]  ;;  %4471 = vmatprep.mubr.msk.f32.mxu0 %vm267_vm0, %v56_v5 }
 0xd7a   :  { %697 = vmatmul.mubr.f32.gmra.mrb[24].mxu0 %v55_v6 }
 0xd82   :  { %v4782_v7 = vpop.eup %4781 }
 0xd83   :  { %v1442_v8 = vadd.f32 1.0, %v4782_v7 }
 0xd85   :  { %4783 = vrcp.f32 %v1442_v8 }
 0xd8f   :  { %v4784_v9 = vpop.eup %4783 }
 0xd90   :  { %v1445_v10 = vmul.f32 2.0, %v4784_v9  ;;  %v1447_v16 = vmul.f32 %v4784_v9, %v1425_v59 }
 0xd92   :  { %v4566_v11 = vadd.f32 -1.0, %v1445_v10 }
 0xd94   :  { %1449 = vrot.lane.b32.xlu0 %v4566_v11, %s5390_s9 }
 0xe06   :  { %v1450_v12 = vpop.permute.xlu0 %1449 }
 0xe07   :  { %v1452_v13 = vmul.f32 %v4784_v9, %v1450_v12 }
 0xe09   :  { %1454 = vrot.lane.b32.xlu1 %v1452_v13, %s5391_s10 }
 0xe7b   :  { %v1455_v17 = vpop.permute.xlu1 %1454 }
 0xe7c   :  { %v1457_v18 = vadd.f32 %v1455_v17, %v1447_v16 }
 0xe7e   :  { %4785 = vtanh.f32 %v1457_v18 }
 0xe88   :  { %v4786_v19 = vpop.eup %4785 }
 0xe89   :  { %1460 = vrot.lane.b32.xlu0 %v4786_v19, %s5393_s11 }
 0xefb   :  { %v1461_v23 = vpop.permute.xlu0 %1460 }
 0xefc   :  { %v1463_v24 = vmul.f32 %v4784_v9, %v1461_v23  ;;  %v1528_v9 = vld [vmem:[#allocation2 + $0x48] sm:$0xff] }
 0xefe   :  { %1467 = vperm.xlu1 %4743, %v1463_v24  }
 0xf7d   :  { %v1468_v26 = vpop.permute.xlu1 %1467 }
 0xf7e   :  { %v1470_v27 = vmul.f32 %v5558_v51, %v1468_v26 }
 0xf80   :  { %v1471_v28 = vadd.f32 %v1470_v27, %v1464_v25  ;;  %v688_v27 = vpop.f32.mrb[20].mxu0 }
 0xf82   :  { %v1472_v29 = vmul.f32 1.442695, %v1471_v28  ;;  %v689_v28 = vadd.f32 %v5551_v47, %v688_v27 }
 0xf84   :  { %4787 = vpow2.f32 %v1472_v29  ;;  %v690_v29 = vpop.f32.mrb[21].mxu0  ;;  %1148 = vst.msk [vmem:[#allocation2 + $0x50] sm:$0xff] %vm1137_vm2, %v689_v28  ;;  %v58_v28 = vld [vmem:[#allocation3 + $0xd8] sm:$0xff] }
 0xf85   :  { %v57_v29 = vld [vmem:[#allocation3 + $0xd0] sm:$0xff]  ;;  %4472 = vmatprep.mubr.msk.f32.mxu0 %vm267_vm0, %v58_v28 }
 0xf86   :  { %702 = vmatmul.mubr.f32.gmra.mrb[26].mxu0 %v57_v29 }
 0xf8e   :  { %v4788_v30 = vpop.eup %4787 }
 0xf8f   :  { %v1474_v31 = vadd.f32 1.0, %v4788_v30 }
 0xf91   :  { %4789 = vrcp.f32 %v1474_v31 }
 0xf9b   :  { %v4790_v32 = vpop.eup %4789 }
 0xf9c   :  { %v1477_v33 = vmul.f32 2.0, %v4790_v32  ;;  %v1479_v39 = vmul.f32 %v4790_v32, %v1457_v18 }
 0xf9e   :  { %v4567_v34 = vadd.f32 -1.0, %v1477_v33 }
 0xfa0   :  { %1481 = vrot.lane.b32.xlu0 %v4567_v34, %s5390_s9 }
0x1012   :  { %v1482_v35 = vpop.permute.xlu0 %1481 }
0x1013   :  { %v1484_v36 = vmul.f32 %v4790_v32, %v1482_v35 }
0x1015   :  { %1486 = vrot.lane.b32.xlu1 %v1484_v36, %s5391_s10 }
0x1087   :  { %v1487_v40 = vpop.permute.xlu1 %1486 }
0x1088   :  { %v1489_v41 = vadd.f32 %v1487_v40, %v1479_v39 }
0x108a   :  { %4791 = vtanh.f32 %v1489_v41 }
0x1094   :  { %v4792_v42 = vpop.eup %4791 }
0x1095   :  { %1492 = vrot.lane.b32.xlu0 %v4792_v42, %s5393_s11 }
0x1107   :  { %v1493_v46 = vpop.permute.xlu0 %1492 }
0x1108   :  { %v1495_v48 = vmul.f32 %v4790_v32, %v1493_v46  ;;  %v1560_v32 = vld [vmem:[#allocation2 + $0x50] sm:$0xff] }
0x110a   :  { %1499 = vperm.xlu1 %4743, %v1495_v48  }
0x1189   :  { %v1500_v50 = vpop.permute.xlu1 %1499 }
0x118a   :  { %v1502_v52 = vmul.f32 %v5558_v51, %v1500_v50 }
0x118c   :  { %v1503_v53 = vadd.f32 %v1502_v52, %v1496_v49  ;;  %v693_v52 = vpop.f32.mrb[22].mxu0 }
0x118e   :  { %v1504_v54 = vmul.f32 1.442695, %v1503_v53  ;;  %v694_v53 = vadd.f32 %v5551_v47, %v693_v52 }
0x1190   :  { %4793 = vpow2.f32 %v1504_v54  ;;  %v695_v54 = vpop.f32.mrb[23].mxu0  ;;  %1149 = vst.msk [vmem:[#allocation2 + $0x58] sm:$0xff] %vm1137_vm2, %v694_v53  ;;  %v60_v53 = vld [vmem:[#allocation3 + $0xe8] sm:$0xff] }
0x1191   :  { %v59_v54 = vld [vmem:[#allocation3 + $0xe0] sm:$0xff]  ;;  %4473 = vmatprep.mubr.msk.f32.mxu0 %vm267_vm0, %v60_v53 }
0x1192   :  { %707 = vmatmul.mubr.f32.gmra.mrb[28].mxu0 %v59_v54 }
0x119a   :  { %v4794_v55 = vpop.eup %4793 }
0x119b   :  { %v1506_v56 = vadd.f32 1.0, %v4794_v55 }
0x119d   :  { %4795 = vrcp.f32 %v1506_v56 }
0x11a7   :  { %v4796_v57 = vpop.eup %4795 }
0x11a8   :  { %v1509_v58 = vmul.f32 2.0, %v4796_v57  ;;  %v1511_v0 = vmul.f32 %v4796_v57, %v1489_v41 }
0x11aa   :  { %v4568_v59 = vadd.f32 -1.0, %v1509_v58 }
0x11ac   :  { %1513 = vrot.lane.b32.xlu0 %v4568_v59, %s5390_s9 }
0x121e   :  { %v1514_v60 = vpop.permute.xlu0 %1513 }
0x121f   :  { %v1516_v61 = vmul.f32 %v4796_v57, %v1514_v60 }
0x1221   :  { %1518 = vrot.lane.b32.xlu1 %v1516_v61, %s5391_s10 }
0x1293   :  { %v1519_v1 = vpop.permute.xlu1 %1518 }
0x1294   :  { %v1521_v2 = vadd.f32 %v1519_v1, %v1511_v0 }
0x1296   :  { %4797 = vtanh.f32 %v1521_v2 }
0x12a0   :  { %v4798_v3 = vpop.eup %4797 }
0x12a1   :  { %1524 = vrot.lane.b32.xlu0 %v4798_v3, %s5393_s11 }
0x1313   :  { %v1525_v7 = vpop.permute.xlu0 %1524 }
0x1314   :  { %v1527_v8 = vmul.f32 %v4796_v57, %v1525_v7  ;;  %v1592_v57 = vld [vmem:[#allocation2 + $0x58] sm:$0xff] }
0x1316   :  { %1531 = vperm.xlu1 %4743, %v1527_v8  }
0x1395   :  { %v1532_v10 = vpop.permute.xlu1 %1531 }
0x1396   :  { %v1534_v11 = vmul.f32 %v5558_v51, %v1532_v10 }
0x1398   :  { %v1535_v12 = vadd.f32 %v1534_v11, %v1528_v9  ;;  %v698_v11 = vpop.f32.mrb[24].mxu0 }
0x139a   :  { %v1536_v13 = vmul.f32 1.442695, %v1535_v12  ;;  %v699_v12 = vadd.f32 %v5551_v47, %v698_v11 }
0x139c   :  { %4799 = vpow2.f32 %v1536_v13  ;;  %v700_v13 = vpop.f32.mrb[25].mxu0  ;;  %1150 = vst.msk [vmem:[#allocation2 + $0x60] sm:$0xff] %vm1137_vm2, %v699_v12  ;;  %v62_v12 = vld [vmem:[#allocation3 + $0xf8] sm:$0xff] }
0x139d   :  { %v61_v13 = vld [vmem:[#allocation3 + $0xf0] sm:$0xff]  ;;  %4474 = vmatprep.mubr.msk.f32.mxu0 %vm267_vm0, %v62_v12 }
0x139e   :  { %712 = vmatmul.mubr.f32.gmra.mrb[30].mxu0 %v61_v13 }
0x13a6   :  { %v4800_v14 = vpop.eup %4799 }
0x13a7   :  { %v1538_v15 = vadd.f32 1.0, %v4800_v14 }
0x13a9   :  { %4801 = vrcp.f32 %v1538_v15 }
0x13b3   :  { %v4802_v16 = vpop.eup %4801 }
0x13b4   :  { %v1541_v17 = vmul.f32 2.0, %v4802_v16  ;;  %v1543_v23 = vmul.f32 %v4802_v16, %v1521_v2 }
0x13b6   :  { %v4569_v18 = vadd.f32 -1.0, %v1541_v17 }
0x13b8   :  { %1545 = vrot.lane.b32.xlu0 %v4569_v18, %s5390_s9 }
0x142a   :  { %v1546_v19 = vpop.permute.xlu0 %1545 }
0x142b   :  { %v1548_v20 = vmul.f32 %v4802_v16, %v1546_v19 }
0x142d   :  { %1550 = vrot.lane.b32.xlu1 %v1548_v20, %s5391_s10 }
0x149f   :  { %v1551_v24 = vpop.permute.xlu1 %1550 }
0x14a0   :  { %v1553_v25 = vadd.f32 %v1551_v24, %v1543_v23 }
0x14a2   :  { %4803 = vtanh.f32 %v1553_v25 }
0x14ac   :  { %v4804_v26 = vpop.eup %4803 }
0x14ad   :  { %1556 = vrot.lane.b32.xlu0 %v4804_v26, %s5393_s11 }
0x151f   :  { %v1557_v30 = vpop.permute.xlu0 %1556 }
0x1520   :  { %v1559_v31 = vmul.f32 %v4802_v16, %v1557_v30  ;;  %v1624_v16 = vld [vmem:[#allocation2 + $0x60] sm:$0xff] }
0x1522   :  { %1563 = vperm.xlu1 %4743, %v1559_v31  }
0x15a1   :  { %v1564_v33 = vpop.permute.xlu1 %1563 }
0x15a2   :  { %v1566_v34 = vmul.f32 %v5558_v51, %v1564_v33 }
0x15a4   :  { %v1567_v35 = vadd.f32 %v1566_v34, %v1560_v32  ;;  %v703_v34 = vpop.f32.mrb[26].mxu0 }
0x15a6   :  { %v1568_v36 = vmul.f32 1.442695, %v1567_v35  ;;  %v704_v35 = vadd.f32 %v5551_v47, %v703_v34  ;;  %v64_v34 = vld [vmem:[#allocation3 + $0x108] sm:$0xff] }
0x15a7   :  { %4475 = vmatprep.mubr.msk.f32.mxu0 %vm267_vm0, %v64_v34 }
0x15a8   :  { %4805 = vpow2.f32 %v1568_v36  ;;  %v705_v36 = vpop.f32.mrb[27].mxu0  ;;  %1151 = vst.msk [vmem:[#allocation2 + $0x68] sm:$0xff] %vm1137_vm2, %v704_v35  ;;  %v63_v35 = vld [vmem:[#allocation3 + $0x100] sm:$0xff] }
0x15a9   :  { %717 = vmatmul.mubr.f32.gmra.mrb[32].mxu0 %v63_v35 }
0x15b2   :  { %v4806_v37 = vpop.eup %4805 }
0x15b3   :  { %v1570_v38 = vadd.f32 1.0, %v4806_v37 }
0x15b5   :  { %4807 = vrcp.f32 %v1570_v38 }
0x15bf   :  { %v4808_v39 = vpop.eup %4807 }
0x15c0   :  { %v1573_v40 = vmul.f32 2.0, %v4808_v39  ;;  %v1575_v46 = vmul.f32 %v4808_v39, %v1553_v25 }
0x15c2   :  { %v4570_v41 = vadd.f32 -1.0, %v1573_v40 }
0x15c4   :  { %1577 = vrot.lane.b32.xlu0 %v4570_v41, %s5390_s9 }
0x1636   :  { %v1578_v42 = vpop.permute.xlu0 %1577 }
0x1637   :  { %v1580_v43 = vmul.f32 %v4808_v39, %v1578_v42 }
0x1639   :  { %1582 = vrot.lane.b32.xlu1 %v1580_v43, %s5391_s10 }
0x16ab   :  { %v1583_v48 = vpop.permute.xlu1 %1582 }
0x16ac   :  { %v1585_v49 = vadd.f32 %v1583_v48, %v1575_v46 }
0x16ae   :  { %4809 = vtanh.f32 %v1585_v49 }
0x16b8   :  { %v4810_v50 = vpop.eup %4809 }
0x16b9   :  { %1588 = vrot.lane.b32.xlu0 %v4810_v50, %s5393_s11 }
0x172b   :  { %v1589_v55 = vpop.permute.xlu0 %1588 }
0x172c   :  { %v1591_v56 = vmul.f32 %v4808_v39, %v1589_v55  ;;  %v1656_v39 = vld [vmem:[#allocation2 + $0x68] sm:$0xff] }
0x172e   :  { %1595 = vperm.xlu1 %4743, %v1591_v56  }
0x17ad   :  { %v1596_v58 = vpop.permute.xlu1 %1595 }
0x17ae   :  { %v1598_v59 = vmul.f32 %v5558_v51, %v1596_v58 }
0x17b0   :  { %v1599_v60 = vadd.f32 %v1598_v59, %v1592_v57  ;;  %v708_v59 = vpop.f32.mrb[28].mxu0 }
0x17b2   :  { %v1600_v61 = vmul.f32 1.442695, %v1599_v60  ;;  %v709_v60 = vadd.f32 %v5551_v47, %v708_v59 }
0x17b4   :  { %4811 = vpow2.f32 %v1600_v61  ;;  %v710_v61 = vpop.f32.mrb[29].mxu0  ;;  %1152 = vst.msk [vmem:[#allocation2 + $0x70] sm:$0xff] %vm1137_vm2, %v709_v60  ;;  %v66_v60 = vld [vmem:[#allocation3 + $0x118] sm:$0xff] }
0x17b5   :  { %v65_v61 = vld [vmem:[#allocation3 + $0x110] sm:$0xff]  ;;  %4476 = vmatprep.mubr.msk.f32.mxu0 %vm267_vm0, %v66_v60 }
0x17b6   :  { %722 = vmatmul.mubr.f32.gmra.mrb[34].mxu0 %v65_v61 }
0x17be   :  { %v4812_v62 = vpop.eup %4811 }
0x17bf   :  { %v1602_v63 = vadd.f32 1.0, %v4812_v62 }
0x17c1   :  { %4813 = vrcp.f32 %v1602_v63 }
0x17cb   :  { %v4814_v0 = vpop.eup %4813 }
0x17cc   :  { %v1605_v1 = vmul.f32 2.0, %v4814_v0  ;;  %v1607_v7 = vmul.f32 %v4814_v0, %v1585_v49 }
0x17ce   :  { %v4571_v2 = vadd.f32 -1.0, %v1605_v1 }
0x17d0   :  { %1609 = vrot.lane.b32.xlu0 %v4571_v2, %s5390_s9 }
0x1842   :  { %v1610_v3 = vpop.permute.xlu0 %1609 }
0x1843   :  { %v1612_v4 = vmul.f32 %v4814_v0, %v1610_v3 }
0x1845   :  { %1614 = vrot.lane.b32.xlu1 %v1612_v4, %s5391_s10 }
0x18b7   :  { %v1615_v8 = vpop.permute.xlu1 %1614 }
0x18b8   :  { %v1617_v9 = vadd.f32 %v1615_v8, %v1607_v7 }
0x18ba   :  { %4815 = vtanh.f32 %v1617_v9 }
0x18c4   :  { %v4816_v10 = vpop.eup %4815 }
0x18c5   :  { %1620 = vrot.lane.b32.xlu0 %v4816_v10, %s5393_s11 }
0x1937   :  { %v1621_v14 = vpop.permute.xlu0 %1620 }
0x1938   :  { %v1623_v15 = vmul.f32 %v4814_v0, %v1621_v14  ;;  %v1688_v0 = vld [vmem:[#allocation2 + $0x70] sm:$0xff] }
0x193a   :  { %1627 = vperm.xlu1 %4743, %v1623_v15  }
0x19b9   :  { %v1628_v17 = vpop.permute.xlu1 %1627 }
0x19ba   :  { %v1630_v18 = vmul.f32 %v5558_v51, %v1628_v17 }
0x19bc   :  { %v1631_v19 = vadd.f32 %v1630_v18, %v1624_v16  ;;  %v713_v18 = vpop.f32.mrb[30].mxu0 }
0x19be   :  { %v1632_v20 = vmul.f32 1.442695, %v1631_v19  ;;  %v714_v19 = vadd.f32 %v5551_v47, %v713_v18 }
0x19c0   :  { %4817 = vpow2.f32 %v1632_v20  ;;  %v715_v20 = vpop.f32.mrb[31].mxu0  ;;  %1153 = vst.msk [vmem:[#allocation2 + $0x78] sm:$0xff] %vm1137_vm2, %v714_v19  ;;  %v68_v19 = vld [vmem:[#allocation3 + $0x128] sm:$0xff] }
0x19c1   :  { %v67_v20 = vld [vmem:[#allocation3 + $0x120] sm:$0xff]  ;;  %4477 = vmatprep.mubr.msk.f32.mxu0 %vm267_vm0, %v68_v19 }
0x19c2   :  { %727 = vmatmul.mubr.f32.gmra.mrb[36].mxu0 %v67_v20 }
0x19ca   :  { %v4818_v21 = vpop.eup %4817 }
0x19cb   :  { %v1634_v22 = vadd.f32 1.0, %v4818_v21 }
0x19cd   :  { %4819 = vrcp.f32 %v1634_v22 }
0x19d7   :  { %v4820_v23 = vpop.eup %4819 }
0x19d8   :  { %v1637_v24 = vmul.f32 2.0, %v4820_v23  ;;  %v1639_v30 = vmul.f32 %v4820_v23, %v1617_v9 }
0x19da   :  { %v4572_v25 = vadd.f32 -1.0, %v1637_v24 }
0x19dc   :  { %1641 = vrot.lane.b32.xlu0 %v4572_v25, %s5390_s9 }
0x1a4e   :  { %v1642_v26 = vpop.permute.xlu0 %1641 }
0x1a4f   :  { %v1644_v27 = vmul.f32 %v4820_v23, %v1642_v26 }
0x1a51   :  { %1646 = vrot.lane.b32.xlu1 %v1644_v27, %s5391_s10 }
0x1ac3   :  { %v1647_v31 = vpop.permute.xlu1 %1646 }
0x1ac4   :  { %v1649_v32 = vadd.f32 %v1647_v31, %v1639_v30 }
0x1ac6   :  { %4821 = vtanh.f32 %v1649_v32 }
0x1ad0   :  { %v4822_v33 = vpop.eup %4821 }
0x1ad1   :  { %1652 = vrot.lane.b32.xlu0 %v4822_v33, %s5393_s11 }
0x1b43   :  { %v1653_v37 = vpop.permute.xlu0 %1652 }
0x1b44   :  { %v1655_v38 = vmul.f32 %v4820_v23, %v1653_v37  ;;  %v1720_v23 = vld [vmem:[#allocation2 + $0x78] sm:$0xff] }
0x1b46   :  { %1659 = vperm.xlu1 %4743, %v1655_v38  }
0x1bc5   :  { %v1660_v40 = vpop.permute.xlu1 %1659 }
0x1bc6   :  { %v1662_v41 = vmul.f32 %v5558_v51, %v1660_v40  ;;  %v5673_v40 = vld [vmem:[%s6323_s3] ss:$0 sm:$0xff] }
0x1bc8   :  { %v1663_v42 = vadd.f32 %v1662_v41, %v1656_v39  ;;  %v718_v39 = vpop.f32.mrb[32].mxu0 }
0x1bc9   :  { %v719_v41 = vadd.f32 %v5673_v40, %v718_v39 }
0x1bca   :  { %v1664_v43 = vmul.f32 1.442695, %v1663_v42  ;;  %v720_v42 = vpop.f32.mrb[33].mxu0 }
0x1bcb   :  { %1154 = vst.msk [vmem:[#allocation2 + $0x80] sm:$0xff] %vm1137_vm2, %v719_v41  ;;  %v70_v41 = vld [vmem:[#allocation3 + $0x138] sm:$0xff]  ;;  %v69_v42 = vld [vmem:[#allocation3 + $0x130] sm:$0xff] }
0x1bcc   :  { %4823 = vpow2.f32 %v1664_v43  ;;  %4478 = vmatprep.mubr.msk.f32.mxu0 %vm267_vm0, %v70_v41 }
0x1bcd   :  { %732 = vmatmul.mubr.f32.gmra.mrb[38].mxu0 %v69_v42 }
0x1bd6   :  { %v4824_v44 = vpop.eup %4823 }
0x1bd7   :  { %v1666_v45 = vadd.f32 1.0, %v4824_v44 }
0x1bd9   :  { %4825 = vrcp.f32 %v1666_v45  ;;  %v1752_v45 = vld [vmem:[#allocation2 + $0x80] sm:$0xff] }
0x1be3   :  { %v4826_v46 = vpop.eup %4825 }
0x1be4   :  { %v1669_v48 = vmul.f32 2.0, %v4826_v46  ;;  %v1671_v55 = vmul.f32 %v4826_v46, %v1649_v32 }
0x1be6   :  { %v4573_v49 = vadd.f32 -1.0, %v1669_v48  ;;  %v5680_v48 = vld [vmem:[%s6322_s2] ss:$0 sm:$0xff] }
0x1be8   :  { %1673 = vrot.lane.b32.xlu0 %v4573_v49, %s5390_s9 }
0x1c5a   :  { %v1674_v50 = vpop.permute.xlu0 %1673 }
0x1c5b   :  { %v1676_v52 = vmul.f32 %v4826_v46, %v1674_v50 }
0x1c5d   :  { %1678 = vrot.lane.b32.xlu1 %v1676_v52, %s5391_s10 }
0x1ccf   :  { %v1679_v56 = vpop.permute.xlu1 %1678 }
0x1cd0   :  { %v1681_v57 = vadd.f32 %v1679_v56, %v1671_v55 }
0x1cd2   :  { %4827 = vtanh.f32 %v1681_v57 }
0x1cdc   :  { %v4828_v58 = vpop.eup %4827 }
0x1cdd   :  { %1684 = vrot.lane.b32.xlu0 %v4828_v58, %s5393_s11 }
0x1d4f   :  { %v1685_v62 = vpop.permute.xlu0 %1684 }
0x1d50   :  { %v1687_v63 = vmul.f32 %v4826_v46, %v1685_v62 }
0x1d52   :  { %1691 = vperm.xlu1 %4743, %v1687_v63  }
0x1dd1   :  { %v1692_v1 = vpop.permute.xlu1 %1691 }
0x1dd2   :  { %v1694_v2 = vmul.f32 %v5558_v51, %v1692_v1 }
0x1dd4   :  { %v1695_v3 = vadd.f32 %v1694_v2, %v1688_v0  ;;  %v723_v2 = vpop.f32.mrb[34].mxu0 }
0x1dd6   :  { %v1696_v4 = vmul.f32 1.442695, %v1695_v3  ;;  %v724_v3 = vadd.f32 %v5673_v40, %v723_v2 }
0x1dd8   :  { %4829 = vpow2.f32 %v1696_v4  ;;  %v725_v4 = vpop.f32.mrb[35].mxu0  ;;  %1155 = vst.msk [vmem:[#allocation2 + $0x88] sm:$0xff] %vm1137_vm2, %v724_v3  ;;  %v72_v3 = vld [vmem:[#allocation3 + $0x148] sm:$0xff] }
0x1dd9   :  { %v71_v4 = vld [vmem:[#allocation3 + $0x140] sm:$0xff]  ;;  %4479 = vmatprep.mubr.msk.f32.mxu0 %vm267_vm0, %v72_v3 }
0x1dda   :  { %737 = vmatmul.mubr.f32.gmra.mrb[40].mxu0 %v71_v4 }
0x1de2   :  { %v4830_v5 = vpop.eup %4829 }
0x1de3   :  { %v1698_v6 = vadd.f32 1.0, %v4830_v5 }
0x1de5   :  { %4831 = vrcp.f32 %v1698_v6 }
0x1def   :  { %v4832_v7 = vpop.eup %4831 }
0x1df0   :  { %v1701_v8 = vmul.f32 2.0, %v4832_v7  ;;  %v1703_v14 = vmul.f32 %v4832_v7, %v1681_v57 }
0x1df2   :  { %v4574_v9 = vadd.f32 -1.0, %v1701_v8 }
0x1df4   :  { %1705 = vrot.lane.b32.xlu0 %v4574_v9, %s5390_s9 }
0x1e66   :  { %v1706_v10 = vpop.permute.xlu0 %1705 }
0x1e67   :  { %v1708_v11 = vmul.f32 %v4832_v7, %v1706_v10 }
0x1e69   :  { %1710 = vrot.lane.b32.xlu1 %v1708_v11, %s5391_s10 }
0x1edb   :  { %v1711_v15 = vpop.permute.xlu1 %1710 }
0x1edc   :  { %v1713_v16 = vadd.f32 %v1711_v15, %v1703_v14 }
0x1ede   :  { %4833 = vtanh.f32 %v1713_v16 }
0x1ee8   :  { %v4834_v17 = vpop.eup %4833 }
0x1ee9   :  { %1716 = vrot.lane.b32.xlu0 %v4834_v17, %s5393_s11 }
0x1f5b   :  { %v1717_v21 = vpop.permute.xlu0 %1716 }
0x1f5c   :  { %v1719_v22 = vmul.f32 %v4832_v7, %v1717_v21  ;;  %v1784_v7 = vld [vmem:[#allocation2 + $0x88] sm:$0xff] }
0x1f5e   :  { %1723 = vperm.xlu1 %4743, %v1719_v22  }
0x1fdd   :  { %v1724_v24 = vpop.permute.xlu1 %1723 }
0x1fde   :  { %v1726_v25 = vmul.f32 %v5558_v51, %v1724_v24 }
0x1fe0   :  { %v1727_v26 = vadd.f32 %v1726_v25, %v1720_v23  ;;  %v728_v25 = vpop.f32.mrb[36].mxu0 }
0x1fe2   :  { %v1728_v27 = vmul.f32 1.442695, %v1727_v26  ;;  %v729_v26 = vadd.f32 %v5673_v40, %v728_v25 }
0x1fe4   :  { %4835 = vpow2.f32 %v1728_v27  ;;  %v730_v27 = vpop.f32.mrb[37].mxu0  ;;  %1156 = vst.msk [vmem:[#allocation2 + $0x90] sm:$0xff] %vm1137_vm2, %v729_v26  ;;  %v74_v26 = vld [vmem:[#allocation3 + $0x158] sm:$0xff] }
0x1fe5   :  { %v73_v27 = vld [vmem:[#allocation3 + $0x150] sm:$0xff]  ;;  %4480 = vmatprep.mubr.msk.f32.mxu0 %vm267_vm0, %v74_v26 }
0x1fe6   :  { %742 = vmatmul.mubr.f32.gmra.mrb[42].mxu0 %v73_v27 }
0x1fee   :  { %v4836_v28 = vpop.eup %4835 }
0x1fef   :  { %v1730_v29 = vadd.f32 1.0, %v4836_v28 }
0x1ff1   :  { %4837 = vrcp.f32 %v1730_v29 }
0x1ffb   :  { %v4838_v30 = vpop.eup %4837 }
0x1ffc   :  { %v1733_v31 = vmul.f32 2.0, %v4838_v30  ;;  %v1735_v51 = vmul.f32 %v4838_v30, %v1713_v16 }
0x1ffe   :  { %v4575_v32 = vadd.f32 -1.0, %v1733_v31 }
0x2000   :  { %1737 = vrot.lane.b32.xlu0 %v4575_v32, %s5390_s9 }
0x2072   :  { %v1738_v47 = vpop.permute.xlu0 %1737 }
0x2073   :  { %v1740_v33 = vmul.f32 %v4838_v30, %v1738_v47 }
0x2075   :  { %1742 = vrot.lane.b32.xlu1 %v1740_v33, %s5391_s10 }
0x20e7   :  { %v1743_v36 = vpop.permute.xlu1 %1742 }
0x20e8   :  { %v1745_v37 = vadd.f32 %v1743_v36, %v1735_v51 }
0x20ea   :  { %4839 = vtanh.f32 %v1745_v37 }
0x20f4   :  { %v4840_v38 = vpop.eup %4839 }
0x20f5   :  { %1748 = vrot.lane.b32.xlu0 %v4840_v38, %s5393_s11 }
0x2167   :  { %v1749_v43 = vpop.permute.xlu0 %1748 }
0x2168   :  { %v1751_v44 = vmul.f32 %v4838_v30, %v1749_v43  ;;  %v1816_v30 = vld [vmem:[#allocation2 + $0x90] sm:$0xff] }
0x216a   :  { %1755 = vperm.xlu1 %4743, %v1751_v44  }
0x21e9   :  { %v1756_v46 = vpop.permute.xlu1 %1755 }
0x21ea   :  { %v1758_v49 = vmul.f32 %v5680_v48, %v1756_v46 }
0x21ec   :  { %v1759_v50 = vadd.f32 %v1758_v49, %v1752_v45  ;;  %v733_v49 = vpop.f32.mrb[38].mxu0 }
0x21ee   :  { %v1760_v52 = vmul.f32 1.442695, %v1759_v50  ;;  %v734_v50 = vadd.f32 %v5673_v40, %v733_v49 }
0x21f0   :  { %4841 = vpow2.f32 %v1760_v52  ;;  %v735_v52 = vpop.f32.mrb[39].mxu0  ;;  %1157 = vst.msk [vmem:[#allocation2 + $0x98] sm:$0xff] %vm1137_vm2, %v734_v50  ;;  %v76_v50 = vld [vmem:[#allocation3 + $0x168] sm:$0xff] }
0x21f1   :  { %v75_v52 = vld [vmem:[#allocation3 + $0x160] sm:$0xff]  ;;  %4481 = vmatprep.mubr.msk.f32.mxu0 %vm267_vm0, %v76_v50 }
0x21f2   :  { %747 = vmatmul.mubr.f32.gmra.mrb[44].mxu0 %v75_v52 }
0x21fa   :  { %v4842_v53 = vpop.eup %4841 }
0x21fb   :  { %v1762_v54 = vadd.f32 1.0, %v4842_v53 }
0x21fd   :  { %4843 = vrcp.f32 %v1762_v54 }
0x2207   :  { %v4844_v55 = vpop.eup %4843 }
0x2208   :  { %v1765_v56 = vmul.f32 2.0, %v4844_v55  ;;  %v1767_v62 = vmul.f32 %v4844_v55, %v1745_v37 }
0x220a   :  { %v4576_v57 = vadd.f32 -1.0, %v1765_v56 }
0x220c   :  { %1769 = vrot.lane.b32.xlu0 %v4576_v57, %s5390_s9 }
0x227e   :  { %v1770_v58 = vpop.permute.xlu0 %1769 }
0x227f   :  { %v1772_v59 = vmul.f32 %v4844_v55, %v1770_v58 }
0x2281   :  { %1774 = vrot.lane.b32.xlu1 %v1772_v59, %s5391_s10 }
0x22f3   :  { %v1775_v63 = vpop.permute.xlu1 %1774 }
0x22f4   :  { %v1777_v0 = vadd.f32 %v1775_v63, %v1767_v62 }
0x22f6   :  { %4845 = vtanh.f32 %v1777_v0 }
0x2300   :  { %v4846_v1 = vpop.eup %4845 }
0x2301   :  { %1780 = vrot.lane.b32.xlu0 %v4846_v1, %s5393_s11 }
0x2373   :  { %v1781_v5 = vpop.permute.xlu0 %1780 }
0x2374   :  { %v1783_v6 = vmul.f32 %v4844_v55, %v1781_v5  ;;  %v1848_v55 = vld [vmem:[#allocation2 + $0x98] sm:$0xff] }
0x2376   :  { %1787 = vperm.xlu1 %4743, %v1783_v6  }
0x23f5   :  { %v1788_v8 = vpop.permute.xlu1 %1787 }
0x23f6   :  { %v1790_v9 = vmul.f32 %v5680_v48, %v1788_v8 }
0x23f8   :  { %v1791_v10 = vadd.f32 %v1790_v9, %v1784_v7  ;;  %v738_v9 = vpop.f32.mrb[40].mxu0 }
0x23fa   :  { %v1792_v11 = vmul.f32 1.442695, %v1791_v10  ;;  %v739_v10 = vadd.f32 %v5673_v40, %v738_v9 }
0x23fc   :  { %4847 = vpow2.f32 %v1792_v11  ;;  %v740_v11 = vpop.f32.mrb[41].mxu0  ;;  %1158 = vst.msk [vmem:[#allocation2 + $0xa0] sm:$0xff] %vm1137_vm2, %v739_v10  ;;  %v78_v10 = vld [vmem:[#allocation3 + $0x178] sm:$0xff] }
0x23fd   :  { %v77_v11 = vld [vmem:[#allocation3 + $0x170] sm:$0xff]  ;;  %4482 = vmatprep.mubr.msk.f32.mxu0 %vm267_vm0, %v78_v10 }
0x23fe   :  { %752 = vmatmul.mubr.f32.gmra.mrb[46].mxu0 %v77_v11 }
0x2406   :  { %v4848_v12 = vpop.eup %4847 }
0x2407   :  { %v1794_v13 = vadd.f32 1.0, %v4848_v12 }
0x2409   :  { %4849 = vrcp.f32 %v1794_v13 }
0x2413   :  { %v4850_v14 = vpop.eup %4849 }
0x2414   :  { %v1797_v15 = vmul.f32 2.0, %v4850_v14  ;;  %v1799_v21 = vmul.f32 %v4850_v14, %v1777_v0 }
0x2416   :  { %v4577_v16 = vadd.f32 -1.0, %v1797_v15 }
0x2418   :  { %1801 = vrot.lane.b32.xlu0 %v4577_v16, %s5390_s9 }
0x248a   :  { %v1802_v17 = vpop.permute.xlu0 %1801 }
0x248b   :  { %v1804_v18 = vmul.f32 %v4850_v14, %v1802_v17 }
0x248d   :  { %1806 = vrot.lane.b32.xlu1 %v1804_v18, %s5391_s10 }
0x24ff   :  { %v1807_v22 = vpop.permute.xlu1 %1806 }
0x2500   :  { %v1809_v23 = vadd.f32 %v1807_v22, %v1799_v21 }
0x2502   :  { %4851 = vtanh.f32 %v1809_v23 }
0x250c   :  { %v4852_v24 = vpop.eup %4851 }
0x250d   :  { %1812 = vrot.lane.b32.xlu0 %v4852_v24, %s5393_s11 }
0x257f   :  { %v1813_v28 = vpop.permute.xlu0 %1812 }
0x2580   :  { %v1815_v29 = vmul.f32 %v4850_v14, %v1813_v28  ;;  %v1880_v14 = vld [vmem:[#allocation2 + $0xa0] sm:$0xff] }
0x2582   :  { %1819 = vperm.xlu1 %4743, %v1815_v29  }
0x2601   :  { %v1820_v31 = vpop.permute.xlu1 %1819 }
0x2602   :  { %v1822_v32 = vmul.f32 %v5680_v48, %v1820_v31 }
0x2604   :  { %v1823_v47 = vadd.f32 %v1822_v32, %v1816_v30  ;;  %v743_v32 = vpop.f32.mrb[42].mxu0 }
0x2606   :  { %v1824_v33 = vmul.f32 1.442695, %v1823_v47  ;;  %v744_v47 = vadd.f32 %v5673_v40, %v743_v32 }
0x2608   :  { %4853 = vpow2.f32 %v1824_v33  ;;  %v745_v33 = vpop.f32.mrb[43].mxu0  ;;  %1159 = vst.msk [vmem:[#allocation2 + $0xa8] sm:$0xff] %vm1137_vm2, %v744_v47  ;;  %v80_v47 = vld [vmem:[#allocation3 + $0x188] sm:$0xff] }
0x2609   :  { %v79_v33 = vld [vmem:[#allocation3 + $0x180] sm:$0xff]  ;;  %4483 = vmatprep.mubr.msk.f32.mxu0 %vm267_vm0, %v80_v47 }
0x260a   :  { %757 = vmatmul.mubr.f32.gmra.mrb[48].mxu0 %v79_v33 }
0x2612   :  { %v4854_v34 = vpop.eup %4853 }
0x2613   :  { %v1826_v35 = vadd.f32 1.0, %v4854_v34 }
0x2615   :  { %4855 = vrcp.f32 %v1826_v35 }
0x261f   :  { %v4856_v51 = vpop.eup %4855 }
0x2620   :  { %v1829_v36 = vmul.f32 2.0, %v4856_v51  ;;  %v1831_v43 = vmul.f32 %v4856_v51, %v1809_v23 }
0x2622   :  { %v4578_v37 = vadd.f32 -1.0, %v1829_v36 }
0x2624   :  { %1833 = vrot.lane.b32.xlu0 %v4578_v37, %s5390_s9 }
0x2696   :  { %v1834_v38 = vpop.permute.xlu0 %1833 }
0x2697   :  { %v1836_v39 = vmul.f32 %v4856_v51, %v1834_v38 }
0x2699   :  { %1838 = vrot.lane.b32.xlu1 %v1836_v39, %s5391_s10 }
0x270b   :  { %v1839_v44 = vpop.permute.xlu1 %1838 }
0x270c   :  { %v1841_v45 = vadd.f32 %v1839_v44, %v1831_v43 }
0x270e   :  { %4857 = vtanh.f32 %v1841_v45 }
0x2718   :  { %v4858_v46 = vpop.eup %4857 }
0x2719   :  { %1844 = vrot.lane.b32.xlu0 %v4858_v46, %s5393_s11 }
0x278b   :  { %v1845_v53 = vpop.permute.xlu0 %1844 }
0x278c   :  { %v1847_v54 = vmul.f32 %v4856_v51, %v1845_v53  ;;  %v1912_v51 = vld [vmem:[#allocation2 + $0xa8] sm:$0xff] }
0x278e   :  { %1851 = vperm.xlu1 %4743, %v1847_v54  }
0x280d   :  { %v1852_v56 = vpop.permute.xlu1 %1851 }
0x280e   :  { %v1854_v57 = vmul.f32 %v5680_v48, %v1852_v56 }
0x2810   :  { %v1855_v58 = vadd.f32 %v1854_v57, %v1848_v55  ;;  %v748_v57 = vpop.f32.mrb[44].mxu0 }
0x2812   :  { %v1856_v59 = vmul.f32 1.442695, %v1855_v58  ;;  %v749_v58 = vadd.f32 %v5673_v40, %v748_v57 }
0x2814   :  { %4859 = vpow2.f32 %v1856_v59  ;;  %v750_v59 = vpop.f32.mrb[45].mxu0  ;;  %1160 = vst.msk [vmem:[#allocation2 + $0xb0] sm:$0xff] %vm1137_vm2, %v749_v58  ;;  %v82_v58 = vld [vmem:[#allocation3 + $0x198] sm:$0xff] }
0x2815   :  { %v81_v59 = vld [vmem:[#allocation3 + $0x190] sm:$0xff]  ;;  %4484 = vmatprep.mubr.msk.f32.mxu0 %vm267_vm0, %v82_v58 }
0x2816   :  { %762 = vmatmul.mubr.f32.gmra.mrb[50].mxu0 %v81_v59 }
0x281e   :  { %v4860_v60 = vpop.eup %4859 }
0x281f   :  { %v1858_v61 = vadd.f32 1.0, %v4860_v60 }
0x2821   :  { %4861 = vrcp.f32 %v1858_v61 }
0x282b   :  { %v4862_v62 = vpop.eup %4861 }
0x282c   :  { %v1861_v63 = vmul.f32 2.0, %v4862_v62  ;;  %v1863_v5 = vmul.f32 %v4862_v62, %v1841_v45 }
0x282e   :  { %v4579_v0 = vadd.f32 -1.0, %v1861_v63 }
0x2830   :  { %1865 = vrot.lane.b32.xlu0 %v4579_v0, %s5390_s9 }
0x28a2   :  { %v1866_v1 = vpop.permute.xlu0 %1865 }
0x28a3   :  { %v1868_v2 = vmul.f32 %v4862_v62, %v1866_v1 }
0x28a5   :  { %1870 = vrot.lane.b32.xlu1 %v1868_v2, %s5391_s10 }
0x2917   :  { %v1871_v6 = vpop.permute.xlu1 %1870 }
0x2918   :  { %v1873_v7 = vadd.f32 %v1871_v6, %v1863_v5 }
0x291a   :  { %4863 = vtanh.f32 %v1873_v7 }
0x2924   :  { %v4864_v8 = vpop.eup %4863 }
0x2925   :  { %1876 = vrot.lane.b32.xlu0 %v4864_v8, %s5393_s11 }
0x2997   :  { %v1877_v12 = vpop.permute.xlu0 %1876 }
0x2998   :  { %v1879_v13 = vmul.f32 %v4862_v62, %v1877_v12  ;;  %v1944_v62 = vld [vmem:[#allocation2 + $0xb0] sm:$0xff] }
0x299a   :  { %1883 = vperm.xlu1 %4743, %v1879_v13  }
0x2a19   :  { %v1884_v15 = vpop.permute.xlu1 %1883 }
0x2a1a   :  { %v1886_v16 = vmul.f32 %v5680_v48, %v1884_v15 }
0x2a1c   :  { %v1887_v17 = vadd.f32 %v1886_v16, %v1880_v14  ;;  %v753_v16 = vpop.f32.mrb[46].mxu0 }
0x2a1e   :  { %v1888_v18 = vmul.f32 1.442695, %v1887_v17  ;;  %v754_v17 = vadd.f32 %v5673_v40, %v753_v16 }
0x2a20   :  { %4865 = vpow2.f32 %v1888_v18  ;;  %v755_v18 = vpop.f32.mrb[47].mxu0  ;;  %1161 = vst.msk [vmem:[#allocation2 + $0xb8] sm:$0xff] %vm1137_vm2, %v754_v17  ;;  %v84_v17 = vld [vmem:[#allocation3 + $0x1a8] sm:$0xff] }
0x2a21   :  { %v83_v18 = vld [vmem:[#allocation3 + $0x1a0] sm:$0xff]  ;;  %4485 = vmatprep.mubr.msk.f32.mxu0 %vm267_vm0, %v84_v17 }
0x2a22   :  { %767 = vmatmul.mubr.f32.gmra.mrb[52].mxu0 %v83_v18 }
0x2a2a   :  { %v4866_v19 = vpop.eup %4865 }
0x2a2b   :  { %v1890_v20 = vadd.f32 1.0, %v4866_v19 }
0x2a2d   :  { %4867 = vrcp.f32 %v1890_v20 }
0x2a37   :  { %v4868_v21 = vpop.eup %4867 }
0x2a38   :  { %v1893_v22 = vmul.f32 2.0, %v4868_v21  ;;  %v1895_v28 = vmul.f32 %v4868_v21, %v1873_v7 }
0x2a3a   :  { %v4580_v23 = vadd.f32 -1.0, %v1893_v22 }
0x2a3c   :  { %1897 = vrot.lane.b32.xlu0 %v4580_v23, %s5390_s9 }
0x2aae   :  { %v1898_v24 = vpop.permute.xlu0 %1897 }
0x2aaf   :  { %v1900_v25 = vmul.f32 %v4868_v21, %v1898_v24 }
0x2ab1   :  { %1902 = vrot.lane.b32.xlu1 %v1900_v25, %s5391_s10 }
0x2b23   :  { %v1903_v29 = vpop.permute.xlu1 %1902 }
0x2b24   :  { %v1905_v30 = vadd.f32 %v1903_v29, %v1895_v28 }
0x2b26   :  { %4869 = vtanh.f32 %v1905_v30 }
0x2b30   :  { %v4870_v31 = vpop.eup %4869 }
0x2b31   :  { %1908 = vrot.lane.b32.xlu0 %v4870_v31, %s5393_s11 }
0x2ba3   :  { %v1909_v34 = vpop.permute.xlu0 %1908 }
0x2ba4   :  { %v1911_v35 = vmul.f32 %v4868_v21, %v1909_v34  ;;  %v1976_v21 = vld [vmem:[#allocation2 + $0xb8] sm:$0xff] }
0x2ba6   :  { %1915 = vperm.xlu1 %4743, %v1911_v35  }
0x2c25   :  { %v1916_v36 = vpop.permute.xlu1 %1915 }
0x2c26   :  { %v1918_v37 = vmul.f32 %v5680_v48, %v1916_v36 }
0x2c28   :  { %v1919_v38 = vadd.f32 %v1918_v37, %v1912_v51  ;;  %v758_v37 = vpop.f32.mrb[48].mxu0 }
0x2c2a   :  { %v1920_v39 = vmul.f32 1.442695, %v1919_v38  ;;  %v759_v38 = vadd.f32 %v5673_v40, %v758_v37 }
0x2c2c   :  { %4871 = vpow2.f32 %v1920_v39  ;;  %v760_v39 = vpop.f32.mrb[49].mxu0  ;;  %1162 = vst.msk [vmem:[#allocation2 + $0xc0] sm:$0xff] %vm1137_vm2, %v759_v38  ;;  %v86_v38 = vld [vmem:[#allocation3 + $0x1b8] sm:$0xff] }
0x2c2d   :  { %v85_v39 = vld [vmem:[#allocation3 + $0x1b0] sm:$0xff]  ;;  %4486 = vmatprep.mubr.msk.f32.mxu0 %vm267_vm0, %v86_v38 }
0x2c2e   :  { %772 = vmatmul.mubr.f32.gmra.mrb[54].mxu0 %v85_v39 }
0x2c36   :  { %v4872_v41 = vpop.eup %4871 }
0x2c37   :  { %v1922_v42 = vadd.f32 1.0, %v4872_v41 }
0x2c39   :  { %4873 = vrcp.f32 %v1922_v42 }
0x2c43   :  { %v4874_v43 = vpop.eup %4873 }
0x2c44   :  { %v1925_v44 = vmul.f32 2.0, %v4874_v43  ;;  %v1927_v53 = vmul.f32 %v4874_v43, %v1905_v30 }
0x2c46   :  { %v4581_v45 = vadd.f32 -1.0, %v1925_v44 }
0x2c48   :  { %1929 = vrot.lane.b32.xlu0 %v4581_v45, %s5390_s9 }
0x2cba   :  { %v1930_v46 = vpop.permute.xlu0 %1929 }
0x2cbb   :  { %v1932_v49 = vmul.f32 %v4874_v43, %v1930_v46 }
0x2cbd   :  { %1934 = vrot.lane.b32.xlu1 %v1932_v49, %s5391_s10 }
0x2d2f   :  { %v1935_v54 = vpop.permute.xlu1 %1934 }
0x2d30   :  { %v1937_v55 = vadd.f32 %v1935_v54, %v1927_v53 }
0x2d32   :  { %4875 = vtanh.f32 %v1937_v55 }
0x2d3c   :  { %v4876_v56 = vpop.eup %4875 }
0x2d3d   :  { %1940 = vrot.lane.b32.xlu0 %v4876_v56, %s5393_s11 }
0x2daf   :  { %v1941_v60 = vpop.permute.xlu0 %1940 }
0x2db0   :  { %v1943_v61 = vmul.f32 %v4874_v43, %v1941_v60  ;;  %v2008_v43 = vld [vmem:[#allocation2 + $0xc0] sm:$0xff] }
0x2db2   :  { %1947 = vperm.xlu1 %4743, %v1943_v61  }
0x2e31   :  { %v1948_v63 = vpop.permute.xlu1 %1947 }
0x2e32   :  { %v1950_v0 = vmul.f32 %v5680_v48, %v1948_v63 }
0x2e34   :  { %v1951_v1 = vadd.f32 %v1950_v0, %v1944_v62  ;;  %v763_v0 = vpop.f32.mrb[50].mxu0 }
0x2e36   :  { %v1952_v2 = vmul.f32 1.442695, %v1951_v1  ;;  %v764_v1 = vadd.f32 %v5673_v40, %v763_v0 }
0x2e38   :  { %4877 = vpow2.f32 %v1952_v2  ;;  %v765_v2 = vpop.f32.mrb[51].mxu0  ;;  %1163 = vst.msk [vmem:[#allocation2 + $0xc8] sm:$0xff] %vm1137_vm2, %v764_v1  ;;  %v88_v1 = vld [vmem:[#allocation3 + $0x1c8] sm:$0xff] }
0x2e39   :  { %v87_v2 = vld [vmem:[#allocation3 + $0x1c0] sm:$0xff]  ;;  %4487 = vmatprep.mubr.msk.f32.mxu0 %vm267_vm0, %v88_v1 }
0x2e3a   :  { %777 = vmatmul.mubr.f32.gmra.mrb[56].mxu0 %v87_v2 }
0x2e42   :  { %v4878_v3 = vpop.eup %4877 }
0x2e43   :  { %v1954_v4 = vadd.f32 1.0, %v4878_v3 }
0x2e45   :  { %4879 = vrcp.f32 %v1954_v4 }
0x2e4f   :  { %v4880_v5 = vpop.eup %4879 }
0x2e50   :  { %v1957_v6 = vmul.f32 2.0, %v4880_v5  ;;  %v1959_v12 = vmul.f32 %v4880_v5, %v1937_v55 }
0x2e52   :  { %v4582_v7 = vadd.f32 -1.0, %v1957_v6 }
0x2e54   :  { %1961 = vrot.lane.b32.xlu0 %v4582_v7, %s5390_s9 }
0x2ec6   :  { %v1962_v8 = vpop.permute.xlu0 %1961 }
0x2ec7   :  { %v1964_v9 = vmul.f32 %v4880_v5, %v1962_v8 }
0x2ec9   :  { %1966 = vrot.lane.b32.xlu1 %v1964_v9, %s5391_s10 }
0x2f3b   :  { %v1967_v13 = vpop.permute.xlu1 %1966 }
0x2f3c   :  { %v1969_v14 = vadd.f32 %v1967_v13, %v1959_v12 }
0x2f3e   :  { %4881 = vtanh.f32 %v1969_v14 }
0x2f48   :  { %v4882_v15 = vpop.eup %4881 }
0x2f49   :  { %1972 = vrot.lane.b32.xlu0 %v4882_v15, %s5393_s11 }
0x2fbb   :  { %v1973_v19 = vpop.permute.xlu0 %1972 }
0x2fbc   :  { %v1975_v20 = vmul.f32 %v4880_v5, %v1973_v19  ;;  %v2040_v5 = vld [vmem:[#allocation2 + $0xc8] sm:$0xff] }
0x2fbe   :  { %1979 = vperm.xlu1 %4743, %v1975_v20  }
0x303d   :  { %v1980_v22 = vpop.permute.xlu1 %1979 }
0x303e   :  { %v1982_v23 = vmul.f32 %v5680_v48, %v1980_v22 }
0x3040   :  { %v1983_v24 = vadd.f32 %v1982_v23, %v1976_v21  ;;  %v768_v23 = vpop.f32.mrb[52].mxu0 }
0x3042   :  { %v1984_v25 = vmul.f32 1.442695, %v1983_v24  ;;  %v769_v24 = vadd.f32 %v5673_v40, %v768_v23 }
0x3044   :  { %4883 = vpow2.f32 %v1984_v25  ;;  %v770_v25 = vpop.f32.mrb[53].mxu0  ;;  %1164 = vst.msk [vmem:[#allocation2 + $0xd0] sm:$0xff] %vm1137_vm2, %v769_v24  ;;  %v90_v24 = vld [vmem:[#allocation3 + $0x1d8] sm:$0xff] }
0x3045   :  { %v89_v25 = vld [vmem:[#allocation3 + $0x1d0] sm:$0xff]  ;;  %4488 = vmatprep.mubr.msk.f32.mxu0 %vm267_vm0, %v90_v24 }
0x3046   :  { %782 = vmatmul.mubr.f32.gmra.mrb[58].mxu0 %v89_v25 }
0x304e   :  { %v4884_v26 = vpop.eup %4883 }
0x304f   :  { %v1986_v27 = vadd.f32 1.0, %v4884_v26 }
0x3051   :  { %4885 = vrcp.f32 %v1986_v27 }
0x305b   :  { %v4886_v28 = vpop.eup %4885 }
0x305c   :  { %v1989_v29 = vmul.f32 2.0, %v4886_v28  ;;  %v1991_v34 = vmul.f32 %v4886_v28, %v1969_v14 }
0x305e   :  { %v4583_v30 = vadd.f32 -1.0, %v1989_v29 }
0x3060   :  { %1993 = vrot.lane.b32.xlu0 %v4583_v30, %s5390_s9 }
0x30d2   :  { %v1994_v31 = vpop.permute.xlu0 %1993 }
0x30d3   :  { %v1996_v32 = vmul.f32 %v4886_v28, %v1994_v31 }
0x30d5   :  { %1998 = vrot.lane.b32.xlu1 %v1996_v32, %s5391_s10 }
0x3147   :  { %v1999_v35 = vpop.permute.xlu1 %1998 }
0x3148   :  { %v2001_v51 = vadd.f32 %v1999_v35, %v1991_v34 }
0x314a   :  { %4887 = vtanh.f32 %v2001_v51 }
0x3154   :  { %v4888_v36 = vpop.eup %4887 }
0x3155   :  { %2004 = vrot.lane.b32.xlu0 %v4888_v36, %s5393_s11 }
0x31c7   :  { %v2005_v41 = vpop.permute.xlu0 %2004 }
0x31c8   :  { %v2007_v42 = vmul.f32 %v4886_v28, %v2005_v41  ;;  %v2072_v28 = vld [vmem:[#allocation2 + $0xd0] sm:$0xff] }
0x31ca   :  { %2011 = vperm.xlu1 %4743, %v2007_v42  }
0x3249   :  { %v2012_v44 = vpop.permute.xlu1 %2011 }
0x324a   :  { %v2014_v45 = vmul.f32 %v5680_v48, %v2012_v44 }
0x324c   :  { %v2015_v46 = vadd.f32 %v2014_v45, %v2008_v43  ;;  %v773_v45 = vpop.f32.mrb[54].mxu0 }
0x324e   :  { %v2016_v49 = vmul.f32 1.442695, %v2015_v46  ;;  %v774_v46 = vadd.f32 %v5673_v40, %v773_v45 }
0x3250   :  { %4889 = vpow2.f32 %v2016_v49  ;;  %v775_v49 = vpop.f32.mrb[55].mxu0  ;;  %1165 = vst.msk [vmem:[#allocation2 + $0xd8] sm:$0xff] %vm1137_vm2, %v774_v46  ;;  %v92_v46 = vld [vmem:[#allocation3 + $0x1e8] sm:$0xff] }
0x3251   :  { %v91_v49 = vld [vmem:[#allocation3 + $0x1e0] sm:$0xff]  ;;  %4489 = vmatprep.mubr.msk.f32.mxu0 %vm267_vm0, %v92_v46 }
0x3252   :  { %787 = vmatmul.mubr.f32.gmra.mrb[60].mxu0 %v91_v49 }
0x325a   :  { %v4890_v50 = vpop.eup %4889 }
0x325b   :  { %v2018_v52 = vadd.f32 1.0, %v4890_v50 }
0x325d   :  { %4891 = vrcp.f32 %v2018_v52 }
0x3267   :  { %v4892_v53 = vpop.eup %4891 }
0x3268   :  { %v2021_v54 = vmul.f32 2.0, %v4892_v53  ;;  %v2023_v60 = vmul.f32 %v4892_v53, %v2001_v51 }
0x326a   :  { %v4584_v55 = vadd.f32 -1.0, %v2021_v54 }
0x326c   :  { %2025 = vrot.lane.b32.xlu0 %v4584_v55, %s5390_s9 }
0x32de   :  { %v2026_v56 = vpop.permute.xlu0 %2025 }
0x32df   :  { %v2028_v57 = vmul.f32 %v4892_v53, %v2026_v56 }
0x32e1   :  { %2030 = vrot.lane.b32.xlu1 %v2028_v57, %s5391_s10 }
0x3353   :  { %v2031_v61 = vpop.permute.xlu1 %2030 }
0x3354   :  { %v2033_v62 = vadd.f32 %v2031_v61, %v2023_v60 }
0x3356   :  { %4893 = vtanh.f32 %v2033_v62 }
0x3360   :  { %v4894_v63 = vpop.eup %4893 }
0x3361   :  { %2036 = vrot.lane.b32.xlu0 %v4894_v63, %s5393_s11 }
0x33d3   :  { %v2037_v3 = vpop.permute.xlu0 %2036 }
0x33d4   :  { %v2039_v4 = vmul.f32 %v4892_v53, %v2037_v3  ;;  %v2104_v53 = vld [vmem:[#allocation2 + $0xd8] sm:$0xff] }
0x33d6   :  { %2043 = vperm.xlu1 %4743, %v2039_v4  }
0x3455   :  { %v2044_v6 = vpop.permute.xlu1 %2043 }
0x3456   :  { %v2046_v7 = vmul.f32 %v5680_v48, %v2044_v6 }
0x3458   :  { %v2047_v8 = vadd.f32 %v2046_v7, %v2040_v5  ;;  %v778_v7 = vpop.f32.mrb[56].mxu0 }
0x345a   :  { %v2048_v9 = vmul.f32 1.442695, %v2047_v8  ;;  %v779_v8 = vadd.f32 %v5673_v40, %v778_v7 }
0x345c   :  { %4895 = vpow2.f32 %v2048_v9  ;;  %v780_v9 = vpop.f32.mrb[57].mxu0  ;;  %1166 = vst.msk [vmem:[#allocation2 + $0xe0] sm:$0xff] %vm1137_vm2, %v779_v8  ;;  %v94_v8 = vld [vmem:[#allocation3 + $0x1f8] sm:$0xff] }
0x345d   :  { %v93_v9 = vld [vmem:[#allocation3 + $0x1f0] sm:$0xff]  ;;  %4490 = vmatprep.mubr.msk.f32.mxu0 %vm267_vm0, %v94_v8 }
0x345e   :  { %792 = vmatmul.mubr.f32.gmra.mrb[62].mxu0 %v93_v9 }
0x3466   :  { %v4896_v10 = vpop.eup %4895 }
0x3467   :  { %v2050_v11 = vadd.f32 1.0, %v4896_v10 }
0x3469   :  { %4897 = vrcp.f32 %v2050_v11 }
0x3473   :  { %v4898_v12 = vpop.eup %4897 }
0x3474   :  { %v2053_v13 = vmul.f32 2.0, %v4898_v12  ;;  %v2055_v19 = vmul.f32 %v4898_v12, %v2033_v62 }
0x3476   :  { %v4585_v14 = vadd.f32 -1.0, %v2053_v13 }
0x3478   :  { %2057 = vrot.lane.b32.xlu0 %v4585_v14, %s5390_s9 }
0x34ea   :  { %v2058_v15 = vpop.permute.xlu0 %2057 }
0x34eb   :  { %v2060_v16 = vmul.f32 %v4898_v12, %v2058_v15 }
0x34ed   :  { %2062 = vrot.lane.b32.xlu1 %v2060_v16, %s5391_s10 }
0x355f   :  { %v2063_v20 = vpop.permute.xlu1 %2062 }
0x3560   :  { %v2065_v21 = vadd.f32 %v2063_v20, %v2055_v19 }
0x3562   :  { %4899 = vtanh.f32 %v2065_v21 }
0x356c   :  { %v4900_v22 = vpop.eup %4899 }
0x356d   :  { %2068 = vrot.lane.b32.xlu0 %v4900_v22, %s5393_s11 }
0x35df   :  { %v2069_v26 = vpop.permute.xlu0 %2068 }
0x35e0   :  { %v2071_v27 = vmul.f32 %v4898_v12, %v2069_v26  ;;  %v2136_v12 = vld [vmem:[#allocation2 + $0xe0] sm:$0xff] }
0x35e2   :  { %2075 = vperm.xlu1 %4743, %v2071_v27  }
0x3661   :  { %v2076_v29 = vpop.permute.xlu1 %2075 }
0x3662   :  { %v2078_v30 = vmul.f32 %v5680_v48, %v2076_v29 }
0x3664   :  { %v2079_v31 = vadd.f32 %v2078_v30, %v2072_v28  ;;  %v783_v30 = vpop.f32.mrb[58].mxu0 }
0x3666   :  { %v2080_v32 = vmul.f32 1.442695, %v2079_v31  ;;  %v784_v31 = vadd.f32 %v5673_v40, %v783_v30  ;;  %v96_v30 = vld [vmem:[#allocation3 + $0x208] sm:$0xff] }
0x3667   :  { %4491 = vmatprep.mubr.msk.f32.mxu0 %vm267_vm0, %v96_v30 }
0x3668   :  { %4901 = vpow2.f32 %v2080_v32  ;;  %v785_v32 = vpop.f32.mrb[59].mxu0  ;;  %1167 = vst.msk [vmem:[#allocation2 + $0xe8] sm:$0xff] %vm1137_vm2, %v784_v31  ;;  %v95_v31 = vld [vmem:[#allocation3 + $0x200] sm:$0xff] }
0x3669   :  { %797 = vmatmul.mubr.f32.gmra.mrb[64].mxu0 %v95_v31 }
0x3672   :  { %v4902_v47 = vpop.eup %4901 }
0x3673   :  { %v2082_v33 = vadd.f32 1.0, %v4902_v47 }
0x3675   :  { %4903 = vrcp.f32 %v2082_v33 }
0x367f   :  { %v4904_v34 = vpop.eup %4903 }
0x3680   :  { %v2085_v35 = vmul.f32 2.0, %v4904_v34  ;;  %v2087_v41 = vmul.f32 %v4904_v34, %v2065_v21 }
0x3682   :  { %v4586_v51 = vadd.f32 -1.0, %v2085_v35 }
0x3684   :  { %2089 = vrot.lane.b32.xlu0 %v4586_v51, %s5390_s9 }
0x36f6   :  { %v2090_v36 = vpop.permute.xlu0 %2089 }
0x36f7   :  { %v2092_v37 = vmul.f32 %v4904_v34, %v2090_v36 }
0x36f9   :  { %2094 = vrot.lane.b32.xlu1 %v2092_v37, %s5391_s10 }
0x376b   :  { %v2095_v42 = vpop.permute.xlu1 %2094 }
0x376c   :  { %v2097_v43 = vadd.f32 %v2095_v42, %v2087_v41 }
0x376e   :  { %4905 = vtanh.f32 %v2097_v43 }
0x3778   :  { %v4906_v44 = vpop.eup %4905 }
0x3779   :  { %2100 = vrot.lane.b32.xlu0 %v4906_v44, %s5393_s11 }
0x37eb   :  { %v2101_v50 = vpop.permute.xlu0 %2100 }
0x37ec   :  { %v2103_v52 = vmul.f32 %v4904_v34, %v2101_v50  ;;  %v2168_v34 = vld [vmem:[#allocation2 + $0xe8] sm:$0xff] }
0x37ee   :  { %2107 = vperm.xlu1 %4743, %v2103_v52  }
0x386d   :  { %v2108_v54 = vpop.permute.xlu1 %2107 }
0x386e   :  { %v2110_v55 = vmul.f32 %v5680_v48, %v2108_v54 }
0x3870   :  { %v2111_v56 = vadd.f32 %v2110_v55, %v2104_v53  ;;  %v788_v55 = vpop.f32.mrb[60].mxu0 }
0x3872   :  { %v2112_v57 = vmul.f32 1.442695, %v2111_v56  ;;  %v789_v56 = vadd.f32 %v5673_v40, %v788_v55 }
0x3874   :  { %4907 = vpow2.f32 %v2112_v57  ;;  %v790_v57 = vpop.f32.mrb[61].mxu0  ;;  %1168 = vst.msk [vmem:[#allocation2 + $0xf0] sm:$0xff] %vm1137_vm2, %v789_v56  ;;  %v98_v56 = vld [vmem:[#allocation3 + $0x218] sm:$0xff] }
0x3875   :  { %v97_v57 = vld [vmem:[#allocation3 + $0x210] sm:$0xff]  ;;  %4492 = vmatprep.mubr.msk.f32.mxu0 %vm267_vm0, %v98_v56 }
0x3876   :  { %802 = vmatmul.mubr.f32.gmra.mrb[66].mxu0 %v97_v57 }
0x387e   :  { %v4908_v58 = vpop.eup %4907 }
0x387f   :  { %v2114_v59 = vadd.f32 1.0, %v4908_v58 }
0x3881   :  { %4909 = vrcp.f32 %v2114_v59 }
0x388b   :  { %v4910_v60 = vpop.eup %4909 }
0x388c   :  { %v2117_v61 = vmul.f32 2.0, %v4910_v60  ;;  %v2119_v3 = vmul.f32 %v4910_v60, %v2097_v43 }
0x388e   :  { %v4587_v62 = vadd.f32 -1.0, %v2117_v61 }
0x3890   :  { %2121 = vrot.lane.b32.xlu0 %v4587_v62, %s5390_s9 }
0x3902   :  { %v2122_v63 = vpop.permute.xlu0 %2121 }
0x3903   :  { %v2124_v0 = vmul.f32 %v4910_v60, %v2122_v63 }
0x3905   :  { %2126 = vrot.lane.b32.xlu1 %v2124_v0, %s5391_s10 }
0x3977   :  { %v2127_v4 = vpop.permute.xlu1 %2126 }
0x3978   :  { %v2129_v5 = vadd.f32 %v2127_v4, %v2119_v3 }
0x397a   :  { %4911 = vtanh.f32 %v2129_v5 }
0x3984   :  { %v4912_v6 = vpop.eup %4911 }
0x3985   :  { %2132 = vrot.lane.b32.xlu0 %v4912_v6, %s5393_s11 }
0x39f7   :  { %v2133_v10 = vpop.permute.xlu0 %2132 }
0x39f8   :  { %v2135_v11 = vmul.f32 %v4910_v60, %v2133_v10  ;;  %v2200_v60 = vld [vmem:[#allocation2 + $0xf0] sm:$0xff] }
0x39fa   :  { %2139 = vperm.xlu1 %4743, %v2135_v11  }
0x3a79   :  { %v2140_v13 = vpop.permute.xlu1 %2139 }
0x3a7a   :  { %v2142_v14 = vmul.f32 %v5680_v48, %v2140_v13 }
0x3a7c   :  { %v2143_v15 = vadd.f32 %v2142_v14, %v2136_v12  ;;  %v793_v14 = vpop.f32.mrb[62].mxu0 }
0x3a7e   :  { %v2144_v16 = vmul.f32 1.442695, %v2143_v15  ;;  %v794_v15 = vadd.f32 %v5673_v40, %v793_v14 }
0x3a80   :  { %4913 = vpow2.f32 %v2144_v16  ;;  %v795_v16 = vpop.f32.mrb[63].mxu0  ;;  %1169 = vst.msk [vmem:[#allocation2 + $0xf8] sm:$0xff] %vm1137_vm2, %v794_v15  ;;  %v100_v15 = vld [vmem:[#allocation3 + $0x228] sm:$0xff] }
0x3a81   :  { %v99_v16 = vld [vmem:[#allocation3 + $0x220] sm:$0xff]  ;;  %4493 = vmatprep.mubr.msk.f32.mxu0 %vm267_vm0, %v100_v15 }
0x3a82   :  { %807 = vmatmul.mubr.f32.gmra.mrb[68].mxu0 %v99_v16 }
0x3a8a   :  { %v4914_v17 = vpop.eup %4913 }
0x3a8b   :  { %v2146_v18 = vadd.f32 1.0, %v4914_v17 }
0x3a8d   :  { %4915 = vrcp.f32 %v2146_v18 }
0x3a97   :  { %v4916_v19 = vpop.eup %4915 }
0x3a98   :  { %v2149_v20 = vmul.f32 2.0, %v4916_v19  ;;  %v2151_v26 = vmul.f32 %v4916_v19, %v2129_v5 }
0x3a9a   :  { %v4588_v21 = vadd.f32 -1.0, %v2149_v20 }
0x3a9c   :  { %2153 = vrot.lane.b32.xlu0 %v4588_v21, %s5390_s9 }
0x3b0e   :  { %v2154_v22 = vpop.permute.xlu0 %2153 }
0x3b0f   :  { %v2156_v23 = vmul.f32 %v4916_v19, %v2154_v22 }
0x3b11   :  { %2158 = vrot.lane.b32.xlu1 %v2156_v23, %s5391_s10 }
0x3b83   :  { %v2159_v27 = vpop.permute.xlu1 %2158 }
0x3b84   :  { %v2161_v28 = vadd.f32 %v2159_v27, %v2151_v26 }
0x3b86   :  { %4917 = vtanh.f32 %v2161_v28 }
0x3b90   :  { %v4918_v29 = vpop.eup %4917 }
0x3b91   :  { %2164 = vrot.lane.b32.xlu0 %v4918_v29, %s5393_s11 }
0x3c03   :  { %v2165_v47 = vpop.permute.xlu0 %2164 }
0x3c04   :  { %v2167_v33 = vmul.f32 %v4916_v19, %v2165_v47  ;;  %v2232_v19 = vld [vmem:[#allocation2 + $0xf8] sm:$0xff] }
0x3c06   :  { %2171 = vperm.xlu1 %4743, %v2167_v33  }
0x3c85   :  { %v2172_v35 = vpop.permute.xlu1 %2171 }
0x3c86   :  { %v2174_v51 = vmul.f32 %v5680_v48, %v2172_v35  ;;  %v5795_v35 = vld [vmem:[%s6323_s3] ss:$0 sm:$0xff] }
0x3c88   :  { %v2175_v36 = vadd.f32 %v2174_v51, %v2168_v34  ;;  %v798_v34 = vpop.f32.mrb[64].mxu0 }
0x3c89   :  { %v799_v51 = vadd.f32 %v5795_v35, %v798_v34 }
0x3c8a   :  { %v2176_v37 = vmul.f32 1.442695, %v2175_v36  ;;  %v800_v36 = vpop.f32.mrb[65].mxu0 }
0x3c8b   :  { %1170 = vst.msk [vmem:[#allocation2 + $0x100] sm:$0xff] %vm1137_vm2, %v799_v51  ;;  %v102_v51 = vld [vmem:[#allocation3 + $0x238] sm:$0xff]  ;;  %v101_v36 = vld [vmem:[#allocation3 + $0x230] sm:$0xff] }
0x3c8c   :  { %4919 = vpow2.f32 %v2176_v37  ;;  %4494 = vmatprep.mubr.msk.f32.mxu0 %vm267_vm0, %v102_v51 }
0x3c8d   :  { %812 = vmatmul.mubr.f32.gmra.mrb[70].mxu0 %v101_v36 }
0x3c96   :  { %v4920_v38 = vpop.eup %4919 }
0x3c97   :  { %v2178_v39 = vadd.f32 1.0, %v4920_v38 }
0x3c99   :  { %4921 = vrcp.f32 %v2178_v39  ;;  %v2264_v39 = vld [vmem:[#allocation2 + $0x100] sm:$0xff] }
0x3ca3   :  { %v4922_v41 = vpop.eup %4921 }
0x3ca4   :  { %v2181_v42 = vmul.f32 2.0, %v4922_v41  ;;  %v2183_v50 = vmul.f32 %v4922_v41, %v2161_v28 }
0x3ca6   :  { %v4589_v43 = vadd.f32 -1.0, %v2181_v42  ;;  %v5802_v42 = vld [vmem:[%s6322_s2] ss:$0 sm:$0xff] }
0x3ca8   :  { %2185 = vrot.lane.b32.xlu0 %v4589_v43, %s5390_s9 }
0x3d1a   :  { %v2186_v44 = vpop.permute.xlu0 %2185 }
0x3d1b   :  { %v2188_v45 = vmul.f32 %v4922_v41, %v2186_v44 }
0x3d1d   :  { %2190 = vrot.lane.b32.xlu1 %v2188_v45, %s5391_s10 }
0x3d8f   :  { %v2191_v52 = vpop.permute.xlu1 %2190 }
0x3d90   :  { %v2193_v53 = vadd.f32 %v2191_v52, %v2183_v50 }
0x3d92   :  { %4923 = vtanh.f32 %v2193_v53 }
0x3d9c   :  { %v4924_v54 = vpop.eup %4923 }
0x3d9d   :  { %2196 = vrot.lane.b32.xlu0 %v4924_v54, %s5393_s11 }
0x3e0f   :  { %v2197_v58 = vpop.permute.xlu0 %2196 }
0x3e10   :  { %v2199_v59 = vmul.f32 %v4922_v41, %v2197_v58 }
0x3e12   :  { %2203 = vperm.xlu1 %4743, %v2199_v59  }
0x3e91   :  { %v2204_v61 = vpop.permute.xlu1 %2203 }
0x3e92   :  { %v2206_v62 = vmul.f32 %v5680_v48, %v2204_v61 }
0x3e94   :  { %v2207_v63 = vadd.f32 %v2206_v62, %v2200_v60  ;;  %v803_v62 = vpop.f32.mrb[66].mxu0 }
0x3e96   :  { %v2208_v0 = vmul.f32 1.442695, %v2207_v63  ;;  %v804_v63 = vadd.f32 %v5795_v35, %v803_v62 }
0x3e98   :  { %4925 = vpow2.f32 %v2208_v0  ;;  %v805_v0 = vpop.f32.mrb[67].mxu0  ;;  %1171 = vst.msk [vmem:[#allocation2 + $0x108] sm:$0xff] %vm1137_vm2, %v804_v63  ;;  %v104_v63 = vld [vmem:[#allocation3 + $0x248] sm:$0xff] }
0x3e99   :  { %v103_v0 = vld [vmem:[#allocation3 + $0x240] sm:$0xff]  ;;  %4495 = vmatprep.mubr.msk.f32.mxu0 %vm267_vm0, %v104_v63 }
0x3e9a   :  { %817 = vmatmul.mubr.f32.gmra.mrb[72].mxu0 %v103_v0 }
0x3ea2   :  { %v4926_v1 = vpop.eup %4925 }
0x3ea3   :  { %v2210_v2 = vadd.f32 1.0, %v4926_v1 }
0x3ea5   :  { %4927 = vrcp.f32 %v2210_v2 }
0x3eaf   :  { %v4928_v3 = vpop.eup %4927 }
0x3eb0   :  { %v2213_v4 = vmul.f32 2.0, %v4928_v3  ;;  %v2215_v10 = vmul.f32 %v4928_v3, %v2193_v53 }
0x3eb2   :  { %v4590_v5 = vadd.f32 -1.0, %v2213_v4 }
0x3eb4   :  { %2217 = vrot.lane.b32.xlu0 %v4590_v5, %s5390_s9 }
0x3f26   :  { %v2218_v6 = vpop.permute.xlu0 %2217 }
0x3f27   :  { %v2220_v7 = vmul.f32 %v4928_v3, %v2218_v6 }
0x3f29   :  { %2222 = vrot.lane.b32.xlu1 %v2220_v7, %s5391_s10 }
0x3f9b   :  { %v2223_v11 = vpop.permute.xlu1 %2222 }
0x3f9c   :  { %v2225_v12 = vadd.f32 %v2223_v11, %v2215_v10 }
0x3f9e   :  { %4929 = vtanh.f32 %v2225_v12 }
0x3fa8   :  { %v4930_v13 = vpop.eup %4929 }
0x3fa9   :  { %2228 = vrot.lane.b32.xlu0 %v4930_v13, %s5393_s11 }
0x401b   :  { %v2229_v17 = vpop.permute.xlu0 %2228 }
0x401c   :  { %v2231_v18 = vmul.f32 %v4928_v3, %v2229_v17  ;;  %v2296_v3 = vld [vmem:[#allocation2 + $0x108] sm:$0xff] }
0x401e   :  { %2235 = vperm.xlu1 %4743, %v2231_v18  }
0x409d   :  { %v2236_v20 = vpop.permute.xlu1 %2235 }
0x409e   :  { %v2238_v21 = vmul.f32 %v5680_v48, %v2236_v20 }
0x40a0   :  { %v2239_v22 = vadd.f32 %v2238_v21, %v2232_v19  ;;  %v808_v21 = vpop.f32.mrb[68].mxu0 }
0x40a2   :  { %v2240_v23 = vmul.f32 1.442695, %v2239_v22  ;;  %v809_v22 = vadd.f32 %v5795_v35, %v808_v21 }
0x40a4   :  { %4931 = vpow2.f32 %v2240_v23  ;;  %v810_v23 = vpop.f32.mrb[69].mxu0  ;;  %1172 = vst.msk [vmem:[#allocation2 + $0x110] sm:$0xff] %vm1137_vm2, %v809_v22  ;;  %v106_v22 = vld [vmem:[#allocation3 + $0x258] sm:$0xff] }
0x40a5   :  { %v105_v23 = vld [vmem:[#allocation3 + $0x250] sm:$0xff]  ;;  %4496 = vmatprep.mubr.msk.f32.mxu0 %vm267_vm0, %v106_v22 }
0x40a6   :  { %822 = vmatmul.mubr.f32.gmra.mrb[74].mxu0 %v105_v23 }
0x40ae   :  { %v4932_v24 = vpop.eup %4931 }
0x40af   :  { %v2242_v25 = vadd.f32 1.0, %v4932_v24 }
0x40b1   :  { %4933 = vrcp.f32 %v2242_v25 }
0x40bb   :  { %v4934_v26 = vpop.eup %4933 }
0x40bc   :  { %v2245_v27 = vmul.f32 2.0, %v4934_v26  ;;  %v2247_v48 = vmul.f32 %v4934_v26, %v2225_v12 }
0x40be   :  { %v4591_v28 = vadd.f32 -1.0, %v2245_v27 }
0x40c0   :  { %2249 = vrot.lane.b32.xlu0 %v4591_v28, %s5390_s9 }
0x4132   :  { %v2250_v40 = vpop.permute.xlu0 %2249 }
0x4133   :  { %v2252_v29 = vmul.f32 %v4934_v26, %v2250_v40 }
0x4135   :  { %2254 = vrot.lane.b32.xlu1 %v2252_v29, %s5391_s10 }
0x41a7   :  { %v2255_v32 = vpop.permute.xlu1 %2254 }
0x41a8   :  { %v2257_v47 = vadd.f32 %v2255_v32, %v2247_v48 }
0x41aa   :  { %4935 = vtanh.f32 %v2257_v47 }
0x41b4   :  { %v4936_v33 = vpop.eup %4935 }
0x41b5   :  { %2260 = vrot.lane.b32.xlu0 %v4936_v33, %s5393_s11 }
0x4227   :  { %v2261_v37 = vpop.permute.xlu0 %2260 }
0x4228   :  { %v2263_v38 = vmul.f32 %v4934_v26, %v2261_v37  ;;  %v2328_v26 = vld [vmem:[#allocation2 + $0x110] sm:$0xff] }
0x422a   :  { %2267 = vperm.xlu1 %4743, %v2263_v38  }
0x42a9   :  { %v2268_v41 = vpop.permute.xlu1 %2267 }
0x42aa   :  { %v2270_v43 = vmul.f32 %v5802_v42, %v2268_v41 }
0x42ac   :  { %v2271_v44 = vadd.f32 %v2270_v43, %v2264_v39  ;;  %v813_v43 = vpop.f32.mrb[70].mxu0 }
0x42ae   :  { %v2272_v45 = vmul.f32 1.442695, %v2271_v44  ;;  %v814_v44 = vadd.f32 %v5795_v35, %v813_v43 }
0x42b0   :  { %4937 = vpow2.f32 %v2272_v45  ;;  %v815_v45 = vpop.f32.mrb[71].mxu0  ;;  %1173 = vst.msk [vmem:[#allocation2 + $0x118] sm:$0xff] %vm1137_vm2, %v814_v44  ;;  %v108_v44 = vld [vmem:[#allocation3 + $0x268] sm:$0xff] }
0x42b1   :  { %v107_v45 = vld [vmem:[#allocation3 + $0x260] sm:$0xff]  ;;  %4497 = vmatprep.mubr.msk.f32.mxu0 %vm267_vm0, %v108_v44 }
0x42b2   :  { %827 = vmatmul.mubr.f32.gmra.mrb[76].mxu0 %v107_v45 }
0x42ba   :  { %v4938_v46 = vpop.eup %4937 }
0x42bb   :  { %v2274_v49 = vadd.f32 1.0, %v4938_v46 }
0x42bd   :  { %4939 = vrcp.f32 %v2274_v49 }
0x42c7   :  { %v4940_v50 = vpop.eup %4939 }
0x42c8   :  { %v2277_v52 = vmul.f32 2.0, %v4940_v50  ;;  %v2279_v58 = vmul.f32 %v4940_v50, %v2257_v47 }
0x42ca   :  { %v4592_v53 = vadd.f32 -1.0, %v2277_v52 }
0x42cc   :  { %2281 = vrot.lane.b32.xlu0 %v4592_v53, %s5390_s9 }
0x433e   :  { %v2282_v54 = vpop.permute.xlu0 %2281 }
0x433f   :  { %v2284_v55 = vmul.f32 %v4940_v50, %v2282_v54 }
0x4341   :  { %2286 = vrot.lane.b32.xlu1 %v2284_v55, %s5391_s10 }
0x43b3   :  { %v2287_v59 = vpop.permute.xlu1 %2286 }
0x43b4   :  { %v2289_v60 = vadd.f32 %v2287_v59, %v2279_v58 }
0x43b6   :  { %4941 = vtanh.f32 %v2289_v60 }
0x43c0   :  { %v4942_v61 = vpop.eup %4941 }
0x43c1   :  { %2292 = vrot.lane.b32.xlu0 %v4942_v61, %s5393_s11 }
0x4433   :  { %v2293_v1 = vpop.permute.xlu0 %2292 }
0x4434   :  { %v2295_v2 = vmul.f32 %v4940_v50, %v2293_v1  ;;  %v2360_v50 = vld [vmem:[#allocation2 + $0x118] sm:$0xff] }
0x4436   :  { %2299 = vperm.xlu1 %4743, %v2295_v2  }
0x44b5   :  { %v2300_v4 = vpop.permute.xlu1 %2299 }
0x44b6   :  { %v2302_v5 = vmul.f32 %v5802_v42, %v2300_v4 }
0x44b8   :  { %v2303_v6 = vadd.f32 %v2302_v5, %v2296_v3  ;;  %v818_v5 = vpop.f32.mrb[72].mxu0 }
0x44ba   :  { %v2304_v7 = vmul.f32 1.442695, %v2303_v6  ;;  %v819_v6 = vadd.f32 %v5795_v35, %v818_v5 }
0x44bc   :  { %4943 = vpow2.f32 %v2304_v7  ;;  %v820_v7 = vpop.f32.mrb[73].mxu0  ;;  %1174 = vst.msk [vmem:[#allocation2 + $0x120] sm:$0xff] %vm1137_vm2, %v819_v6  ;;  %v110_v6 = vld [vmem:[#allocation3 + $0x278] sm:$0xff] }
0x44bd   :  { %v109_v7 = vld [vmem:[#allocation3 + $0x270] sm:$0xff]  ;;  %4498 = vmatprep.mubr.msk.f32.mxu0 %vm267_vm0, %v110_v6 }
0x44be   :  { %832 = vmatmul.mubr.f32.gmra.mrb[78].mxu0 %v109_v7 }
0x44c6   :  { %v4944_v8 = vpop.eup %4943 }
0x44c7   :  { %v2306_v9 = vadd.f32 1.0, %v4944_v8 }
0x44c9   :  { %4945 = vrcp.f32 %v2306_v9 }
0x44d3   :  { %v4946_v10 = vpop.eup %4945 }
0x44d4   :  { %v2309_v11 = vmul.f32 2.0, %v4946_v10  ;;  %v2311_v17 = vmul.f32 %v4946_v10, %v2289_v60 }
0x44d6   :  { %v4593_v12 = vadd.f32 -1.0, %v2309_v11 }
0x44d8   :  { %2313 = vrot.lane.b32.xlu0 %v4593_v12, %s5390_s9 }
0x454a   :  { %v2314_v13 = vpop.permute.xlu0 %2313 }
0x454b   :  { %v2316_v14 = vmul.f32 %v4946_v10, %v2314_v13 }
0x454d   :  { %2318 = vrot.lane.b32.xlu1 %v2316_v14, %s5391_s10 }
0x45bf   :  { %v2319_v18 = vpop.permute.xlu1 %2318 }
0x45c0   :  { %v2321_v19 = vadd.f32 %v2319_v18, %v2311_v17 }
0x45c2   :  { %4947 = vtanh.f32 %v2321_v19 }
0x45cc   :  { %v4948_v20 = vpop.eup %4947 }
0x45cd   :  { %2324 = vrot.lane.b32.xlu0 %v4948_v20, %s5393_s11 }
0x463f   :  { %v2325_v24 = vpop.permute.xlu0 %2324 }
0x4640   :  { %v2327_v25 = vmul.f32 %v4946_v10, %v2325_v24  ;;  %v2392_v10 = vld [vmem:[#allocation2 + $0x120] sm:$0xff] }
0x4642   :  { %2331 = vperm.xlu1 %4743, %v2327_v25  }
0x46c1   :  { %v2332_v27 = vpop.permute.xlu1 %2331 }
0x46c2   :  { %v2334_v28 = vmul.f32 %v5802_v42, %v2332_v27 }
0x46c4   :  { %v2335_v40 = vadd.f32 %v2334_v28, %v2328_v26  ;;  %v823_v28 = vpop.f32.mrb[74].mxu0 }
0x46c6   :  { %v2336_v29 = vmul.f32 1.442695, %v2335_v40  ;;  %v824_v40 = vadd.f32 %v5795_v35, %v823_v28 }
0x46c8   :  { %4949 = vpow2.f32 %v2336_v29  ;;  %v825_v29 = vpop.f32.mrb[75].mxu0  ;;  %1175 = vst.msk [vmem:[#allocation2 + $0x128] sm:$0xff] %vm1137_vm2, %v824_v40  ;;  %v112_v40 = vld [vmem:[#allocation3 + $0x288] sm:$0xff] }
0x46c9   :  { %v111_v29 = vld [vmem:[#allocation3 + $0x280] sm:$0xff]  ;;  %4499 = vmatprep.mubr.msk.f32.mxu0 %vm267_vm0, %v112_v40 }
0x46ca   :  { %837 = vmatmul.mubr.f32.gmra.mrb[80].mxu0 %v111_v29 }
0x46d2   :  { %v4950_v30 = vpop.eup %4949 }
0x46d3   :  { %v2338_v31 = vadd.f32 1.0, %v4950_v30 }
0x46d5   :  { %4951 = vrcp.f32 %v2338_v31 }
0x46df   :  { %v4952_v48 = vpop.eup %4951 }
0x46e0   :  { %v2341_v32 = vmul.f32 2.0, %v4952_v48  ;;  %v2343_v37 = vmul.f32 %v4952_v48, %v2321_v19 }
0x46e2   :  { %v4594_v47 = vadd.f32 -1.0, %v2341_v32 }
0x46e4   :  { %2345 = vrot.lane.b32.xlu0 %v4594_v47, %s5390_s9 }
0x4756   :  { %v2346_v33 = vpop.permute.xlu0 %2345 }
0x4757   :  { %v2348_v34 = vmul.f32 %v4952_v48, %v2346_v33 }
0x4759   :  { %2350 = vrot.lane.b32.xlu1 %v2348_v34, %s5391_s10 }
0x47cb   :  { %v2351_v38 = vpop.permute.xlu1 %2350 }
0x47cc   :  { %v2353_v39 = vadd.f32 %v2351_v38, %v2343_v37 }
0x47ce   :  { %4953 = vtanh.f32 %v2353_v39 }
0x47d8   :  { %v4954_v41 = vpop.eup %4953 }
0x47d9   :  { %2356 = vrot.lane.b32.xlu0 %v4954_v41, %s5393_s11 }
0x484b   :  { %v2357_v46 = vpop.permute.xlu0 %2356 }
0x484c   :  { %v2359_v49 = vmul.f32 %v4952_v48, %v2357_v46  ;;  %v2424_v48 = vld [vmem:[#allocation2 + $0x128] sm:$0xff] }
0x484e   :  { %2363 = vperm.xlu1 %4743, %v2359_v49  }
0x48cd   :  { %v2364_v52 = vpop.permute.xlu1 %2363 }
0x48ce   :  { %v2366_v53 = vmul.f32 %v5802_v42, %v2364_v52 }
0x48d0   :  { %v2367_v54 = vadd.f32 %v2366_v53, %v2360_v50  ;;  %v828_v53 = vpop.f32.mrb[76].mxu0 }
0x48d2   :  { %v2368_v55 = vmul.f32 1.442695, %v2367_v54  ;;  %v829_v54 = vadd.f32 %v5795_v35, %v828_v53 }
0x48d4   :  { %4955 = vpow2.f32 %v2368_v55  ;;  %v830_v55 = vpop.f32.mrb[77].mxu0  ;;  %1176 = vst.msk [vmem:[#allocation2 + $0x130] sm:$0xff] %vm1137_vm2, %v829_v54  ;;  %v114_v54 = vld [vmem:[#allocation3 + $0x298] sm:$0xff] }
0x48d5   :  { %v113_v55 = vld [vmem:[#allocation3 + $0x290] sm:$0xff]  ;;  %4500 = vmatprep.mubr.msk.f32.mxu0 %vm267_vm0, %v114_v54 }
0x48d6   :  { %842 = vmatmul.mubr.f32.gmra.mrb[82].mxu0 %v113_v55 }
0x48de   :  { %v4956_v56 = vpop.eup %4955 }
0x48df   :  { %v2370_v57 = vadd.f32 1.0, %v4956_v56 }
0x48e1   :  { %4957 = vrcp.f32 %v2370_v57 }
0x48eb   :  { %v4958_v58 = vpop.eup %4957 }
0x48ec   :  { %v2373_v59 = vmul.f32 2.0, %v4958_v58  ;;  %v2375_v1 = vmul.f32 %v4958_v58, %v2353_v39 }
0x48ee   :  { %v4595_v60 = vadd.f32 -1.0, %v2373_v59 }
0x48f0   :  { %2377 = vrot.lane.b32.xlu0 %v4595_v60, %s5390_s9 }
0x4962   :  { %v2378_v61 = vpop.permute.xlu0 %2377 }
0x4963   :  { %v2380_v62 = vmul.f32 %v4958_v58, %v2378_v61 }
0x4965   :  { %2382 = vrot.lane.b32.xlu1 %v2380_v62, %s5391_s10 }
0x49d7   :  { %v2383_v2 = vpop.permute.xlu1 %2382 }
0x49d8   :  { %v2385_v3 = vadd.f32 %v2383_v2, %v2375_v1 }
0x49da   :  { %4959 = vtanh.f32 %v2385_v3 }
0x49e4   :  { %v4960_v4 = vpop.eup %4959 }
0x49e5   :  { %2388 = vrot.lane.b32.xlu0 %v4960_v4, %s5393_s11 }
0x4a57   :  { %v2389_v8 = vpop.permute.xlu0 %2388 }
0x4a58   :  { %v2391_v9 = vmul.f32 %v4958_v58, %v2389_v8  ;;  %v2456_v58 = vld [vmem:[#allocation2 + $0x130] sm:$0xff] }
0x4a5a   :  { %2395 = vperm.xlu1 %4743, %v2391_v9  }
0x4ad9   :  { %v2396_v11 = vpop.permute.xlu1 %2395 }
0x4ada   :  { %v2398_v12 = vmul.f32 %v5802_v42, %v2396_v11 }
0x4adc   :  { %v2399_v13 = vadd.f32 %v2398_v12, %v2392_v10  ;;  %v833_v12 = vpop.f32.mrb[78].mxu0 }
0x4ade   :  { %v2400_v14 = vmul.f32 1.442695, %v2399_v13  ;;  %v834_v13 = vadd.f32 %v5795_v35, %v833_v12 }
0x4ae0   :  { %4961 = vpow2.f32 %v2400_v14  ;;  %v835_v14 = vpop.f32.mrb[79].mxu0  ;;  %1177 = vst.msk [vmem:[#allocation2 + $0x138] sm:$0xff] %vm1137_vm2, %v834_v13  ;;  %v116_v13 = vld [vmem:[#allocation3 + $0x2a8] sm:$0xff] }
0x4ae1   :  { %v115_v14 = vld [vmem:[#allocation3 + $0x2a0] sm:$0xff]  ;;  %4501 = vmatprep.mubr.msk.f32.mxu0 %vm267_vm0, %v116_v13 }
0x4ae2   :  { %847 = vmatmul.mubr.f32.gmra.mrb[84].mxu0 %v115_v14 }
0x4aea   :  { %v4962_v15 = vpop.eup %4961 }
0x4aeb   :  { %v2402_v16 = vadd.f32 1.0, %v4962_v15 }
0x4aed   :  { %4963 = vrcp.f32 %v2402_v16 }
0x4af7   :  { %v4964_v17 = vpop.eup %4963 }
0x4af8   :  { %v2405_v18 = vmul.f32 2.0, %v4964_v17  ;;  %v2407_v24 = vmul.f32 %v4964_v17, %v2385_v3 }
0x4afa   :  { %v4596_v19 = vadd.f32 -1.0, %v2405_v18 }
0x4afc   :  { %2409 = vrot.lane.b32.xlu0 %v4596_v19, %s5390_s9 }
0x4b6e   :  { %v2410_v20 = vpop.permute.xlu0 %2409 }
0x4b6f   :  { %v2412_v21 = vmul.f32 %v4964_v17, %v2410_v20 }
0x4b71   :  { %2414 = vrot.lane.b32.xlu1 %v2412_v21, %s5391_s10 }
0x4be3   :  { %v2415_v25 = vpop.permute.xlu1 %2414 }
0x4be4   :  { %v2417_v26 = vadd.f32 %v2415_v25, %v2407_v24 }
0x4be6   :  { %4965 = vtanh.f32 %v2417_v26 }
0x4bf0   :  { %v4966_v27 = vpop.eup %4965 }
0x4bf1   :  { %2420 = vrot.lane.b32.xlu0 %v4966_v27, %s5393_s11 }
0x4c63   :  { %v2421_v30 = vpop.permute.xlu0 %2420 }
0x4c64   :  { %v2423_v31 = vmul.f32 %v4964_v17, %v2421_v30  ;;  %v2488_v17 = vld [vmem:[#allocation2 + $0x138] sm:$0xff] }
0x4c66   :  { %2427 = vperm.xlu1 %4743, %v2423_v31  }
0x4ce5   :  { %v2428_v32 = vpop.permute.xlu1 %2427 }
0x4ce6   :  { %v2430_v47 = vmul.f32 %v5802_v42, %v2428_v32 }
0x4ce8   :  { %v2431_v33 = vadd.f32 %v2430_v47, %v2424_v48  ;;  %v838_v47 = vpop.f32.mrb[80].mxu0 }
0x4cea   :  { %v2432_v34 = vmul.f32 1.442695, %v2431_v33  ;;  %v839_v33 = vadd.f32 %v5795_v35, %v838_v47 }
0x4cec   :  { %4967 = vpow2.f32 %v2432_v34  ;;  %v840_v34 = vpop.f32.mrb[81].mxu0  ;;  %1178 = vst.msk [vmem:[#allocation2 + $0x140] sm:$0xff] %vm1137_vm2, %v839_v33  ;;  %v118_v33 = vld [vmem:[#allocation3 + $0x2b8] sm:$0xff] }
0x4ced   :  { %v117_v34 = vld [vmem:[#allocation3 + $0x2b0] sm:$0xff]  ;;  %4502 = vmatprep.mubr.msk.f32.mxu0 %vm267_vm0, %v118_v33 }
0x4cee   :  { %852 = vmatmul.mubr.f32.gmra.mrb[86].mxu0 %v117_v34 }
0x4cf6   :  { %v4968_v51 = vpop.eup %4967 }
0x4cf7   :  { %v2434_v36 = vadd.f32 1.0, %v4968_v51 }
0x4cf9   :  { %4969 = vrcp.f32 %v2434_v36 }
0x4d03   :  { %v4970_v37 = vpop.eup %4969 }
0x4d04   :  { %v2437_v38 = vmul.f32 2.0, %v4970_v37  ;;  %v2439_v46 = vmul.f32 %v4970_v37, %v2417_v26 }
0x4d06   :  { %v4597_v39 = vadd.f32 -1.0, %v2437_v38 }
0x4d08   :  { %2441 = vrot.lane.b32.xlu0 %v4597_v39, %s5390_s9 }
0x4d7a   :  { %v2442_v41 = vpop.permute.xlu0 %2441 }
0x4d7b   :  { %v2444_v43 = vmul.f32 %v4970_v37, %v2442_v41 }
0x4d7d   :  { %2446 = vrot.lane.b32.xlu1 %v2444_v43, %s5391_s10 }
0x4def   :  { %v2447_v49 = vpop.permute.xlu1 %2446 }
0x4df0   :  { %v2449_v50 = vadd.f32 %v2447_v49, %v2439_v46 }
0x4df2   :  { %4971 = vtanh.f32 %v2449_v50 }
0x4dfc   :  { %v4972_v52 = vpop.eup %4971 }
0x4dfd   :  { %2452 = vrot.lane.b32.xlu0 %v4972_v52, %s5393_s11 }
0x4e6f   :  { %v2453_v56 = vpop.permute.xlu0 %2452 }
0x4e70   :  { %v2455_v57 = vmul.f32 %v4970_v37, %v2453_v56  ;;  %v2520_v37 = vld [vmem:[#allocation2 + $0x140] sm:$0xff] }
0x4e72   :  { %2459 = vperm.xlu1 %4743, %v2455_v57  }
0x4ef1   :  { %v2460_v59 = vpop.permute.xlu1 %2459 }
0x4ef2   :  { %v2462_v60 = vmul.f32 %v5802_v42, %v2460_v59 }
0x4ef4   :  { %v2463_v61 = vadd.f32 %v2462_v60, %v2456_v58  ;;  %v843_v60 = vpop.f32.mrb[82].mxu0 }
0x4ef6   :  { %v2464_v62 = vmul.f32 1.442695, %v2463_v61  ;;  %v844_v61 = vadd.f32 %v5795_v35, %v843_v60 }
0x4ef8   :  { %4973 = vpow2.f32 %v2464_v62  ;;  %v845_v62 = vpop.f32.mrb[83].mxu0  ;;  %1179 = vst.msk [vmem:[#allocation2 + $0x148] sm:$0xff] %vm1137_vm2, %v844_v61  ;;  %v120_v61 = vld [vmem:[#allocation3 + $0x2c8] sm:$0xff] }
0x4ef9   :  { %v119_v62 = vld [vmem:[#allocation3 + $0x2c0] sm:$0xff]  ;;  %4503 = vmatprep.mubr.msk.f32.mxu0 %vm267_vm0, %v120_v61 }
0x4efa   :  { %857 = vmatmul.mubr.f32.gmra.mrb[88].mxu0 %v119_v62 }
0x4f02   :  { %v4974_v63 = vpop.eup %4973 }
0x4f03   :  { %v2466_v0 = vadd.f32 1.0, %v4974_v63 }
0x4f05   :  { %4975 = vrcp.f32 %v2466_v0 }
0x4f0f   :  { %v4976_v1 = vpop.eup %4975 }
0x4f10   :  { %v2469_v2 = vmul.f32 2.0, %v4976_v1  ;;  %v2471_v8 = vmul.f32 %v4976_v1, %v2449_v50 }
0x4f12   :  { %v4598_v3 = vadd.f32 -1.0, %v2469_v2 }
0x4f14   :  { %2473 = vrot.lane.b32.xlu0 %v4598_v3, %s5390_s9 }
0x4f86   :  { %v2474_v4 = vpop.permute.xlu0 %2473 }
0x4f87   :  { %v2476_v5 = vmul.f32 %v4976_v1, %v2474_v4 }
0x4f89   :  { %2478 = vrot.lane.b32.xlu1 %v2476_v5, %s5391_s10 }
0x4ffb   :  { %v2479_v9 = vpop.permute.xlu1 %2478 }
0x4ffc   :  { %v2481_v10 = vadd.f32 %v2479_v9, %v2471_v8 }
0x4ffe   :  { %4977 = vtanh.f32 %v2481_v10 }
0x5008   :  { %v4978_v11 = vpop.eup %4977 }
0x5009   :  { %2484 = vrot.lane.b32.xlu0 %v4978_v11, %s5393_s11 }
0x507b   :  { %v2485_v15 = vpop.permute.xlu0 %2484 }
0x507c   :  { %v2487_v16 = vmul.f32 %v4976_v1, %v2485_v15  ;;  %v2552_v1 = vld [vmem:[#allocation2 + $0x148] sm:$0xff] }
0x507e   :  { %2491 = vperm.xlu1 %4743, %v2487_v16  }
0x50fd   :  { %v2492_v18 = vpop.permute.xlu1 %2491 }
0x50fe   :  { %v2494_v19 = vmul.f32 %v5802_v42, %v2492_v18 }
0x5100   :  { %v2495_v20 = vadd.f32 %v2494_v19, %v2488_v17  ;;  %v848_v19 = vpop.f32.mrb[84].mxu0 }
0x5102   :  { %v2496_v21 = vmul.f32 1.442695, %v2495_v20  ;;  %v849_v20 = vadd.f32 %v5795_v35, %v848_v19 }
0x5104   :  { %4979 = vpow2.f32 %v2496_v21  ;;  %v850_v21 = vpop.f32.mrb[85].mxu0  ;;  %1180 = vst.msk [vmem:[#allocation2 + $0x150] sm:$0xff] %vm1137_vm2, %v849_v20  ;;  %v122_v20 = vld [vmem:[#allocation3 + $0x2d8] sm:$0xff] }
0x5105   :  { %v121_v21 = vld [vmem:[#allocation3 + $0x2d0] sm:$0xff]  ;;  %4504 = vmatprep.mubr.msk.f32.mxu0 %vm267_vm0, %v122_v20 }
0x5106   :  { %862 = vmatmul.mubr.f32.gmra.mrb[90].mxu0 %v121_v21 }
0x510e   :  { %v4980_v22 = vpop.eup %4979 }
0x510f   :  { %v2498_v23 = vadd.f32 1.0, %v4980_v22 }
0x5111   :  { %4981 = vrcp.f32 %v2498_v23 }
0x511b   :  { %v4982_v24 = vpop.eup %4981 }
0x511c   :  { %v2501_v25 = vmul.f32 2.0, %v4982_v24  ;;  %v2503_v30 = vmul.f32 %v4982_v24, %v2481_v10 }
0x511e   :  { %v4599_v26 = vadd.f32 -1.0, %v2501_v25 }
0x5120   :  { %2505 = vrot.lane.b32.xlu0 %v4599_v26, %s5390_s9 }
0x5192   :  { %v2506_v27 = vpop.permute.xlu0 %2505 }
0x5193   :  { %v2508_v28 = vmul.f32 %v4982_v24, %v2506_v27 }
0x5195   :  { %2510 = vrot.lane.b32.xlu1 %v2508_v28, %s5391_s10 }
0x5207   :  { %v2511_v31 = vpop.permute.xlu1 %2510 }
0x5208   :  { %v2513_v48 = vadd.f32 %v2511_v31, %v2503_v30 }
0x520a   :  { %4983 = vtanh.f32 %v2513_v48 }
0x5214   :  { %v4984_v32 = vpop.eup %4983 }
0x5215   :  { %2516 = vrot.lane.b32.xlu0 %v4984_v32, %s5393_s11 }
0x5287   :  { %v2517_v51 = vpop.permute.xlu0 %2516 }
0x5288   :  { %v2519_v36 = vmul.f32 %v4982_v24, %v2517_v51  ;;  %v2584_v24 = vld [vmem:[#allocation2 + $0x150] sm:$0xff] }
0x528a   :  { %2523 = vperm.xlu1 %4743, %v2519_v36  }
0x5309   :  { %v2524_v38 = vpop.permute.xlu1 %2523 }
0x530a   :  { %v2526_v39 = vmul.f32 %v5802_v42, %v2524_v38 }
0x530c   :  { %v2527_v41 = vadd.f32 %v2526_v39, %v2520_v37  ;;  %v853_v39 = vpop.f32.mrb[86].mxu0 }
0x530e   :  { %v2528_v43 = vmul.f32 1.442695, %v2527_v41  ;;  %v854_v41 = vadd.f32 %v5795_v35, %v853_v39 }
0x5310   :  { %4985 = vpow2.f32 %v2528_v43  ;;  %v855_v43 = vpop.f32.mrb[87].mxu0  ;;  %1181 = vst.msk [vmem:[#allocation2 + $0x158] sm:$0xff] %vm1137_vm2, %v854_v41  ;;  %v124_v41 = vld [vmem:[#allocation3 + $0x2e8] sm:$0xff] }
0x5311   :  { %v123_v43 = vld [vmem:[#allocation3 + $0x2e0] sm:$0xff]  ;;  %4505 = vmatprep.mubr.msk.f32.mxu0 %vm267_vm0, %v124_v41 }
0x5312   :  { %867 = vmatmul.mubr.f32.gmra.mrb[92].mxu0 %v123_v43 }
0x531a   :  { %v4986_v44 = vpop.eup %4985 }
0x531b   :  { %v2530_v45 = vadd.f32 1.0, %v4986_v44 }
0x531d   :  { %4987 = vrcp.f32 %v2530_v45 }
0x5327   :  { %v4988_v46 = vpop.eup %4987 }
0x5328   :  { %v2533_v49 = vmul.f32 2.0, %v4988_v46  ;;  %v2535_v56 = vmul.f32 %v4988_v46, %v2513_v48 }
0x532a   :  { %v4600_v50 = vadd.f32 -1.0, %v2533_v49 }
0x532c   :  { %2537 = vrot.lane.b32.xlu0 %v4600_v50, %s5390_s9 }
0x539e   :  { %v2538_v52 = vpop.permute.xlu0 %2537 }
0x539f   :  { %v2540_v53 = vmul.f32 %v4988_v46, %v2538_v52 }
0x53a1   :  { %2542 = vrot.lane.b32.xlu1 %v2540_v53, %s5391_s10 }
0x5413   :  { %v2543_v57 = vpop.permute.xlu1 %2542 }
0x5414   :  { %v2545_v58 = vadd.f32 %v2543_v57, %v2535_v56 }
0x5416   :  { %4989 = vtanh.f32 %v2545_v58 }
0x5420   :  { %v4990_v59 = vpop.eup %4989 }
0x5421   :  { %2548 = vrot.lane.b32.xlu0 %v4990_v59, %s5393_s11 }
0x5493   :  { %v2549_v63 = vpop.permute.xlu0 %2548 }
0x5494   :  { %v2551_v0 = vmul.f32 %v4988_v46, %v2549_v63  ;;  %v2616_v46 = vld [vmem:[#allocation2 + $0x158] sm:$0xff] }
0x5496   :  { %2555 = vperm.xlu1 %4743, %v2551_v0  }
0x5515   :  { %v2556_v2 = vpop.permute.xlu1 %2555 }
0x5516   :  { %v2558_v3 = vmul.f32 %v5802_v42, %v2556_v2 }
0x5518   :  { %v2559_v4 = vadd.f32 %v2558_v3, %v2552_v1  ;;  %v858_v3 = vpop.f32.mrb[88].mxu0 }
0x551a   :  { %v2560_v5 = vmul.f32 1.442695, %v2559_v4  ;;  %v859_v4 = vadd.f32 %v5795_v35, %v858_v3 }
0x551c   :  { %4991 = vpow2.f32 %v2560_v5  ;;  %v860_v5 = vpop.f32.mrb[89].mxu0  ;;  %1182 = vst.msk [vmem:[#allocation2 + $0x160] sm:$0xff] %vm1137_vm2, %v859_v4  ;;  %v126_v4 = vld [vmem:[#allocation3 + $0x2f8] sm:$0xff] }
0x551d   :  { %v125_v5 = vld [vmem:[#allocation3 + $0x2f0] sm:$0xff]  ;;  %4506 = vmatprep.mubr.msk.f32.mxu0 %vm267_vm0, %v126_v4 }
0x551e   :  { %872 = vmatmul.mubr.f32.gmra.mrb[94].mxu0 %v125_v5 }
0x5526   :  { %v4992_v6 = vpop.eup %4991 }
0x5527   :  { %v2562_v7 = vadd.f32 1.0, %v4992_v6 }
0x5529   :  { %4993 = vrcp.f32 %v2562_v7 }
0x5533   :  { %v4994_v8 = vpop.eup %4993 }
0x5534   :  { %v2565_v9 = vmul.f32 2.0, %v4994_v8  ;;  %v2567_v15 = vmul.f32 %v4994_v8, %v2545_v58 }
0x5536   :  { %v4601_v10 = vadd.f32 -1.0, %v2565_v9 }
0x5538   :  { %2569 = vrot.lane.b32.xlu0 %v4601_v10, %s5390_s9 }
0x55aa   :  { %v2570_v11 = vpop.permute.xlu0 %2569 }
0x55ab   :  { %v2572_v12 = vmul.f32 %v4994_v8, %v2570_v11 }
0x55ad   :  { %2574 = vrot.lane.b32.xlu1 %v2572_v12, %s5391_s10 }
0x561f   :  { %v2575_v16 = vpop.permute.xlu1 %2574 }
0x5620   :  { %v2577_v17 = vadd.f32 %v2575_v16, %v2567_v15 }
0x5622   :  { %4995 = vtanh.f32 %v2577_v17 }
0x562c   :  { %v4996_v18 = vpop.eup %4995 }
0x562d   :  { %2580 = vrot.lane.b32.xlu0 %v4996_v18, %s5393_s11 }
0x569f   :  { %v2581_v22 = vpop.permute.xlu0 %2580 }
0x56a0   :  { %v2583_v23 = vmul.f32 %v4994_v8, %v2581_v22  ;;  %v2648_v8 = vld [vmem:[#allocation2 + $0x160] sm:$0xff] }
0x56a2   :  { %2587 = vperm.xlu1 %4743, %v2583_v23  }
0x5721   :  { %v2588_v25 = vpop.permute.xlu1 %2587 }
0x5722   :  { %v2590_v26 = vmul.f32 %v5802_v42, %v2588_v25 }
0x5724   :  { %v2591_v27 = vadd.f32 %v2590_v26, %v2584_v24  ;;  %v863_v26 = vpop.f32.mrb[90].mxu0 }
0x5726   :  { %v2592_v28 = vmul.f32 1.442695, %v2591_v27  ;;  %v864_v27 = vadd.f32 %v5795_v35, %v863_v26  ;;  %v128_v26 = vld [vmem:[#allocation3 + $0x308] sm:$0xff] }
0x5727   :  { %4507 = vmatprep.mubr.msk.f32.mxu0 %vm267_vm0, %v128_v26 }
0x5728   :  { %4997 = vpow2.f32 %v2592_v28  ;;  %v865_v28 = vpop.f32.mrb[91].mxu0  ;;  %1183 = vst.msk [vmem:[#allocation2 + $0x168] sm:$0xff] %vm1137_vm2, %v864_v27  ;;  %v127_v27 = vld [vmem:[#allocation3 + $0x300] sm:$0xff] }
0x5729   :  { %877 = vmatmul.mubr.f32.gmra.mrb[96].mxu0 %v127_v27 }
0x5732   :  { %v4998_v40 = vpop.eup %4997 }
0x5733   :  { %v2594_v29 = vadd.f32 1.0, %v4998_v40 }
0x5735   :  { %4999 = vrcp.f32 %v2594_v29 }
0x573f   :  { %v5000_v30 = vpop.eup %4999 }
0x5740   :  { %v2597_v31 = vmul.f32 2.0, %v5000_v30  ;;  %v2599_v51 = vmul.f32 %v5000_v30, %v2577_v17 }
0x5742   :  { %v4602_v48 = vadd.f32 -1.0, %v2597_v31 }
0x5744   :  { %2601 = vrot.lane.b32.xlu0 %v4602_v48, %s5390_s9 }
0x57b6   :  { %v2602_v32 = vpop.permute.xlu0 %2601 }
0x57b7   :  { %v2604_v47 = vmul.f32 %v5000_v30, %v2602_v32 }
0x57b9   :  { %2606 = vrot.lane.b32.xlu1 %v2604_v47, %s5391_s10 }
0x582b   :  { %v2607_v36 = vpop.permute.xlu1 %2606 }
0x582c   :  { %v2609_v37 = vadd.f32 %v2607_v36, %v2599_v51 }
0x582e   :  { %5001 = vtanh.f32 %v2609_v37 }
0x5838   :  { %v5002_v38 = vpop.eup %5001 }
0x5839   :  { %2612 = vrot.lane.b32.xlu0 %v5002_v38, %s5393_s11 }
0x58ab   :  { %v2613_v44 = vpop.permute.xlu0 %2612 }
0x58ac   :  { %v2615_v45 = vmul.f32 %v5000_v30, %v2613_v44  ;;  %v2680_v30 = vld [vmem:[#allocation2 + $0x168] sm:$0xff] }
0x58ae   :  { %2619 = vperm.xlu1 %4743, %v2615_v45  }
0x592d   :  { %v2620_v49 = vpop.permute.xlu1 %2619 }
0x592e   :  { %v2622_v50 = vmul.f32 %v5802_v42, %v2620_v49 }
0x5930   :  { %v2623_v52 = vadd.f32 %v2622_v50, %v2616_v46  ;;  %v868_v50 = vpop.f32.mrb[92].mxu0 }
0x5932   :  { %v2624_v53 = vmul.f32 1.442695, %v2623_v52  ;;  %v869_v52 = vadd.f32 %v5795_v35, %v868_v50 }
0x5934   :  { %5003 = vpow2.f32 %v2624_v53  ;;  %v870_v53 = vpop.f32.mrb[93].mxu0  ;;  %1184 = vst.msk [vmem:[#allocation2 + $0x170] sm:$0xff] %vm1137_vm2, %v869_v52  ;;  %v130_v52 = vld [vmem:[#allocation3 + $0x318] sm:$0xff] }
0x5935   :  { %v129_v53 = vld [vmem:[#allocation3 + $0x310] sm:$0xff]  ;;  %4508 = vmatprep.mubr.msk.f32.mxu0 %vm267_vm0, %v130_v52 }
0x5936   :  { %882 = vmatmul.mubr.f32.gmra.mrb[98].mxu0 %v129_v53 }
0x593e   :  { %v5004_v54 = vpop.eup %5003 }
0x593f   :  { %v2626_v55 = vadd.f32 1.0, %v5004_v54 }
0x5941   :  { %5005 = vrcp.f32 %v2626_v55 }
0x594b   :  { %v5006_v56 = vpop.eup %5005 }
0x594c   :  { %v2629_v57 = vmul.f32 2.0, %v5006_v56  ;;  %v2631_v63 = vmul.f32 %v5006_v56, %v2609_v37 }
0x594e   :  { %v4603_v58 = vadd.f32 -1.0, %v2629_v57 }
0x5950   :  { %2633 = vrot.lane.b32.xlu0 %v4603_v58, %s5390_s9 }
0x59c2   :  { %v2634_v59 = vpop.permute.xlu0 %2633 }
0x59c3   :  { %v2636_v60 = vmul.f32 %v5006_v56, %v2634_v59 }
0x59c5   :  { %2638 = vrot.lane.b32.xlu1 %v2636_v60, %s5391_s10 }
0x5a37   :  { %v2639_v0 = vpop.permute.xlu1 %2638 }
0x5a38   :  { %v2641_v1 = vadd.f32 %v2639_v0, %v2631_v63 }
0x5a3a   :  { %5007 = vtanh.f32 %v2641_v1 }
0x5a44   :  { %v5008_v2 = vpop.eup %5007 }
0x5a45   :  { %2644 = vrot.lane.b32.xlu0 %v5008_v2, %s5393_s11 }
0x5ab7   :  { %v2645_v6 = vpop.permute.xlu0 %2644 }
0x5ab8   :  { %v2647_v7 = vmul.f32 %v5006_v56, %v2645_v6  ;;  %v2712_v56 = vld [vmem:[#allocation2 + $0x170] sm:$0xff] }
0x5aba   :  { %2651 = vperm.xlu1 %4743, %v2647_v7  }
0x5b39   :  { %v2652_v9 = vpop.permute.xlu1 %2651 }
0x5b3a   :  { %v2654_v10 = vmul.f32 %v5802_v42, %v2652_v9 }
0x5b3c   :  { %v2655_v11 = vadd.f32 %v2654_v10, %v2648_v8  ;;  %v873_v10 = vpop.f32.mrb[94].mxu0 }
0x5b3e   :  { %v2656_v12 = vmul.f32 1.442695, %v2655_v11  ;;  %v874_v11 = vadd.f32 %v5795_v35, %v873_v10 }
0x5b40   :  { %5009 = vpow2.f32 %v2656_v12  ;;  %v875_v12 = vpop.f32.mrb[95].mxu0  ;;  %1185 = vst.msk [vmem:[#allocation2 + $0x178] sm:$0xff] %vm1137_vm2, %v874_v11  ;;  %v132_v11 = vld [vmem:[#allocation3 + $0x328] sm:$0xff] }
0x5b41   :  { %v131_v12 = vld [vmem:[#allocation3 + $0x320] sm:$0xff]  ;;  %4509 = vmatprep.mubr.msk.f32.mxu1 %vm267_vm0, %v132_v11 }
0x5b42   :  { %887 = vmatmul.mubr.f32.vlgmr.msra.gmra.mrb[0].mxu1 %v131_v12 }
0x5b4a   :  { %v5010_v13 = vpop.eup %5009 }
0x5b4b   :  { %v2658_v14 = vadd.f32 1.0, %v5010_v13 }
0x5b4d   :  { %5011 = vrcp.f32 %v2658_v14 }
0x5b57   :  { %v5012_v15 = vpop.eup %5011 }
0x5b58   :  { %v2661_v16 = vmul.f32 2.0, %v5012_v15  ;;  %v2663_v22 = vmul.f32 %v5012_v15, %v2641_v1 }
0x5b5a   :  { %v4604_v17 = vadd.f32 -1.0, %v2661_v16 }
0x5b5c   :  { %2665 = vrot.lane.b32.xlu0 %v4604_v17, %s5390_s9 }
0x5bce   :  { %v2666_v18 = vpop.permute.xlu0 %2665 }
0x5bcf   :  { %v2668_v19 = vmul.f32 %v5012_v15, %v2666_v18 }
0x5bd1   :  { %2670 = vrot.lane.b32.xlu1 %v2668_v19, %s5391_s10 }
0x5c43   :  { %v2671_v23 = vpop.permute.xlu1 %2670 }
0x5c44   :  { %v2673_v24 = vadd.f32 %v2671_v23, %v2663_v22 }
0x5c46   :  { %5013 = vtanh.f32 %v2673_v24 }
0x5c50   :  { %v5014_v25 = vpop.eup %5013 }
0x5c51   :  { %2676 = vrot.lane.b32.xlu0 %v5014_v25, %s5393_s11 }
0x5cc3   :  { %v2677_v40 = vpop.permute.xlu0 %2676 }
0x5cc4   :  { %v2679_v29 = vmul.f32 %v5012_v15, %v2677_v40  ;;  %v2744_v15 = vld [vmem:[#allocation2 + $0x178] sm:$0xff] }
0x5cc6   :  { %2683 = vperm.xlu1 %4743, %v2679_v29  }
0x5d45   :  { %v2684_v31 = vpop.permute.xlu1 %2683 }
0x5d46   :  { %v2686_v48 = vmul.f32 %v5802_v42, %v2684_v31  ;;  %v5917_v31 = vld [vmem:[%s6323_s3] ss:$0 sm:$0xff] }
0x5d48   :  { %v2687_v32 = vadd.f32 %v2686_v48, %v2680_v30  ;;  %v878_v30 = vpop.f32.mrb[96].mxu0 }
0x5d49   :  { %v879_v48 = vadd.f32 %v5917_v31, %v878_v30 }
0x5d4a   :  { %v2688_v47 = vmul.f32 1.442695, %v2687_v32  ;;  %v880_v32 = vpop.f32.mrb[97].mxu0 }
0x5d4b   :  { %1186 = vst.msk [vmem:[#allocation2 + $0x180] sm:$0xff] %vm1137_vm2, %v879_v48  ;;  %v134_v48 = vld [vmem:[#allocation3 + $0x338] sm:$0xff]  ;;  %v133_v32 = vld [vmem:[#allocation3 + $0x330] sm:$0xff] }
0x5d4c   :  { %5015 = vpow2.f32 %v2688_v47  ;;  %4510 = vmatprep.mubr.msk.f32.mxu1 %vm267_vm0, %v134_v48 }
0x5d4d   :  { %892 = vmatmul.mubr.f32.gmra.mrb[2].mxu1 %v133_v32 }
0x5d56   :  { %v5016_v33 = vpop.eup %5015 }
0x5d57   :  { %v2690_v34 = vadd.f32 1.0, %v5016_v33 }
0x5d59   :  { %5017 = vrcp.f32 %v2690_v34  ;;  %v2776_v34 = vld [vmem:[#allocation2 + $0x180] sm:$0xff] }
0x5d63   :  { %v5018_v51 = vpop.eup %5017 }
0x5d64   :  { %v2693_v36 = vmul.f32 2.0, %v5018_v51  ;;  %v2695_v44 = vmul.f32 %v5018_v51, %v2673_v24 }
0x5d66   :  { %v4605_v37 = vadd.f32 -1.0, %v2693_v36  ;;  %v5924_v36 = vld [vmem:[%s6322_s2] ss:$0 sm:$0xff] }
0x5d68   :  { %2697 = vrot.lane.b32.xlu0 %v4605_v37, %s5390_s9 }
0x5dda   :  { %v2698_v38 = vpop.permute.xlu0 %2697 }
0x5ddb   :  { %v2700_v39 = vmul.f32 %v5018_v51, %v2698_v38 }
0x5ddd   :  { %2702 = vrot.lane.b32.xlu1 %v2700_v39, %s5391_s10 }
0x5e4f   :  { %v2703_v45 = vpop.permute.xlu1 %2702 }
0x5e50   :  { %v2705_v46 = vadd.f32 %v2703_v45, %v2695_v44 }
0x5e52   :  { %5019 = vtanh.f32 %v2705_v46 }
0x5e5c   :  { %v5020_v49 = vpop.eup %5019 }
0x5e5d   :  { %2708 = vrot.lane.b32.xlu0 %v5020_v49, %s5393_s11 }
0x5ecf   :  { %v2709_v54 = vpop.permute.xlu0 %2708 }
0x5ed0   :  { %v2711_v55 = vmul.f32 %v5018_v51, %v2709_v54 }
0x5ed2   :  { %2715 = vperm.xlu1 %4743, %v2711_v55  }
0x5f51   :  { %v2716_v57 = vpop.permute.xlu1 %2715 }
0x5f52   :  { %v2718_v58 = vmul.f32 %v5802_v42, %v2716_v57 }
0x5f54   :  { %v2719_v59 = vadd.f32 %v2718_v58, %v2712_v56  ;;  %v883_v58 = vpop.f32.mrb[98].mxu0 }
0x5f56   :  { %v2720_v60 = vmul.f32 1.442695, %v2719_v59  ;;  %v884_v59 = vadd.f32 %v5917_v31, %v883_v58 }
0x5f58   :  { %5021 = vpow2.f32 %v2720_v60  ;;  %v885_v60 = vpop.f32.mrb[99].mxu0  ;;  %1187 = vst.msk [vmem:[#allocation2 + $0x188] sm:$0xff] %vm1137_vm2, %v884_v59  ;;  %v136_v59 = vld [vmem:[#allocation3 + $0x348] sm:$0xff] }
0x5f59   :  { %v135_v60 = vld [vmem:[#allocation3 + $0x340] sm:$0xff]  ;;  %4511 = vmatprep.mubr.msk.f32.mxu1 %vm267_vm0, %v136_v59 }
0x5f5a   :  { %897 = vmatmul.mubr.f32.gmra.mrb[4].mxu1 %v135_v60 }
0x5f62   :  { %v5022_v61 = vpop.eup %5021 }
0x5f63   :  { %v2722_v62 = vadd.f32 1.0, %v5022_v61 }
0x5f65   :  { %5023 = vrcp.f32 %v2722_v62 }
0x5f6f   :  { %v5024_v63 = vpop.eup %5023 }
0x5f70   :  { %v2725_v0 = vmul.f32 2.0, %v5024_v63  ;;  %v2727_v6 = vmul.f32 %v5024_v63, %v2705_v46 }
0x5f72   :  { %v4606_v1 = vadd.f32 -1.0, %v2725_v0 }
0x5f74   :  { %2729 = vrot.lane.b32.xlu0 %v4606_v1, %s5390_s9 }
0x5fe6   :  { %v2730_v2 = vpop.permute.xlu0 %2729 }
0x5fe7   :  { %v2732_v3 = vmul.f32 %v5024_v63, %v2730_v2 }
0x5fe9   :  { %2734 = vrot.lane.b32.xlu1 %v2732_v3, %s5391_s10 }
0x605b   :  { %v2735_v7 = vpop.permute.xlu1 %2734 }
0x605c   :  { %v2737_v8 = vadd.f32 %v2735_v7, %v2727_v6 }
0x605e   :  { %5025 = vtanh.f32 %v2737_v8 }
0x6068   :  { %v5026_v9 = vpop.eup %5025 }
0x6069   :  { %2740 = vrot.lane.b32.xlu0 %v5026_v9, %s5393_s11 }
0x60db   :  { %v2741_v13 = vpop.permute.xlu0 %2740 }
0x60dc   :  { %v2743_v14 = vmul.f32 %v5024_v63, %v2741_v13  ;;  %v2808_v63 = vld [vmem:[#allocation2 + $0x188] sm:$0xff] }
0x60de   :  { %2747 = vperm.xlu1 %4743, %v2743_v14  }
0x615d   :  { %v2748_v16 = vpop.permute.xlu1 %2747 }
0x615e   :  { %v2750_v17 = vmul.f32 %v5802_v42, %v2748_v16 }
0x6160   :  { %v2751_v18 = vadd.f32 %v2750_v17, %v2744_v15  ;;  %v888_v17 = vpop.f32.mrb[0].mxu1 }
0x6162   :  { %v2752_v19 = vmul.f32 1.442695, %v2751_v18  ;;  %v889_v18 = vadd.f32 %v5917_v31, %v888_v17 }
0x6164   :  { %5027 = vpow2.f32 %v2752_v19  ;;  %v890_v19 = vpop.f32.mrb[1].mxu1  ;;  %1188 = vst.msk [vmem:[#allocation2 + $0x190] sm:$0xff] %vm1137_vm2, %v889_v18  ;;  %v138_v18 = vld [vmem:[#allocation3 + $0x358] sm:$0xff] }
0x6165   :  { %v137_v19 = vld [vmem:[#allocation3 + $0x350] sm:$0xff]  ;;  %4512 = vmatprep.mubr.msk.f32.mxu1 %vm267_vm0, %v138_v18 }
0x6166   :  { %902 = vmatmul.mubr.f32.gmra.mrb[6].mxu1 %v137_v19 }
0x616e   :  { %v5028_v20 = vpop.eup %5027 }
0x616f   :  { %v2754_v21 = vadd.f32 1.0, %v5028_v20 }
0x6171   :  { %5029 = vrcp.f32 %v2754_v21 }
0x617b   :  { %v5030_v22 = vpop.eup %5029 }
0x617c   :  { %v2757_v23 = vmul.f32 2.0, %v5030_v22  ;;  %v2759_v42 = vmul.f32 %v5030_v22, %v2737_v8 }
0x617e   :  { %v4607_v24 = vadd.f32 -1.0, %v2757_v23 }
0x6180   :  { %2761 = vrot.lane.b32.xlu0 %v4607_v24, %s5390_s9 }
0x61f2   :  { %v2762_v35 = vpop.permute.xlu0 %2761 }
0x61f3   :  { %v2764_v25 = vmul.f32 %v5030_v22, %v2762_v35 }
0x61f5   :  { %2766 = vrot.lane.b32.xlu1 %v2764_v25, %s5391_s10 }
0x6267   :  { %v2767_v28 = vpop.permute.xlu1 %2766 }
0x6268   :  { %v2769_v40 = vadd.f32 %v2767_v28, %v2759_v42 }
0x626a   :  { %5031 = vtanh.f32 %v2769_v40 }
0x6274   :  { %v5032_v29 = vpop.eup %5031 }
0x6275   :  { %2772 = vrot.lane.b32.xlu0 %v5032_v29, %s5393_s11 }
0x62e7   :  { %v2773_v47 = vpop.permute.xlu0 %2772 }
0x62e8   :  { %v2775_v33 = vmul.f32 %v5030_v22, %v2773_v47  ;;  %v2840_v22 = vld [vmem:[#allocation2 + $0x190] sm:$0xff] }
0x62ea   :  { %2779 = vperm.xlu1 %4743, %v2775_v33  }
0x6369   :  { %v2780_v51 = vpop.permute.xlu1 %2779 }
0x636a   :  { %v2782_v37 = vmul.f32 %v5924_v36, %v2780_v51 }
0x636c   :  { %v2783_v38 = vadd.f32 %v2782_v37, %v2776_v34  ;;  %v893_v37 = vpop.f32.mrb[2].mxu1 }
0x636e   :  { %v2784_v39 = vmul.f32 1.442695, %v2783_v38  ;;  %v894_v38 = vadd.f32 %v5917_v31, %v893_v37 }
0x6370   :  { %5033 = vpow2.f32 %v2784_v39  ;;  %v895_v39 = vpop.f32.mrb[3].mxu1  ;;  %1189 = vst.msk [vmem:[#allocation2 + $0x198] sm:$0xff] %vm1137_vm2, %v894_v38  ;;  %v140_v38 = vld [vmem:[#allocation3 + $0x368] sm:$0xff] }
0x6371   :  { %v139_v39 = vld [vmem:[#allocation3 + $0x360] sm:$0xff]  ;;  %4513 = vmatprep.mubr.msk.f32.mxu1 %vm267_vm0, %v140_v38 }
0x6372   :  { %907 = vmatmul.mubr.f32.gmra.mrb[8].mxu1 %v139_v39 }
0x637a   :  { %v5034_v41 = vpop.eup %5033 }
0x637b   :  { %v2786_v43 = vadd.f32 1.0, %v5034_v41 }
0x637d   :  { %5035 = vrcp.f32 %v2786_v43 }
0x6387   :  { %v5036_v44 = vpop.eup %5035 }
0x6388   :  { %v2789_v45 = vmul.f32 2.0, %v5036_v44  ;;  %v2791_v54 = vmul.f32 %v5036_v44, %v2769_v40 }
0x638a   :  { %v4608_v46 = vadd.f32 -1.0, %v2789_v45 }
0x638c   :  { %2793 = vrot.lane.b32.xlu0 %v4608_v46, %s5390_s9 }
0x63fe   :  { %v2794_v49 = vpop.permute.xlu0 %2793 }
0x63ff   :  { %v2796_v50 = vmul.f32 %v5036_v44, %v2794_v49 }
0x6401   :  { %2798 = vrot.lane.b32.xlu1 %v2796_v50, %s5391_s10 }
0x6473   :  { %v2799_v55 = vpop.permute.xlu1 %2798 }
0x6474   :  { %v2801_v56 = vadd.f32 %v2799_v55, %v2791_v54 }
0x6476   :  { %5037 = vtanh.f32 %v2801_v56 }
0x6480   :  { %v5038_v57 = vpop.eup %5037 }
0x6481   :  { %2804 = vrot.lane.b32.xlu0 %v5038_v57, %s5393_s11 }
0x64f3   :  { %v2805_v61 = vpop.permute.xlu0 %2804 }
0x64f4   :  { %v2807_v62 = vmul.f32 %v5036_v44, %v2805_v61  ;;  %v2872_v44 = vld [vmem:[#allocation2 + $0x198] sm:$0xff] }
0x64f6   :  { %2811 = vperm.xlu1 %4743, %v2807_v62  }
0x6575   :  { %v2812_v0 = vpop.permute.xlu1 %2811 }
0x6576   :  { %v2814_v1 = vmul.f32 %v5924_v36, %v2812_v0 }
0x6578   :  { %v2815_v2 = vadd.f32 %v2814_v1, %v2808_v63  ;;  %v898_v1 = vpop.f32.mrb[4].mxu1 }
0x657a   :  { %v2816_v3 = vmul.f32 1.442695, %v2815_v2  ;;  %v899_v2 = vadd.f32 %v5917_v31, %v898_v1 }
0x657c   :  { %5039 = vpow2.f32 %v2816_v3  ;;  %v900_v3 = vpop.f32.mrb[5].mxu1  ;;  %1190 = vst.msk [vmem:[#allocation2 + $0x1a0] sm:$0xff] %vm1137_vm2, %v899_v2  ;;  %v142_v2 = vld [vmem:[#allocation3 + $0x378] sm:$0xff] }
0x657d   :  { %v141_v3 = vld [vmem:[#allocation3 + $0x370] sm:$0xff]  ;;  %4514 = vmatprep.mubr.msk.f32.mxu1 %vm267_vm0, %v142_v2 }
0x657e   :  { %912 = vmatmul.mubr.f32.gmra.mrb[10].mxu1 %v141_v3 }
0x6586   :  { %v5040_v4 = vpop.eup %5039 }
0x6587   :  { %v2818_v5 = vadd.f32 1.0, %v5040_v4 }
0x6589   :  { %5041 = vrcp.f32 %v2818_v5 }
0x6593   :  { %v5042_v6 = vpop.eup %5041 }
0x6594   :  { %v2821_v7 = vmul.f32 2.0, %v5042_v6  ;;  %v2823_v13 = vmul.f32 %v5042_v6, %v2801_v56 }
0x6596   :  { %v4609_v8 = vadd.f32 -1.0, %v2821_v7 }
0x6598   :  { %2825 = vrot.lane.b32.xlu0 %v4609_v8, %s5390_s9 }
0x660a   :  { %v2826_v9 = vpop.permute.xlu0 %2825 }
0x660b   :  { %v2828_v10 = vmul.f32 %v5042_v6, %v2826_v9 }
0x660d   :  { %2830 = vrot.lane.b32.xlu1 %v2828_v10, %s5391_s10 }
0x667f   :  { %v2831_v14 = vpop.permute.xlu1 %2830 }
0x6680   :  { %v2833_v15 = vadd.f32 %v2831_v14, %v2823_v13 }
0x6682   :  { %5043 = vtanh.f32 %v2833_v15 }
0x668c   :  { %v5044_v16 = vpop.eup %5043 }
0x668d   :  { %2836 = vrot.lane.b32.xlu0 %v5044_v16, %s5393_s11 }
0x66ff   :  { %v2837_v20 = vpop.permute.xlu0 %2836 }
0x6700   :  { %v2839_v21 = vmul.f32 %v5042_v6, %v2837_v20  ;;  %v2904_v6 = vld [vmem:[#allocation2 + $0x1a0] sm:$0xff] }
0x6702   :  { %2843 = vperm.xlu1 %4743, %v2839_v21  }
0x6781   :  { %v2844_v23 = vpop.permute.xlu1 %2843 }
0x6782   :  { %v2846_v24 = vmul.f32 %v5924_v36, %v2844_v23 }
0x6784   :  { %v2847_v35 = vadd.f32 %v2846_v24, %v2840_v22  ;;  %v903_v24 = vpop.f32.mrb[6].mxu1 }
0x6786   :  { %v2848_v25 = vmul.f32 1.442695, %v2847_v35  ;;  %v904_v35 = vadd.f32 %v5917_v31, %v903_v24 }
0x6788   :  { %5045 = vpow2.f32 %v2848_v25  ;;  %v905_v25 = vpop.f32.mrb[7].mxu1  ;;  %1191 = vst.msk [vmem:[#allocation2 + $0x1a8] sm:$0xff] %vm1137_vm2, %v904_v35  ;;  %v144_v35 = vld [vmem:[#allocation3 + $0x388] sm:$0xff] }
0x6789   :  { %v143_v25 = vld [vmem:[#allocation3 + $0x380] sm:$0xff]  ;;  %4515 = vmatprep.mubr.msk.f32.mxu1 %vm267_vm0, %v144_v35 }
0x678a   :  { %917 = vmatmul.mubr.f32.gmra.mrb[12].mxu1 %v143_v25 }
0x6792   :  { %v5046_v26 = vpop.eup %5045 }
0x6793   :  { %v2850_v27 = vadd.f32 1.0, %v5046_v26 }
0x6795   :  { %5047 = vrcp.f32 %v2850_v27 }
0x679f   :  { %v5048_v42 = vpop.eup %5047 }
0x67a0   :  { %v2853_v28 = vmul.f32 2.0, %v5048_v42  ;;  %v2855_v47 = vmul.f32 %v5048_v42, %v2833_v15 }
0x67a2   :  { %v4610_v40 = vadd.f32 -1.0, %v2853_v28 }
0x67a4   :  { %2857 = vrot.lane.b32.xlu0 %v4610_v40, %s5390_s9 }
0x6816   :  { %v2858_v29 = vpop.permute.xlu0 %2857 }
0x6817   :  { %v2860_v30 = vmul.f32 %v5048_v42, %v2858_v29 }
0x6819   :  { %2862 = vrot.lane.b32.xlu1 %v2860_v30, %s5391_s10 }
0x688b   :  { %v2863_v33 = vpop.permute.xlu1 %2862 }
0x688c   :  { %v2865_v34 = vadd.f32 %v2863_v33, %v2855_v47 }
0x688e   :  { %5049 = vtanh.f32 %v2865_v34 }
0x6898   :  { %v5050_v51 = vpop.eup %5049 }
0x6899   :  { %2868 = vrot.lane.b32.xlu0 %v5050_v51, %s5393_s11 }
0x690b   :  { %v2869_v41 = vpop.permute.xlu0 %2868 }
0x690c   :  { %v2871_v43 = vmul.f32 %v5048_v42, %v2869_v41  ;;  %v2936_v42 = vld [vmem:[#allocation2 + $0x1a8] sm:$0xff] }
0x690e   :  { %2875 = vperm.xlu1 %4743, %v2871_v43  }
0x698d   :  { %v2876_v45 = vpop.permute.xlu1 %2875 }
0x698e   :  { %v2878_v46 = vmul.f32 %v5924_v36, %v2876_v45 }
0x6990   :  { %v2879_v49 = vadd.f32 %v2878_v46, %v2872_v44  ;;  %v908_v46 = vpop.f32.mrb[8].mxu1 }
0x6992   :  { %v2880_v50 = vmul.f32 1.442695, %v2879_v49  ;;  %v909_v49 = vadd.f32 %v5917_v31, %v908_v46 }
0x6994   :  { %5051 = vpow2.f32 %v2880_v50  ;;  %v910_v50 = vpop.f32.mrb[9].mxu1  ;;  %1192 = vst.msk [vmem:[#allocation2 + $0x1b0] sm:$0xff] %vm1137_vm2, %v909_v49  ;;  %v146_v49 = vld [vmem:[#allocation3 + $0x398] sm:$0xff] }
0x6995   :  { %v145_v50 = vld [vmem:[#allocation3 + $0x390] sm:$0xff]  ;;  %4516 = vmatprep.mubr.msk.f32.mxu1 %vm267_vm0, %v146_v49 }
0x6996   :  { %922 = vmatmul.mubr.f32.gmra.mrb[14].mxu1 %v145_v50 }
0x699e   :  { %v5052_v52 = vpop.eup %5051 }
0x699f   :  { %v2882_v53 = vadd.f32 1.0, %v5052_v52 }
0x69a1   :  { %5053 = vrcp.f32 %v2882_v53 }
0x69ab   :  { %v5054_v54 = vpop.eup %5053 }
0x69ac   :  { %v2885_v55 = vmul.f32 2.0, %v5054_v54  ;;  %v2887_v61 = vmul.f32 %v5054_v54, %v2865_v34 }
0x69ae   :  { %v4611_v56 = vadd.f32 -1.0, %v2885_v55 }
0x69b0   :  { %2889 = vrot.lane.b32.xlu0 %v4611_v56, %s5390_s9 }
0x6a22   :  { %v2890_v57 = vpop.permute.xlu0 %2889 }
0x6a23   :  { %v2892_v58 = vmul.f32 %v5054_v54, %v2890_v57 }
0x6a25   :  { %2894 = vrot.lane.b32.xlu1 %v2892_v58, %s5391_s10 }
0x6a97   :  { %v2895_v62 = vpop.permute.xlu1 %2894 }
0x6a98   :  { %v2897_v63 = vadd.f32 %v2895_v62, %v2887_v61 }
0x6a9a   :  { %5055 = vtanh.f32 %v2897_v63 }
0x6aa4   :  { %v5056_v0 = vpop.eup %5055 }
0x6aa5   :  { %2900 = vrot.lane.b32.xlu0 %v5056_v0, %s5393_s11 }
0x6b17   :  { %v2901_v4 = vpop.permute.xlu0 %2900 }
0x6b18   :  { %v2903_v5 = vmul.f32 %v5054_v54, %v2901_v4  ;;  %v2968_v54 = vld [vmem:[#allocation2 + $0x1b0] sm:$0xff] }
0x6b1a   :  { %2907 = vperm.xlu1 %4743, %v2903_v5  }
0x6b99   :  { %v2908_v7 = vpop.permute.xlu1 %2907 }
0x6b9a   :  { %v2910_v8 = vmul.f32 %v5924_v36, %v2908_v7 }
0x6b9c   :  { %v2911_v9 = vadd.f32 %v2910_v8, %v2904_v6  ;;  %v913_v8 = vpop.f32.mrb[10].mxu1 }
0x6b9e   :  { %v2912_v10 = vmul.f32 1.442695, %v2911_v9  ;;  %v914_v9 = vadd.f32 %v5917_v31, %v913_v8 }
0x6ba0   :  { %5057 = vpow2.f32 %v2912_v10  ;;  %v915_v10 = vpop.f32.mrb[11].mxu1  ;;  %1193 = vst.msk [vmem:[#allocation2 + $0x1b8] sm:$0xff] %vm1137_vm2, %v914_v9  ;;  %v148_v9 = vld [vmem:[#allocation3 + $0x3a8] sm:$0xff] }
0x6ba1   :  { %v147_v10 = vld [vmem:[#allocation3 + $0x3a0] sm:$0xff]  ;;  %4517 = vmatprep.mubr.msk.f32.mxu1 %vm267_vm0, %v148_v9 }
0x6ba2   :  { %927 = vmatmul.mubr.f32.gmra.mrb[16].mxu1 %v147_v10 }
0x6baa   :  { %v5058_v11 = vpop.eup %5057 }
0x6bab   :  { %v2914_v12 = vadd.f32 1.0, %v5058_v11 }
0x6bad   :  { %5059 = vrcp.f32 %v2914_v12 }
0x6bb7   :  { %v5060_v13 = vpop.eup %5059 }
0x6bb8   :  { %v2917_v14 = vmul.f32 2.0, %v5060_v13  ;;  %v2919_v20 = vmul.f32 %v5060_v13, %v2897_v63 }
0x6bba   :  { %v4612_v15 = vadd.f32 -1.0, %v2917_v14 }
0x6bbc   :  { %2921 = vrot.lane.b32.xlu0 %v4612_v15, %s5390_s9 }
0x6c2e   :  { %v2922_v16 = vpop.permute.xlu0 %2921 }
0x6c2f   :  { %v2924_v17 = vmul.f32 %v5060_v13, %v2922_v16 }
0x6c31   :  { %2926 = vrot.lane.b32.xlu1 %v2924_v17, %s5391_s10 }
0x6ca3   :  { %v2927_v21 = vpop.permute.xlu1 %2926 }
0x6ca4   :  { %v2929_v22 = vadd.f32 %v2927_v21, %v2919_v20 }
0x6ca6   :  { %5061 = vtanh.f32 %v2929_v22 }
0x6cb0   :  { %v5062_v23 = vpop.eup %5061 }
0x6cb1   :  { %2932 = vrot.lane.b32.xlu0 %v5062_v23, %s5393_s11 }
0x6d23   :  { %v2933_v26 = vpop.permute.xlu0 %2932 }
0x6d24   :  { %v2935_v27 = vmul.f32 %v5060_v13, %v2933_v26  ;;  %v3000_v13 = vld [vmem:[#allocation2 + $0x1b8] sm:$0xff] }
0x6d26   :  { %2939 = vperm.xlu1 %4743, %v2935_v27  }
0x6da5   :  { %v2940_v28 = vpop.permute.xlu1 %2939 }
0x6da6   :  { %v2942_v40 = vmul.f32 %v5924_v36, %v2940_v28 }
0x6da8   :  { %v2943_v29 = vadd.f32 %v2942_v40, %v2936_v42  ;;  %v918_v40 = vpop.f32.mrb[12].mxu1 }
0x6daa   :  { %v2944_v30 = vmul.f32 1.442695, %v2943_v29  ;;  %v919_v29 = vadd.f32 %v5917_v31, %v918_v40 }
0x6dac   :  { %5063 = vpow2.f32 %v2944_v30  ;;  %v920_v30 = vpop.f32.mrb[13].mxu1  ;;  %1194 = vst.msk [vmem:[#allocation2 + $0x1c0] sm:$0xff] %vm1137_vm2, %v919_v29  ;;  %v150_v29 = vld [vmem:[#allocation3 + $0x3b8] sm:$0xff] }
0x6dad   :  { %v149_v30 = vld [vmem:[#allocation3 + $0x3b0] sm:$0xff]  ;;  %4518 = vmatprep.mubr.msk.f32.mxu1 %vm267_vm0, %v150_v29 }
0x6dae   :  { %932 = vmatmul.mubr.f32.gmra.mrb[18].mxu1 %v149_v30 }
0x6db6   :  { %v5064_v48 = vpop.eup %5063 }
0x6db7   :  { %v2946_v32 = vadd.f32 1.0, %v5064_v48 }
0x6db9   :  { %5065 = vrcp.f32 %v2946_v32 }
0x6dc3   :  { %v5066_v47 = vpop.eup %5065 }
0x6dc4   :  { %v2949_v33 = vmul.f32 2.0, %v5066_v47  ;;  %v2951_v41 = vmul.f32 %v5066_v47, %v2929_v22 }
0x6dc6   :  { %v4613_v34 = vadd.f32 -1.0, %v2949_v33 }
0x6dc8   :  { %2953 = vrot.lane.b32.xlu0 %v4613_v34, %s5390_s9 }
0x6e3a   :  { %v2954_v51 = vpop.permute.xlu0 %2953 }
0x6e3b   :  { %v2956_v37 = vmul.f32 %v5066_v47, %v2954_v51 }
0x6e3d   :  { %2958 = vrot.lane.b32.xlu1 %v2956_v37, %s5391_s10 }
0x6eaf   :  { %v2959_v43 = vpop.permute.xlu1 %2958 }
0x6eb0   :  { %v2961_v44 = vadd.f32 %v2959_v43, %v2951_v41 }
0x6eb2   :  { %5067 = vtanh.f32 %v2961_v44 }
0x6ebc   :  { %v5068_v45 = vpop.eup %5067 }
0x6ebd   :  { %2964 = vrot.lane.b32.xlu0 %v5068_v45, %s5393_s11 }
0x6f2f   :  { %v2965_v52 = vpop.permute.xlu0 %2964 }
0x6f30   :  { %v2967_v53 = vmul.f32 %v5066_v47, %v2965_v52  ;;  %v3032_v47 = vld [vmem:[#allocation2 + $0x1c0] sm:$0xff] }
0x6f32   :  { %2971 = vperm.xlu1 %4743, %v2967_v53  }
0x6fb1   :  { %v2972_v55 = vpop.permute.xlu1 %2971 }
0x6fb2   :  { %v2974_v56 = vmul.f32 %v5924_v36, %v2972_v55 }
0x6fb4   :  { %v2975_v57 = vadd.f32 %v2974_v56, %v2968_v54  ;;  %v923_v56 = vpop.f32.mrb[14].mxu1 }
0x6fb6   :  { %v2976_v58 = vmul.f32 1.442695, %v2975_v57  ;;  %v924_v57 = vadd.f32 %v5917_v31, %v923_v56 }
0x6fb8   :  { %5069 = vpow2.f32 %v2976_v58  ;;  %v925_v58 = vpop.f32.mrb[15].mxu1  ;;  %1195 = vst.msk [vmem:[#allocation2 + $0x1c8] sm:$0xff] %vm1137_vm2, %v924_v57  ;;  %v152_v57 = vld [vmem:[#allocation3 + $0x3c8] sm:$0xff] }
0x6fb9   :  { %v151_v58 = vld [vmem:[#allocation3 + $0x3c0] sm:$0xff]  ;;  %4519 = vmatprep.mubr.msk.f32.mxu1 %vm267_vm0, %v152_v57 }
0x6fba   :  { %937 = vmatmul.mubr.f32.gmra.mrb[20].mxu1 %v151_v58 }
0x6fc2   :  { %v5070_v59 = vpop.eup %5069 }
0x6fc3   :  { %v2978_v60 = vadd.f32 1.0, %v5070_v59 }
0x6fc5   :  { %5071 = vrcp.f32 %v2978_v60 }
0x6fcf   :  { %v5072_v61 = vpop.eup %5071 }
0x6fd0   :  { %v2981_v62 = vmul.f32 2.0, %v5072_v61  ;;  %v2983_v4 = vmul.f32 %v5072_v61, %v2961_v44 }
0x6fd2   :  { %v4614_v63 = vadd.f32 -1.0, %v2981_v62 }
0x6fd4   :  { %2985 = vrot.lane.b32.xlu0 %v4614_v63, %s5390_s9 }
0x7046   :  { %v2986_v0 = vpop.permute.xlu0 %2985 }
0x7047   :  { %v2988_v1 = vmul.f32 %v5072_v61, %v2986_v0 }
0x7049   :  { %2990 = vrot.lane.b32.xlu1 %v2988_v1, %s5391_s10 }
0x70bb   :  { %v2991_v5 = vpop.permute.xlu1 %2990 }
0x70bc   :  { %v2993_v6 = vadd.f32 %v2991_v5, %v2983_v4 }
0x70be   :  { %5073 = vtanh.f32 %v2993_v6 }
0x70c8   :  { %v5074_v7 = vpop.eup %5073 }
0x70c9   :  { %2996 = vrot.lane.b32.xlu0 %v5074_v7, %s5393_s11 }
0x713b   :  { %v2997_v11 = vpop.permute.xlu0 %2996 }
0x713c   :  { %v2999_v12 = vmul.f32 %v5072_v61, %v2997_v11  ;;  %v3064_v61 = vld [vmem:[#allocation2 + $0x1c8] sm:$0xff] }
0x713e   :  { %3003 = vperm.xlu1 %4743, %v2999_v12  }
0x71bd   :  { %v3004_v14 = vpop.permute.xlu1 %3003 }
0x71be   :  { %v3006_v15 = vmul.f32 %v5924_v36, %v3004_v14 }
0x71c0   :  { %v3007_v16 = vadd.f32 %v3006_v15, %v3000_v13  ;;  %v928_v15 = vpop.f32.mrb[16].mxu1 }
0x71c2   :  { %v3008_v17 = vmul.f32 1.442695, %v3007_v16  ;;  %v929_v16 = vadd.f32 %v5917_v31, %v928_v15 }
0x71c4   :  { %5075 = vpow2.f32 %v3008_v17  ;;  %v930_v17 = vpop.f32.mrb[17].mxu1  ;;  %1196 = vst.msk [vmem:[#allocation2 + $0x1d0] sm:$0xff] %vm1137_vm2, %v929_v16  ;;  %v154_v16 = vld [vmem:[#allocation3 + $0x3d8] sm:$0xff] }
0x71c5   :  { %v153_v17 = vld [vmem:[#allocation3 + $0x3d0] sm:$0xff]  ;;  %4520 = vmatprep.mubr.msk.f32.mxu1 %vm267_vm0, %v154_v16 }
0x71c6   :  { %942 = vmatmul.mubr.f32.gmra.mrb[22].mxu1 %v153_v17 }
0x71ce   :  { %v5076_v18 = vpop.eup %5075 }
0x71cf   :  { %v3010_v19 = vadd.f32 1.0, %v5076_v18 }
0x71d1   :  { %5077 = vrcp.f32 %v3010_v19 }
0x71db   :  { %v5078_v20 = vpop.eup %5077 }
0x71dc   :  { %v3013_v21 = vmul.f32 2.0, %v5078_v20  ;;  %v3015_v26 = vmul.f32 %v5078_v20, %v2993_v6 }
0x71de   :  { %v4615_v22 = vadd.f32 -1.0, %v3013_v21 }
0x71e0   :  { %3017 = vrot.lane.b32.xlu0 %v4615_v22, %s5390_s9 }
0x7252   :  { %v3018_v23 = vpop.permute.xlu0 %3017 }
0x7253   :  { %v3020_v24 = vmul.f32 %v5078_v20, %v3018_v23 }
0x7255   :  { %3022 = vrot.lane.b32.xlu1 %v3020_v24, %s5391_s10 }
0x72c7   :  { %v3023_v27 = vpop.permute.xlu1 %3022 }
0x72c8   :  { %v3025_v42 = vadd.f32 %v3023_v27, %v3015_v26 }
0x72ca   :  { %5079 = vtanh.f32 %v3025_v42 }
0x72d4   :  { %v5080_v28 = vpop.eup %5079 }
0x72d5   :  { %3028 = vrot.lane.b32.xlu0 %v5080_v28, %s5393_s11 }
0x7347   :  { %v3029_v48 = vpop.permute.xlu0 %3028 }
0x7348   :  { %v3031_v32 = vmul.f32 %v5078_v20, %v3029_v48  ;;  %v3096_v20 = vld [vmem:[#allocation2 + $0x1d0] sm:$0xff] }
0x734a   :  { %3035 = vperm.xlu1 %4743, %v3031_v32  }
0x73c9   :  { %v3036_v33 = vpop.permute.xlu1 %3035 }
0x73ca   :  { %v3038_v34 = vmul.f32 %v5924_v36, %v3036_v33 }
0x73cc   :  { %v3039_v51 = vadd.f32 %v3038_v34, %v3032_v47  ;;  %v933_v34 = vpop.f32.mrb[18].mxu1 }
0x73ce   :  { %v3040_v37 = vmul.f32 1.442695, %v3039_v51  ;;  %v934_v51 = vadd.f32 %v5917_v31, %v933_v34 }
0x73d0   :  { %5081 = vpow2.f32 %v3040_v37  ;;  %v935_v37 = vpop.f32.mrb[19].mxu1  ;;  %1197 = vst.msk [vmem:[#allocation2 + $0x1d8] sm:$0xff] %vm1137_vm2, %v934_v51  ;;  %v156_v51 = vld [vmem:[#allocation3 + $0x3e8] sm:$0xff] }
0x73d1   :  { %v155_v37 = vld [vmem:[#allocation3 + $0x3e0] sm:$0xff]  ;;  %4521 = vmatprep.mubr.msk.f32.mxu1 %vm267_vm0, %v156_v51 }
0x73d2   :  { %947 = vmatmul.mubr.f32.gmra.mrb[24].mxu1 %v155_v37 }
0x73da   :  { %v5082_v38 = vpop.eup %5081 }
0x73db   :  { %v3042_v39 = vadd.f32 1.0, %v5082_v38 }
0x73dd   :  { %5083 = vrcp.f32 %v3042_v39 }
0x73e7   :  { %v5084_v41 = vpop.eup %5083 }
0x73e8   :  { %v3045_v43 = vmul.f32 2.0, %v5084_v41  ;;  %v3047_v52 = vmul.f32 %v5084_v41, %v3025_v42 }
0x73ea   :  { %v4616_v44 = vadd.f32 -1.0, %v3045_v43 }
0x73ec   :  { %3049 = vrot.lane.b32.xlu0 %v4616_v44, %s5390_s9 }
0x745e   :  { %v3050_v45 = vpop.permute.xlu0 %3049 }
0x745f   :  { %v3052_v46 = vmul.f32 %v5084_v41, %v3050_v45 }
0x7461   :  { %3054 = vrot.lane.b32.xlu1 %v3052_v46, %s5391_s10 }
0x74d3   :  { %v3055_v53 = vpop.permute.xlu1 %3054 }
0x74d4   :  { %v3057_v54 = vadd.f32 %v3055_v53, %v3047_v52 }
0x74d6   :  { %5085 = vtanh.f32 %v3057_v54 }
0x74e0   :  { %v5086_v55 = vpop.eup %5085 }
0x74e1   :  { %3060 = vrot.lane.b32.xlu0 %v5086_v55, %s5393_s11 }
0x7553   :  { %v3061_v59 = vpop.permute.xlu0 %3060 }
0x7554   :  { %v3063_v60 = vmul.f32 %v5084_v41, %v3061_v59  ;;  %v3128_v41 = vld [vmem:[#allocation2 + $0x1d8] sm:$0xff] }
0x7556   :  { %3067 = vperm.xlu1 %4743, %v3063_v60  }
0x75d5   :  { %v3068_v62 = vpop.permute.xlu1 %3067 }
0x75d6   :  { %v3070_v63 = vmul.f32 %v5924_v36, %v3068_v62 }
0x75d8   :  { %v3071_v0 = vadd.f32 %v3070_v63, %v3064_v61  ;;  %v938_v63 = vpop.f32.mrb[20].mxu1 }
0x75da   :  { %v3072_v1 = vmul.f32 1.442695, %v3071_v0  ;;  %v939_v0 = vadd.f32 %v5917_v31, %v938_v63 }
0x75dc   :  { %5087 = vpow2.f32 %v3072_v1  ;;  %v940_v1 = vpop.f32.mrb[21].mxu1  ;;  %1198 = vst.msk [vmem:[#allocation2 + $0x1e0] sm:$0xff] %vm1137_vm2, %v939_v0  ;;  %v158_v0 = vld [vmem:[#allocation3 + $0x3f8] sm:$0xff] }
0x75dd   :  { %v157_v1 = vld [vmem:[#allocation3 + $0x3f0] sm:$0xff]  ;;  %4522 = vmatprep.mubr.msk.f32.mxu1 %vm267_vm0, %v158_v0 }
0x75de   :  { %952 = vmatmul.mubr.f32.gmra.mrb[26].mxu1 %v157_v1 }
0x75e6   :  { %v5088_v2 = vpop.eup %5087 }
0x75e7   :  { %v3074_v3 = vadd.f32 1.0, %v5088_v2 }
0x75e9   :  { %5089 = vrcp.f32 %v3074_v3 }
0x75f3   :  { %v5090_v4 = vpop.eup %5089 }
0x75f4   :  { %v3077_v5 = vmul.f32 2.0, %v5090_v4  ;;  %v3079_v11 = vmul.f32 %v5090_v4, %v3057_v54 }
0x75f6   :  { %v4617_v6 = vadd.f32 -1.0, %v3077_v5 }
0x75f8   :  { %3081 = vrot.lane.b32.xlu0 %v4617_v6, %s5390_s9 }
0x766a   :  { %v3082_v7 = vpop.permute.xlu0 %3081 }
0x766b   :  { %v3084_v8 = vmul.f32 %v5090_v4, %v3082_v7 }
0x766d   :  { %3086 = vrot.lane.b32.xlu1 %v3084_v8, %s5391_s10 }
0x76df   :  { %v3087_v12 = vpop.permute.xlu1 %3086 }
0x76e0   :  { %v3089_v13 = vadd.f32 %v3087_v12, %v3079_v11 }
0x76e2   :  { %5091 = vtanh.f32 %v3089_v13 }
0x76ec   :  { %v5092_v14 = vpop.eup %5091 }
0x76ed   :  { %3092 = vrot.lane.b32.xlu0 %v5092_v14, %s5393_s11 }
0x775f   :  { %v3093_v18 = vpop.permute.xlu0 %3092 }
0x7760   :  { %v3095_v19 = vmul.f32 %v5090_v4, %v3093_v18  ;;  %v3160_v4 = vld [vmem:[#allocation2 + $0x1e0] sm:$0xff] }
0x7762   :  { %3099 = vperm.xlu1 %4743, %v3095_v19  }
0x77e1   :  { %v3100_v21 = vpop.permute.xlu1 %3099 }
0x77e2   :  { %v3102_v22 = vmul.f32 %v5924_v36, %v3100_v21 }
0x77e4   :  { %v3103_v23 = vadd.f32 %v3102_v22, %v3096_v20  ;;  %v943_v22 = vpop.f32.mrb[22].mxu1 }
0x77e6   :  { %v3104_v24 = vmul.f32 1.442695, %v3103_v23  ;;  %v944_v23 = vadd.f32 %v5917_v31, %v943_v22  ;;  %v160_v22 = vld [vmem:[#allocation3 + $0x408] sm:$0xff] }
0x77e7   :  { %4523 = vmatprep.mubr.msk.f32.mxu1 %vm267_vm0, %v160_v22 }
0x77e8   :  { %5093 = vpow2.f32 %v3104_v24  ;;  %v945_v24 = vpop.f32.mrb[23].mxu1  ;;  %1199 = vst.msk [vmem:[#allocation2 + $0x1e8] sm:$0xff] %vm1137_vm2, %v944_v23  ;;  %v159_v23 = vld [vmem:[#allocation3 + $0x400] sm:$0xff] }
0x77e9   :  { %957 = vmatmul.mubr.f32.gmra.mrb[28].mxu1 %v159_v23 }
0x77f2   :  { %v5094_v35 = vpop.eup %5093 }
0x77f3   :  { %v3106_v25 = vadd.f32 1.0, %v5094_v35 }
0x77f5   :  { %5095 = vrcp.f32 %v3106_v25 }
0x77ff   :  { %v5096_v26 = vpop.eup %5095 }
0x7800   :  { %v3109_v27 = vmul.f32 2.0, %v5096_v26  ;;  %v3111_v48 = vmul.f32 %v5096_v26, %v3089_v13 }
0x7802   :  { %v4618_v42 = vadd.f32 -1.0, %v3109_v27 }
0x7804   :  { %3113 = vrot.lane.b32.xlu0 %v4618_v42, %s5390_s9 }
0x7876   :  { %v3114_v28 = vpop.permute.xlu0 %3113 }
0x7877   :  { %v3116_v40 = vmul.f32 %v5096_v26, %v3114_v28 }
0x7879   :  { %3118 = vrot.lane.b32.xlu1 %v3116_v40, %s5391_s10 }
0x78eb   :  { %v3119_v32 = vpop.permute.xlu1 %3118 }
0x78ec   :  { %v3121_v47 = vadd.f32 %v3119_v32, %v3111_v48 }
0x78ee   :  { %5097 = vtanh.f32 %v3121_v47 }
0x78f8   :  { %v5098_v33 = vpop.eup %5097 }
0x78f9   :  { %3124 = vrot.lane.b32.xlu0 %v5098_v33, %s5393_s11 }
0x796b   :  { %v3125_v38 = vpop.permute.xlu0 %3124 }
0x796c   :  { %v3127_v39 = vmul.f32 %v5096_v26, %v3125_v38  ;;  %v3192_v26 = vld [vmem:[#allocation2 + $0x1e8] sm:$0xff] }
0x796e   :  { %3131 = vperm.xlu1 %4743, %v3127_v39  }
0x79ed   :  { %v3132_v43 = vpop.permute.xlu1 %3131 }
0x79ee   :  { %v3134_v44 = vmul.f32 %v5924_v36, %v3132_v43 }
0x79f0   :  { %v3135_v45 = vadd.f32 %v3134_v44, %v3128_v41  ;;  %v948_v44 = vpop.f32.mrb[24].mxu1 }
0x79f2   :  { %v3136_v46 = vmul.f32 1.442695, %v3135_v45  ;;  %v949_v45 = vadd.f32 %v5917_v31, %v948_v44 }
0x79f4   :  { %5099 = vpow2.f32 %v3136_v46  ;;  %v950_v46 = vpop.f32.mrb[25].mxu1  ;;  %1200 = vst.msk [vmem:[#allocation2 + $0x1f0] sm:$0xff] %vm1137_vm2, %v949_v45  ;;  %v162_v45 = vld [vmem:[#allocation3 + $0x418] sm:$0xff] }
0x79f5   :  { %v161_v46 = vld [vmem:[#allocation3 + $0x410] sm:$0xff]  ;;  %4524 = vmatprep.mubr.msk.f32.mxu1 %vm267_vm0, %v162_v45 }
0x79f6   :  { %962 = vmatmul.mubr.f32.gmra.mrb[30].mxu1 %v161_v46 }
0x79fe   :  { %v5100_v49 = vpop.eup %5099 }
0x79ff   :  { %v3138_v50 = vadd.f32 1.0, %v5100_v49 }
0x7a01   :  { %5101 = vrcp.f32 %v3138_v50 }
0x7a0b   :  { %v5102_v52 = vpop.eup %5101 }
0x7a0c   :  { %v3141_v53 = vmul.f32 2.0, %v5102_v52  ;;  %v3143_v59 = vmul.f32 %v5102_v52, %v3121_v47 }
0x7a0e   :  { %v4619_v54 = vadd.f32 -1.0, %v3141_v53 }
0x7a10   :  { %3145 = vrot.lane.b32.xlu0 %v4619_v54, %s5390_s9 }
0x7a82   :  { %v3146_v55 = vpop.permute.xlu0 %3145 }
0x7a83   :  { %v3148_v56 = vmul.f32 %v5102_v52, %v3146_v55 }
0x7a85   :  { %3150 = vrot.lane.b32.xlu1 %v3148_v56, %s5391_s10 }
0x7af7   :  { %v3151_v60 = vpop.permute.xlu1 %3150 }
0x7af8   :  { %v3153_v61 = vadd.f32 %v3151_v60, %v3143_v59 }
0x7afa   :  { %5103 = vtanh.f32 %v3153_v61 }
0x7b04   :  { %v5104_v62 = vpop.eup %5103 }
0x7b05   :  { %3156 = vrot.lane.b32.xlu0 %v5104_v62, %s5393_s11 }
0x7b77   :  { %v3157_v2 = vpop.permute.xlu0 %3156 }
0x7b78   :  { %v3159_v3 = vmul.f32 %v5102_v52, %v3157_v2  ;;  %v3224_v52 = vld [vmem:[#allocation2 + $0x1f0] sm:$0xff] }
0x7b7a   :  { %3163 = vperm.xlu1 %4743, %v3159_v3  }
0x7bf9   :  { %v3164_v5 = vpop.permute.xlu1 %3163 }
0x7bfa   :  { %v3166_v6 = vmul.f32 %v5924_v36, %v3164_v5 }
0x7bfc   :  { %v3167_v7 = vadd.f32 %v3166_v6, %v3160_v4  ;;  %v953_v6 = vpop.f32.mrb[26].mxu1 }
0x7bfe   :  { %v3168_v8 = vmul.f32 1.442695, %v3167_v7  ;;  %v954_v7 = vadd.f32 %v5917_v31, %v953_v6 }
0x7c00   :  { %5105 = vpow2.f32 %v3168_v8  ;;  %v955_v8 = vpop.f32.mrb[27].mxu1  ;;  %1201 = vst.msk [vmem:[#allocation2 + $0x1f8] sm:$0xff] %vm1137_vm2, %v954_v7  ;;  %v164_v7 = vld [vmem:[#allocation3 + $0x428] sm:$0xff] }
0x7c01   :  { %v163_v8 = vld [vmem:[#allocation3 + $0x420] sm:$0xff]  ;;  %4525 = vmatprep.mubr.msk.f32.mxu1 %vm267_vm0, %v164_v7 }
0x7c02   :  { %967 = vmatmul.mubr.f32.gmra.mrb[32].mxu1 %v163_v8 }
0x7c0a   :  { %v5106_v9 = vpop.eup %5105 }
0x7c0b   :  { %v3170_v10 = vadd.f32 1.0, %v5106_v9 }
0x7c0d   :  { %5107 = vrcp.f32 %v3170_v10 }
0x7c17   :  { %v5108_v11 = vpop.eup %5107 }
0x7c18   :  { %v3173_v12 = vmul.f32 2.0, %v5108_v11  ;;  %v3175_v18 = vmul.f32 %v5108_v11, %v3153_v61 }
0x7c1a   :  { %v4620_v13 = vadd.f32 -1.0, %v3173_v12 }
0x7c1c   :  { %3177 = vrot.lane.b32.xlu0 %v4620_v13, %s5390_s9 }
0x7c8e   :  { %v3178_v14 = vpop.permute.xlu0 %3177 }
0x7c8f   :  { %v3180_v15 = vmul.f32 %v5108_v11, %v3178_v14 }
0x7c91   :  { %3182 = vrot.lane.b32.xlu1 %v3180_v15, %s5391_s10 }
0x7d03   :  { %v3183_v19 = vpop.permute.xlu1 %3182 }
0x7d04   :  { %v3185_v20 = vadd.f32 %v3183_v19, %v3175_v18 }
0x7d06   :  { %5109 = vtanh.f32 %v3185_v20 }
0x7d10   :  { %v5110_v21 = vpop.eup %5109 }
0x7d11   :  { %3188 = vrot.lane.b32.xlu0 %v5110_v21, %s5393_s11 }
0x7d83   :  { %v3189_v35 = vpop.permute.xlu0 %3188 }
0x7d84   :  { %v3191_v25 = vmul.f32 %v5108_v11, %v3189_v35  ;;  %v3256_v11 = vld [vmem:[#allocation2 + $0x1f8] sm:$0xff] }
0x7d86   :  { %3195 = vperm.xlu1 %4743, %v3191_v25  }
0x7e05   :  { %v3196_v27 = vpop.permute.xlu1 %3195 }
0x7e06   :  { %v3198_v42 = vmul.f32 %v5924_v36, %v3196_v27  ;;  %v6039_v27 = vld [vmem:[%s6323_s3] ss:$0 sm:$0xff] }
0x7e08   :  { %v3199_v28 = vadd.f32 %v3198_v42, %v3192_v26  ;;  %v958_v26 = vpop.f32.mrb[28].mxu1 }
0x7e09   :  { %v959_v42 = vadd.f32 %v6039_v27, %v958_v26 }
0x7e0a   :  { %v3200_v40 = vmul.f32 1.442695, %v3199_v28  ;;  %v960_v28 = vpop.f32.mrb[29].mxu1 }
0x7e0b   :  { %1202 = vst.msk [vmem:[#allocation2 + $0x200] sm:$0xff] %vm1137_vm2, %v959_v42  ;;  %v166_v42 = vld [vmem:[#allocation3 + $0x438] sm:$0xff]  ;;  %v165_v28 = vld [vmem:[#allocation3 + $0x430] sm:$0xff] }
0x7e0c   :  { %5111 = vpow2.f32 %v3200_v40  ;;  %4526 = vmatprep.mubr.msk.f32.mxu1 %vm267_vm0, %v166_v42 }
0x7e0d   :  { %972 = vmatmul.mubr.f32.gmra.mrb[34].mxu1 %v165_v28 }
0x7e16   :  { %v5112_v29 = vpop.eup %5111 }
0x7e17   :  { %v3202_v30 = vadd.f32 1.0, %v5112_v29 }
0x7e19   :  { %5113 = vrcp.f32 %v3202_v30  ;;  %v3288_v30 = vld [vmem:[#allocation2 + $0x200] sm:$0xff] }
0x7e23   :  { %v5114_v48 = vpop.eup %5113 }
0x7e24   :  { %v3205_v32 = vmul.f32 2.0, %v5114_v48  ;;  %v3207_v38 = vmul.f32 %v5114_v48, %v3185_v20 }
0x7e26   :  { %v4621_v47 = vadd.f32 -1.0, %v3205_v32  ;;  %v6046_v32 = vld [vmem:[%s6322_s2] ss:$0 sm:$0xff] }
0x7e28   :  { %3209 = vrot.lane.b32.xlu0 %v4621_v47, %s5390_s9 }
0x7e9a   :  { %v3210_v33 = vpop.permute.xlu0 %3209 }
0x7e9b   :  { %v3212_v34 = vmul.f32 %v5114_v48, %v3210_v33 }
0x7e9d   :  { %3214 = vrot.lane.b32.xlu1 %v3212_v34, %s5391_s10 }
0x7f0f   :  { %v3215_v39 = vpop.permute.xlu1 %3214 }
0x7f10   :  { %v3217_v41 = vadd.f32 %v3215_v39, %v3207_v38 }
0x7f12   :  { %5115 = vtanh.f32 %v3217_v41 }
0x7f1c   :  { %v5116_v43 = vpop.eup %5115 }
0x7f1d   :  { %3220 = vrot.lane.b32.xlu0 %v5116_v43, %s5393_s11 }
0x7f8f   :  { %v3221_v49 = vpop.permute.xlu0 %3220 }
0x7f90   :  { %v3223_v50 = vmul.f32 %v5114_v48, %v3221_v49 }
0x7f92   :  { %3227 = vperm.xlu1 %4743, %v3223_v50  }
0x8011   :  { %v3228_v53 = vpop.permute.xlu1 %3227 }
0x8012   :  { %v3230_v54 = vmul.f32 %v5924_v36, %v3228_v53 }
0x8014   :  { %v3231_v55 = vadd.f32 %v3230_v54, %v3224_v52  ;;  %v963_v54 = vpop.f32.mrb[30].mxu1 }
0x8016   :  { %v3232_v56 = vmul.f32 1.442695, %v3231_v55  ;;  %v964_v55 = vadd.f32 %v6039_v27, %v963_v54 }
0x8018   :  { %5117 = vpow2.f32 %v3232_v56  ;;  %v965_v56 = vpop.f32.mrb[31].mxu1  ;;  %1203 = vst.msk [vmem:[#allocation2 + $0x208] sm:$0xff] %vm1137_vm2, %v964_v55  ;;  %v168_v55 = vld [vmem:[#allocation3 + $0x448] sm:$0xff] }
0x8019   :  { %v167_v56 = vld [vmem:[#allocation3 + $0x440] sm:$0xff]  ;;  %4527 = vmatprep.mubr.msk.f32.mxu1 %vm267_vm0, %v168_v55 }
0x801a   :  { %977 = vmatmul.mubr.f32.gmra.mrb[36].mxu1 %v167_v56 }
0x8022   :  { %v5118_v57 = vpop.eup %5117 }
0x8023   :  { %v3234_v58 = vadd.f32 1.0, %v5118_v57 }
0x8025   :  { %5119 = vrcp.f32 %v3234_v58 }
0x802f   :  { %v5120_v59 = vpop.eup %5119 }
0x8030   :  { %v3237_v60 = vmul.f32 2.0, %v5120_v59  ;;  %v3239_v2 = vmul.f32 %v5120_v59, %v3217_v41 }
0x8032   :  { %v4622_v61 = vadd.f32 -1.0, %v3237_v60 }
0x8034   :  { %3241 = vrot.lane.b32.xlu0 %v4622_v61, %s5390_s9 }
0x80a6   :  { %v3242_v62 = vpop.permute.xlu0 %3241 }
0x80a7   :  { %v3244_v63 = vmul.f32 %v5120_v59, %v3242_v62 }
0x80a9   :  { %3246 = vrot.lane.b32.xlu1 %v3244_v63, %s5391_s10 }
0x811b   :  { %v3247_v3 = vpop.permute.xlu1 %3246 }
0x811c   :  { %v3249_v4 = vadd.f32 %v3247_v3, %v3239_v2 }
0x811e   :  { %5121 = vtanh.f32 %v3249_v4 }
0x8128   :  { %v5122_v5 = vpop.eup %5121 }
0x8129   :  { %3252 = vrot.lane.b32.xlu0 %v5122_v5, %s5393_s11 }
0x819b   :  { %v3253_v9 = vpop.permute.xlu0 %3252 }
0x819c   :  { %v3255_v10 = vmul.f32 %v5120_v59, %v3253_v9  ;;  %v3320_v59 = vld [vmem:[#allocation2 + $0x208] sm:$0xff] }
0x819e   :  { %3259 = vperm.xlu1 %4743, %v3255_v10  }
0x821d   :  { %v3260_v12 = vpop.permute.xlu1 %3259 }
0x821e   :  { %v3262_v13 = vmul.f32 %v5924_v36, %v3260_v12 }
0x8220   :  { %v3263_v14 = vadd.f32 %v3262_v13, %v3256_v11  ;;  %v968_v13 = vpop.f32.mrb[32].mxu1 }
0x8222   :  { %v3264_v15 = vmul.f32 1.442695, %v3263_v14  ;;  %v969_v14 = vadd.f32 %v6039_v27, %v968_v13 }
0x8224   :  { %5123 = vpow2.f32 %v3264_v15  ;;  %v970_v15 = vpop.f32.mrb[33].mxu1  ;;  %1204 = vst.msk [vmem:[#allocation2 + $0x210] sm:$0xff] %vm1137_vm2, %v969_v14  ;;  %v170_v14 = vld [vmem:[#allocation3 + $0x458] sm:$0xff] }
0x8225   :  { %v169_v15 = vld [vmem:[#allocation3 + $0x450] sm:$0xff]  ;;  %4528 = vmatprep.mubr.msk.f32.mxu1 %vm267_vm0, %v170_v14 }
0x8226   :  { %982 = vmatmul.mubr.f32.gmra.mrb[38].mxu1 %v169_v15 }
0x822e   :  { %v5124_v16 = vpop.eup %5123 }
0x822f   :  { %v3266_v17 = vadd.f32 1.0, %v5124_v16 }
0x8231   :  { %5125 = vrcp.f32 %v3266_v17 }
0x823b   :  { %v5126_v18 = vpop.eup %5125 }
0x823c   :  { %v3269_v19 = vmul.f32 2.0, %v5126_v18  ;;  %v3271_v36 = vmul.f32 %v5126_v18, %v3249_v4 }
0x823e   :  { %v4623_v20 = vadd.f32 -1.0, %v3269_v19 }
0x8240   :  { %3273 = vrot.lane.b32.xlu0 %v4623_v20, %s5390_s9 }
0x82b2   :  { %v3274_v31 = vpop.permute.xlu0 %3273 }
0x82b3   :  { %v3276_v21 = vmul.f32 %v5126_v18, %v3274_v31 }
0x82b5   :  { %3278 = vrot.lane.b32.xlu1 %v3276_v21, %s5391_s10 }
0x8327   :  { %v3279_v24 = vpop.permute.xlu1 %3278 }
0x8328   :  { %v3281_v35 = vadd.f32 %v3279_v24, %v3271_v36 }
0x832a   :  { %5127 = vtanh.f32 %v3281_v35 }
0x8334   :  { %v5128_v25 = vpop.eup %5127 }
0x8335   :  { %3284 = vrot.lane.b32.xlu0 %v5128_v25, %s5393_s11 }
0x83a7   :  { %v3285_v40 = vpop.permute.xlu0 %3284 }
0x83a8   :  { %v3287_v29 = vmul.f32 %v5126_v18, %v3285_v40  ;;  %v3352_v18 = vld [vmem:[#allocation2 + $0x210] sm:$0xff] }
0x83aa   :  { %3291 = vperm.xlu1 %4743, %v3287_v29  }
0x8429   :  { %v3292_v48 = vpop.permute.xlu1 %3291 }
0x842a   :  { %v3294_v47 = vmul.f32 %v6046_v32, %v3292_v48 }
0x842c   :  { %v3295_v33 = vadd.f32 %v3294_v47, %v3288_v30  ;;  %v973_v47 = vpop.f32.mrb[34].mxu1 }
0x842e   :  { %v3296_v34 = vmul.f32 1.442695, %v3295_v33  ;;  %v974_v33 = vadd.f32 %v6039_v27, %v973_v47 }
0x8430   :  { %5129 = vpow2.f32 %v3296_v34  ;;  %v975_v34 = vpop.f32.mrb[35].mxu1  ;;  %1205 = vst.msk [vmem:[#allocation2 + $0x218] sm:$0xff] %vm1137_vm2, %v974_v33  ;;  %v172_v33 = vld [vmem:[#allocation3 + $0x468] sm:$0xff] }
0x8431   :  { %v171_v34 = vld [vmem:[#allocation3 + $0x460] sm:$0xff]  ;;  %4529 = vmatprep.mubr.msk.f32.mxu1 %vm267_vm0, %v172_v33 }
0x8432   :  { %987 = vmatmul.mubr.f32.gmra.mrb[40].mxu1 %v171_v34 }
0x843a   :  { %v5130_v51 = vpop.eup %5129 }
0x843b   :  { %v3298_v37 = vadd.f32 1.0, %v5130_v51 }
0x843d   :  { %5131 = vrcp.f32 %v3298_v37 }
0x8447   :  { %v5132_v38 = vpop.eup %5131 }
0x8448   :  { %v3301_v39 = vmul.f32 2.0, %v5132_v38  ;;  %v3303_v49 = vmul.f32 %v5132_v38, %v3281_v35 }
0x844a   :  { %v4624_v41 = vadd.f32 -1.0, %v3301_v39 }
0x844c   :  { %3305 = vrot.lane.b32.xlu0 %v4624_v41, %s5390_s9 }
0x84be   :  { %v3306_v43 = vpop.permute.xlu0 %3305 }
0x84bf   :  { %v3308_v44 = vmul.f32 %v5132_v38, %v3306_v43 }
0x84c1   :  { %3310 = vrot.lane.b32.xlu1 %v3308_v44, %s5391_s10 }
0x8533   :  { %v3311_v50 = vpop.permute.xlu1 %3310 }
0x8534   :  { %v3313_v52 = vadd.f32 %v3311_v50, %v3303_v49 }
0x8536   :  { %5133 = vtanh.f32 %v3313_v52 }
0x8540   :  { %v5134_v53 = vpop.eup %5133 }
0x8541   :  { %3316 = vrot.lane.b32.xlu0 %v5134_v53, %s5393_s11 }
0x85b3   :  { %v3317_v57 = vpop.permute.xlu0 %3316 }
0x85b4   :  { %v3319_v58 = vmul.f32 %v5132_v38, %v3317_v57  ;;  %v3384_v38 = vld [vmem:[#allocation2 + $0x218] sm:$0xff] }
0x85b6   :  { %3323 = vperm.xlu1 %4743, %v3319_v58  }
0x8635   :  { %v3324_v60 = vpop.permute.xlu1 %3323 }
0x8636   :  { %v3326_v61 = vmul.f32 %v6046_v32, %v3324_v60 }
0x8638   :  { %v3327_v62 = vadd.f32 %v3326_v61, %v3320_v59  ;;  %v978_v61 = vpop.f32.mrb[36].mxu1 }
0x863a   :  { %v3328_v63 = vmul.f32 1.442695, %v3327_v62  ;;  %v979_v62 = vadd.f32 %v6039_v27, %v978_v61 }
0x863c   :  { %5135 = vpow2.f32 %v3328_v63  ;;  %v980_v63 = vpop.f32.mrb[37].mxu1  ;;  %1206 = vst.msk [vmem:[#allocation2 + $0x220] sm:$0xff] %vm1137_vm2, %v979_v62  ;;  %v174_v62 = vld [vmem:[#allocation3 + $0x478] sm:$0xff] }
0x863d   :  { %v173_v63 = vld [vmem:[#allocation3 + $0x470] sm:$0xff]  ;;  %4530 = vmatprep.mubr.msk.f32.mxu1 %vm267_vm0, %v174_v62 }
0x863e   :  { %992 = vmatmul.mubr.f32.gmra.mrb[42].mxu1 %v173_v63 }
0x8646   :  { %v5136_v0 = vpop.eup %5135 }
0x8647   :  { %v3330_v1 = vadd.f32 1.0, %v5136_v0 }
0x8649   :  { %5137 = vrcp.f32 %v3330_v1 }
0x8653   :  { %v5138_v2 = vpop.eup %5137 }
0x8654   :  { %v3333_v3 = vmul.f32 2.0, %v5138_v2  ;;  %v3335_v9 = vmul.f32 %v5138_v2, %v3313_v52 }
0x8656   :  { %v4625_v4 = vadd.f32 -1.0, %v3333_v3 }
0x8658   :  { %3337 = vrot.lane.b32.xlu0 %v4625_v4, %s5390_s9 }
0x86ca   :  { %v3338_v5 = vpop.permute.xlu0 %3337 }
0x86cb   :  { %v3340_v6 = vmul.f32 %v5138_v2, %v3338_v5 }
0x86cd   :  { %3342 = vrot.lane.b32.xlu1 %v3340_v6, %s5391_s10 }
0x873f   :  { %v3343_v10 = vpop.permute.xlu1 %3342 }
0x8740   :  { %v3345_v11 = vadd.f32 %v3343_v10, %v3335_v9 }
0x8742   :  { %5139 = vtanh.f32 %v3345_v11 }
0x874c   :  { %v5140_v12 = vpop.eup %5139 }
0x874d   :  { %3348 = vrot.lane.b32.xlu0 %v5140_v12, %s5393_s11 }
0x87bf   :  { %v3349_v16 = vpop.permute.xlu0 %3348 }
0x87c0   :  { %v3351_v17 = vmul.f32 %v5138_v2, %v3349_v16  ;;  %v3416_v2 = vld [vmem:[#allocation2 + $0x220] sm:$0xff] }
0x87c2   :  { %3355 = vperm.xlu1 %4743, %v3351_v17  }
0x8841   :  { %v3356_v19 = vpop.permute.xlu1 %3355 }
0x8842   :  { %v3358_v20 = vmul.f32 %v6046_v32, %v3356_v19 }
0x8844   :  { %v3359_v31 = vadd.f32 %v3358_v20, %v3352_v18  ;;  %v983_v20 = vpop.f32.mrb[38].mxu1 }
0x8846   :  { %v3360_v21 = vmul.f32 1.442695, %v3359_v31  ;;  %v984_v31 = vadd.f32 %v6039_v27, %v983_v20 }
0x8848   :  { %5141 = vpow2.f32 %v3360_v21  ;;  %v985_v21 = vpop.f32.mrb[39].mxu1  ;;  %1207 = vst.msk [vmem:[#allocation2 + $0x228] sm:$0xff] %vm1137_vm2, %v984_v31  ;;  %v176_v31 = vld [vmem:[#allocation3 + $0x488] sm:$0xff] }
0x8849   :  { %v175_v21 = vld [vmem:[#allocation3 + $0x480] sm:$0xff]  ;;  %4531 = vmatprep.mubr.msk.f32.mxu1 %vm267_vm0, %v176_v31 }
0x884a   :  { %997 = vmatmul.mubr.f32.gmra.mrb[44].mxu1 %v175_v21 }
0x8852   :  { %v5142_v22 = vpop.eup %5141 }
0x8853   :  { %v3362_v23 = vadd.f32 1.0, %v5142_v22 }
0x8855   :  { %5143 = vrcp.f32 %v3362_v23 }
0x885f   :  { %v5144_v36 = vpop.eup %5143 }
0x8860   :  { %v3365_v24 = vmul.f32 2.0, %v5144_v36  ;;  %v3367_v40 = vmul.f32 %v5144_v36, %v3345_v11 }
0x8862   :  { %v4626_v35 = vadd.f32 -1.0, %v3365_v24 }
0x8864   :  { %3369 = vrot.lane.b32.xlu0 %v4626_v35, %s5390_s9 }
0x88d6   :  { %v3370_v25 = vpop.permute.xlu0 %3369 }
0x88d7   :  { %v3372_v26 = vmul.f32 %v5144_v36, %v3370_v25 }
0x88d9   :  { %3374 = vrot.lane.b32.xlu1 %v3372_v26, %s5391_s10 }
0x894b   :  { %v3375_v29 = vpop.permute.xlu1 %3374 }
0x894c   :  { %v3377_v30 = vadd.f32 %v3375_v29, %v3367_v40 }
0x894e   :  { %5145 = vtanh.f32 %v3377_v30 }
0x8958   :  { %v5146_v48 = vpop.eup %5145 }
0x8959   :  { %3380 = vrot.lane.b32.xlu0 %v5146_v48, %s5393_s11 }
0x89cb   :  { %v3381_v51 = vpop.permute.xlu0 %3380 }
0x89cc   :  { %v3383_v37 = vmul.f32 %v5144_v36, %v3381_v51  ;;  %v3448_v36 = vld [vmem:[#allocation2 + $0x228] sm:$0xff] }
0x89ce   :  { %3387 = vperm.xlu1 %4743, %v3383_v37  }
0x8a4d   :  { %v3388_v39 = vpop.permute.xlu1 %3387 }
0x8a4e   :  { %v3390_v41 = vmul.f32 %v6046_v32, %v3388_v39 }
0x8a50   :  { %v3391_v43 = vadd.f32 %v3390_v41, %v3384_v38  ;;  %v988_v41 = vpop.f32.mrb[40].mxu1 }
0x8a52   :  { %v3392_v44 = vmul.f32 1.442695, %v3391_v43  ;;  %v989_v43 = vadd.f32 %v6039_v27, %v988_v41 }
0x8a54   :  { %5147 = vpow2.f32 %v3392_v44  ;;  %v990_v44 = vpop.f32.mrb[41].mxu1  ;;  %1208 = vst.msk [vmem:[#allocation2 + $0x230] sm:$0xff] %vm1137_vm2, %v989_v43  ;;  %v178_v43 = vld [vmem:[#allocation3 + $0x498] sm:$0xff] }
0x8a55   :  { %v177_v44 = vld [vmem:[#allocation3 + $0x490] sm:$0xff]  ;;  %4532 = vmatprep.mubr.msk.f32.mxu1 %vm267_vm0, %v178_v43 }
0x8a56   :  { %1002 = vmatmul.mubr.f32.gmra.mrb[46].mxu1 %v177_v44 }
0x8a5e   :  { %v5148_v45 = vpop.eup %5147 }
0x8a5f   :  { %v3394_v46 = vadd.f32 1.0, %v5148_v45 }
0x8a61   :  { %5149 = vrcp.f32 %v3394_v46 }
0x8a6b   :  { %v5150_v49 = vpop.eup %5149 }
0x8a6c   :  { %v3397_v50 = vmul.f32 2.0, %v5150_v49  ;;  %v3399_v57 = vmul.f32 %v5150_v49, %v3377_v30 }
0x8a6e   :  { %v4627_v52 = vadd.f32 -1.0, %v3397_v50 }
0x8a70   :  { %3401 = vrot.lane.b32.xlu0 %v4627_v52, %s5390_s9 }
0x8ae2   :  { %v3402_v53 = vpop.permute.xlu0 %3401 }
0x8ae3   :  { %v3404_v54 = vmul.f32 %v5150_v49, %v3402_v53 }
0x8ae5   :  { %3406 = vrot.lane.b32.xlu1 %v3404_v54, %s5391_s10 }
0x8b57   :  { %v3407_v58 = vpop.permute.xlu1 %3406 }
0x8b58   :  { %v3409_v59 = vadd.f32 %v3407_v58, %v3399_v57 }
0x8b5a   :  { %5151 = vtanh.f32 %v3409_v59 }
0x8b64   :  { %v5152_v60 = vpop.eup %5151 }
0x8b65   :  { %3412 = vrot.lane.b32.xlu0 %v5152_v60, %s5393_s11 }
0x8bd7   :  { %v3413_v0 = vpop.permute.xlu0 %3412 }
0x8bd8   :  { %v3415_v1 = vmul.f32 %v5150_v49, %v3413_v0  ;;  %v3480_v49 = vld [vmem:[#allocation2 + $0x230] sm:$0xff] }
0x8bda   :  { %3419 = vperm.xlu1 %4743, %v3415_v1  }
0x8c59   :  { %v3420_v3 = vpop.permute.xlu1 %3419 }
0x8c5a   :  { %v3422_v4 = vmul.f32 %v6046_v32, %v3420_v3 }
0x8c5c   :  { %v3423_v5 = vadd.f32 %v3422_v4, %v3416_v2  ;;  %v993_v4 = vpop.f32.mrb[42].mxu1 }
0x8c5e   :  { %v3424_v6 = vmul.f32 1.442695, %v3423_v5  ;;  %v994_v5 = vadd.f32 %v6039_v27, %v993_v4 }
0x8c60   :  { %5153 = vpow2.f32 %v3424_v6  ;;  %v995_v6 = vpop.f32.mrb[43].mxu1  ;;  %1209 = vst.msk [vmem:[#allocation2 + $0x238] sm:$0xff] %vm1137_vm2, %v994_v5  ;;  %v180_v5 = vld [vmem:[#allocation3 + $0x4a8] sm:$0xff] }
0x8c61   :  { %v179_v6 = vld [vmem:[#allocation3 + $0x4a0] sm:$0xff]  ;;  %4533 = vmatprep.mubr.msk.f32.mxu1 %vm267_vm0, %v180_v5 }
0x8c62   :  { %1007 = vmatmul.mubr.f32.gmra.mrb[48].mxu1 %v179_v6 }
0x8c6a   :  { %v5154_v7 = vpop.eup %5153 }
0x8c6b   :  { %v3426_v8 = vadd.f32 1.0, %v5154_v7 }
0x8c6d   :  { %5155 = vrcp.f32 %v3426_v8 }
0x8c77   :  { %v5156_v9 = vpop.eup %5155 }
0x8c78   :  { %v3429_v10 = vmul.f32 2.0, %v5156_v9  ;;  %v3431_v16 = vmul.f32 %v5156_v9, %v3409_v59 }
0x8c7a   :  { %v4628_v11 = vadd.f32 -1.0, %v3429_v10 }
0x8c7c   :  { %3433 = vrot.lane.b32.xlu0 %v4628_v11, %s5390_s9 }
0x8cee   :  { %v3434_v12 = vpop.permute.xlu0 %3433 }
0x8cef   :  { %v3436_v13 = vmul.f32 %v5156_v9, %v3434_v12 }
0x8cf1   :  { %3438 = vrot.lane.b32.xlu1 %v3436_v13, %s5391_s10 }
0x8d63   :  { %v3439_v17 = vpop.permute.xlu1 %3438 }
0x8d64   :  { %v3441_v18 = vadd.f32 %v3439_v17, %v3431_v16 }
0x8d66   :  { %5157 = vtanh.f32 %v3441_v18 }
0x8d70   :  { %v5158_v19 = vpop.eup %5157 }
0x8d71   :  { %3444 = vrot.lane.b32.xlu0 %v5158_v19, %s5393_s11 }
0x8de3   :  { %v3445_v22 = vpop.permute.xlu0 %3444 }
0x8de4   :  { %v3447_v23 = vmul.f32 %v5156_v9, %v3445_v22  ;;  %v3512_v9 = vld [vmem:[#allocation2 + $0x238] sm:$0xff] }
0x8de6   :  { %3451 = vperm.xlu1 %4743, %v3447_v23  }
0x8e65   :  { %v3452_v24 = vpop.permute.xlu1 %3451 }
0x8e66   :  { %v3454_v35 = vmul.f32 %v6046_v32, %v3452_v24 }
0x8e68   :  { %v3455_v25 = vadd.f32 %v3454_v35, %v3448_v36  ;;  %v998_v35 = vpop.f32.mrb[44].mxu1 }
0x8e6a   :  { %v3456_v26 = vmul.f32 1.442695, %v3455_v25  ;;  %v999_v25 = vadd.f32 %v6039_v27, %v998_v35 }
0x8e6c   :  { %5159 = vpow2.f32 %v3456_v26  ;;  %v1000_v26 = vpop.f32.mrb[45].mxu1  ;;  %1210 = vst.msk [vmem:[#allocation2 + $0x240] sm:$0xff] %vm1137_vm2, %v999_v25  ;;  %v182_v25 = vld [vmem:[#allocation3 + $0x4b8] sm:$0xff] }
0x8e6d   :  { %v181_v26 = vld [vmem:[#allocation3 + $0x4b0] sm:$0xff]  ;;  %4534 = vmatprep.mubr.msk.f32.mxu1 %vm267_vm0, %v182_v25 }
0x8e6e   :  { %1012 = vmatmul.mubr.f32.gmra.mrb[50].mxu1 %v181_v26 }
0x8e76   :  { %v5160_v42 = vpop.eup %5159 }
0x8e77   :  { %v3458_v28 = vadd.f32 1.0, %v5160_v42 }
0x8e79   :  { %5161 = vrcp.f32 %v3458_v28 }
0x8e83   :  { %v5162_v40 = vpop.eup %5161 }
0x8e84   :  { %v3461_v29 = vmul.f32 2.0, %v5162_v40  ;;  %v3463_v51 = vmul.f32 %v5162_v40, %v3441_v18 }
0x8e86   :  { %v4629_v30 = vadd.f32 -1.0, %v3461_v29 }
0x8e88   :  { %3465 = vrot.lane.b32.xlu0 %v4629_v30, %s5390_s9 }
0x8efa   :  { %v3466_v48 = vpop.permute.xlu0 %3465 }
0x8efb   :  { %v3468_v47 = vmul.f32 %v5162_v40, %v3466_v48 }
0x8efd   :  { %3470 = vrot.lane.b32.xlu1 %v3468_v47, %s5391_s10 }
0x8f6f   :  { %v3471_v37 = vpop.permute.xlu1 %3470 }
0x8f70   :  { %v3473_v38 = vadd.f32 %v3471_v37, %v3463_v51 }
0x8f72   :  { %5163 = vtanh.f32 %v3473_v38 }
0x8f7c   :  { %v5164_v39 = vpop.eup %5163 }
0x8f7d   :  { %3476 = vrot.lane.b32.xlu0 %v5164_v39, %s5393_s11 }
0x8fef   :  { %v3477_v45 = vpop.permute.xlu0 %3476 }
0x8ff0   :  { %v3479_v46 = vmul.f32 %v5162_v40, %v3477_v45  ;;  %v3544_v40 = vld [vmem:[#allocation2 + $0x240] sm:$0xff] }
0x8ff2   :  { %3483 = vperm.xlu1 %4743, %v3479_v46  }
0x9071   :  { %v3484_v50 = vpop.permute.xlu1 %3483 }
0x9072   :  { %v3486_v52 = vmul.f32 %v6046_v32, %v3484_v50 }
0x9074   :  { %v3487_v53 = vadd.f32 %v3486_v52, %v3480_v49  ;;  %v1003_v52 = vpop.f32.mrb[46].mxu1 }
0x9076   :  { %v3488_v54 = vmul.f32 1.442695, %v3487_v53  ;;  %v1004_v53 = vadd.f32 %v6039_v27, %v1003_v52 }
0x9078   :  { %5165 = vpow2.f32 %v3488_v54  ;;  %v1005_v54 = vpop.f32.mrb[47].mxu1  ;;  %1211 = vst.msk [vmem:[#allocation2 + $0x248] sm:$0xff] %vm1137_vm2, %v1004_v53  ;;  %v184_v53 = vld [vmem:[#allocation3 + $0x4c8] sm:$0xff] }
0x9079   :  { %v183_v54 = vld [vmem:[#allocation3 + $0x4c0] sm:$0xff]  ;;  %4535 = vmatprep.mubr.msk.f32.mxu1 %vm267_vm0, %v184_v53 }
0x907a   :  { %1017 = vmatmul.mubr.f32.gmra.mrb[52].mxu1 %v183_v54 }
0x9082   :  { %v5166_v55 = vpop.eup %5165 }
0x9083   :  { %v3490_v56 = vadd.f32 1.0, %v5166_v55 }
0x9085   :  { %5167 = vrcp.f32 %v3490_v56 }
0x908f   :  { %v5168_v57 = vpop.eup %5167 }
0x9090   :  { %v3493_v58 = vmul.f32 2.0, %v5168_v57  ;;  %v3495_v0 = vmul.f32 %v5168_v57, %v3473_v38 }
0x9092   :  { %v4630_v59 = vadd.f32 -1.0, %v3493_v58 }
0x9094   :  { %3497 = vrot.lane.b32.xlu0 %v4630_v59, %s5390_s9 }
0x9106   :  { %v3498_v60 = vpop.permute.xlu0 %3497 }
0x9107   :  { %v3500_v61 = vmul.f32 %v5168_v57, %v3498_v60 }
0x9109   :  { %3502 = vrot.lane.b32.xlu1 %v3500_v61, %s5391_s10 }
0x917b   :  { %v3503_v1 = vpop.permute.xlu1 %3502 }
0x917c   :  { %v3505_v2 = vadd.f32 %v3503_v1, %v3495_v0 }
0x917e   :  { %5169 = vtanh.f32 %v3505_v2 }
0x9188   :  { %v5170_v3 = vpop.eup %5169 }
0x9189   :  { %3508 = vrot.lane.b32.xlu0 %v5170_v3, %s5393_s11 }
0x91fb   :  { %v3509_v7 = vpop.permute.xlu0 %3508 }
0x91fc   :  { %v3511_v8 = vmul.f32 %v5168_v57, %v3509_v7  ;;  %v3576_v57 = vld [vmem:[#allocation2 + $0x248] sm:$0xff] }
0x91fe   :  { %3515 = vperm.xlu1 %4743, %v3511_v8  }
0x927d   :  { %v3516_v10 = vpop.permute.xlu1 %3515 }
0x927e   :  { %v3518_v11 = vmul.f32 %v6046_v32, %v3516_v10 }
0x9280   :  { %v3519_v12 = vadd.f32 %v3518_v11, %v3512_v9  ;;  %v1008_v11 = vpop.f32.mrb[48].mxu1 }
0x9282   :  { %v3520_v13 = vmul.f32 1.442695, %v3519_v12  ;;  %v1009_v12 = vadd.f32 %v6039_v27, %v1008_v11 }
0x9284   :  { %5171 = vpow2.f32 %v3520_v13  ;;  %v1010_v13 = vpop.f32.mrb[49].mxu1  ;;  %1212 = vst.msk [vmem:[#allocation2 + $0x250] sm:$0xff] %vm1137_vm2, %v1009_v12  ;;  %v186_v12 = vld [vmem:[#allocation3 + $0x4d8] sm:$0xff] }
0x9285   :  { %v185_v13 = vld [vmem:[#allocation3 + $0x4d0] sm:$0xff]  ;;  %4536 = vmatprep.mubr.msk.f32.mxu1 %vm267_vm0, %v186_v12 }
0x9286   :  { %1022 = vmatmul.mubr.f32.gmra.mrb[54].mxu1 %v185_v13 }
0x928e   :  { %v5172_v14 = vpop.eup %5171 }
0x928f   :  { %v3522_v15 = vadd.f32 1.0, %v5172_v14 }
0x9291   :  { %5173 = vrcp.f32 %v3522_v15 }
0x929b   :  { %v5174_v16 = vpop.eup %5173 }
0x929c   :  { %v3525_v17 = vmul.f32 2.0, %v5174_v16  ;;  %v3527_v22 = vmul.f32 %v5174_v16, %v3505_v2 }
0x929e   :  { %v4631_v18 = vadd.f32 -1.0, %v3525_v17 }
0x92a0   :  { %3529 = vrot.lane.b32.xlu0 %v4631_v18, %s5390_s9 }
0x9312   :  { %v3530_v19 = vpop.permute.xlu0 %3529 }
0x9313   :  { %v3532_v20 = vmul.f32 %v5174_v16, %v3530_v19 }
0x9315   :  { %3534 = vrot.lane.b32.xlu1 %v3532_v20, %s5391_s10 }
0x9387   :  { %v3535_v23 = vpop.permute.xlu1 %3534 }
0x9388   :  { %v3537_v36 = vadd.f32 %v3535_v23, %v3527_v22 }
0x938a   :  { %5175 = vtanh.f32 %v3537_v36 }
0x9394   :  { %v5176_v24 = vpop.eup %5175 }
0x9395   :  { %3540 = vrot.lane.b32.xlu0 %v5176_v24, %s5393_s11 }
0x9407   :  { %v3541_v42 = vpop.permute.xlu0 %3540 }
0x9408   :  { %v3543_v28 = vmul.f32 %v5174_v16, %v3541_v42  ;;  %v3608_v16 = vld [vmem:[#allocation2 + $0x250] sm:$0xff] }
0x940a   :  { %3547 = vperm.xlu1 %4743, %v3543_v28  }
0x9489   :  { %v3548_v29 = vpop.permute.xlu1 %3547 }
0x948a   :  { %v3550_v30 = vmul.f32 %v6046_v32, %v3548_v29 }
0x948c   :  { %v3551_v48 = vadd.f32 %v3550_v30, %v3544_v40  ;;  %v1013_v30 = vpop.f32.mrb[50].mxu1 }
0x948e   :  { %v3552_v47 = vmul.f32 1.442695, %v3551_v48  ;;  %v1014_v48 = vadd.f32 %v6039_v27, %v1013_v30 }
0x9490   :  { %5177 = vpow2.f32 %v3552_v47  ;;  %v1015_v47 = vpop.f32.mrb[51].mxu1  ;;  %1213 = vst.msk [vmem:[#allocation2 + $0x258] sm:$0xff] %vm1137_vm2, %v1014_v48  ;;  %v188_v48 = vld [vmem:[#allocation3 + $0x4e8] sm:$0xff] }
0x9491   :  { %v187_v47 = vld [vmem:[#allocation3 + $0x4e0] sm:$0xff]  ;;  %4537 = vmatprep.mubr.msk.f32.mxu1 %vm267_vm0, %v188_v48 }
0x9492   :  { %1027 = vmatmul.mubr.f32.gmra.mrb[56].mxu1 %v187_v47 }
0x949a   :  { %v5178_v33 = vpop.eup %5177 }
0x949b   :  { %v3554_v34 = vadd.f32 1.0, %v5178_v33 }
0x949d   :  { %5179 = vrcp.f32 %v3554_v34 }
0x94a7   :  { %v5180_v51 = vpop.eup %5179 }
0x94a8   :  { %v3557_v37 = vmul.f32 2.0, %v5180_v51  ;;  %v3559_v45 = vmul.f32 %v5180_v51, %v3537_v36 }
0x94aa   :  { %v4632_v38 = vadd.f32 -1.0, %v3557_v37 }
0x94ac   :  { %3561 = vrot.lane.b32.xlu0 %v4632_v38, %s5390_s9 }
0x951e   :  { %v3562_v39 = vpop.permute.xlu0 %3561 }
0x951f   :  { %v3564_v41 = vmul.f32 %v5180_v51, %v3562_v39 }
0x9521   :  { %3566 = vrot.lane.b32.xlu1 %v3564_v41, %s5391_s10 }
0x9593   :  { %v3567_v46 = vpop.permute.xlu1 %3566 }
0x9594   :  { %v3569_v49 = vadd.f32 %v3567_v46, %v3559_v45 }
0x9596   :  { %5181 = vtanh.f32 %v3569_v49 }
0x95a0   :  { %v5182_v50 = vpop.eup %5181 }
0x95a1   :  { %3572 = vrot.lane.b32.xlu0 %v5182_v50, %s5393_s11 }
0x9613   :  { %v3573_v55 = vpop.permute.xlu0 %3572 }
0x9614   :  { %v3575_v56 = vmul.f32 %v5180_v51, %v3573_v55  ;;  %v3640_v51 = vld [vmem:[#allocation2 + $0x258] sm:$0xff] }
0x9616   :  { %3579 = vperm.xlu1 %4743, %v3575_v56  }
0x9695   :  { %v3580_v58 = vpop.permute.xlu1 %3579 }
0x9696   :  { %v3582_v59 = vmul.f32 %v6046_v32, %v3580_v58 }
0x9698   :  { %v3583_v60 = vadd.f32 %v3582_v59, %v3576_v57  ;;  %v1018_v59 = vpop.f32.mrb[52].mxu1 }
0x969a   :  { %v3584_v61 = vmul.f32 1.442695, %v3583_v60  ;;  %v1019_v60 = vadd.f32 %v6039_v27, %v1018_v59 }
0x969c   :  { %5183 = vpow2.f32 %v3584_v61  ;;  %v1020_v61 = vpop.f32.mrb[53].mxu1  ;;  %1214 = vst.msk [vmem:[#allocation2 + $0x260] sm:$0xff] %vm1137_vm2, %v1019_v60  ;;  %v190_v60 = vld [vmem:[#allocation3 + $0x4f8] sm:$0xff] }
0x969d   :  { %v189_v61 = vld [vmem:[#allocation3 + $0x4f0] sm:$0xff]  ;;  %4538 = vmatprep.mubr.msk.f32.mxu1 %vm267_vm0, %v190_v60 }
0x969e   :  { %1032 = vmatmul.mubr.f32.gmra.mrb[58].mxu1 %v189_v61 }
0x96a6   :  { %v5184_v62 = vpop.eup %5183 }
0x96a7   :  { %v3586_v63 = vadd.f32 1.0, %v5184_v62 }
0x96a9   :  { %5185 = vrcp.f32 %v3586_v63 }
0x96b3   :  { %v5186_v0 = vpop.eup %5185 }
0x96b4   :  { %v3589_v1 = vmul.f32 2.0, %v5186_v0  ;;  %v3591_v7 = vmul.f32 %v5186_v0, %v3569_v49 }
0x96b6   :  { %v4633_v2 = vadd.f32 -1.0, %v3589_v1 }
0x96b8   :  { %3593 = vrot.lane.b32.xlu0 %v4633_v2, %s5390_s9 }
0x972a   :  { %v3594_v3 = vpop.permute.xlu0 %3593 }
0x972b   :  { %v3596_v4 = vmul.f32 %v5186_v0, %v3594_v3 }
0x972d   :  { %3598 = vrot.lane.b32.xlu1 %v3596_v4, %s5391_s10 }
0x979f   :  { %v3599_v8 = vpop.permute.xlu1 %3598 }
0x97a0   :  { %v3601_v9 = vadd.f32 %v3599_v8, %v3591_v7 }
0x97a2   :  { %5187 = vtanh.f32 %v3601_v9 }
0x97ac   :  { %v5188_v10 = vpop.eup %5187 }
0x97ad   :  { %3604 = vrot.lane.b32.xlu0 %v5188_v10, %s5393_s11 }
0x981f   :  { %v3605_v14 = vpop.permute.xlu0 %3604 }
0x9820   :  { %v3607_v15 = vmul.f32 %v5186_v0, %v3605_v14  ;;  %v3672_v0 = vld [vmem:[#allocation2 + $0x260] sm:$0xff] }
0x9822   :  { %3611 = vperm.xlu1 %4743, %v3607_v15  }
0x98a1   :  { %v3612_v17 = vpop.permute.xlu1 %3611 }
0x98a2   :  { %v3614_v18 = vmul.f32 %v6046_v32, %v3612_v17 }
0x98a4   :  { %v3615_v19 = vadd.f32 %v3614_v18, %v3608_v16  ;;  %v1023_v18 = vpop.f32.mrb[54].mxu1 }
0x98a6   :  { %v3616_v20 = vmul.f32 1.442695, %v3615_v19  ;;  %v1024_v19 = vadd.f32 %v6039_v27, %v1023_v18  ;;  %v192_v18 = vld [vmem:[#allocation3 + $0x508] sm:$0xff] }
0x98a7   :  { %4539 = vmatprep.mubr.msk.f32.mxu1 %vm267_vm0, %v192_v18 }
0x98a8   :  { %5189 = vpow2.f32 %v3616_v20  ;;  %v1025_v20 = vpop.f32.mrb[55].mxu1  ;;  %1215 = vst.msk [vmem:[#allocation2 + $0x268] sm:$0xff] %vm1137_vm2, %v1024_v19  ;;  %v191_v19 = vld [vmem:[#allocation3 + $0x500] sm:$0xff] }
0x98a9   :  { %1037 = vmatmul.mubr.f32.gmra.mrb[60].mxu1 %v191_v19 }
0x98b2   :  { %v5190_v31 = vpop.eup %5189 }
0x98b3   :  { %v3618_v21 = vadd.f32 1.0, %v5190_v31 }
0x98b5   :  { %5191 = vrcp.f32 %v3618_v21 }
0x98bf   :  { %v5192_v22 = vpop.eup %5191 }
0x98c0   :  { %v3621_v23 = vmul.f32 2.0, %v5192_v22  ;;  %v3623_v42 = vmul.f32 %v5192_v22, %v3601_v9 }
0x98c2   :  { %v4634_v36 = vadd.f32 -1.0, %v3621_v23 }
0x98c4   :  { %3625 = vrot.lane.b32.xlu0 %v4634_v36, %s5390_s9 }
0x9936   :  { %v3626_v24 = vpop.permute.xlu0 %3625 }
0x9937   :  { %v3628_v35 = vmul.f32 %v5192_v22, %v3626_v24 }
0x9939   :  { %3630 = vrot.lane.b32.xlu1 %v3628_v35, %s5391_s10 }
0x99ab   :  { %v3631_v28 = vpop.permute.xlu1 %3630 }
0x99ac   :  { %v3633_v40 = vadd.f32 %v3631_v28, %v3623_v42 }
0x99ae   :  { %5193 = vtanh.f32 %v3633_v40 }
0x99b8   :  { %v5194_v29 = vpop.eup %5193 }
0x99b9   :  { %3636 = vrot.lane.b32.xlu0 %v5194_v29, %s5393_s11 }
0x9a2b   :  { %v3637_v33 = vpop.permute.xlu0 %3636 }
0x9a2c   :  { %v3639_v34 = vmul.f32 %v5192_v22, %v3637_v33  ;;  %v3704_v22 = vld [vmem:[#allocation2 + $0x268] sm:$0xff] }
0x9a2e   :  { %3643 = vperm.xlu1 %4743, %v3639_v34  }
0x9aad   :  { %v3644_v37 = vpop.permute.xlu1 %3643 }
0x9aae   :  { %v3646_v38 = vmul.f32 %v6046_v32, %v3644_v37 }
0x9ab0   :  { %v3647_v39 = vadd.f32 %v3646_v38, %v3640_v51  ;;  %v1028_v38 = vpop.f32.mrb[56].mxu1 }
0x9ab2   :  { %v3648_v41 = vmul.f32 1.442695, %v3647_v39  ;;  %v1029_v39 = vadd.f32 %v6039_v27, %v1028_v38 }
0x9ab4   :  { %5195 = vpow2.f32 %v3648_v41  ;;  %v1030_v41 = vpop.f32.mrb[57].mxu1  ;;  %1216 = vst.msk [vmem:[#allocation2 + $0x270] sm:$0xff] %vm1137_vm2, %v1029_v39  ;;  %v194_v39 = vld [vmem:[#allocation3 + $0x518] sm:$0xff] }
0x9ab5   :  { %v193_v41 = vld [vmem:[#allocation3 + $0x510] sm:$0xff]  ;;  %4540 = vmatprep.mubr.msk.f32.mxu1 %vm267_vm0, %v194_v39 }
0x9ab6   :  { %1042 = vmatmul.mubr.f32.gmra.mrb[62].mxu1 %v193_v41 }
0x9abe   :  { %v5196_v43 = vpop.eup %5195 }
0x9abf   :  { %v3650_v44 = vadd.f32 1.0, %v5196_v43 }
0x9ac1   :  { %5197 = vrcp.f32 %v3650_v44 }
0x9acb   :  { %v5198_v45 = vpop.eup %5197 }
0x9acc   :  { %v3653_v46 = vmul.f32 2.0, %v5198_v45  ;;  %v3655_v55 = vmul.f32 %v5198_v45, %v3633_v40 }
0x9ace   :  { %v4635_v49 = vadd.f32 -1.0, %v3653_v46 }
0x9ad0   :  { %3657 = vrot.lane.b32.xlu0 %v4635_v49, %s5390_s9 }
0x9b42   :  { %v3658_v50 = vpop.permute.xlu0 %3657 }
0x9b43   :  { %v3660_v52 = vmul.f32 %v5198_v45, %v3658_v50 }
0x9b45   :  { %3662 = vrot.lane.b32.xlu1 %v3660_v52, %s5391_s10 }
0x9bb7   :  { %v3663_v56 = vpop.permute.xlu1 %3662 }
0x9bb8   :  { %v3665_v57 = vadd.f32 %v3663_v56, %v3655_v55 }
0x9bba   :  { %5199 = vtanh.f32 %v3665_v57 }
0x9bc4   :  { %v5200_v58 = vpop.eup %5199 }
0x9bc5   :  { %3668 = vrot.lane.b32.xlu0 %v5200_v58, %s5393_s11 }
0x9c37   :  { %v3669_v62 = vpop.permute.xlu0 %3668 }
0x9c38   :  { %v3671_v63 = vmul.f32 %v5198_v45, %v3669_v62  ;;  %v3736_v45 = vld [vmem:[#allocation2 + $0x270] sm:$0xff] }
0x9c3a   :  { %3675 = vperm.xlu1 %4743, %v3671_v63  }
0x9cb9   :  { %v3676_v1 = vpop.permute.xlu1 %3675 }
0x9cba   :  { %v3678_v2 = vmul.f32 %v6046_v32, %v3676_v1 }
0x9cbc   :  { %v3679_v3 = vadd.f32 %v3678_v2, %v3672_v0  ;;  %v1033_v2 = vpop.f32.mrb[58].mxu1 }
0x9cbe   :  { %v3680_v4 = vmul.f32 1.442695, %v3679_v3  ;;  %v1034_v3 = vadd.f32 %v6039_v27, %v1033_v2 }
0x9cc0   :  { %5201 = vpow2.f32 %v3680_v4  ;;  %v1035_v4 = vpop.f32.mrb[59].mxu1  ;;  %1217 = vst.msk [vmem:[#allocation2 + $0x278] sm:$0xff] %vm1137_vm2, %v1034_v3  ;;  %v196_v3 = vld [vmem:[#allocation3 + $0x528] sm:$0xff] }
0x9cc1   :  { %v195_v4 = vld [vmem:[#allocation3 + $0x520] sm:$0xff]  ;;  %4541 = vmatprep.mubr.msk.f32.mxu1 %vm267_vm0, %v196_v3 }
0x9cc2   :  { %1047 = vmatmul.mubr.f32.gmra.mrb[64].mxu1 %v195_v4 }
0x9cca   :  { %v5202_v5 = vpop.eup %5201 }
0x9ccb   :  { %v3682_v6 = vadd.f32 1.0, %v5202_v5 }
0x9ccd   :  { %5203 = vrcp.f32 %v3682_v6 }
0x9cd7   :  { %v5204_v7 = vpop.eup %5203 }
0x9cd8   :  { %v3685_v8 = vmul.f32 2.0, %v5204_v7  ;;  %v3687_v14 = vmul.f32 %v5204_v7, %v3665_v57 }
0x9cda   :  { %v4636_v9 = vadd.f32 -1.0, %v3685_v8 }
0x9cdc   :  { %3689 = vrot.lane.b32.xlu0 %v4636_v9, %s5390_s9 }
0x9d4e   :  { %v3690_v10 = vpop.permute.xlu0 %3689 }
0x9d4f   :  { %v3692_v11 = vmul.f32 %v5204_v7, %v3690_v10 }
0x9d51   :  { %3694 = vrot.lane.b32.xlu1 %v3692_v11, %s5391_s10 }
0x9dc3   :  { %v3695_v15 = vpop.permute.xlu1 %3694 }
0x9dc4   :  { %v3697_v16 = vadd.f32 %v3695_v15, %v3687_v14 }
0x9dc6   :  { %5205 = vtanh.f32 %v3697_v16 }
0x9dd0   :  { %v5206_v17 = vpop.eup %5205 }
0x9dd1   :  { %3700 = vrot.lane.b32.xlu0 %v5206_v17, %s5393_s11 }
0x9e43   :  { %v3701_v31 = vpop.permute.xlu0 %3700 }
0x9e44   :  { %v3703_v21 = vmul.f32 %v5204_v7, %v3701_v31  ;;  %v3768_v7 = vld [vmem:[#allocation2 + $0x278] sm:$0xff] }
0x9e46   :  { %3707 = vperm.xlu1 %4743, %v3703_v21  }
0x9ec5   :  { %v3708_v23 = vpop.permute.xlu1 %3707 }
0x9ec6   :  { %v3710_v36 = vmul.f32 %v6046_v32, %v3708_v23  ;;  %v6161_v23 = vld [vmem:[%s6323_s3] ss:$0 sm:$0xff] }
0x9ec8   :  { %v3711_v24 = vadd.f32 %v3710_v36, %v3704_v22  ;;  %v1038_v22 = vpop.f32.mrb[60].mxu1 }
0x9ec9   :  { %v1039_v36 = vadd.f32 %v6161_v23, %v1038_v22 }
0x9eca   :  { %v3712_v35 = vmul.f32 1.442695, %v3711_v24  ;;  %v1040_v24 = vpop.f32.mrb[61].mxu1 }
0x9ecb   :  { %1218 = vst.msk [vmem:[#allocation2 + $0x280] sm:$0xff] %vm1137_vm2, %v1039_v36  ;;  %v198_v36 = vld [vmem:[#allocation3 + $0x538] sm:$0xff]  ;;  %v197_v24 = vld [vmem:[#allocation3 + $0x530] sm:$0xff] }
0x9ecc   :  { %5207 = vpow2.f32 %v3712_v35  ;;  %4542 = vmatprep.mubr.msk.f32.mxu1 %vm267_vm0, %v198_v36 }
0x9ecd   :  { %1052 = vmatmul.mubr.f32.gmra.mrb[66].mxu1 %v197_v24 }
0x9ed6   :  { %v5208_v25 = vpop.eup %5207 }
0x9ed7   :  { %v3714_v26 = vadd.f32 1.0, %v5208_v25 }
0x9ed9   :  { %5209 = vrcp.f32 %v3714_v26  ;;  %v3800_v26 = vld [vmem:[#allocation2 + $0x280] sm:$0xff] }
0x9ee3   :  { %v5210_v42 = vpop.eup %5209 }
0x9ee4   :  { %v3717_v28 = vmul.f32 2.0, %v5210_v42  ;;  %v3719_v33 = vmul.f32 %v5210_v42, %v3697_v16 }
0x9ee6   :  { %v4637_v40 = vadd.f32 -1.0, %v3717_v28  ;;  %v6168_v28 = vld [vmem:[%s6322_s2] ss:$0 sm:$0xff] }
0x9ee8   :  { %3721 = vrot.lane.b32.xlu0 %v4637_v40, %s5390_s9 }
0x9f5a   :  { %v3722_v29 = vpop.permute.xlu0 %3721 }
0x9f5b   :  { %v3724_v30 = vmul.f32 %v5210_v42, %v3722_v29 }
0x9f5d   :  { %3726 = vrot.lane.b32.xlu1 %v3724_v30, %s5391_s10 }
0x9fcf   :  { %v3727_v34 = vpop.permute.xlu1 %3726 }
0x9fd0   :  { %v3729_v51 = vadd.f32 %v3727_v34, %v3719_v33 }
0x9fd2   :  { %5211 = vtanh.f32 %v3729_v51 }
0x9fdc   :  { %v5212_v37 = vpop.eup %5211 }
0x9fdd   :  { %3732 = vrot.lane.b32.xlu0 %v5212_v37, %s5393_s11 }
0xa04f   :  { %v3733_v43 = vpop.permute.xlu0 %3732 }
0xa050   :  { %v3735_v44 = vmul.f32 %v5210_v42, %v3733_v43 }
0xa052   :  { %3739 = vperm.xlu1 %4743, %v3735_v44  }
0xa0d1   :  { %v3740_v46 = vpop.permute.xlu1 %3739 }
0xa0d2   :  { %v3742_v49 = vmul.f32 %v6046_v32, %v3740_v46 }
0xa0d4   :  { %v3743_v50 = vadd.f32 %v3742_v49, %v3736_v45  ;;  %v1043_v49 = vpop.f32.mrb[62].mxu1 }
0xa0d6   :  { %v3744_v52 = vmul.f32 1.442695, %v3743_v50  ;;  %v1044_v50 = vadd.f32 %v6161_v23, %v1043_v49 }
0xa0d8   :  { %5213 = vpow2.f32 %v3744_v52  ;;  %v1045_v52 = vpop.f32.mrb[63].mxu1  ;;  %1219 = vst.msk [vmem:[#allocation2 + $0x288] sm:$0xff] %vm1137_vm2, %v1044_v50  ;;  %v200_v50 = vld [vmem:[#allocation3 + $0x548] sm:$0xff] }
0xa0d9   :  { %v199_v52 = vld [vmem:[#allocation3 + $0x540] sm:$0xff]  ;;  %4543 = vmatprep.mubr.msk.f32.mxu1 %vm267_vm0, %v200_v50 }
0xa0da   :  { %1057 = vmatmul.mubr.f32.gmra.mrb[68].mxu1 %v199_v52 }
0xa0e2   :  { %v5214_v53 = vpop.eup %5213 }
0xa0e3   :  { %v3746_v54 = vadd.f32 1.0, %v5214_v53 }
0xa0e5   :  { %5215 = vrcp.f32 %v3746_v54 }
0xa0ef   :  { %v5216_v55 = vpop.eup %5215 }
0xa0f0   :  { %v3749_v56 = vmul.f32 2.0, %v5216_v55  ;;  %v3751_v62 = vmul.f32 %v5216_v55, %v3729_v51 }
0xa0f2   :  { %v4638_v57 = vadd.f32 -1.0, %v3749_v56 }
0xa0f4   :  { %3753 = vrot.lane.b32.xlu0 %v4638_v57, %s5390_s9 }
0xa166   :  { %v3754_v58 = vpop.permute.xlu0 %3753 }
0xa167   :  { %v3756_v59 = vmul.f32 %v5216_v55, %v3754_v58 }
0xa169   :  { %3758 = vrot.lane.b32.xlu1 %v3756_v59, %s5391_s10 }
0xa1db   :  { %v3759_v63 = vpop.permute.xlu1 %3758 }
0xa1dc   :  { %v3761_v0 = vadd.f32 %v3759_v63, %v3751_v62 }
0xa1de   :  { %5217 = vtanh.f32 %v3761_v0 }
0xa1e8   :  { %v5218_v1 = vpop.eup %5217 }
0xa1e9   :  { %3764 = vrot.lane.b32.xlu0 %v5218_v1, %s5393_s11 }
0xa25b   :  { %v3765_v5 = vpop.permute.xlu0 %3764 }
0xa25c   :  { %v3767_v6 = vmul.f32 %v5216_v55, %v3765_v5  ;;  %v3832_v55 = vld [vmem:[#allocation2 + $0x288] sm:$0xff] }
0xa25e   :  { %3771 = vperm.xlu1 %4743, %v3767_v6  }
0xa2dd   :  { %v3772_v8 = vpop.permute.xlu1 %3771 }
0xa2de   :  { %v3774_v9 = vmul.f32 %v6046_v32, %v3772_v8 }
0xa2e0   :  { %v3775_v10 = vadd.f32 %v3774_v9, %v3768_v7  ;;  %v1048_v9 = vpop.f32.mrb[64].mxu1 }
0xa2e2   :  { %v3776_v11 = vmul.f32 1.442695, %v3775_v10  ;;  %v1049_v10 = vadd.f32 %v6161_v23, %v1048_v9 }
0xa2e4   :  { %5219 = vpow2.f32 %v3776_v11  ;;  %v1050_v11 = vpop.f32.mrb[65].mxu1  ;;  %1220 = vst.msk [vmem:[#allocation2 + $0x290] sm:$0xff] %vm1137_vm2, %v1049_v10  ;;  %v202_v10 = vld [vmem:[#allocation3 + $0x558] sm:$0xff] }
0xa2e5   :  { %v201_v11 = vld [vmem:[#allocation3 + $0x550] sm:$0xff]  ;;  %4544 = vmatprep.mubr.msk.f32.mxu1 %vm267_vm0, %v202_v10 }
0xa2e6   :  { %1062 = vmatmul.mubr.f32.gmra.mrb[70].mxu1 %v201_v11 }
0xa2ee   :  { %v5220_v12 = vpop.eup %5219 }
0xa2ef   :  { %v3778_v13 = vadd.f32 1.0, %v5220_v12 }
0xa2f1   :  { %5221 = vrcp.f32 %v3778_v13 }
0xa2fb   :  { %v5222_v14 = vpop.eup %5221 }
0xa2fc   :  { %v3781_v15 = vmul.f32 2.0, %v5222_v14  ;;  %v3783_v32 = vmul.f32 %v5222_v14, %v3761_v0 }
0xa2fe   :  { %v4639_v16 = vadd.f32 -1.0, %v3781_v15 }
0xa300   :  { %3785 = vrot.lane.b32.xlu0 %v4639_v16, %s5390_s9 }
0xa372   :  { %v3786_v27 = vpop.permute.xlu0 %3785 }
0xa373   :  { %v3788_v17 = vmul.f32 %v5222_v14, %v3786_v27 }
0xa375   :  { %3790 = vrot.lane.b32.xlu1 %v3788_v17, %s5391_s10 }
0xa3e7   :  { %v3791_v20 = vpop.permute.xlu1 %3790 }
0xa3e8   :  { %v3793_v31 = vadd.f32 %v3791_v20, %v3783_v32 }
0xa3ea   :  { %5223 = vtanh.f32 %v3793_v31 }
0xa3f4   :  { %v5224_v21 = vpop.eup %5223 }
0xa3f5   :  { %3796 = vrot.lane.b32.xlu0 %v5224_v21, %s5393_s11 }
0xa467   :  { %v3797_v35 = vpop.permute.xlu0 %3796 }
0xa468   :  { %v3799_v25 = vmul.f32 %v5222_v14, %v3797_v35  ;;  %v3864_v14 = vld [vmem:[#allocation2 + $0x290] sm:$0xff] }
0xa46a   :  { %3803 = vperm.xlu1 %4743, %v3799_v25  }
0xa4e9   :  { %v3804_v42 = vpop.permute.xlu1 %3803 }
0xa4ea   :  { %v3806_v40 = vmul.f32 %v6168_v28, %v3804_v42 }
0xa4ec   :  { %v3807_v29 = vadd.f32 %v3806_v40, %v3800_v26  ;;  %v1053_v40 = vpop.f32.mrb[66].mxu1 }
0xa4ee   :  { %v3808_v30 = vmul.f32 1.442695, %v3807_v29  ;;  %v1054_v29 = vadd.f32 %v6161_v23, %v1053_v40 }
0xa4f0   :  { %5225 = vpow2.f32 %v3808_v30  ;;  %v1055_v30 = vpop.f32.mrb[67].mxu1  ;;  %1221 = vst.msk [vmem:[#allocation2 + $0x298] sm:$0xff] %vm1137_vm2, %v1054_v29  ;;  %v204_v29 = vld [vmem:[#allocation3 + $0x568] sm:$0xff] }
0xa4f1   :  { %v203_v30 = vld [vmem:[#allocation3 + $0x560] sm:$0xff]  ;;  %4545 = vmatprep.mubr.msk.f32.mxu1 %vm267_vm0, %v204_v29 }
0xa4f2   :  { %1067 = vmatmul.mubr.f32.gmra.mrb[72].mxu1 %v203_v30 }
0xa4fa   :  { %v5226_v48 = vpop.eup %5225 }
0xa4fb   :  { %v3810_v47 = vadd.f32 1.0, %v5226_v48 }
0xa4fd   :  { %5227 = vrcp.f32 %v3810_v47 }
0xa507   :  { %v5228_v33 = vpop.eup %5227 }
0xa508   :  { %v3813_v34 = vmul.f32 2.0, %v5228_v33  ;;  %v3815_v43 = vmul.f32 %v5228_v33, %v3793_v31 }
0xa50a   :  { %v4640_v51 = vadd.f32 -1.0, %v3813_v34 }
0xa50c   :  { %3817 = vrot.lane.b32.xlu0 %v4640_v51, %s5390_s9 }
0xa57e   :  { %v3818_v37 = vpop.permute.xlu0 %3817 }
0xa57f   :  { %v3820_v38 = vmul.f32 %v5228_v33, %v3818_v37 }
0xa581   :  { %3822 = vrot.lane.b32.xlu1 %v3820_v38, %s5391_s10 }
0xa5f3   :  { %v3823_v44 = vpop.permute.xlu1 %3822 }
0xa5f4   :  { %v3825_v45 = vadd.f32 %v3823_v44, %v3815_v43 }
0xa5f6   :  { %5229 = vtanh.f32 %v3825_v45 }
0xa600   :  { %v5230_v46 = vpop.eup %5229 }
0xa601   :  { %3828 = vrot.lane.b32.xlu0 %v5230_v46, %s5393_s11 }
0xa673   :  { %v3829_v53 = vpop.permute.xlu0 %3828 }
0xa674   :  { %v3831_v54 = vmul.f32 %v5228_v33, %v3829_v53  ;;  %v3896_v33 = vld [vmem:[#allocation2 + $0x298] sm:$0xff] }
0xa676   :  { %3835 = vperm.xlu1 %4743, %v3831_v54  }
0xa6f5   :  { %v3836_v56 = vpop.permute.xlu1 %3835 }
0xa6f6   :  { %v3838_v57 = vmul.f32 %v6168_v28, %v3836_v56 }
0xa6f8   :  { %v3839_v58 = vadd.f32 %v3838_v57, %v3832_v55  ;;  %v1058_v57 = vpop.f32.mrb[68].mxu1 }
0xa6fa   :  { %v3840_v59 = vmul.f32 1.442695, %v3839_v58  ;;  %v1059_v58 = vadd.f32 %v6161_v23, %v1058_v57 }
0xa6fc   :  { %5231 = vpow2.f32 %v3840_v59  ;;  %v1060_v59 = vpop.f32.mrb[69].mxu1  ;;  %1222 = vst.msk [vmem:[#allocation2 + $0x2a0] sm:$0xff] %vm1137_vm2, %v1059_v58  ;;  %v206_v58 = vld [vmem:[#allocation3 + $0x578] sm:$0xff] }
0xa6fd   :  { %v205_v59 = vld [vmem:[#allocation3 + $0x570] sm:$0xff]  ;;  %4546 = vmatprep.mubr.msk.f32.mxu1 %vm267_vm0, %v206_v58 }
0xa6fe   :  { %1072 = vmatmul.mubr.f32.gmra.mrb[74].mxu1 %v205_v59 }
0xa706   :  { %v5232_v60 = vpop.eup %5231 }
0xa707   :  { %v3842_v61 = vadd.f32 1.0, %v5232_v60 }
0xa709   :  { %5233 = vrcp.f32 %v3842_v61 }
0xa713   :  { %v5234_v62 = vpop.eup %5233 }
0xa714   :  { %v3845_v63 = vmul.f32 2.0, %v5234_v62  ;;  %v3847_v5 = vmul.f32 %v5234_v62, %v3825_v45 }
0xa716   :  { %v4641_v0 = vadd.f32 -1.0, %v3845_v63 }
0xa718   :  { %3849 = vrot.lane.b32.xlu0 %v4641_v0, %s5390_s9 }
0xa78a   :  { %v3850_v1 = vpop.permute.xlu0 %3849 }
0xa78b   :  { %v3852_v2 = vmul.f32 %v5234_v62, %v3850_v1 }
0xa78d   :  { %3854 = vrot.lane.b32.xlu1 %v3852_v2, %s5391_s10 }
0xa7ff   :  { %v3855_v6 = vpop.permute.xlu1 %3854 }
0xa800   :  { %v3857_v7 = vadd.f32 %v3855_v6, %v3847_v5 }
0xa802   :  { %5235 = vtanh.f32 %v3857_v7 }
0xa80c   :  { %v5236_v8 = vpop.eup %5235 }
0xa80d   :  { %3860 = vrot.lane.b32.xlu0 %v5236_v8, %s5393_s11 }
0xa87f   :  { %v3861_v12 = vpop.permute.xlu0 %3860 }
0xa880   :  { %v3863_v13 = vmul.f32 %v5234_v62, %v3861_v12  ;;  %v3928_v62 = vld [vmem:[#allocation2 + $0x2a0] sm:$0xff] }
0xa882   :  { %3867 = vperm.xlu1 %4743, %v3863_v13  }
0xa901   :  { %v3868_v15 = vpop.permute.xlu1 %3867 }
0xa902   :  { %v3870_v16 = vmul.f32 %v6168_v28, %v3868_v15 }
0xa904   :  { %v3871_v27 = vadd.f32 %v3870_v16, %v3864_v14  ;;  %v1063_v16 = vpop.f32.mrb[70].mxu1 }
0xa906   :  { %v3872_v17 = vmul.f32 1.442695, %v3871_v27  ;;  %v1064_v27 = vadd.f32 %v6161_v23, %v1063_v16 }
0xa908   :  { %5237 = vpow2.f32 %v3872_v17  ;;  %v1065_v17 = vpop.f32.mrb[71].mxu1  ;;  %1223 = vst.msk [vmem:[#allocation2 + $0x2a8] sm:$0xff] %vm1137_vm2, %v1064_v27  ;;  %v208_v27 = vld [vmem:[#allocation3 + $0x588] sm:$0xff] }
0xa909   :  { %v207_v17 = vld [vmem:[#allocation3 + $0x580] sm:$0xff]  ;;  %4547 = vmatprep.mubr.msk.f32.mxu1 %vm267_vm0, %v208_v27 }
0xa90a   :  { %1077 = vmatmul.mubr.f32.gmra.mrb[76].mxu1 %v207_v17 }
0xa912   :  { %v5238_v18 = vpop.eup %5237 }
0xa913   :  { %v3874_v19 = vadd.f32 1.0, %v5238_v18 }
0xa915   :  { %5239 = vrcp.f32 %v3874_v19 }
0xa91f   :  { %v5240_v32 = vpop.eup %5239 }
0xa920   :  { %v3877_v20 = vmul.f32 2.0, %v5240_v32  ;;  %v3879_v35 = vmul.f32 %v5240_v32, %v3857_v7 }
0xa922   :  { %v4642_v31 = vadd.f32 -1.0, %v3877_v20 }
0xa924   :  { %3881 = vrot.lane.b32.xlu0 %v4642_v31, %s5390_s9 }
0xa996   :  { %v3882_v21 = vpop.permute.xlu0 %3881 }
0xa997   :  { %v3884_v22 = vmul.f32 %v5240_v32, %v3882_v21 }
0xa999   :  { %3886 = vrot.lane.b32.xlu1 %v3884_v22, %s5391_s10 }
0xaa0b   :  { %v3887_v25 = vpop.permute.xlu1 %3886 }
0xaa0c   :  { %v3889_v26 = vadd.f32 %v3887_v25, %v3879_v35 }
0xaa0e   :  { %5241 = vtanh.f32 %v3889_v26 }
0xaa18   :  { %v5242_v42 = vpop.eup %5241 }
0xaa19   :  { %3892 = vrot.lane.b32.xlu0 %v5242_v42, %s5393_s11 }
0xaa8b   :  { %v3893_v48 = vpop.permute.xlu0 %3892 }
0xaa8c   :  { %v3895_v47 = vmul.f32 %v5240_v32, %v3893_v48  ;;  %v3960_v32 = vld [vmem:[#allocation2 + $0x2a8] sm:$0xff] }
0xaa8e   :  { %3899 = vperm.xlu1 %4743, %v3895_v47  }
0xab0d   :  { %v3900_v34 = vpop.permute.xlu1 %3899 }
0xab0e   :  { %v3902_v51 = vmul.f32 %v6168_v28, %v3900_v34 }
0xab10   :  { %v3903_v37 = vadd.f32 %v3902_v51, %v3896_v33  ;;  %v1068_v51 = vpop.f32.mrb[72].mxu1 }
0xab12   :  { %v3904_v38 = vmul.f32 1.442695, %v3903_v37  ;;  %v1069_v37 = vadd.f32 %v6161_v23, %v1068_v51 }
0xab14   :  { %5243 = vpow2.f32 %v3904_v38  ;;  %v1070_v38 = vpop.f32.mrb[73].mxu1  ;;  %1224 = vst.msk [vmem:[#allocation2 + $0x2b0] sm:$0xff] %vm1137_vm2, %v1069_v37  ;;  %v210_v37 = vld [vmem:[#allocation3 + $0x598] sm:$0xff] }
0xab15   :  { %v209_v38 = vld [vmem:[#allocation3 + $0x590] sm:$0xff]  ;;  %4548 = vmatprep.mubr.msk.f32.mxu1 %vm267_vm0, %v210_v37 }
0xab16   :  { %1082 = vmatmul.mubr.f32.gmra.mrb[78].mxu1 %v209_v38 }
0xab1e   :  { %v5244_v39 = vpop.eup %5243 }
0xab1f   :  { %v3906_v41 = vadd.f32 1.0, %v5244_v39 }
0xab21   :  { %5245 = vrcp.f32 %v3906_v41 }
0xab2b   :  { %v5246_v43 = vpop.eup %5245 }
0xab2c   :  { %v3909_v44 = vmul.f32 2.0, %v5246_v43  ;;  %v3911_v53 = vmul.f32 %v5246_v43, %v3889_v26 }
0xab2e   :  { %v4643_v45 = vadd.f32 -1.0, %v3909_v44 }
0xab30   :  { %3913 = vrot.lane.b32.xlu0 %v4643_v45, %s5390_s9 }
0xaba2   :  { %v3914_v46 = vpop.permute.xlu0 %3913 }
0xaba3   :  { %v3916_v49 = vmul.f32 %v5246_v43, %v3914_v46 }
0xaba5   :  { %3918 = vrot.lane.b32.xlu1 %v3916_v49, %s5391_s10 }
0xac17   :  { %v3919_v54 = vpop.permute.xlu1 %3918 }
0xac18   :  { %v3921_v55 = vadd.f32 %v3919_v54, %v3911_v53 }
0xac1a   :  { %5247 = vtanh.f32 %v3921_v55 }
0xac24   :  { %v5248_v56 = vpop.eup %5247 }
0xac25   :  { %3924 = vrot.lane.b32.xlu0 %v5248_v56, %s5393_s11 }
0xac97   :  { %v3925_v60 = vpop.permute.xlu0 %3924 }
0xac98   :  { %v3927_v61 = vmul.f32 %v5246_v43, %v3925_v60  ;;  %v3992_v43 = vld [vmem:[#allocation2 + $0x2b0] sm:$0xff] }
0xac9a   :  { %3931 = vperm.xlu1 %4743, %v3927_v61  }
0xad19   :  { %v3932_v63 = vpop.permute.xlu1 %3931 }
0xad1a   :  { %v3934_v0 = vmul.f32 %v6168_v28, %v3932_v63 }
0xad1c   :  { %v3935_v1 = vadd.f32 %v3934_v0, %v3928_v62  ;;  %v1073_v0 = vpop.f32.mrb[74].mxu1 }
0xad1e   :  { %v3936_v2 = vmul.f32 1.442695, %v3935_v1  ;;  %v1074_v1 = vadd.f32 %v6161_v23, %v1073_v0 }
0xad20   :  { %5249 = vpow2.f32 %v3936_v2  ;;  %v1075_v2 = vpop.f32.mrb[75].mxu1  ;;  %1225 = vst.msk [vmem:[#allocation2 + $0x2b8] sm:$0xff] %vm1137_vm2, %v1074_v1  ;;  %v212_v1 = vld [vmem:[#allocation3 + $0x5a8] sm:$0xff] }
0xad21   :  { %v211_v2 = vld [vmem:[#allocation3 + $0x5a0] sm:$0xff]  ;;  %4549 = vmatprep.mubr.msk.f32.mxu1 %vm267_vm0, %v212_v1 }
0xad22   :  { %1087 = vmatmul.mubr.f32.gmra.mrb[80].mxu1 %v211_v2 }
0xad2a   :  { %v5250_v3 = vpop.eup %5249 }
0xad2b   :  { %v3938_v4 = vadd.f32 1.0, %v5250_v3 }
0xad2d   :  { %5251 = vrcp.f32 %v3938_v4 }
0xad37   :  { %v5252_v5 = vpop.eup %5251 }
0xad38   :  { %v3941_v6 = vmul.f32 2.0, %v5252_v5  ;;  %v3943_v12 = vmul.f32 %v5252_v5, %v3921_v55 }
0xad3a   :  { %v4644_v7 = vadd.f32 -1.0, %v3941_v6 }
0xad3c   :  { %3945 = vrot.lane.b32.xlu0 %v4644_v7, %s5390_s9 }
0xadae   :  { %v3946_v8 = vpop.permute.xlu0 %3945 }
0xadaf   :  { %v3948_v9 = vmul.f32 %v5252_v5, %v3946_v8 }
0xadb1   :  { %3950 = vrot.lane.b32.xlu1 %v3948_v9, %s5391_s10 }
0xae23   :  { %v3951_v13 = vpop.permute.xlu1 %3950 }
0xae24   :  { %v3953_v14 = vadd.f32 %v3951_v13, %v3943_v12 }
0xae26   :  { %5253 = vtanh.f32 %v3953_v14 }
0xae30   :  { %v5254_v15 = vpop.eup %5253 }
0xae31   :  { %3956 = vrot.lane.b32.xlu0 %v5254_v15, %s5393_s11 }
0xaea3   :  { %v3957_v18 = vpop.permute.xlu0 %3956 }
0xaea4   :  { %v3959_v19 = vmul.f32 %v5252_v5, %v3957_v18  ;;  %v4024_v5 = vld [vmem:[#allocation2 + $0x2b8] sm:$0xff] }
0xaea6   :  { %3963 = vperm.xlu1 %4743, %v3959_v19  }
0xaf25   :  { %v3964_v20 = vpop.permute.xlu1 %3963 }
0xaf26   :  { %v3966_v31 = vmul.f32 %v6168_v28, %v3964_v20 }
0xaf28   :  { %v3967_v21 = vadd.f32 %v3966_v31, %v3960_v32  ;;  %v1078_v31 = vpop.f32.mrb[76].mxu1 }
0xaf2a   :  { %v3968_v22 = vmul.f32 1.442695, %v3967_v21  ;;  %v1079_v21 = vadd.f32 %v6161_v23, %v1078_v31 }
0xaf2c   :  { %5255 = vpow2.f32 %v3968_v22  ;;  %v1080_v22 = vpop.f32.mrb[77].mxu1  ;;  %1226 = vst.msk [vmem:[#allocation2 + $0x2c0] sm:$0xff] %vm1137_vm2, %v1079_v21  ;;  %v214_v21 = vld [vmem:[#allocation3 + $0x5b8] sm:$0xff] }
0xaf2d   :  { %v213_v22 = vld [vmem:[#allocation3 + $0x5b0] sm:$0xff]  ;;  %4550 = vmatprep.mubr.msk.f32.mxu1 %vm267_vm0, %v214_v21 }
0xaf2e   :  { %1092 = vmatmul.mubr.f32.gmra.mrb[82].mxu1 %v213_v22 }
0xaf36   :  { %v5256_v36 = vpop.eup %5255 }
0xaf37   :  { %v3970_v24 = vadd.f32 1.0, %v5256_v36 }
0xaf39   :  { %5257 = vrcp.f32 %v3970_v24 }
0xaf43   :  { %v5258_v35 = vpop.eup %5257 }
0xaf44   :  { %v3973_v25 = vmul.f32 2.0, %v5258_v35  ;;  %v3975_v48 = vmul.f32 %v5258_v35, %v3953_v14 }
0xaf46   :  { %v4645_v26 = vadd.f32 -1.0, %v3973_v25 }
0xaf48   :  { %3977 = vrot.lane.b32.xlu0 %v4645_v26, %s5390_s9 }
0xafba   :  { %v3978_v42 = vpop.permute.xlu0 %3977 }
0xafbb   :  { %v3980_v40 = vmul.f32 %v5258_v35, %v3978_v42 }
0xafbd   :  { %3982 = vrot.lane.b32.xlu1 %v3980_v40, %s5391_s10 }
0xb02f   :  { %v3983_v47 = vpop.permute.xlu1 %3982 }
0xb030   :  { %v3985_v33 = vadd.f32 %v3983_v47, %v3975_v48 }
0xb032   :  { %5259 = vtanh.f32 %v3985_v33 }
0xb03c   :  { %v5260_v34 = vpop.eup %5259 }
0xb03d   :  { %3988 = vrot.lane.b32.xlu0 %v5260_v34, %s5393_s11 }
0xb0af   :  { %v3989_v39 = vpop.permute.xlu0 %3988 }
0xb0b0   :  { %v3991_v41 = vmul.f32 %v5258_v35, %v3989_v39  ;;  %v4056_v35 = vld [vmem:[#allocation2 + $0x2c0] sm:$0xff] }
0xb0b2   :  { %3995 = vperm.xlu1 %4743, %v3991_v41  }
0xb131   :  { %v3996_v44 = vpop.permute.xlu1 %3995 }
0xb132   :  { %v3998_v45 = vmul.f32 %v6168_v28, %v3996_v44 }
0xb134   :  { %v3999_v46 = vadd.f32 %v3998_v45, %v3992_v43  ;;  %v1083_v45 = vpop.f32.mrb[78].mxu1 }
0xb136   :  { %v4000_v49 = vmul.f32 1.442695, %v3999_v46  ;;  %v1084_v46 = vadd.f32 %v6161_v23, %v1083_v45 }
0xb138   :  { %5261 = vpow2.f32 %v4000_v49  ;;  %v1085_v49 = vpop.f32.mrb[79].mxu1  ;;  %1227 = vst.msk [vmem:[#allocation2 + $0x2c8] sm:$0xff] %vm1137_vm2, %v1084_v46  ;;  %v216_v46 = vld [vmem:[#allocation3 + $0x5c8] sm:$0xff] }
0xb139   :  { %v215_v49 = vld [vmem:[#allocation3 + $0x5c0] sm:$0xff]  ;;  %4551 = vmatprep.mubr.msk.f32.mxu1 %vm267_vm0, %v216_v46 }
0xb13a   :  { %1097 = vmatmul.mubr.f32.gmra.mrb[84].mxu1 %v215_v49 }
0xb142   :  { %v5262_v50 = vpop.eup %5261 }
0xb143   :  { %v4002_v52 = vadd.f32 1.0, %v5262_v50 }
0xb145   :  { %5263 = vrcp.f32 %v4002_v52 }
0xb14f   :  { %v5264_v53 = vpop.eup %5263 }
0xb150   :  { %v4005_v54 = vmul.f32 2.0, %v5264_v53  ;;  %v4007_v60 = vmul.f32 %v5264_v53, %v3985_v33 }
0xb152   :  { %v4646_v55 = vadd.f32 -1.0, %v4005_v54 }
0xb154   :  { %4009 = vrot.lane.b32.xlu0 %v4646_v55, %s5390_s9 }
0xb1c6   :  { %v4010_v56 = vpop.permute.xlu0 %4009 }
0xb1c7   :  { %v4012_v57 = vmul.f32 %v5264_v53, %v4010_v56 }
0xb1c9   :  { %4014 = vrot.lane.b32.xlu1 %v4012_v57, %s5391_s10 }
0xb23b   :  { %v4015_v61 = vpop.permute.xlu1 %4014 }
0xb23c   :  { %v4017_v62 = vadd.f32 %v4015_v61, %v4007_v60 }
0xb23e   :  { %5265 = vtanh.f32 %v4017_v62 }
0xb248   :  { %v5266_v63 = vpop.eup %5265 }
0xb249   :  { %4020 = vrot.lane.b32.xlu0 %v5266_v63, %s5393_s11 }
0xb2bb   :  { %v4021_v3 = vpop.permute.xlu0 %4020 }
0xb2bc   :  { %v4023_v4 = vmul.f32 %v5264_v53, %v4021_v3  ;;  %v4088_v53 = vld [vmem:[#allocation2 + $0x2c8] sm:$0xff] }
0xb2be   :  { %4027 = vperm.xlu1 %4743, %v4023_v4  }
0xb33d   :  { %v4028_v6 = vpop.permute.xlu1 %4027 }
0xb33e   :  { %v4030_v7 = vmul.f32 %v6168_v28, %v4028_v6 }
0xb340   :  { %v4031_v8 = vadd.f32 %v4030_v7, %v4024_v5  ;;  %v1088_v7 = vpop.f32.mrb[80].mxu1 }
0xb342   :  { %v4032_v9 = vmul.f32 1.442695, %v4031_v8  ;;  %v1089_v8 = vadd.f32 %v6161_v23, %v1088_v7 }
0xb344   :  { %5267 = vpow2.f32 %v4032_v9  ;;  %v1090_v9 = vpop.f32.mrb[81].mxu1  ;;  %1228 = vst.msk [vmem:[#allocation2 + $0x2d0] sm:$0xff] %vm1137_vm2, %v1089_v8  ;;  %v218_v8 = vld [vmem:[#allocation3 + $0x5d8] sm:$0xff] }
0xb345   :  { %v217_v9 = vld [vmem:[#allocation3 + $0x5d0] sm:$0xff]  ;;  %4552 = vmatprep.mubr.msk.f32.mxu1 %vm267_vm0, %v218_v8 }
0xb346   :  { %1102 = vmatmul.mubr.f32.gmra.mrb[86].mxu1 %v217_v9 }
0xb34e   :  { %v5268_v10 = vpop.eup %5267 }
0xb34f   :  { %v4034_v11 = vadd.f32 1.0, %v5268_v10 }
0xb351   :  { %5269 = vrcp.f32 %v4034_v11 }
0xb35b   :  { %v5270_v12 = vpop.eup %5269 }
0xb35c   :  { %v4037_v13 = vmul.f32 2.0, %v5270_v12  ;;  %v4039_v18 = vmul.f32 %v5270_v12, %v4017_v62 }
0xb35e   :  { %v4647_v14 = vadd.f32 -1.0, %v4037_v13 }
0xb360   :  { %4041 = vrot.lane.b32.xlu0 %v4647_v14, %s5390_s9 }
0xb3d2   :  { %v4042_v15 = vpop.permute.xlu0 %4041 }
0xb3d3   :  { %v4044_v16 = vmul.f32 %v5270_v12, %v4042_v15 }
0xb3d5   :  { %4046 = vrot.lane.b32.xlu1 %v4044_v16, %s5391_s10 }
0xb447   :  { %v4047_v19 = vpop.permute.xlu1 %4046 }
0xb448   :  { %v4049_v32 = vadd.f32 %v4047_v19, %v4039_v18 }
0xb44a   :  { %5271 = vtanh.f32 %v4049_v32 }
0xb454   :  { %v5272_v20 = vpop.eup %5271 }
0xb455   :  { %4052 = vrot.lane.b32.xlu0 %v5272_v20, %s5393_s11 }
0xb4c7   :  { %v4053_v36 = vpop.permute.xlu0 %4052 }
0xb4c8   :  { %v4055_v24 = vmul.f32 %v5270_v12, %v4053_v36  ;;  %v4120_v12 = vld [vmem:[#allocation2 + $0x2d0] sm:$0xff] }
0xb4ca   :  { %4059 = vperm.xlu1 %4743, %v4055_v24  }
0xb549   :  { %v4060_v25 = vpop.permute.xlu1 %4059 }
0xb54a   :  { %v4062_v26 = vmul.f32 %v6168_v28, %v4060_v25 }
0xb54c   :  { %v4063_v42 = vadd.f32 %v4062_v26, %v4056_v35  ;;  %v1093_v26 = vpop.f32.mrb[82].mxu1 }
0xb54e   :  { %v4064_v40 = vmul.f32 1.442695, %v4063_v42  ;;  %v1094_v42 = vadd.f32 %v6161_v23, %v1093_v26 }
0xb550   :  { %5273 = vpow2.f32 %v4064_v40  ;;  %v1095_v40 = vpop.f32.mrb[83].mxu1  ;;  %1229 = vst.msk [vmem:[#allocation2 + $0x2d8] sm:$0xff] %vm1137_vm2, %v1094_v42  ;;  %v220_v42 = vld [vmem:[#allocation3 + $0x5e8] sm:$0xff] }
0xb551   :  { %v219_v40 = vld [vmem:[#allocation3 + $0x5e0] sm:$0xff]  ;;  %4553 = vmatprep.mubr.msk.f32.mxu1 %vm267_vm0, %v220_v42 }
0xb552   :  { %1107 = vmatmul.mubr.f32.gmra.mrb[88].mxu1 %v219_v40 }
0xb55a   :  { %v5274_v29 = vpop.eup %5273 }
0xb55b   :  { %v4066_v30 = vadd.f32 1.0, %v5274_v29 }
0xb55d   :  { %5275 = vrcp.f32 %v4066_v30 }
0xb567   :  { %v5276_v48 = vpop.eup %5275 }
0xb568   :  { %v4069_v47 = vmul.f32 2.0, %v5276_v48  ;;  %v4071_v39 = vmul.f32 %v5276_v48, %v4049_v32 }
0xb56a   :  { %v4648_v33 = vadd.f32 -1.0, %v4069_v47 }
0xb56c   :  { %4073 = vrot.lane.b32.xlu0 %v4648_v33, %s5390_s9 }
0xb5de   :  { %v4074_v34 = vpop.permute.xlu0 %4073 }
0xb5df   :  { %v4076_v51 = vmul.f32 %v5276_v48, %v4074_v34 }
0xb5e1   :  { %4078 = vrot.lane.b32.xlu1 %v4076_v51, %s5391_s10 }
0xb653   :  { %v4079_v41 = vpop.permute.xlu1 %4078 }
0xb654   :  { %v4081_v43 = vadd.f32 %v4079_v41, %v4071_v39 }
0xb656   :  { %5277 = vtanh.f32 %v4081_v43 }
0xb660   :  { %v5278_v44 = vpop.eup %5277 }
0xb661   :  { %4084 = vrot.lane.b32.xlu0 %v5278_v44, %s5393_s11 }
0xb6d3   :  { %v4085_v50 = vpop.permute.xlu0 %4084 }
0xb6d4   :  { %v4087_v52 = vmul.f32 %v5276_v48, %v4085_v50  ;;  %v4152_v48 = vld [vmem:[#allocation2 + $0x2d8] sm:$0xff] }
0xb6d6   :  { %4091 = vperm.xlu1 %4743, %v4087_v52  }
0xb755   :  { %v4092_v54 = vpop.permute.xlu1 %4091 }
0xb756   :  { %v4094_v55 = vmul.f32 %v6168_v28, %v4092_v54 }
0xb758   :  { %v4095_v56 = vadd.f32 %v4094_v55, %v4088_v53  ;;  %v1098_v55 = vpop.f32.mrb[84].mxu1 }
0xb75a   :  { %v4096_v57 = vmul.f32 1.442695, %v4095_v56  ;;  %v1099_v56 = vadd.f32 %v6161_v23, %v1098_v55 }
0xb75c   :  { %5279 = vpow2.f32 %v4096_v57  ;;  %v1100_v57 = vpop.f32.mrb[85].mxu1  ;;  %1230 = vst.msk [vmem:[#allocation2 + $0x2e0] sm:$0xff] %vm1137_vm2, %v1099_v56  ;;  %v222_v56 = vld [vmem:[#allocation3 + $0x5f8] sm:$0xff] }
0xb75d   :  { %v221_v57 = vld [vmem:[#allocation3 + $0x5f0] sm:$0xff]  ;;  %4554 = vmatprep.mubr.msk.f32.mxu1 %vm267_vm0, %v222_v56 }
0xb75e   :  { %1112 = vmatmul.mubr.f32.gmra.mrb[90].mxu1 %v221_v57 }
0xb766   :  { %v5280_v58 = vpop.eup %5279 }
0xb767   :  { %v4098_v59 = vadd.f32 1.0, %v5280_v58 }
0xb769   :  { %5281 = vrcp.f32 %v4098_v59 }
0xb773   :  { %v5282_v60 = vpop.eup %5281 }
0xb774   :  { %v4101_v61 = vmul.f32 2.0, %v5282_v60  ;;  %v4103_v3 = vmul.f32 %v5282_v60, %v4081_v43 }
0xb776   :  { %v4649_v62 = vadd.f32 -1.0, %v4101_v61 }
0xb778   :  { %4105 = vrot.lane.b32.xlu0 %v4649_v62, %s5390_s9 }
0xb7ea   :  { %v4106_v63 = vpop.permute.xlu0 %4105 }
0xb7eb   :  { %v4108_v0 = vmul.f32 %v5282_v60, %v4106_v63 }
0xb7ed   :  { %4110 = vrot.lane.b32.xlu1 %v4108_v0, %s5391_s10 }
0xb85f   :  { %v4111_v4 = vpop.permute.xlu1 %4110 }
0xb860   :  { %v4113_v5 = vadd.f32 %v4111_v4, %v4103_v3 }
0xb862   :  { %5283 = vtanh.f32 %v4113_v5 }
0xb86c   :  { %v5284_v6 = vpop.eup %5283 }
0xb86d   :  { %4116 = vrot.lane.b32.xlu0 %v5284_v6, %s5393_s11 }
0xb8df   :  { %v4117_v10 = vpop.permute.xlu0 %4116 }
0xb8e0   :  { %v4119_v11 = vmul.f32 %v5282_v60, %v4117_v10  ;;  %v4184_v60 = vld [vmem:[#allocation2 + $0x2e0] sm:$0xff] }
0xb8e2   :  { %4123 = vperm.xlu1 %4743, %v4119_v11  }
0xb961   :  { %v4124_v13 = vpop.permute.xlu1 %4123 }
0xb962   :  { %v4126_v14 = vmul.f32 %v6168_v28, %v4124_v13 }
0xb964   :  { %v4127_v15 = vadd.f32 %v4126_v14, %v4120_v12  ;;  %v1103_v14 = vpop.f32.mrb[86].mxu1 }
0xb966   :  { %v4128_v16 = vmul.f32 1.442695, %v4127_v15  ;;  %v1104_v15 = vadd.f32 %v6161_v23, %v1103_v14  ;;  %v224_v14 = vld [vmem:[#allocation3 + $0x608] sm:$0xff] }
0xb967   :  { %4555 = vmatprep.mubr.msk.f32.mxu1 %vm267_vm0, %v224_v14 }
0xb968   :  { %5285 = vpow2.f32 %v4128_v16  ;;  %v1105_v16 = vpop.f32.mrb[87].mxu1  ;;  %1231 = vst.msk [vmem:[#allocation2 + $0x2e8] sm:$0xff] %vm1137_vm2, %v1104_v15  ;;  %v223_v15 = vld [vmem:[#allocation3 + $0x600] sm:$0xff] }
0xb969   :  { %1117 = vmatmul.mubr.f32.gmra.mrb[92].mxu1 %v223_v15 }
0xb972   :  { %v5286_v27 = vpop.eup %5285 }
0xb973   :  { %v4130_v17 = vadd.f32 1.0, %v5286_v27 }
0xb975   :  { %5287 = vrcp.f32 %v4130_v17 }
0xb97f   :  { %v5288_v18 = vpop.eup %5287 }
0xb980   :  { %v4133_v19 = vmul.f32 2.0, %v5288_v18  ;;  %v4135_v36 = vmul.f32 %v5288_v18, %v4113_v5 }
0xb982   :  { %v4650_v32 = vadd.f32 -1.0, %v4133_v19 }
0xb984   :  { %4137 = vrot.lane.b32.xlu0 %v4650_v32, %s5390_s9 }
0xb9f6   :  { %v4138_v20 = vpop.permute.xlu0 %4137 }
0xb9f7   :  { %v4140_v31 = vmul.f32 %v5288_v18, %v4138_v20 }
0xb9f9   :  { %4142 = vrot.lane.b32.xlu1 %v4140_v31, %s5391_s10 }
0xba6b   :  { %v4143_v24 = vpop.permute.xlu1 %4142 }
0xba6c   :  { %v4145_v35 = vadd.f32 %v4143_v24, %v4135_v36 }
0xba6e   :  { %5289 = vtanh.f32 %v4145_v35 }
0xba78   :  { %v5290_v25 = vpop.eup %5289 }
0xba79   :  { %4148 = vrot.lane.b32.xlu0 %v5290_v25, %s5393_s11 }
0xbaeb   :  { %v4149_v29 = vpop.permute.xlu0 %4148 }
0xbaec   :  { %v4151_v30 = vmul.f32 %v5288_v18, %v4149_v29  ;;  %v4216_v18 = vld [vmem:[#allocation2 + $0x2e8] sm:$0xff] }
0xbaee   :  { %4155 = vperm.xlu1 %4743, %v4151_v30  }
0xbb6d   :  { %v4156_v47 = vpop.permute.xlu1 %4155 }
0xbb6e   :  { %v4158_v33 = vmul.f32 %v6168_v28, %v4156_v47 }
0xbb70   :  { %v4159_v34 = vadd.f32 %v4158_v33, %v4152_v48  ;;  %v1108_v33 = vpop.f32.mrb[88].mxu1 }
0xbb72   :  { %v4160_v51 = vmul.f32 1.442695, %v4159_v34  ;;  %v1109_v34 = vadd.f32 %v6161_v23, %v1108_v33 }
0xbb74   :  { %5291 = vpow2.f32 %v4160_v51  ;;  %v1110_v51 = vpop.f32.mrb[89].mxu1  ;;  %1232 = vst.msk [vmem:[#allocation2 + $0x2f0] sm:$0xff] %vm1137_vm2, %v1109_v34  ;;  %v226_v34 = vld [vmem:[#allocation3 + $0x618] sm:$0xff] }
0xbb75   :  { %v225_v51 = vld [vmem:[#allocation3 + $0x610] sm:$0xff]  ;;  %4556 = vmatprep.mubr.msk.f32.mxu1 %vm267_vm0, %v226_v34 }
0xbb76   :  { %1122 = vmatmul.mubr.f32.gmra.mrb[94].mxu1 %v225_v51 }
0xbb7e   :  { %v5292_v37 = vpop.eup %5291 }
0xbb7f   :  { %v4162_v38 = vadd.f32 1.0, %v5292_v37 }
0xbb81   :  { %5293 = vrcp.f32 %v4162_v38 }
0xbb8b   :  { %v5294_v39 = vpop.eup %5293 }
0xbb8c   :  { %v4165_v41 = vmul.f32 2.0, %v5294_v39  ;;  %v4167_v50 = vmul.f32 %v5294_v39, %v4145_v35 }
0xbb8e   :  { %v4651_v43 = vadd.f32 -1.0, %v4165_v41 }
0xbb90   :  { %4169 = vrot.lane.b32.xlu0 %v4651_v43, %s5390_s9 }
0xbc02   :  { %v4170_v44 = vpop.permute.xlu0 %4169 }
0xbc03   :  { %v4172_v45 = vmul.f32 %v5294_v39, %v4170_v44 }
0xbc05   :  { %4174 = vrot.lane.b32.xlu1 %v4172_v45, %s5391_s10 }
0xbc77   :  { %v4175_v52 = vpop.permute.xlu1 %4174 }
0xbc78   :  { %v4177_v53 = vadd.f32 %v4175_v52, %v4167_v50 }
0xbc7a   :  { %5295 = vtanh.f32 %v4177_v53 }
0xbc84   :  { %v5296_v54 = vpop.eup %5295 }
0xbc85   :  { %4180 = vrot.lane.b32.xlu0 %v5296_v54, %s5393_s11 }
0xbcf7   :  { %v4181_v58 = vpop.permute.xlu0 %4180 }
0xbcf8   :  { %v4183_v59 = vmul.f32 %v5294_v39, %v4181_v58  ;;  %v4248_v39 = vld [vmem:[#allocation2 + $0x2f0] sm:$0xff] }
0xbcfa   :  { %4187 = vperm.xlu1 %4743, %v4183_v59  }
0xbd79   :  { %v4188_v61 = vpop.permute.xlu1 %4187 }
0xbd7a   :  { %v4190_v62 = vmul.f32 %v6168_v28, %v4188_v61 }
0xbd7c   :  { %v4191_v63 = vadd.f32 %v4190_v62, %v4184_v60  ;;  %v1113_v62 = vpop.f32.mrb[90].mxu1 }
0xbd7e   :  { %v4192_v0 = vmul.f32 1.442695, %v4191_v63  ;;  %v1114_v63 = vadd.f32 %v6161_v23, %v1113_v62 }
0xbd80   :  { %5297 = vpow2.f32 %v4192_v0  ;;  %v1115_v0 = vpop.f32.mrb[91].mxu1  ;;  %1233 = vst.msk [vmem:[#allocation2 + $0x2f8] sm:$0xff] %vm1137_vm2, %v1114_v63  ;;  %v228_v63 = vld [vmem:[#allocation3 + $0x628] sm:$0xff] }
0xbd81   :  { %v227_v0 = vld [vmem:[#allocation3 + $0x620] sm:$0xff]  ;;  %4557 = vmatprep.mubr.msk.f32.mxu1 %vm267_vm0, %v228_v63 }
0xbd82   :  { %1127 = vmatmul.mubr.f32.gmra.mrb[96].mxu1 %v227_v0 }
0xbd8a   :  { %v5298_v1 = vpop.eup %5297 }
0xbd8b   :  { %v4194_v2 = vadd.f32 1.0, %v5298_v1 }
0xbd8d   :  { %5299 = vrcp.f32 %v4194_v2 }
0xbd97   :  { %v5300_v3 = vpop.eup %5299 }
0xbd98   :  { %v4197_v4 = vmul.f32 2.0, %v5300_v3  ;;  %v4199_v10 = vmul.f32 %v5300_v3, %v4177_v53 }
0xbd9a   :  { %v4652_v5 = vadd.f32 -1.0, %v4197_v4 }
0xbd9c   :  { %4201 = vrot.lane.b32.xlu0 %v4652_v5, %s5390_s9 }
0xbe0e   :  { %v4202_v6 = vpop.permute.xlu0 %4201 }
0xbe0f   :  { %v4204_v7 = vmul.f32 %v5300_v3, %v4202_v6 }
0xbe11   :  { %4206 = vrot.lane.b32.xlu1 %v4204_v7, %s5391_s10 }
0xbe83   :  { %v4207_v11 = vpop.permute.xlu1 %4206 }
0xbe84   :  { %v4209_v12 = vadd.f32 %v4207_v11, %v4199_v10 }
0xbe86   :  { %5301 = vtanh.f32 %v4209_v12 }
0xbe90   :  { %v5302_v13 = vpop.eup %5301 }
0xbe91   :  { %4212 = vrot.lane.b32.xlu0 %v5302_v13, %s5393_s11 }
0xbf03   :  { %v4213_v27 = vpop.permute.xlu0 %4212 }
0xbf04   :  { %v4215_v17 = vmul.f32 %v5300_v3, %v4213_v27  ;;  %v4280_v3 = vld [vmem:[#allocation2 + $0x2f8] sm:$0xff] }
0xbf06   :  { %4219 = vperm.xlu1 %4743, %v4215_v17  }
0xbf85   :  { %v4220_v19 = vpop.permute.xlu1 %4219 }
0xbf86   :  { %v4222_v32 = vmul.f32 %v6168_v28, %v4220_v19  ;;  %v6283_v19 = vld [vmem:[%s6323_s3] ss:$0 sm:$0xff] }
0xbf88   :  { %v4223_v20 = vadd.f32 %v4222_v32, %v4216_v18  ;;  %v1118_v18 = vpop.f32.mrb[92].mxu1 }
0xbf89   :  { %v1119_v32 = vadd.f32 %v6283_v19, %v1118_v18 }
0xbf8a   :  { %v4224_v31 = vmul.f32 1.442695, %v4223_v20  ;;  %v1120_v20 = vpop.f32.mrb[93].mxu1 }
0xbf8b   :  { %1234 = vst.msk [vmem:[#allocation2 + $0x300] sm:$0xff] %vm1137_vm2, %v1119_v32  ;;  %v230_v32 = vld [vmem:[#allocation3 + $0x638] sm:$0xff]  ;;  %v229_v20 = vld [vmem:[#allocation3 + $0x630] sm:$0xff] }
0xbf8c   :  { %5303 = vpow2.f32 %v4224_v31  ;;  %4558 = vmatprep.mubr.msk.f32.mxu1 %vm267_vm0, %v230_v32 }
0xbf8d   :  { %1132 = vmatmul.mubr.f32.gmra.mrb[98].mxu1 %v229_v20 }
0xbf96   :  { %v5304_v21 = vpop.eup %5303 }
0xbf97   :  { %v4226_v22 = vadd.f32 1.0, %v5304_v21 }
0xbf99   :  { %5305 = vrcp.f32 %v4226_v22  ;;  %v4312_v22 = vld [vmem:[#allocation2 + $0x300] sm:$0xff] }
0xbfa3   :  { %v5306_v36 = vpop.eup %5305 }
0xbfa4   :  { %v4229_v24 = vmul.f32 2.0, %v5306_v36  ;;  %v4231_v29 = vmul.f32 %v5306_v36, %v4209_v12 }
0xbfa6   :  { %v4653_v35 = vadd.f32 -1.0, %v4229_v24  ;;  %v6290_v24 = vld [vmem:[%s6322_s2] ss:$0 sm:$0xff]  ;;  %s5394_s2 = smov 125  }
0xbfa8   :  { %4233 = vrot.lane.b32.xlu0 %v4653_v35, %s5390_s9 }
0xc01a   :  { %v4234_v25 = vpop.permute.xlu0 %4233 }
0xc01b   :  { %v4236_v26 = vmul.f32 %v5306_v36, %v4234_v25 }
0xc01d   :  { %4238 = vrot.lane.b32.xlu1 %v4236_v26, %s5391_s10 }
0xc08f   :  { %v4239_v30 = vpop.permute.xlu1 %4238 }
0xc090   :  { %v4241_v48 = vadd.f32 %v4239_v30, %v4231_v29 }
0xc092   :  { %5307 = vtanh.f32 %v4241_v48 }
0xc09c   :  { %v5308_v47 = vpop.eup %5307 }
0xc09d   :  { %4244 = vrot.lane.b32.xlu0 %v5308_v47, %s5393_s11 }
0xc10f   :  { %v4245_v37 = vpop.permute.xlu0 %4244 }
0xc110   :  { %v4247_v38 = vmul.f32 %v5306_v36, %v4245_v37 }
0xc112   :  { %4251 = vperm.xlu1 %4743, %v4247_v38  }
0xc191   :  { %v4252_v41 = vpop.permute.xlu1 %4251 }
0xc192   :  { %v4254_v43 = vmul.f32 %v6168_v28, %v4252_v41 }
0xc194   :  { %v4255_v44 = vadd.f32 %v4254_v43, %v4248_v39  ;;  %v1123_v43 = vpop.f32.mrb[94].mxu1 }
0xc196   :  { %v4256_v45 = vmul.f32 1.442695, %v4255_v44  ;;  %v1124_v44 = vadd.f32 %v6283_v19, %v1123_v43 }
0xc198   :  { %5309 = vpow2.f32 %v4256_v45  ;;  %v1125_v45 = vpop.f32.mrb[95].mxu1  ;;  %1235 = vst.msk [vmem:[#allocation2 + $0x308] sm:$0xff] %vm1137_vm2, %v1124_v44 }
0xc1a2   :  { %v5310_v46 = vpop.eup %5309 }
0xc1a3   :  { %v4258_v49 = vadd.f32 1.0, %v5310_v46 }
0xc1a5   :  { %5311 = vrcp.f32 %v4258_v49 }
0xc1af   :  { %v5312_v50 = vpop.eup %5311 }
0xc1b0   :  { %v4261_v52 = vmul.f32 2.0, %v5312_v50  ;;  %v4263_v58 = vmul.f32 %v5312_v50, %v4241_v48 }
0xc1b2   :  { %v4654_v53 = vadd.f32 -1.0, %v4261_v52 }
0xc1b4   :  { %4265 = vrot.lane.b32.xlu0 %v4654_v53, %s5390_s9 }
0xc226   :  { %v4266_v54 = vpop.permute.xlu0 %4265 }
0xc227   :  { %v4268_v55 = vmul.f32 %v5312_v50, %v4266_v54 }
0xc229   :  { %4270 = vrot.lane.b32.xlu1 %v4268_v55, %s5391_s10 }
0xc29b   :  { %v4271_v59 = vpop.permute.xlu1 %4270 }
0xc29c   :  { %v4273_v60 = vadd.f32 %v4271_v59, %v4263_v58 }
0xc29e   :  { %5313 = vtanh.f32 %v4273_v60 }
0xc2a8   :  { %v5314_v61 = vpop.eup %5313 }
0xc2a9   :  { %4276 = vrot.lane.b32.xlu0 %v5314_v61, %s5393_s11 }
0xc31b   :  { %v4277_v1 = vpop.permute.xlu0 %4276 }
0xc31c   :  { %v4279_v2 = vmul.f32 %v5312_v50, %v4277_v1  ;;  %v4344_v50 = vld [vmem:[#allocation2 + $0x308] sm:$0xff] }
0xc31e   :  { %4283 = vperm.xlu1 %4743, %v4279_v2  }
0xc39d   :  { %v4284_v4 = vpop.permute.xlu1 %4283 }
0xc39e   :  { %v4286_v5 = vmul.f32 %v6168_v28, %v4284_v4 }
0xc3a0   :  { %v4287_v6 = vadd.f32 %v4286_v5, %v4280_v3  ;;  %v1128_v5 = vpop.f32.mrb[96].mxu1 }
0xc3a2   :  { %v4288_v7 = vmul.f32 1.442695, %v4287_v6  ;;  %v1129_v6 = vadd.f32 %v6283_v19, %v1128_v5 }
0xc3a4   :  { %5315 = vpow2.f32 %v4288_v7  ;;  %v1130_v7 = vpop.f32.mrb[97].mxu1  ;;  %1236 = vst.msk [vmem:[#allocation2 + $0x310] sm:$0xff] %vm1137_vm2, %v1129_v6 }
0xc3ae   :  { %v5316_v8 = vpop.eup %5315 }
0xc3af   :  { %v4290_v9 = vadd.f32 1.0, %v5316_v8 }
0xc3b1   :  { %5317 = vrcp.f32 %v4290_v9 }
0xc3bb   :  { %v5318_v10 = vpop.eup %5317 }
0xc3bc   :  { %v4293_v11 = vmul.f32 2.0, %v5318_v10  ;;  %v4295_v28 = vmul.f32 %v5318_v10, %v4273_v60 }
0xc3be   :  { %v4655_v12 = vadd.f32 -1.0, %v4293_v11 }
0xc3c0   :  { %4297 = vrot.lane.b32.xlu0 %v4655_v12, %s5390_s9 }
0xc432   :  { %v4298_v23 = vpop.permute.xlu0 %4297 }
0xc433   :  { %v4300_v13 = vmul.f32 %v5318_v10, %v4298_v23 }
0xc435   :  { %4302 = vrot.lane.b32.xlu1 %v4300_v13, %s5391_s10 }
0xc4a7   :  { %v4303_v16 = vpop.permute.xlu1 %4302 }
0xc4a8   :  { %v4305_v27 = vadd.f32 %v4303_v16, %v4295_v28 }
0xc4aa   :  { %5319 = vtanh.f32 %v4305_v27 }
0xc4b4   :  { %v5320_v17 = vpop.eup %5319 }
0xc4b5   :  { %4308 = vrot.lane.b32.xlu0 %v5320_v17, %s5393_s11 }
0xc527   :  { %v4309_v31 = vpop.permute.xlu0 %4308 }
0xc528   :  { %v4311_v21 = vmul.f32 %v5318_v10, %v4309_v31  ;;  %v4376_v10 = vld [vmem:[#allocation2 + $0x310] sm:$0xff] }
0xc52a   :  { %4315 = vperm.xlu1 %4743, %v4311_v21  }
0xc5a9   :  { %v4316_v36 = vpop.permute.xlu1 %4315 }
0xc5aa   :  { %v4318_v35 = vmul.f32 %v6290_v24, %v4316_v36 }
0xc5ac   :  { %v4319_v25 = vadd.f32 %v4318_v35, %v4312_v22  ;;  %v1133_v35 = vpop.f32.mrb[98].mxu1 }
0xc5ae   :  { %v4320_v26 = vmul.f32 1.442695, %v4319_v25  ;;  %v1134_v25 = vadd.f32 %v6283_v19, %v1133_v35 }
0xc5b0   :  { %5321 = vpow2.f32 %v4320_v26  ;;  %v1135_v26 = vpop.f32.mrb[99].mxu1  ;;  %1237 = vst.msk [vmem:[#allocation2 + $0x318] sm:$0xff] %vm1137_vm2, %v1134_v25 }
0xc5ba   :  { %v5322_v42 = vpop.eup %5321 }
0xc5bb   :  { %v4322_v40 = vadd.f32 1.0, %v5322_v42 }
0xc5bd   :  { %5323 = vrcp.f32 %v4322_v40 }
0xc5c7   :  { %v5324_v29 = vpop.eup %5323 }
0xc5c8   :  { %v4325_v30 = vmul.f32 2.0, %v5324_v29  ;;  %v4327_v37 = vmul.f32 %v5324_v29, %v4305_v27 }
0xc5ca   :  { %v4656_v48 = vadd.f32 -1.0, %v4325_v30 }
0xc5cc   :  { %4329 = vrot.lane.b32.xlu0 %v4656_v48, %s5390_s9 }
0xc63e   :  { %v4330_v47 = vpop.permute.xlu0 %4329 }
0xc63f   :  { %v4332_v33 = vmul.f32 %v5324_v29, %v4330_v47 }
0xc641   :  { %4334 = vrot.lane.b32.xlu1 %v4332_v33, %s5391_s10 }
0xc6b3   :  { %v4335_v38 = vpop.permute.xlu1 %4334 }
0xc6b4   :  { %v4337_v39 = vadd.f32 %v4335_v38, %v4327_v37 }
0xc6b6   :  { %5325 = vtanh.f32 %v4337_v39 }
0xc6c0   :  { %v5326_v41 = vpop.eup %5325 }
0xc6c1   :  { %4340 = vrot.lane.b32.xlu0 %v5326_v41, %s5393_s11 }
0xc733   :  { %v4341_v46 = vpop.permute.xlu0 %4340 }
0xc734   :  { %v4343_v49 = vmul.f32 %v5324_v29, %v4341_v46  ;;  %v4408_v29 = vld [vmem:[#allocation2 + $0x318] sm:$0xff] }
0xc736   :  { %4347 = vperm.xlu1 %4743, %v4343_v49  }
0xc7b5   :  { %v4348_v52 = vpop.permute.xlu1 %4347 }
0xc7b6   :  { %v4350_v53 = vmul.f32 %v6290_v24, %v4348_v52 }
0xc7b8   :  { %v4351_v54 = vadd.f32 %v4350_v53, %v4344_v50 }
0xc7ba   :  { %v4352_v55 = vmul.f32 1.442695, %v4351_v54 }
0xc7bc   :  { %5327 = vpow2.f32 %v4352_v55 }
0xc7c6   :  { %v5328_v56 = vpop.eup %5327 }
0xc7c7   :  { %v4354_v57 = vadd.f32 1.0, %v5328_v56 }
0xc7c9   :  { %5329 = vrcp.f32 %v4354_v57 }
0xc7d3   :  { %v5330_v58 = vpop.eup %5329 }
0xc7d4   :  { %v4357_v59 = vmul.f32 2.0, %v5330_v58  ;;  %v4359_v1 = vmul.f32 %v5330_v58, %v4337_v39 }
0xc7d6   :  { %v4657_v60 = vadd.f32 -1.0, %v4357_v59 }
0xc7d8   :  { %4361 = vrot.lane.b32.xlu0 %v4657_v60, %s5390_s9 }
0xc84a   :  { %v4362_v61 = vpop.permute.xlu0 %4361 }
0xc84b   :  { %v4364_v62 = vmul.f32 %v5330_v58, %v4362_v61 }
0xc84d   :  { %4366 = vrot.lane.b32.xlu1 %v4364_v62, %s5391_s10 }
0xc8bf   :  { %v4367_v2 = vpop.permute.xlu1 %4366 }
0xc8c0   :  { %v4369_v3 = vadd.f32 %v4367_v2, %v4359_v1 }
0xc8c2   :  { %5331 = vtanh.f32 %v4369_v3 }
0xc8cc   :  { %v5332_v4 = vpop.eup %5331 }
0xc8cd   :  { %4372 = vrot.lane.b32.xlu0 %v5332_v4, %s5393_s11 }
0xc93f   :  { %v4373_v8 = vpop.permute.xlu0 %4372 }
0xc940   :  { %v4375_v9 = vmul.f32 %v5330_v58, %v4373_v8 }
0xc942   :  { %4379 = vperm.xlu1 %4743, %v4375_v9  }
0xc9c1   :  { %v4380_v11 = vpop.permute.xlu1 %4379 }
0xc9c2   :  { %v4382_v12 = vmul.f32 %v6290_v24, %v4380_v11 }
0xc9c4   :  { %v4383_v23 = vadd.f32 %v4382_v12, %v4376_v10 }
0xc9c6   :  { %v4384_v13 = vmul.f32 1.442695, %v4383_v23 }
0xc9c8   :  { %5333 = vpow2.f32 %v4384_v13 }
0xc9d2   :  { %v5334_v14 = vpop.eup %5333 }
0xc9d3   :  { %v4386_v15 = vadd.f32 1.0, %v5334_v14 }
0xc9d5   :  { %5335 = vrcp.f32 %v4386_v15 }
0xc9df   :  { %v5336_v28 = vpop.eup %5335 }
0xc9e0   :  { %v4389_v16 = vmul.f32 2.0, %v5336_v28  ;;  %v4391_v31 = vmul.f32 %v5336_v28, %v4369_v3 }
0xc9e2   :  { %v4658_v27 = vadd.f32 -1.0, %v4389_v16 }
0xc9e4   :  { %4393 = vrot.lane.b32.xlu0 %v4658_v27, %s5390_s9 }
0xca56   :  { %v4394_v17 = vpop.permute.xlu0 %4393 }
0xca57   :  { %v4396_v18 = vmul.f32 %v5336_v28, %v4394_v17 }
0xca59   :  { %4398 = vrot.lane.b32.xlu1 %v4396_v18, %s5391_s10 }
0xcacb   :  { %v4399_v21 = vpop.permute.xlu1 %4398 }
0xcacc   :  { %v4401_v22 = vadd.f32 %v4399_v21, %v4391_v31 }
0xcace   :  { %5337 = vtanh.f32 %v4401_v22 }
0xcad8   :  { %v5338_v36 = vpop.eup %5337 }
0xcad9   :  { %4404 = vrot.lane.b32.xlu0 %v5338_v36, %s5393_s11 }
0xcb4b   :  { %v4405_v42 = vpop.permute.xlu0 %4404 }
0xcb4c   :  { %v4407_v40 = vmul.f32 %v5336_v28, %v4405_v42 }
0xcb4e   :  { %4411 = vperm.xlu1 %4743, %v4407_v40  }
0xcbcd   :  { %v4412_v30 = vpop.permute.xlu1 %4411 }
0xcbce   :  { %v4414_v48 = vmul.f32 %v6290_v24, %v4412_v30 }
0xcbd0   :  { %v4415_v47 = vadd.f32 %v4414_v48, %v4408_v29 }
0xcbd2   :  { %v4416_v33 = vmul.f32 1.442695, %v4415_v47 }
0xcbd4   :  { %5339 = vpow2.f32 %v4416_v33 }
0xcbde   :  { %v5340_v34 = vpop.eup %5339 }
0xcbdf   :  { %v4418_v51 = vadd.f32 1.0, %v5340_v34 }
0xcbe1   :  { %5341 = vrcp.f32 %v4418_v51 }
0xcbeb   :  { %v5342_v37 = vpop.eup %5341 }
0xcbec   :  { %v4421_v38 = vmul.f32 2.0, %v5342_v37  ;;  %v4423_v43 = vmul.f32 %v5342_v37, %v4401_v22 }
0xcbee   :  { %v4659_v39 = vadd.f32 -1.0, %v4421_v38 }
0xcbf0   :  { %4425 = vrot.lane.b32.xlu0 %v4659_v39, %s5390_s9 }
0xcc62   :  { %v4426_v19 = vpop.permute.xlu0 %4425 }
0xcc63   :  { %v4428_v41 = vmul.f32 %v5342_v37, %v4426_v19 }
0xcc65   :  { %4430 = vrot.lane.b32.xlu1 %v4428_v41, %s5391_s10 }
0xccd7   :  { %v4431_v44 = vpop.permute.xlu1 %4430 }
0xccd8   :  { %v4433_v45 = vadd.f32 %v4431_v44, %v4423_v43 }
0xccda   :  { %5343 = vtanh.f32 %v4433_v45 }
0xcce4   :  { %v5344_v24 = vpop.eup %5343 }
0xcce5   :  { %4436 = vrot.lane.b32.xlu0 %v5344_v24, %s5393_s11 }
0xcd57   :  { %v4437_v46 = vpop.permute.xlu0 %4436 }
0xcd58   :  { %v4439_v49 = vmul.f32 %v5342_v37, %v4437_v46 }
0xcd5a   :  { %v4660_v50 = vmul.f32 -1.442695, %v4439_v49 }
0xcd5c   :  { %5345 = vpow2.f32 %v4660_v50 }
0xcd66   :  { %v5346_v52 = vpop.eup %5345 }
0xcd67   :  { %v4443_v53 = vadd.f32 1.0, %v5346_v52 }
0xcd69   :  { %5347 = vrcp.f32 %v4443_v53 }
0xcd73   :  { %v5348_v54 = vpop.eup %5347 }
0xcd74   :  { %4447 = vrot.lane.b32.xlu1 %v5348_v54, %s5394_s2 }
0xcde6   :  { %v4448_v55 = vpop.permute.xlu1 %4447 }
0xcde7   :  { %4451 = vst.msk [vmem:[%s6324_s4] sm:$0xff] %vm4450_vm3, %v4448_v55 }
0xcde8   :  { %4456 = vsyncpa [#allocation4], 1 }

</bundles_post_ra>
